<compile_context>
chip_gen: v7x
topology: tpu7x:2x2x1
jax: 0.10.0
libtpu: 0.0.40
codegen_flags: <defaults>
</compile_context>

<pallas_src>
import functools

import jax
import jax.numpy as jnp
from jax import lax
from jax.experimental import pallas as pl
from jax.experimental.pallas import tpu as pltpu

BN_EPS = 1e-5
VMEM_LIMIT_BYTES = 32 * 1024 * 1024   # safe on v5e/v6e/v7x; the tiles below stay far under it


def _round_up(x, m):
    return (x + m - 1) // m * m


# ---------------------------------------------------------------------------
# Pass A: conv3x3 as 9 shifted bf16 MXU matmuls over a row-halo slab
#         (+ optional fused HoyerBiAct of the previous stage on the input)
#         + fused per-channel BN sum / sum-of-squares partials
# ---------------------------------------------------------------------------
def _make_conv_stats_kernel(*, block_rows, width, hw, cout_p, halo_rows,
                            m_valid, mask_tail, binarize, if_spike):
    B = block_rows

    def kernel(*refs):
        if binarize:
            xlo_ref, xhi_ref, w_ref, thr_ref, conv_ref, sum_ref, sumsq_ref, slab = refs
        else:
            xlo_ref, xhi_ref, w_ref, conv_ref, sum_ref, sumsq_ref, slab = refs
            thr_ref = None

        # ---- assemble the (B + halo_rows, Cin_p) halo slab in VMEM scratch ----
        lo = xlo_ref[...]                    # rows [i*B, (i+1)*B) of the halo-padded input
        hi = xhi_ref[0:halo_rows, :]         # first halo_rows rows of the next block
        if binarize:
            # fused HoyerBiAct of the previous stage (elementwise, so it commutes with the
            # conv taps); recomputed only on the small halo overlap.
            t = thr_ref[0, 0]
            if if_spike:
                lo = jnp.where(lo.astype(jnp.float32) >= t, 1.0, 0.0).astype(jnp.bfloat16)
                hi = jnp.where(hi.astype(jnp.float32) >= t, 1.0, 0.0).astype(jnp.bfloat16)
            else:
                lo32 = lo.astype(jnp.float32)
                hi32 = hi.astype(jnp.float32)
                lo = jnp.where(lo32 >= t, lo32, 0.0).astype(jnp.bfloat16)
                hi = jnp.where(hi32 >= t, hi32, 0.0).astype(jnp.bfloat16)
        slab[0:B, :] = lo
        slab[B:B + halo_rows, :] = hi

        # ---- per-output-row image-boundary masks (taps that fall into conv padding) ----
        r = pl.program_id(0) * B + lax.broadcasted_iota(jnp.int32, (B, 1), 0)
        rw = r % width                                        # w coordinate
        rhw = r % hw                                          # h*W + w within one image
        not_top = (rhw >= width).astype(jnp.bfloat16)         # h > 0
        not_bot = (rhw < hw - width).astype(jnp.bfloat16)     # h < H-1
        not_left = (rw >= 1).astype(jnp.bfloat16)             # w > 0
        not_right = (rw < width - 1).astype(jnp.bfloat16)     # w < W-1

        def tap_mask(dy, dx):
            m = None
            if dy == 0:
                m = not_top
            elif dy == 2:
                m = not_bot
            if dx == 0:
                m = not_left if m is None else m * not_left
            elif dx == 2:
                m = not_right if m is None else m * not_right
            return m

        # ---- 9 shifted, accumulating matmuls (MXU; mask multiplies are VPU filler) ----
        acc = jnp.zeros((B, cout_p), jnp.float32)
        for dy in range(3):
            for dx in range(3):
                off = dy * width + dx
                xin = slab[off:off + B, :]
                m = tap_mask(dy, dx)
                if m is not None:
                    xin = xin * m
                acc = acc + jnp.dot(xin, w_ref[dy * 3 + dx],
                                    preferred_element_type=jnp.float32)

        if mask_tail:
            # zero rows beyond N*H*W so BN stats stay exact and the host-side Hoyer padding
            # correction is analytic (only the last tile actually has such rows)
            acc = jnp.where(r < m_valid, acc, 0.0)

        conv_ref[...] = acc.astype(conv_ref.dtype)

        # ---- fused sum / sum-of-squares partials: single pass over the (spilled) acc ----
        ps = acc[0:8, :]
        pss = ps * ps
        for rr in range(8, B, 8):
            x8 = acc[rr:rr + 8, :]
            ps = ps + x8
            pss = pss + x8 * x8
        sum_ref[...] = ps
        sumsq_ref[...] = pss

    return kernel


# ---------------------------------------------------------------------------
# Pass B: folded BN (one FMA, 1/thr pre-folded) + residual + clamp + Hoyer partials
# ---------------------------------------------------------------------------
def _make_bn_clip_kernel(*, block_rows, add_residual):
    B = block_rows

    def kernel(*refs):
        if add_residual:
            conv_ref, a_ref, b_ref, invthr_ref, res_ref, c_ref, num_ref, den_ref = refs
        else:
            conv_ref, a_ref, b_ref, c_ref, num_ref, den_ref = refs

        y = conv_ref[...].astype(jnp.float32) * a_ref[...] + b_ref[...]
        if add_residual:
            y = y + res_ref[...].astype(jnp.float32) * invthr_ref[0, 0]
        c = jnp.clip(y, 0.0, 1.0)               # clamp(x / threshold, 0, 1)
        c_ref[...] = c.astype(c_ref.dtype)

        # fused Hoyer partials (c >= 0 so |c| == c), accumulated in f32
        ps = c[0:8, :]
        pss = ps * ps
        for rr in range(8, B, 8):
            x8 = c[rr:rr + 8, :]
            ps = ps + x8
            pss = pss + x8 * x8
        num_ref[...] = pss
        den_ref[...] = ps

    return kernel


# ---------------------------------------------------------------------------
# Pass C: spike thresholding against the global Hoyer threshold
# ---------------------------------------------------------------------------
def _make_spike_kernel(if_spike):
    def kernel(c_ref, thr_ref, out_ref):
        c = c_ref[...].astype(jnp.float32)
        t = thr_ref[0, 0]
        if if_spike:
            out_ref[...] = jnp.where(c >= t, 1.0, 0.0).astype(out_ref.dtype)
        else:
            out_ref[...] = jnp.where(c >= t, c, 0.0).astype(out_ref.dtype)
    return kernel


def _conv_bn_stage(x_halo, w_taps, gamma, beta, threshold, *, width, hw, m_valid, m_pad,
                   block_rows, residual=None, input_spike_thr=None, input_if_spike=True,
                   x_thr_scale=1.0, eps=BN_EPS):
    """conv3x3 + training-mode BN + clamp(x/thr, 0, 1) (+ residual) for one stage.

    x_halo : ((num_tiles+1)*block_rows, Cin_p) bf16; rows = [width+1 zero halo | data | zeros]
    w_taps : (9, Cin_p, Cout_p) bf16, tap index t = ky*3 + kx
    Returns (c, spike_thr): c = clipped pre-activation (m_pad, Cout_p) bf16,
    spike_thr = x_thr_scale * sum(c^2)/sum(c) over the valid rows.
    """
    B = block_rows
    num_tiles = m_pad // B
    cin_p = x_halo.shape[1]
    cout_p = w_taps.shape[2]
    halo_rows = _round_up(2 * width + 2, 8)
    assert halo_rows <= B, "block_rows must cover the 3x3 row halo"
    binarize = input_spike_thr is not None
    add_residual = residual is not None
    mask_tail = (int(m_valid) != int(m_pad))

    cparams = pltpu.CompilerParams(
        dimension_semantics=("parallel",),        # independent M tiles (dual-TC on v7x)
        vmem_limit_bytes=VMEM_LIMIT_BYTES,
    )

    # ---------------- pass A: halo conv + BN partials ----------------
    kernel_a = _make_conv_stats_kernel(
        block_rows=B, width=width, hw=hw, cout_p=cout_p, halo_rows=halo_rows,
        m_valid=int(m_valid), mask_tail=mask_tail, binarize=binarize, if_spike=input_if_spike)
    in_specs_a = [pl.BlockSpec((B, cin_p), lambda i: (i, 0)),        # current block
                  pl.BlockSpec((B, cin_p), lambda i: (i + 1, 0)),    # next block (halo source)
                  pl.BlockSpec((9, cin_p, cout_p), lambda i: (0, 0, 0))]
    args_a = [x_halo, x_halo, w_taps]
    if binarize:
        in_specs_a.append(pl.BlockSpec(memory_space=pltpu.MemorySpace.SMEM))
        args_a.append(jnp.reshape(input_spike_thr.astype(jnp.float32), (1, 1)))

    conv_out, psum, psumsq = pl.pallas_call(
        kernel_a,
        out_shape=(jax.ShapeDtypeStruct((m_pad, cout_p), jnp.bfloat16),
                   jax.ShapeDtypeStruct((num_tiles * 8, cout_p), jnp.float32),
                   jax.ShapeDtypeStruct((num_tiles * 8, cout_p), jnp.float32)),
        grid=(num_tiles,),
        in_specs=in_specs_a,
        out_specs=(pl.BlockSpec((B, cout_p), lambda i: (i, 0)),
                   pl.BlockSpec((8, cout_p), lambda i: (i, 0)),
                   pl.BlockSpec((8, cout_p), lambda i: (i, 0))),
        scratch_shapes=[pltpu.VMEM((B + halo_rows, cin_p), jnp.bfloat16)],
        compiler_params=cparams,
        cost_estimate=pl.CostEstimate(
            flops=2 * 9 * m_pad * cin_p * cout_p, transcendentals=0,
            bytes_accessed=2 * m_pad * cin_p * 2 + 9 * cin_p * cout_p * 2 + m_pad * cout_p * 2),
    )(*args_a)

    # ------------- combine 1 (tiny XLA): global BN stats -> folded scale/shift -------------
    inv_m = 1.0 / float(m_valid)
    s = jnp.sum(psum, axis=0)
    ss = jnp.sum(psumsq, axis=0)
    mean = s * inv_m
    var = jnp.maximum(ss * inv_m - mean * mean, 0.0)       # biased variance (training BN)
    inv_thr = 1.0 / jnp.asarray(threshold, jnp.float32)
    a0 = gamma.astype(jnp.float32) * lax.rsqrt(var + eps)
    a_vec = a0 * inv_thr                                    # 1/threshold folded in
    b_vec = (beta.astype(jnp.float32) - mean * a0) * inv_thr

    # ---------------- pass B: normalize + residual + clamp + Hoyer partials ----------------
    kernel_b = _make_bn_clip_kernel(block_rows=B, add_residual=add_residual)
    in_specs_b = [pl.BlockSpec((B, cout_p), lambda i: (i, 0)),
                  pl.BlockSpec((1, cout_p), lambda i: (0, 0)),
                  pl.BlockSpec((1, cout_p), lambda i: (0, 0))]
    args_b = [conv_out, a_vec.reshape(1, cout_p), b_vec.reshape(1, cout_p)]
    if add_residual:
        in_specs_b.append(pl.BlockSpec(memory_space=pltpu.MemorySpace.SMEM))
        args_b.append(jnp.reshape(inv_thr, (1, 1)))
        in_specs_b.append(pl.BlockSpec((B, cout_p), lambda i: (i, 0)))
        args_b.append(residual)

    c_arr, pnum, pden = pl.pallas_call(
        kernel_b,
        out_shape=(jax.ShapeDtypeStruct((m_pad, cout_p), jnp.bfloat16),
                   jax.ShapeDtypeStruct((num_tiles * 8, cout_p), jnp.float32),
                   jax.ShapeDtypeStruct((num_tiles * 8, cout_p), jnp.float32)),
        grid=(num_tiles,),
        in_specs=in_specs_b,
        out_specs=(pl.BlockSpec((B, cout_p), lambda i: (i, 0)),
                   pl.BlockSpec((8, cout_p), lambda i: (i, 0)),
                   pl.BlockSpec((8, cout_p), lambda i: (i, 0))),
        compiler_params=cparams,
        cost_estimate=pl.CostEstimate(
            flops=8 * m_pad * cout_p, transcendentals=0,
            bytes_accessed=m_pad * cout_p * (4 + (2 if add_residual else 0))),
    )(*args_b)

    # ------------- combine 2 (tiny XLA): global Hoyer threshold -------------
    num = jnp.sum(pnum)
    den = jnp.sum(pden)
    if mask_tail:
        # Padding rows have conv == 0 (zeroed in pass A) and residual == 0, so they each
        # contribute clamp(b_vec, 0, 1) per channel; subtract analytically (no in-kernel mask).
        c_pad = jnp.clip(b_vec, 0.0, 1.0)
        n_pad = float(int(m_pad) - int(m_valid))
        num = num - n_pad * jnp.sum(c_pad * c_pad)
        den = den - n_pad * jnp.sum(c_pad)
    # den == 0 (everything clamped to zero): the reference's 0/0=NaN comparison yields an
    # all-zero spike map; +inf reproduces that without NaNs.
    hoyer_thr = jnp.where(den > 0.0, num / jnp.maximum(den, 1e-12), jnp.inf)
    spike_thr = jnp.float32(x_thr_scale) * hoyer_thr
    return c_arr, spike_thr


def _spike_pass(c_arr, spike_thr, *, block_rows, if_spike=True):
    m_pad, cout_p = c_arr.shape
    B = block_rows
    num_tiles = m_pad // B
    cparams = pltpu.CompilerParams(dimension_semantics=("parallel",),
                                   vmem_limit_bytes=VMEM_LIMIT_BYTES)
    return pl.pallas_call(
        _make_spike_kernel(bool(if_spike)),
        out_shape=jax.ShapeDtypeStruct((m_pad, cout_p), jnp.bfloat16),
        grid=(num_tiles,),
        in_specs=[pl.BlockSpec((B, cout_p), lambda i: (i, 0)),
                  pl.BlockSpec(memory_space=pltpu.MemorySpace.SMEM)],
        out_specs=pl.BlockSpec((B, cout_p), lambda i: (i, 0)),
        compiler_params=cparams,
        cost_estimate=pl.CostEstimate(flops=2 * m_pad * cout_p, transcendentals=0,
                                      bytes_accessed=2 * m_pad * cout_p * 2),
    )(c_arr, jnp.reshape(spike_thr.astype(jnp.float32), (1, 1)))


# ---------------------------------------------------------------------------
# Host-side glue (XLA): layout, halo zero-padding, weight repack
# ---------------------------------------------------------------------------
def basic_block_double_forward(x_nchw, params, *, x_thr_scale=1.0, if_spike=True,
                               block_rows=512):
    """Forward of BasicBlock_double (stride=1, downsample=None). Input/output are NCHW f32."""
    N, Cin, H, W = x_nchw.shape
    planes = params["w1"].shape[0]
    assert Cin == planes, "downsample=None path requires inplanes == planes"
    M = N * H * W
    HW = H * W

    halo_rows = _round_up(2 * W + 2, 8)
    B = max(8, _round_up(int(block_rows), 8))
    B = min(B, _round_up(M, 8))
    B = max(B, halo_rows)                       # the 3x3 row halo must fit inside one block
    num_tiles = -(-M // B)
    M_pad = num_tiles * B
    Cp = _round_up(planes, 128)                 # lane-dense channel padding

    x_flat = jnp.transpose(x_nchw, (0, 2, 3, 1)).reshape(M, Cin)

    def to_halo(rows_bf16):
        # [W+1 zero halo | data | zeros] -> (num_tiles + 1) * B rows, so the "next block"
        # stream (block i+1) used as the halo source is always in range.
        total = (num_tiles + 1) * B
        return jnp.pad(rows_bf16, ((W + 1, total - (W + 1) - rows_bf16.shape[0]), (0, 0)))

    def prep_weight(w_oihw):
        cout, cin = w_oihw.shape[0], w_oihw.shape[1]
        wt = jnp.transpose(w_oihw, (2, 3, 1, 0)).reshape(9, cin, cout)   # tap t = ky*3 + kx
        wt = jnp.pad(wt, ((0, 0), (0, Cp - cin), (0, Cp - cout)))
        return wt.astype(jnp.bfloat16)

    # ----- stage 1: conv1 -> bn1 -> clamp (act1's spike is fused into stage-2's conv) -----
    x1 = to_halo(jnp.pad(x_flat, ((0, 0), (0, Cp - Cin))).astype(jnp.bfloat16))
    g1 = jnp.pad(params["gamma1"].astype(jnp.float32), (0, Cp - planes))
    b1 = jnp.pad(params["beta1"].astype(jnp.float32), (0, Cp - planes))
    c1, sthr1 = _conv_bn_stage(x1, prep_weight(params["w1"]), g1, b1, params["thr1"],
                               width=W, hw=HW, m_valid=M, m_pad=M_pad, block_rows=B,
                               x_thr_scale=x_thr_scale)

    # ----- stage 2: conv2(act1(c1)) -> bn2 -> (+ residual) -> act2 -----
    g2 = jnp.pad(params["gamma2"].astype(jnp.float32), (0, Cp - planes))
    b2 = jnp.pad(params["beta2"].astype(jnp.float32), (0, Cp - planes))
    residual = jnp.pad(x_flat.astype(jnp.bfloat16), ((0, M_pad - M), (0, Cp - Cin)))
    c2, sthr2 = _conv_bn_stage(to_halo(c1), prep_weight(params["w2"]), g2, b2, params["thr2"],
                               width=W, hw=HW, m_valid=M, m_pad=M_pad, block_rows=B,
                               residual=residual, input_spike_thr=sthr1,
                               input_if_spike=if_spike, x_thr_scale=x_thr_scale)
    spikes = _spike_pass(c2, sthr2, block_rows=B, if_spike=if_spike)

    out = spikes[:M, :planes].astype(jnp.float32).reshape(N, H, W, planes)
    return jnp.transpose(out, (0, 3, 1, 2))     # back to NCHW


# ---------------------------------------------------------------------------
# Pure-JAX reference (mirrors the kernel's bf16 storage points for a tight comparison)
# ---------------------------------------------------------------------------
def _reference_forward(x_nchw, params, *, x_thr_scale=1.0, if_spike=True):
    def conv(x, w):
        return lax.conv_general_dilated(
            x.astype(jnp.bfloat16), w.astype(jnp.bfloat16), (1, 1), ((1, 1), (1, 1)),
            dimension_numbers=("NCHW", "OIHW", "NCHW"),
            preferred_element_type=jnp.float32)

    def bn(y, g, b):
        mean = jnp.mean(y, axis=(0, 2, 3), keepdims=True)
        var = jnp.mean(jnp.square(y - mean), axis=(0, 2, 3), keepdims=True)
        a = g.reshape(1, -1, 1, 1) * lax.rsqrt(var + BN_EPS)
        y_q = y.astype(jnp.bfloat16).astype(jnp.float32)      # kernel stores conv in bf16
        return y_q * a + (b.reshape(1, -1, 1, 1) - mean * a)

    def act(y, thr):
        c = jnp.clip(y / thr, 0.0, 1.0)
        num = jnp.sum(c * c)
        den = jnp.sum(c)
        h = jnp.where(den > 0.0, num / jnp.maximum(den, 1e-12), jnp.inf)
        t = jnp.float32(x_thr_scale) * h
        c_q = c.astype(jnp.bfloat16).astype(jnp.float32)      # kernel stores c in bf16
        if if_spike:
            return jnp.where(c_q >= t, 1.0, 0.0)
        return jnp.where(c_q >= t, c_q, 0.0)

    out = act(bn(conv(x_nchw, params["w1"]), params["gamma1"], params["beta1"]), params["thr1"])
    res = x_nchw.astype(jnp.bfloat16).astype(jnp.float32)     # kernel adds a bf16 residual
    out = bn(conv(out, params["w2"]), params["gamma2"], params["beta2"]) + res
    return act(out, params["thr2"])


if __name__ == "__main__":
    key = jax.random.PRNGKey(0)
    ks = jax.random.split(key, 8)

    # small shapes: batch=2, inplanes=planes=8, spatial 16x16, stride=1 (downsample=None)
    N, C, H, W = 2, 8, 16, 16
    planes = 8

    x = jax.random.normal(ks[0], (N, C, H, W), jnp.float32)

    params = dict(
        w1=0.2 * jax.random.normal(ks[1], (planes, C, 3, 3), jnp.float32),       # conv1.weight
        w2=0.2 * jax.random.normal(ks[2], (planes, planes, 3, 3), jnp.float32),  # conv2.weight
        gamma1=1.0 + 0.1 * jax.random.normal(ks[3], (planes,), jnp.float32),     # bn1.weight
        beta1=0.1 * jax.random.normal(ks[4], (planes,), jnp.float32),            # bn1.bias
        gamma2=1.0 + 0.1 * jax.random.normal(ks[5], (planes,), jnp.float32),     # bn2.weight
        beta2=0.1 * jax.random.normal(ks[6], (planes,), jnp.float32),            # bn2.bias
        thr1=jnp.float32(1.0),  # act1.threshold (HoyerBiAct default init)
        thr2=jnp.float32(1.0),  # act2.threshold
    )

    # block_rows=128 -> a 4-step grid at this toy size, exercising the tiled multi-pass
    # structure, the halo-conv boundary masks, and the cross-tile BN / Hoyer combines.
    fwd = jax.jit(functools.partial(basic_block_double_forward, block_rows=128))
    out = jax.block_until_ready(fwd(x, params))

    assert out.shape == (N, planes, H, W), out.shape
    assert out.dtype == jnp.float32
    # spiking output must be binary
    assert bool(jnp.all((out == 0.0) | (out == 1.0)))

    # cross-check against a pure-JAX reference (a few borderline spikes may flip under bf16)
    ref = _reference_forward(x, params)
    agreement = float(jnp.mean((out == ref).astype(jnp.float32)))
    assert agreement >= 0.95, agreement

    print("KERNEL_OK")
</pallas_src>

<mosaic_0001>
module attributes {stable_mosaic.version = 11 : i64} {
  func.func @kernel(%arg0: i32, %arg1: memref<128x128xbf16, #tpu.memory_space<vmem>>, %arg2: memref<128x128xbf16, #tpu.memory_space<vmem>>, %arg3: memref<9x128x128xbf16, #tpu.memory_space<vmem>>, %arg4: memref<128x128xbf16, #tpu.memory_space<vmem>>, %arg5: memref<8x128xf32, #tpu.memory_space<vmem>>, %arg6: memref<8x128xf32, #tpu.memory_space<vmem>>, %arg7: memref<168x128xbf16, #tpu.memory_space<vmem>>) attributes {dimension_semantics = [#tpu.dimension_semantics<parallel>], iteration_bounds = array<i64: 4>, scalar_prefetch = 0 : i64, scratch_operands = 1 : i64, tpu.core_type = #tpu.core_type<tc>, window_params = [{transform_indices = @transform_0, window_bounds = array<i64: 128, 128>}, {transform_indices = @transform_1, window_bounds = array<i64: 128, 128>}, {pipeline_mode = #tpu.pipeline_mode<synchronous>, transform_indices = @transform_2, window_bounds = array<i64: 9, 128, 128>}, {transform_indices = @transform_3, window_bounds = array<i64: 128, 128>}, {transform_indices = @transform_4, window_bounds = array<i64: 8, 128>}, {transform_indices = @transform_5, window_bounds = array<i64: 8, 128>}]} {
    %c0 = arith.constant 0 : index
    %c0_0 = arith.constant 0 : index
    %0 = vector.load %arg1[%c0, %c0_0] : memref<128x128xbf16, #tpu.memory_space<vmem>>, vector<128x128xbf16>
    %c0_1 = arith.constant 0 : index
    %c0_2 = arith.constant 0 : index
    %1 = vector.load %arg2[%c0_1, %c0_2] : memref<128x128xbf16, #tpu.memory_space<vmem>>, vector<40x128xbf16>
    %c0_3 = arith.constant 0 : index
    %c0_4 = arith.constant 0 : index
    %2 = vector.load %arg7[%c0_3, %c0_4] : memref<168x128xbf16, #tpu.memory_space<vmem>>, vector<128x128xbf16>
    tpu.vector_store %arg7[%c0_3, %c0_4], %0 {strides = array<i32>} : memref<168x128xbf16, #tpu.memory_space<vmem>>, vector<128x128xbf16>,
    %c128 = arith.constant 128 : index
    %c0_5 = arith.constant 0 : index
    %3 = vector.load %arg7[%c128, %c0_5] : memref<168x128xbf16, #tpu.memory_space<vmem>>, vector<40x128xbf16>
    tpu.vector_store %arg7[%c128, %c0_5], %1 {strides = array<i32>} : memref<168x128xbf16, #tpu.memory_space<vmem>>, vector<40x128xbf16>,
    %c128_i32 = arith.constant 128 : i32
    %4 = arith.muli %arg0, %c128_i32 : i32
    %5 = tpu.iota {dimensions = array<i32: 0>} : vector<128x1xi32>
    %6 = vector.broadcast %4 : i32 to vector<128x1xi32>
    %7 = arith.addi %6, %5 : vector<128x1xi32>
    %c16_i32 = arith.constant 16 : i32
    %c0_i32 = arith.constant 0 : i32
    %8 = arith.cmpi eq, %c16_i32, %c0_i32 : i32
    %c1_i32 = arith.constant 1 : i32
    %9 = arith.select %8, %c1_i32, %c16_i32 : i32
    %10 = vector.broadcast %9 : i32 to vector<128x1xi32>
    %11 = arith.remsi %7, %10 : vector<128x1xi32>
    %c0_i32_6 = arith.constant 0 : i32
    %12 = vector.broadcast %c0_i32_6 : i32 to vector<128x1xi32>
    %13 = arith.cmpi ne, %11, %12 : vector<128x1xi32>
    %c0_i32_7 = arith.constant 0 : i32
    %14 = vector.broadcast %c0_i32_7 : i32 to vector<128x1xi32>
    %15 = arith.cmpi slt, %11, %14 : vector<128x1xi32>
    %c0_i32_8 = arith.constant 0 : i32
    %16 = arith.cmpi slt, %9, %c0_i32_8 : i32
    %17 = vector.broadcast %16 : i1 to vector<128x1xi1>
    %18 = vector.broadcast %17 : vector<128x1xi1> to vector<128x1xi1>
    %19 = arith.xori %15, %18 : vector<128x1xi1>
    %20 = arith.andi %19, %13 : vector<128x1xi1>
    %21 = vector.broadcast %9 : i32 to vector<128x1xi32>
    %22 = arith.addi %11, %21 : vector<128x1xi32>
    %23 = arith.select %20, %22, %11 : vector<128x1xi1>, vector<128x1xi32>
    %c256_i32 = arith.constant 256 : i32
    %c0_i32_9 = arith.constant 0 : i32
    %24 = arith.cmpi eq, %c256_i32, %c0_i32_9 : i32
    %c1_i32_10 = arith.constant 1 : i32
    %25 = arith.select %24, %c1_i32_10, %c256_i32 : i32
    %26 = vector.broadcast %25 : i32 to vector<128x1xi32>
    %27 = arith.remsi %7, %26 : vector<128x1xi32>
    %c0_i32_11 = arith.constant 0 : i32
    %28 = vector.broadcast %c0_i32_11 : i32 to vector<128x1xi32>
    %29 = arith.cmpi ne, %27, %28 : vector<128x1xi32>
    %c0_i32_12 = arith.constant 0 : i32
    %30 = vector.broadcast %c0_i32_12 : i32 to vector<128x1xi32>
    %31 = arith.cmpi slt, %27, %30 : vector<128x1xi32>
    %c0_i32_13 = arith.constant 0 : i32
    %32 = arith.cmpi slt, %25, %c0_i32_13 : i32
    %33 = vector.broadcast %32 : i1 to vector<128x1xi1>
    %34 = vector.broadcast %33 : vector<128x1xi1> to vector<128x1xi1>
    %35 = arith.xori %31, %34 : vector<128x1xi1>
    %36 = arith.andi %35, %29 : vector<128x1xi1>
    %37 = vector.broadcast %25 : i32 to vector<128x1xi32>
    %38 = arith.addi %27, %37 : vector<128x1xi32>
    %39 = arith.select %36, %38, %27 : vector<128x1xi1>, vector<128x1xi32>
    %c16_i32_14 = arith.constant 16 : i32
    %40 = vector.broadcast %c16_i32_14 : i32 to vector<128x1xi32>
    %41 = arith.cmpi sge, %39, %40 : vector<128x1xi32>
    %42 = arith.extui %41 : vector<128x1xi1> to vector<128x1xi32>
    %43 = arith.sitofp %42 : vector<128x1xi32> to vector<128x1xf32>
    %44 = arith.truncf %43 : vector<128x1xf32> to vector<128x1xbf16>
    %c240_i32 = arith.constant 240 : i32
    %45 = vector.broadcast %c240_i32 : i32 to vector<128x1xi32>
    %46 = arith.cmpi slt, %39, %45 : vector<128x1xi32>
    %47 = arith.extui %46 : vector<128x1xi1> to vector<128x1xi32>
    %48 = arith.sitofp %47 : vector<128x1xi32> to vector<128x1xf32>
    %49 = arith.truncf %48 : vector<128x1xf32> to vector<128x1xbf16>
    %c1_i32_15 = arith.constant 1 : i32
    %50 = vector.broadcast %c1_i32_15 : i32 to vector<128x1xi32>
    %51 = arith.cmpi sge, %23, %50 : vector<128x1xi32>
    %52 = arith.extui %51 : vector<128x1xi1> to vector<128x1xi32>
    %53 = arith.sitofp %52 : vector<128x1xi32> to vector<128x1xf32>
    %54 = arith.truncf %53 : vector<128x1xf32> to vector<128x1xbf16>
    %c15_i32 = arith.constant 15 : i32
    %55 = vector.broadcast %c15_i32 : i32 to vector<128x1xi32>
    %56 = arith.cmpi slt, %23, %55 : vector<128x1xi32>
    %57 = arith.extui %56 : vector<128x1xi1> to vector<128x1xi32>
    %58 = arith.sitofp %57 : vector<128x1xi32> to vector<128x1xf32>
    %59 = arith.truncf %58 : vector<128x1xf32> to vector<128x1xbf16>
    %cst = arith.constant 0.000000e+00 : f32
    %60 = vector.broadcast %cst : f32 to vector<128x128xf32>
    %c0_16 = arith.constant 0 : index
    %c0_17 = arith.constant 0 : index
    %61 = vector.load %arg7[%c0_16, %c0_17] : memref<168x128xbf16, #tpu.memory_space<vmem>>, vector<128x128xbf16>
    %62 = arith.mulf %44, %54 : vector<128x1xbf16>
    %63 = vector.broadcast %62 : vector<128x1xbf16> to vector<128x128xbf16>
    %64 = arith.mulf %61, %63 : vector<128x128xbf16>
    %c0_18 = arith.constant 0 : index
    %c0_19 = arith.constant 0 : index
    %c0_20 = arith.constant 0 : index
    %65 = vector.load %arg3[%c0_18, %c0_19, %c0_20] : memref<9x128x128xbf16, #tpu.memory_space<vmem>>, vector<1x128x128xbf16>
    %66 = vector.shape_cast %65 : vector<1x128x128xbf16> to vector<128x128xbf16>
    %cst_21 = arith.constant dense<0.000000e+00> : vector<128x128xf32>
    %67 = tpu.matmul %64, %66, %cst_21 {dimension_numbers = #tpu.dot_dimension_numbers<[1], [0], [0], [1], [0, 0, 1, 1], [], []>} : vector<128x128xbf16>, vector<128x128xbf16>, vector<128x128xf32> -> vector<128x128xf32>
    %68 = arith.addf %60, %67 : vector<128x128xf32>
    %c1 = arith.constant 1 : index
    %c0_22 = arith.constant 0 : index
    %69 = vector.load %arg7[%c1, %c0_22] : memref<168x128xbf16, #tpu.memory_space<vmem>>, vector<128x128xbf16>
    %70 = vector.broadcast %44 : vector<128x1xbf16> to vector<128x128xbf16>
    %71 = arith.mulf %69, %70 : vector<128x128xbf16>
    %c1_23 = arith.constant 1 : index
    %c0_24 = arith.constant 0 : index
    %c0_25 = arith.constant 0 : index
    %72 = vector.load %arg3[%c1_23, %c0_24, %c0_25] : memref<9x128x128xbf16, #tpu.memory_space<vmem>>, vector<1x128x128xbf16>
    %73 = vector.shape_cast %72 : vector<1x128x128xbf16> to vector<128x128xbf16>
    %cst_26 = arith.constant dense<0.000000e+00> : vector<128x128xf32>
    %74 = tpu.matmul %71, %73, %cst_26 {dimension_numbers = #tpu.dot_dimension_numbers<[1], [0], [0], [1], [0, 0, 1, 1], [], []>} : vector<128x128xbf16>, vector<128x128xbf16>, vector<128x128xf32> -> vector<128x128xf32>
    %75 = arith.addf %68, %74 : vector<128x128xf32>
    %c2 = arith.constant 2 : index
    %c0_27 = arith.constant 0 : index
    %76 = vector.load %arg7[%c2, %c0_27] : memref<168x128xbf16, #tpu.memory_space<vmem>>, vector<128x128xbf16>
    %77 = arith.mulf %44, %59 : vector<128x1xbf16>
    %78 = vector.broadcast %77 : vector<128x1xbf16> to vector<128x128xbf16>
    %79 = arith.mulf %76, %78 : vector<128x128xbf16>
    %c2_28 = arith.constant 2 : index
    %c0_29 = arith.constant 0 : index
    %c0_30 = arith.constant 0 : index
    %80 = vector.load %arg3[%c2_28, %c0_29, %c0_30] : memref<9x128x128xbf16, #tpu.memory_space<vmem>>, vector<1x128x128xbf16>
    %81 = vector.shape_cast %80 : vector<1x128x128xbf16> to vector<128x128xbf16>
    %cst_31 = arith.constant dense<0.000000e+00> : vector<128x128xf32>
    %82 = tpu.matmul %79, %81, %cst_31 {dimension_numbers = #tpu.dot_dimension_numbers<[1], [0], [0], [1], [0, 0, 1, 1], [], []>} : vector<128x128xbf16>, vector<128x128xbf16>, vector<128x128xf32> -> vector<128x128xf32>
    %83 = arith.addf %75, %82 : vector<128x128xf32>
    %c16 = arith.constant 16 : index
    %c0_32 = arith.constant 0 : index
    %84 = vector.load %arg7[%c16, %c0_32] : memref<168x128xbf16, #tpu.memory_space<vmem>>, vector<128x128xbf16>
    %85 = vector.broadcast %54 : vector<128x1xbf16> to vector<128x128xbf16>
    %86 = arith.mulf %84, %85 : vector<128x128xbf16>
    %c3 = arith.constant 3 : index
    %c0_33 = arith.constant 0 : index
    %c0_34 = arith.constant 0 : index
    %87 = vector.load %arg3[%c3, %c0_33, %c0_34] : memref<9x128x128xbf16, #tpu.memory_space<vmem>>, vector<1x128x128xbf16>
    %88 = vector.shape_cast %87 : vector<1x128x128xbf16> to vector<128x128xbf16>
    %cst_35 = arith.constant dense<0.000000e+00> : vector<128x128xf32>
    %89 = tpu.matmul %86, %88, %cst_35 {dimension_numbers = #tpu.dot_dimension_numbers<[1], [0], [0], [1], [0, 0, 1, 1], [], []>} : vector<128x128xbf16>, vector<128x128xbf16>, vector<128x128xf32> -> vector<128x128xf32>
    %90 = arith.addf %83, %89 : vector<128x128xf32>
    %c17 = arith.constant 17 : index
    %c0_36 = arith.constant 0 : index
    %91 = vector.load %arg7[%c17, %c0_36] : memref<168x128xbf16, #tpu.memory_space<vmem>>, vector<128x128xbf16>
    %c4 = arith.constant 4 : index
    %c0_37 = arith.constant 0 : index
    %c0_38 = arith.constant 0 : index
    %92 = vector.load %arg3[%c4, %c0_37, %c0_38] : memref<9x128x128xbf16, #tpu.memory_space<vmem>>, vector<1x128x128xbf16>
    %93 = vector.shape_cast %92 : vector<1x128x128xbf16> to vector<128x128xbf16>
    %cst_39 = arith.constant dense<0.000000e+00> : vector<128x128xf32>
    %94 = tpu.matmul %91, %93, %cst_39 {dimension_numbers = #tpu.dot_dimension_numbers<[1], [0], [0], [1], [0, 0, 1, 1], [], []>} : vector<128x128xbf16>, vector<128x128xbf16>, vector<128x128xf32> -> vector<128x128xf32>
    %95 = arith.addf %90, %94 : vector<128x128xf32>
    %c18 = arith.constant 18 : index
    %c0_40 = arith.constant 0 : index
    %96 = vector.load %arg7[%c18, %c0_40] : memref<168x128xbf16, #tpu.memory_space<vmem>>, vector<128x128xbf16>
    %97 = vector.broadcast %59 : vector<128x1xbf16> to vector<128x128xbf16>
    %98 = arith.mulf %96, %97 : vector<128x128xbf16>
    %c5 = arith.constant 5 : index
    %c0_41 = arith.constant 0 : index
    %c0_42 = arith.constant 0 : index
    %99 = vector.load %arg3[%c5, %c0_41, %c0_42] : memref<9x128x128xbf16, #tpu.memory_space<vmem>>, vector<1x128x128xbf16>
    %100 = vector.shape_cast %99 : vector<1x128x128xbf16> to vector<128x128xbf16>
    %cst_43 = arith.constant dense<0.000000e+00> : vector<128x128xf32>
    %101 = tpu.matmul %98, %100, %cst_43 {dimension_numbers = #tpu.dot_dimension_numbers<[1], [0], [0], [1], [0, 0, 1, 1], [], []>} : vector<128x128xbf16>, vector<128x128xbf16>, vector<128x128xf32> -> vector<128x128xf32>
    %102 = arith.addf %95, %101 : vector<128x128xf32>
    %c32 = arith.constant 32 : index
    %c0_44 = arith.constant 0 : index
    %103 = vector.load %arg7[%c32, %c0_44] : memref<168x128xbf16, #tpu.memory_space<vmem>>, vector<128x128xbf16>
    %104 = arith.mulf %49, %54 : vector<128x1xbf16>
    %105 = vector.broadcast %104 : vector<128x1xbf16> to vector<128x128xbf16>
    %106 = arith.mulf %103, %105 : vector<128x128xbf16>
    %c6 = arith.constant 6 : index
    %c0_45 = arith.constant 0 : index
    %c0_46 = arith.constant 0 : index
    %107 = vector.load %arg3[%c6, %c0_45, %c0_46] : memref<9x128x128xbf16, #tpu.memory_space<vmem>>, vector<1x128x128xbf16>
    %108 = vector.shape_cast %107 : vector<1x128x128xbf16> to vector<128x128xbf16>
    %cst_47 = arith.constant dense<0.000000e+00> : vector<128x128xf32>
    %109 = tpu.matmul %106, %108, %cst_47 {dimension_numbers = #tpu.dot_dimension_numbers<[1], [0], [0], [1], [0, 0, 1, 1], [], []>} : vector<128x128xbf16>, vector<128x128xbf16>, vector<128x128xf32> -> vector<128x128xf32>
    %110 = arith.addf %102, %109 : vector<128x128xf32>
    %c33 = arith.constant 33 : index
    %c0_48 = arith.constant 0 : index
    %111 = vector.load %arg7[%c33, %c0_48] : memref<168x128xbf16, #tpu.memory_space<vmem>>, vector<128x128xbf16>
    %112 = vector.broadcast %49 : vector<128x1xbf16> to vector<128x128xbf16>
    %113 = arith.mulf %111, %112 : vector<128x128xbf16>
    %c7 = arith.constant 7 : index
    %c0_49 = arith.constant 0 : index
    %c0_50 = arith.constant 0 : index
    %114 = vector.load %arg3[%c7, %c0_49, %c0_50] : memref<9x128x128xbf16, #tpu.memory_space<vmem>>, vector<1x128x128xbf16>
    %115 = vector.shape_cast %114 : vector<1x128x128xbf16> to vector<128x128xbf16>
    %cst_51 = arith.constant dense<0.000000e+00> : vector<128x128xf32>
    %116 = tpu.matmul %113, %115, %cst_51 {dimension_numbers = #tpu.dot_dimension_numbers<[1], [0], [0], [1], [0, 0, 1, 1], [], []>} : vector<128x128xbf16>, vector<128x128xbf16>, vector<128x128xf32> -> vector<128x128xf32>
    %117 = arith.addf %110, %116 : vector<128x128xf32>
    %c34 = arith.constant 34 : index
    %c0_52 = arith.constant 0 : index
    %118 = vector.load %arg7[%c34, %c0_52] : memref<168x128xbf16, #tpu.memory_space<vmem>>, vector<128x128xbf16>
    %119 = arith.mulf %49, %59 : vector<128x1xbf16>
    %120 = vector.broadcast %119 : vector<128x1xbf16> to vector<128x128xbf16>
    %121 = arith.mulf %118, %120 : vector<128x128xbf16>
    %c8 = arith.constant 8 : index
    %c0_53 = arith.constant 0 : index
    %c0_54 = arith.constant 0 : index
    %122 = vector.load %arg3[%c8, %c0_53, %c0_54] : memref<9x128x128xbf16, #tpu.memory_space<vmem>>, vector<1x128x128xbf16>
    %123 = vector.shape_cast %122 : vector<1x128x128xbf16> to vector<128x128xbf16>
    %cst_55 = arith.constant dense<0.000000e+00> : vector<128x128xf32>
    %124 = tpu.matmul %121, %123, %cst_55 {dimension_numbers = #tpu.dot_dimension_numbers<[1], [0], [0], [1], [0, 0, 1, 1], [], []>} : vector<128x128xbf16>, vector<128x128xbf16>, vector<128x128xf32> -> vector<128x128xf32>
    %125 = arith.addf %117, %124 : vector<128x128xf32>
    %126 = arith.truncf %125 : vector<128x128xf32> to vector<128x128xbf16>
    %c0_56 = arith.constant 0 : index
    %c0_57 = arith.constant 0 : index
    %127 = vector.load %arg4[%c0_56, %c0_57] : memref<128x128xbf16, #tpu.memory_space<vmem>>, vector<128x128xbf16>
    tpu.vector_store %arg4[%c0_56, %c0_57], %126 {strides = array<i32>} : memref<128x128xbf16, #tpu.memory_space<vmem>>, vector<128x128xbf16>,
    %128 = vector.extract_strided_slice %125 {offsets = [0, 0], sizes = [8, 128], strides = [1, 1]} : vector<128x128xf32> to vector<8x128xf32>
    %129 = arith.mulf %128, %128 : vector<8x128xf32>
    %130 = vector.extract_strided_slice %125 {offsets = [8, 0], sizes = [8, 128], strides = [1, 1]} : vector<128x128xf32> to vector<8x128xf32>
    %131 = arith.addf %128, %130 : vector<8x128xf32>
    %132 = arith.mulf %130, %130 : vector<8x128xf32>
    %133 = arith.addf %129, %132 : vector<8x128xf32>
    %134 = vector.extract_strided_slice %125 {offsets = [16, 0], sizes = [8, 128], strides = [1, 1]} : vector<128x128xf32> to vector<8x128xf32>
    %135 = arith.addf %131, %134 : vector<8x128xf32>
    %136 = arith.mulf %134, %134 : vector<8x128xf32>
    %137 = arith.addf %133, %136 : vector<8x128xf32>
    %138 = vector.extract_strided_slice %125 {offsets = [24, 0], sizes = [8, 128], strides = [1, 1]} : vector<128x128xf32> to vector<8x128xf32>
    %139 = arith.addf %135, %138 : vector<8x128xf32>
    %140 = arith.mulf %138, %138 : vector<8x128xf32>
    %141 = arith.addf %137, %140 : vector<8x128xf32>
    %142 = vector.extract_strided_slice %125 {offsets = [32, 0], sizes = [8, 128], strides = [1, 1]} : vector<128x128xf32> to vector<8x128xf32>
    %143 = arith.addf %139, %142 : vector<8x128xf32>
    %144 = arith.mulf %142, %142 : vector<8x128xf32>
    %145 = arith.addf %141, %144 : vector<8x128xf32>
    %146 = vector.extract_strided_slice %125 {offsets = [40, 0], sizes = [8, 128], strides = [1, 1]} : vector<128x128xf32> to vector<8x128xf32>
    %147 = arith.addf %143, %146 : vector<8x128xf32>
    %148 = arith.mulf %146, %146 : vector<8x128xf32>
    %149 = arith.addf %145, %148 : vector<8x128xf32>
    %150 = vector.extract_strided_slice %125 {offsets = [48, 0], sizes = [8, 128], strides = [1, 1]} : vector<128x128xf32> to vector<8x128xf32>
    %151 = arith.addf %147, %150 : vector<8x128xf32>
    %152 = arith.mulf %150, %150 : vector<8x128xf32>
    %153 = arith.addf %149, %152 : vector<8x128xf32>
    %154 = vector.extract_strided_slice %125 {offsets = [56, 0], sizes = [8, 128], strides = [1, 1]} : vector<128x128xf32> to vector<8x128xf32>
    %155 = arith.addf %151, %154 : vector<8x128xf32>
    %156 = arith.mulf %154, %154 : vector<8x128xf32>
    %157 = arith.addf %153, %156 : vector<8x128xf32>
    %158 = vector.extract_strided_slice %125 {offsets = [64, 0], sizes = [8, 128], strides = [1, 1]} : vector<128x128xf32> to vector<8x128xf32>
    %159 = arith.addf %155, %158 : vector<8x128xf32>
    %160 = arith.mulf %158, %158 : vector<8x128xf32>
    %161 = arith.addf %157, %160 : vector<8x128xf32>
    %162 = vector.extract_strided_slice %125 {offsets = [72, 0], sizes = [8, 128], strides = [1, 1]} : vector<128x128xf32> to vector<8x128xf32>
    %163 = arith.addf %159, %162 : vector<8x128xf32>
    %164 = arith.mulf %162, %162 : vector<8x128xf32>
    %165 = arith.addf %161, %164 : vector<8x128xf32>
    %166 = vector.extract_strided_slice %125 {offsets = [80, 0], sizes = [8, 128], strides = [1, 1]} : vector<128x128xf32> to vector<8x128xf32>
    %167 = arith.addf %163, %166 : vector<8x128xf32>
    %168 = arith.mulf %166, %166 : vector<8x128xf32>
    %169 = arith.addf %165, %168 : vector<8x128xf32>
    %170 = vector.extract_strided_slice %125 {offsets = [88, 0], sizes = [8, 128], strides = [1, 1]} : vector<128x128xf32> to vector<8x128xf32>
    %171 = arith.addf %167, %170 : vector<8x128xf32>
    %172 = arith.mulf %170, %170 : vector<8x128xf32>
    %173 = arith.addf %169, %172 : vector<8x128xf32>
    %174 = vector.extract_strided_slice %125 {offsets = [96, 0], sizes = [8, 128], strides = [1, 1]} : vector<128x128xf32> to vector<8x128xf32>
    %175 = arith.addf %171, %174 : vector<8x128xf32>
    %176 = arith.mulf %174, %174 : vector<8x128xf32>
    %177 = arith.addf %173, %176 : vector<8x128xf32>
    %178 = vector.extract_strided_slice %125 {offsets = [104, 0], sizes = [8, 128], strides = [1, 1]} : vector<128x128xf32> to vector<8x128xf32>
    %179 = arith.addf %175, %178 : vector<8x128xf32>
    %180 = arith.mulf %178, %178 : vector<8x128xf32>
    %181 = arith.addf %177, %180 : vector<8x128xf32>
    %182 = vector.extract_strided_slice %125 {offsets = [112, 0], sizes = [8, 128], strides = [1, 1]} : vector<128x128xf32> to vector<8x128xf32>
    %183 = arith.addf %179, %182 : vector<8x128xf32>
    %184 = arith.mulf %182, %182 : vector<8x128xf32>
    %185 = arith.addf %181, %184 : vector<8x128xf32>
    %186 = vector.extract_strided_slice %125 {offsets = [120, 0], sizes = [8, 128], strides = [1, 1]} : vector<128x128xf32> to vector<8x128xf32>
    %187 = arith.addf %183, %186 : vector<8x128xf32>
    %188 = arith.mulf %186, %186 : vector<8x128xf32>
    %189 = arith.addf %185, %188 : vector<8x128xf32>
    %c0_58 = arith.constant 0 : index
    %c0_59 = arith.constant 0 : index
    %190 = vector.load %arg5[%c0_58, %c0_59] : memref<8x128xf32, #tpu.memory_space<vmem>>, vector<8x128xf32>
    tpu.vector_store %arg5[%c0_58, %c0_59], %187 {strides = array<i32>} : memref<8x128xf32, #tpu.memory_space<vmem>>, vector<8x128xf32>,
    %c0_60 = arith.constant 0 : index
    %c0_61 = arith.constant 0 : index
    %191 = vector.load %arg6[%c0_60, %c0_61] : memref<8x128xf32, #tpu.memory_space<vmem>>, vector<8x128xf32>
    tpu.vector_store %arg6[%c0_60, %c0_61], %189 {strides = array<i32>} : memref<8x128xf32, #tpu.memory_space<vmem>>, vector<8x128xf32>,
    return
  }
  func.func @transform_0(%arg0: i32) -> (i32, i32) {
    %c0_i32 = arith.constant 0 : i32
    %c0_i32_0 = arith.constant 0 : i32
    return %arg0, %c0_i32 : i32, i32
  }
  func.func @transform_1(%arg0: i32) -> (i32, i32) {
    %c1_i32 = arith.constant 1 : i32
    %0 = arith.addi %arg0, %c1_i32 : i32
    %c0_i32 = arith.constant 0 : i32
    %c0_i32_0 = arith.constant 0 : i32
    return %0, %c0_i32 : i32, i32
  }
  func.func @transform_2(%arg0: i32) -> (i32, i32, i32) {
    %c0_i32 = arith.constant 0 : i32
    %c0_i32_0 = arith.constant 0 : i32
    %c0_i32_1 = arith.constant 0 : i32
    %c0_i32_2 = arith.constant 0 : i32
    return %c0_i32, %c0_i32_0, %c0_i32_1 : i32, i32, i32
  }
  func.func @transform_3(%arg0: i32) -> (i32, i32) {
    %c0_i32 = arith.constant 0 : i32
    %c0_i32_0 = arith.constant 0 : i32
    return %arg0, %c0_i32 : i32, i32
  }
  func.func @transform_4(%arg0: i32) -> (i32, i32) {
    %c0_i32 = arith.constant 0 : i32
    %c0_i32_0 = arith.constant 0 : i32
    return %arg0, %c0_i32 : i32, i32
  }
  func.func @transform_5(%arg0: i32) -> (i32, i32) {
    %c0_i32 = arith.constant 0 : i32
    %c0_i32_0 = arith.constant 0 : i32
    return %arg0, %c0_i32 : i32, i32
  }
}

module attributes {stable_mosaic.version = 11 : i64} {
  func.func @kernel(%arg0: i32, %arg1: memref<128x128xbf16, #tpu.memory_space<vmem>>, %arg2: memref<1x128xf32, #tpu.memory_space<vmem>>, %arg3: memref<1x128xf32, #tpu.memory_space<vmem>>, %arg4: memref<128x128xbf16, #tpu.memory_space<vmem>>, %arg5: memref<8x128xf32, #tpu.memory_space<vmem>>, %arg6: memref<8x128xf32, #tpu.memory_space<vmem>>) attributes {dimension_semantics = [#tpu.dimension_semantics<parallel>], iteration_bounds = array<i64: 4>, scalar_prefetch = 0 : i64, scratch_operands = 0 : i64, tpu.core_type = #tpu.core_type<tc>, window_params = [{transform_indices = @transform_0, window_bounds = array<i64: 128, 128>}, {pipeline_mode = #tpu.pipeline_mode<synchronous>, transform_indices = @transform_1, window_bounds = array<i64: 1, 128>}, {pipeline_mode = #tpu.pipeline_mode<synchronous>, transform_indices = @transform_2, window_bounds = array<i64: 1, 128>}, {transform_indices = @transform_3, window_bounds = array<i64: 128, 128>}, {transform_indices = @transform_4, window_bounds = array<i64: 8, 128>}, {transform_indices = @transform_5, window_bounds = array<i64: 8, 128>}]} {
    %c0 = arith.constant 0 : index
    %c0_0 = arith.constant 0 : index
    %0 = vector.load %arg1[%c0, %c0_0] : memref<128x128xbf16, #tpu.memory_space<vmem>>, vector<128x128xbf16>
    %1 = arith.extf %0 : vector<128x128xbf16> to vector<128x128xf32>
    %c0_1 = arith.constant 0 : index
    %c0_2 = arith.constant 0 : index
    %2 = vector.load %arg2[%c0_1, %c0_2] : memref<1x128xf32, #tpu.memory_space<vmem>>, vector<1x128xf32>
    %3 = vector.broadcast %2 : vector<1x128xf32> to vector<128x128xf32>
    %4 = arith.mulf %1, %3 : vector<128x128xf32>
    %c0_3 = arith.constant 0 : index
    %c0_4 = arith.constant 0 : index
    %5 = vector.load %arg3[%c0_3, %c0_4] : memref<1x128xf32, #tpu.memory_space<vmem>>, vector<1x128xf32>
    %6 = vector.broadcast %5 : vector<1x128xf32> to vector<128x128xf32>
    %7 = arith.addf %4, %6 : vector<128x128xf32>
    %cst = arith.constant 0.000000e+00 : f32
    %cst_5 = arith.constant 1.000000e+00 : f32
    %8 = vector.broadcast %cst : f32 to vector<128x128xf32>
    %9 = arith.maximumf %8, %7 : vector<128x128xf32>
    %10 = vector.broadcast %cst_5 : f32 to vector<128x128xf32>
    %11 = arith.minimumf %10, %9 : vector<128x128xf32>
    %12 = arith.truncf %11 : vector<128x128xf32> to vector<128x128xbf16>
    %c0_6 = arith.constant 0 : index
    %c0_7 = arith.constant 0 : index
    %13 = vector.load %arg4[%c0_6, %c0_7] : memref<128x128xbf16, #tpu.memory_space<vmem>>, vector<128x128xbf16>
    tpu.vector_store %arg4[%c0_6, %c0_7], %12 {strides = array<i32>} : memref<128x128xbf16, #tpu.memory_space<vmem>>, vector<128x128xbf16>,
    %14 = vector.extract_strided_slice %11 {offsets = [0, 0], sizes = [8, 128], strides = [1, 1]} : vector<128x128xf32> to vector<8x128xf32>
    %15 = arith.mulf %14, %14 : vector<8x128xf32>
    %16 = vector.extract_strided_slice %11 {offsets = [8, 0], sizes = [8, 128], strides = [1, 1]} : vector<128x128xf32> to vector<8x128xf32>
    %17 = arith.addf %14, %16 : vector<8x128xf32>
    %18 = arith.mulf %16, %16 : vector<8x128xf32>
    %19 = arith.addf %15, %18 : vector<8x128xf32>
    %20 = vector.extract_strided_slice %11 {offsets = [16, 0], sizes = [8, 128], strides = [1, 1]} : vector<128x128xf32> to vector<8x128xf32>
    %21 = arith.addf %17, %20 : vector<8x128xf32>
    %22 = arith.mulf %20, %20 : vector<8x128xf32>
    %23 = arith.addf %19, %22 : vector<8x128xf32>
    %24 = vector.extract_strided_slice %11 {offsets = [24, 0], sizes = [8, 128], strides = [1, 1]} : vector<128x128xf32> to vector<8x128xf32>
    %25 = arith.addf %21, %24 : vector<8x128xf32>
    %26 = arith.mulf %24, %24 : vector<8x128xf32>
    %27 = arith.addf %23, %26 : vector<8x128xf32>
    %28 = vector.extract_strided_slice %11 {offsets = [32, 0], sizes = [8, 128], strides = [1, 1]} : vector<128x128xf32> to vector<8x128xf32>
    %29 = arith.addf %25, %28 : vector<8x128xf32>
    %30 = arith.mulf %28, %28 : vector<8x128xf32>
    %31 = arith.addf %27, %30 : vector<8x128xf32>
    %32 = vector.extract_strided_slice %11 {offsets = [40, 0], sizes = [8, 128], strides = [1, 1]} : vector<128x128xf32> to vector<8x128xf32>
    %33 = arith.addf %29, %32 : vector<8x128xf32>
    %34 = arith.mulf %32, %32 : vector<8x128xf32>
    %35 = arith.addf %31, %34 : vector<8x128xf32>
    %36 = vector.extract_strided_slice %11 {offsets = [48, 0], sizes = [8, 128], strides = [1, 1]} : vector<128x128xf32> to vector<8x128xf32>
    %37 = arith.addf %33, %36 : vector<8x128xf32>
    %38 = arith.mulf %36, %36 : vector<8x128xf32>
    %39 = arith.addf %35, %38 : vector<8x128xf32>
    %40 = vector.extract_strided_slice %11 {offsets = [56, 0], sizes = [8, 128], strides = [1, 1]} : vector<128x128xf32> to vector<8x128xf32>
    %41 = arith.addf %37, %40 : vector<8x128xf32>
    %42 = arith.mulf %40, %40 : vector<8x128xf32>
    %43 = arith.addf %39, %42 : vector<8x128xf32>
    %44 = vector.extract_strided_slice %11 {offsets = [64, 0], sizes = [8, 128], strides = [1, 1]} : vector<128x128xf32> to vector<8x128xf32>
    %45 = arith.addf %41, %44 : vector<8x128xf32>
    %46 = arith.mulf %44, %44 : vector<8x128xf32>
    %47 = arith.addf %43, %46 : vector<8x128xf32>
    %48 = vector.extract_strided_slice %11 {offsets = [72, 0], sizes = [8, 128], strides = [1, 1]} : vector<128x128xf32> to vector<8x128xf32>
    %49 = arith.addf %45, %48 : vector<8x128xf32>
    %50 = arith.mulf %48, %48 : vector<8x128xf32>
    %51 = arith.addf %47, %50 : vector<8x128xf32>
    %52 = vector.extract_strided_slice %11 {offsets = [80, 0], sizes = [8, 128], strides = [1, 1]} : vector<128x128xf32> to vector<8x128xf32>
    %53 = arith.addf %49, %52 : vector<8x128xf32>
    %54 = arith.mulf %52, %52 : vector<8x128xf32>
    %55 = arith.addf %51, %54 : vector<8x128xf32>
    %56 = vector.extract_strided_slice %11 {offsets = [88, 0], sizes = [8, 128], strides = [1, 1]} : vector<128x128xf32> to vector<8x128xf32>
    %57 = arith.addf %53, %56 : vector<8x128xf32>
    %58 = arith.mulf %56, %56 : vector<8x128xf32>
    %59 = arith.addf %55, %58 : vector<8x128xf32>
    %60 = vector.extract_strided_slice %11 {offsets = [96, 0], sizes = [8, 128], strides = [1, 1]} : vector<128x128xf32> to vector<8x128xf32>
    %61 = arith.addf %57, %60 : vector<8x128xf32>
    %62 = arith.mulf %60, %60 : vector<8x128xf32>
    %63 = arith.addf %59, %62 : vector<8x128xf32>
    %64 = vector.extract_strided_slice %11 {offsets = [104, 0], sizes = [8, 128], strides = [1, 1]} : vector<128x128xf32> to vector<8x128xf32>
    %65 = arith.addf %61, %64 : vector<8x128xf32>
    %66 = arith.mulf %64, %64 : vector<8x128xf32>
    %67 = arith.addf %63, %66 : vector<8x128xf32>
    %68 = vector.extract_strided_slice %11 {offsets = [112, 0], sizes = [8, 128], strides = [1, 1]} : vector<128x128xf32> to vector<8x128xf32>
    %69 = arith.addf %65, %68 : vector<8x128xf32>
    %70 = arith.mulf %68, %68 : vector<8x128xf32>
    %71 = arith.addf %67, %70 : vector<8x128xf32>
    %72 = vector.extract_strided_slice %11 {offsets = [120, 0], sizes = [8, 128], strides = [1, 1]} : vector<128x128xf32> to vector<8x128xf32>
    %73 = arith.addf %69, %72 : vector<8x128xf32>
    %74 = arith.mulf %72, %72 : vector<8x128xf32>
    %75 = arith.addf %71, %74 : vector<8x128xf32>
    %c0_8 = arith.constant 0 : index
    %c0_9 = arith.constant 0 : index
    %76 = vector.load %arg5[%c0_8, %c0_9] : memref<8x128xf32, #tpu.memory_space<vmem>>, vector<8x128xf32>
    tpu.vector_store %arg5[%c0_8, %c0_9], %75 {strides = array<i32>} : memref<8x128xf32, #tpu.memory_space<vmem>>, vector<8x128xf32>,
    %c0_10 = arith.constant 0 : index
    %c0_11 = arith.constant 0 : index
    %77 = vector.load %arg6[%c0_10, %c0_11] : memref<8x128xf32, #tpu.memory_space<vmem>>, vector<8x128xf32>
    tpu.vector_store %arg6[%c0_10, %c0_11], %73 {strides = array<i32>} : memref<8x128xf32, #tpu.memory_space<vmem>>, vector<8x128xf32>,
    return
  }
  func.func @transform_0(%arg0: i32) -> (i32, i32) {
    %c0_i32 = arith.constant 0 : i32
    %c0_i32_0 = arith.constant 0 : i32
    return %arg0, %c0_i32 : i32, i32
  }
  func.func @transform_1(%arg0: i32) -> (i32, i32) {
    %c0_i32 = arith.constant 0 : i32
    %c0_i32_0 = arith.constant 0 : i32
    %c0_i32_1 = arith.constant 0 : i32
    return %c0_i32, %c0_i32_0 : i32, i32
  }
  func.func @transform_2(%arg0: i32) -> (i32, i32) {
    %c0_i32 = arith.constant 0 : i32
    %c0_i32_0 = arith.constant 0 : i32
    %c0_i32_1 = arith.constant 0 : i32
    return %c0_i32, %c0_i32_0 : i32, i32
  }
  func.func @transform_3(%arg0: i32) -> (i32, i32) {
    %c0_i32 = arith.constant 0 : i32
    %c0_i32_0 = arith.constant 0 : i32
    return %arg0, %c0_i32 : i32, i32
  }
  func.func @transform_4(%arg0: i32) -> (i32, i32) {
    %c0_i32 = arith.constant 0 : i32
    %c0_i32_0 = arith.constant 0 : i32
    return %arg0, %c0_i32 : i32, i32
  }
  func.func @transform_5(%arg0: i32) -> (i32, i32) {
    %c0_i32 = arith.constant 0 : i32
    %c0_i32_0 = arith.constant 0 : i32
    return %arg0, %c0_i32 : i32, i32
  }
}

module attributes {stable_mosaic.version = 11 : i64} {
  func.func @kernel(%arg0: i32, %arg1: memref<128x128xbf16, #tpu.memory_space<vmem>>, %arg2: memref<128x128xbf16, #tpu.memory_space<vmem>>, %arg3: memref<9x128x128xbf16, #tpu.memory_space<vmem>>, %arg4: memref<1x1xf32, #tpu.memory_space<smem>>, %arg5: memref<128x128xbf16, #tpu.memory_space<vmem>>, %arg6: memref<8x128xf32, #tpu.memory_space<vmem>>, %arg7: memref<8x128xf32, #tpu.memory_space<vmem>>, %arg8: memref<168x128xbf16, #tpu.memory_space<vmem>>) attributes {dimension_semantics = [#tpu.dimension_semantics<parallel>], iteration_bounds = array<i64: 4>, scalar_prefetch = 0 : i64, scratch_operands = 1 : i64, tpu.core_type = #tpu.core_type<tc>, window_params = [{transform_indices = @transform_0, window_bounds = array<i64: 128, 128>}, {transform_indices = @transform_1, window_bounds = array<i64: 128, 128>}, {pipeline_mode = #tpu.pipeline_mode<synchronous>, transform_indices = @transform_2, window_bounds = array<i64: 9, 128, 128>}, {transform_indices = @transform_3, window_bounds = array<i64: 1, 1>}, {transform_indices = @transform_4, window_bounds = array<i64: 128, 128>}, {transform_indices = @transform_5, window_bounds = array<i64: 8, 128>}, {transform_indices = @transform_6, window_bounds = array<i64: 8, 128>}]} {
    %c0 = arith.constant 0 : index
    %c0_0 = arith.constant 0 : index
    %0 = vector.load %arg1[%c0, %c0_0] : memref<128x128xbf16, #tpu.memory_space<vmem>>, vector<128x128xbf16>
    %c0_1 = arith.constant 0 : index
    %c0_2 = arith.constant 0 : index
    %1 = vector.load %arg2[%c0_1, %c0_2] : memref<128x128xbf16, #tpu.memory_space<vmem>>, vector<40x128xbf16>
    %c0_3 = arith.constant 0 : index
    %c0_4 = arith.constant 0 : index
    %2 = memref.load %arg4[%c0_3, %c0_4] : memref<1x1xf32, #tpu.memory_space<smem>>
    %3 = arith.extf %0 : vector<128x128xbf16> to vector<128x128xf32>
    %4 = vector.broadcast %2 : f32 to vector<128x128xf32>
    %5 = arith.cmpf oge, %3, %4 : vector<128x128xf32>
    %cst = arith.constant 1.000000e+00 : f32
    %cst_5 = arith.constant 0.000000e+00 : f32
    %6 = vector.broadcast %cst : f32 to vector<128x128xf32>
    %7 = vector.broadcast %cst_5 : f32 to vector<128x128xf32>
    %8 = arith.select %5, %6, %7 : vector<128x128xi1>, vector<128x128xf32>
    %9 = arith.truncf %8 : vector<128x128xf32> to vector<128x128xbf16>
    %10 = arith.extf %1 : vector<40x128xbf16> to vector<40x128xf32>
    %11 = vector.broadcast %2 : f32 to vector<40x128xf32>
    %12 = arith.cmpf oge, %10, %11 : vector<40x128xf32>
    %cst_6 = arith.constant 1.000000e+00 : f32
    %cst_7 = arith.constant 0.000000e+00 : f32
    %13 = vector.broadcast %cst_6 : f32 to vector<40x128xf32>
    %14 = vector.broadcast %cst_7 : f32 to vector<40x128xf32>
    %15 = arith.select %12, %13, %14 : vector<40x128xi1>, vector<40x128xf32>
    %16 = arith.truncf %15 : vector<40x128xf32> to vector<40x128xbf16>
    %c0_8 = arith.constant 0 : index
    %c0_9 = arith.constant 0 : index
    %17 = vector.load %arg8[%c0_8, %c0_9] : memref<168x128xbf16, #tpu.memory_space<vmem>>, vector<128x128xbf16>
    tpu.vector_store %arg8[%c0_8, %c0_9], %9 {strides = array<i32>} : memref<168x128xbf16, #tpu.memory_space<vmem>>, vector<128x128xbf16>,
    %c128 = arith.constant 128 : index
    %c0_10 = arith.constant 0 : index
    %18 = vector.load %arg8[%c128, %c0_10] : memref<168x128xbf16, #tpu.memory_space<vmem>>, vector<40x128xbf16>
    tpu.vector_store %arg8[%c128, %c0_10], %16 {strides = array<i32>} : memref<168x128xbf16, #tpu.memory_space<vmem>>, vector<40x128xbf16>,
    %c128_i32 = arith.constant 128 : i32
    %19 = arith.muli %arg0, %c128_i32 : i32
    %20 = tpu.iota {dimensions = array<i32: 0>} : vector<128x1xi32>
    %21 = vector.broadcast %19 : i32 to vector<128x1xi32>
    %22 = arith.addi %21, %20 : vector<128x1xi32>
    %c16_i32 = arith.constant 16 : i32
    %c0_i32 = arith.constant 0 : i32
    %23 = arith.cmpi eq, %c16_i32, %c0_i32 : i32
    %c1_i32 = arith.constant 1 : i32
    %24 = arith.select %23, %c1_i32, %c16_i32 : i32
    %25 = vector.broadcast %24 : i32 to vector<128x1xi32>
    %26 = arith.remsi %22, %25 : vector<128x1xi32>
    %c0_i32_11 = arith.constant 0 : i32
    %27 = vector.broadcast %c0_i32_11 : i32 to vector<128x1xi32>
    %28 = arith.cmpi ne, %26, %27 : vector<128x1xi32>
    %c0_i32_12 = arith.constant 0 : i32
    %29 = vector.broadcast %c0_i32_12 : i32 to vector<128x1xi32>
    %30 = arith.cmpi slt, %26, %29 : vector<128x1xi32>
    %c0_i32_13 = arith.constant 0 : i32
    %31 = arith.cmpi slt, %24, %c0_i32_13 : i32
    %32 = vector.broadcast %31 : i1 to vector<128x1xi1>
    %33 = vector.broadcast %32 : vector<128x1xi1> to vector<128x1xi1>
    %34 = arith.xori %30, %33 : vector<128x1xi1>
    %35 = arith.andi %34, %28 : vector<128x1xi1>
    %36 = vector.broadcast %24 : i32 to vector<128x1xi32>
    %37 = arith.addi %26, %36 : vector<128x1xi32>
    %38 = arith.select %35, %37, %26 : vector<128x1xi1>, vector<128x1xi32>
    %c256_i32 = arith.constant 256 : i32
    %c0_i32_14 = arith.constant 0 : i32
    %39 = arith.cmpi eq, %c256_i32, %c0_i32_14 : i32
    %c1_i32_15 = arith.constant 1 : i32
    %40 = arith.select %39, %c1_i32_15, %c256_i32 : i32
    %41 = vector.broadcast %40 : i32 to vector<128x1xi32>
    %42 = arith.remsi %22, %41 : vector<128x1xi32>
    %c0_i32_16 = arith.constant 0 : i32
    %43 = vector.broadcast %c0_i32_16 : i32 to vector<128x1xi32>
    %44 = arith.cmpi ne, %42, %43 : vector<128x1xi32>
    %c0_i32_17 = arith.constant 0 : i32
    %45 = vector.broadcast %c0_i32_17 : i32 to vector<128x1xi32>
    %46 = arith.cmpi slt, %42, %45 : vector<128x1xi32>
    %c0_i32_18 = arith.constant 0 : i32
    %47 = arith.cmpi slt, %40, %c0_i32_18 : i32
    %48 = vector.broadcast %47 : i1 to vector<128x1xi1>
    %49 = vector.broadcast %48 : vector<128x1xi1> to vector<128x1xi1>
    %50 = arith.xori %46, %49 : vector<128x1xi1>
    %51 = arith.andi %50, %44 : vector<128x1xi1>
    %52 = vector.broadcast %40 : i32 to vector<128x1xi32>
    %53 = arith.addi %42, %52 : vector<128x1xi32>
    %54 = arith.select %51, %53, %42 : vector<128x1xi1>, vector<128x1xi32>
    %c16_i32_19 = arith.constant 16 : i32
    %55 = vector.broadcast %c16_i32_19 : i32 to vector<128x1xi32>
    %56 = arith.cmpi sge, %54, %55 : vector<128x1xi32>
    %57 = arith.extui %56 : vector<128x1xi1> to vector<128x1xi32>
    %58 = arith.sitofp %57 : vector<128x1xi32> to vector<128x1xf32>
    %59 = arith.truncf %58 : vector<128x1xf32> to vector<128x1xbf16>
    %c240_i32 = arith.constant 240 : i32
    %60 = vector.broadcast %c240_i32 : i32 to vector<128x1xi32>
    %61 = arith.cmpi slt, %54, %60 : vector<128x1xi32>
    %62 = arith.extui %61 : vector<128x1xi1> to vector<128x1xi32>
    %63 = arith.sitofp %62 : vector<128x1xi32> to vector<128x1xf32>
    %64 = arith.truncf %63 : vector<128x1xf32> to vector<128x1xbf16>
    %c1_i32_20 = arith.constant 1 : i32
    %65 = vector.broadcast %c1_i32_20 : i32 to vector<128x1xi32>
    %66 = arith.cmpi sge, %38, %65 : vector<128x1xi32>
    %67 = arith.extui %66 : vector<128x1xi1> to vector<128x1xi32>
    %68 = arith.sitofp %67 : vector<128x1xi32> to vector<128x1xf32>
    %69 = arith.truncf %68 : vector<128x1xf32> to vector<128x1xbf16>
    %c15_i32 = arith.constant 15 : i32
    %70 = vector.broadcast %c15_i32 : i32 to vector<128x1xi32>
    %71 = arith.cmpi slt, %38, %70 : vector<128x1xi32>
    %72 = arith.extui %71 : vector<128x1xi1> to vector<128x1xi32>
    %73 = arith.sitofp %72 : vector<128x1xi32> to vector<128x1xf32>
    %74 = arith.truncf %73 : vector<128x1xf32> to vector<128x1xbf16>
    %cst_21 = arith.constant 0.000000e+00 : f32
    %75 = vector.broadcast %cst_21 : f32 to vector<128x128xf32>
    %c0_22 = arith.constant 0 : index
    %c0_23 = arith.constant 0 : index
    %76 = vector.load %arg8[%c0_22, %c0_23] : memref<168x128xbf16, #tpu.memory_space<vmem>>, vector<128x128xbf16>
    %77 = arith.mulf %59, %69 : vector<128x1xbf16>
    %78 = vector.broadcast %77 : vector<128x1xbf16> to vector<128x128xbf16>
    %79 = arith.mulf %76, %78 : vector<128x128xbf16>
    %c0_24 = arith.constant 0 : index
    %c0_25 = arith.constant 0 : index
    %c0_26 = arith.constant 0 : index
    %80 = vector.load %arg3[%c0_24, %c0_25, %c0_26] : memref<9x128x128xbf16, #tpu.memory_space<vmem>>, vector<1x128x128xbf16>
    %81 = vector.shape_cast %80 : vector<1x128x128xbf16> to vector<128x128xbf16>
    %cst_27 = arith.constant dense<0.000000e+00> : vector<128x128xf32>
    %82 = tpu.matmul %79, %81, %cst_27 {dimension_numbers = #tpu.dot_dimension_numbers<[1], [0], [0], [1], [0, 0, 1, 1], [], []>} : vector<128x128xbf16>, vector<128x128xbf16>, vector<128x128xf32> -> vector<128x128xf32>
    %83 = arith.addf %75, %82 : vector<128x128xf32>
    %c1 = arith.constant 1 : index
    %c0_28 = arith.constant 0 : index
    %84 = vector.load %arg8[%c1, %c0_28] : memref<168x128xbf16, #tpu.memory_space<vmem>>, vector<128x128xbf16>
    %85 = vector.broadcast %59 : vector<128x1xbf16> to vector<128x128xbf16>
    %86 = arith.mulf %84, %85 : vector<128x128xbf16>
    %c1_29 = arith.constant 1 : index
    %c0_30 = arith.constant 0 : index
    %c0_31 = arith.constant 0 : index
    %87 = vector.load %arg3[%c1_29, %c0_30, %c0_31] : memref<9x128x128xbf16, #tpu.memory_space<vmem>>, vector<1x128x128xbf16>
    %88 = vector.shape_cast %87 : vector<1x128x128xbf16> to vector<128x128xbf16>
    %cst_32 = arith.constant dense<0.000000e+00> : vector<128x128xf32>
    %89 = tpu.matmul %86, %88, %cst_32 {dimension_numbers = #tpu.dot_dimension_numbers<[1], [0], [0], [1], [0, 0, 1, 1], [], []>} : vector<128x128xbf16>, vector<128x128xbf16>, vector<128x128xf32> -> vector<128x128xf32>
    %90 = arith.addf %83, %89 : vector<128x128xf32>
    %c2 = arith.constant 2 : index
    %c0_33 = arith.constant 0 : index
    %91 = vector.load %arg8[%c2, %c0_33] : memref<168x128xbf16, #tpu.memory_space<vmem>>, vector<128x128xbf16>
    %92 = arith.mulf %59, %74 : vector<128x1xbf16>
    %93 = vector.broadcast %92 : vector<128x1xbf16> to vector<128x128xbf16>
    %94 = arith.mulf %91, %93 : vector<128x128xbf16>
    %c2_34 = arith.constant 2 : index
    %c0_35 = arith.constant 0 : index
    %c0_36 = arith.constant 0 : index
    %95 = vector.load %arg3[%c2_34, %c0_35, %c0_36] : memref<9x128x128xbf16, #tpu.memory_space<vmem>>, vector<1x128x128xbf16>
    %96 = vector.shape_cast %95 : vector<1x128x128xbf16> to vector<128x128xbf16>
    %cst_37 = arith.constant dense<0.000000e+00> : vector<128x128xf32>
    %97 = tpu.matmul %94, %96, %cst_37 {dimension_numbers = #tpu.dot_dimension_numbers<[1], [0], [0], [1], [0, 0, 1, 1], [], []>} : vector<128x128xbf16>, vector<128x128xbf16>, vector<128x128xf32> -> vector<128x128xf32>
    %98 = arith.addf %90, %97 : vector<128x128xf32>
    %c16 = arith.constant 16 : index
    %c0_38 = arith.constant 0 : index
    %99 = vector.load %arg8[%c16, %c0_38] : memref<168x128xbf16, #tpu.memory_space<vmem>>, vector<128x128xbf16>
    %100 = vector.broadcast %69 : vector<128x1xbf16> to vector<128x128xbf16>
    %101 = arith.mulf %99, %100 : vector<128x128xbf16>
    %c3 = arith.constant 3 : index
    %c0_39 = arith.constant 0 : index
    %c0_40 = arith.constant 0 : index
    %102 = vector.load %arg3[%c3, %c0_39, %c0_40] : memref<9x128x128xbf16, #tpu.memory_space<vmem>>, vector<1x128x128xbf16>
    %103 = vector.shape_cast %102 : vector<1x128x128xbf16> to vector<128x128xbf16>
    %cst_41 = arith.constant dense<0.000000e+00> : vector<128x128xf32>
    %104 = tpu.matmul %101, %103, %cst_41 {dimension_numbers = #tpu.dot_dimension_numbers<[1], [0], [0], [1], [0, 0, 1, 1], [], []>} : vector<128x128xbf16>, vector<128x128xbf16>, vector<128x128xf32> -> vector<128x128xf32>
    %105 = arith.addf %98, %104 : vector<128x128xf32>
    %c17 = arith.constant 17 : index
    %c0_42 = arith.constant 0 : index
    %106 = vector.load %arg8[%c17, %c0_42] : memref<168x128xbf16, #tpu.memory_space<vmem>>, vector<128x128xbf16>
    %c4 = arith.constant 4 : index
    %c0_43 = arith.constant 0 : index
    %c0_44 = arith.constant 0 : index
    %107 = vector.load %arg3[%c4, %c0_43, %c0_44] : memref<9x128x128xbf16, #tpu.memory_space<vmem>>, vector<1x128x128xbf16>
    %108 = vector.shape_cast %107 : vector<1x128x128xbf16> to vector<128x128xbf16>
    %cst_45 = arith.constant dense<0.000000e+00> : vector<128x128xf32>
    %109 = tpu.matmul %106, %108, %cst_45 {dimension_numbers = #tpu.dot_dimension_numbers<[1], [0], [0], [1], [0, 0, 1, 1], [], []>} : vector<128x128xbf16>, vector<128x128xbf16>, vector<128x128xf32> -> vector<128x128xf32>
    %110 = arith.addf %105, %109 : vector<128x128xf32>
    %c18 = arith.constant 18 : index
    %c0_46 = arith.constant 0 : index
    %111 = vector.load %arg8[%c18, %c0_46] : memref<168x128xbf16, #tpu.memory_space<vmem>>, vector<128x128xbf16>
    %112 = vector.broadcast %74 : vector<128x1xbf16> to vector<128x128xbf16>
    %113 = arith.mulf %111, %112 : vector<128x128xbf16>
    %c5 = arith.constant 5 : index
    %c0_47 = arith.constant 0 : index
    %c0_48 = arith.constant 0 : index
    %114 = vector.load %arg3[%c5, %c0_47, %c0_48] : memref<9x128x128xbf16, #tpu.memory_space<vmem>>, vector<1x128x128xbf16>
    %115 = vector.shape_cast %114 : vector<1x128x128xbf16> to vector<128x128xbf16>
    %cst_49 = arith.constant dense<0.000000e+00> : vector<128x128xf32>
    %116 = tpu.matmul %113, %115, %cst_49 {dimension_numbers = #tpu.dot_dimension_numbers<[1], [0], [0], [1], [0, 0, 1, 1], [], []>} : vector<128x128xbf16>, vector<128x128xbf16>, vector<128x128xf32> -> vector<128x128xf32>
    %117 = arith.addf %110, %116 : vector<128x128xf32>
    %c32 = arith.constant 32 : index
    %c0_50 = arith.constant 0 : index
    %118 = vector.load %arg8[%c32, %c0_50] : memref<168x128xbf16, #tpu.memory_space<vmem>>, vector<128x128xbf16>
    %119 = arith.mulf %64, %69 : vector<128x1xbf16>
    %120 = vector.broadcast %119 : vector<128x1xbf16> to vector<128x128xbf16>
    %121 = arith.mulf %118, %120 : vector<128x128xbf16>
    %c6 = arith.constant 6 : index
    %c0_51 = arith.constant 0 : index
    %c0_52 = arith.constant 0 : index
    %122 = vector.load %arg3[%c6, %c0_51, %c0_52] : memref<9x128x128xbf16, #tpu.memory_space<vmem>>, vector<1x128x128xbf16>
    %123 = vector.shape_cast %122 : vector<1x128x128xbf16> to vector<128x128xbf16>
    %cst_53 = arith.constant dense<0.000000e+00> : vector<128x128xf32>
    %124 = tpu.matmul %121, %123, %cst_53 {dimension_numbers = #tpu.dot_dimension_numbers<[1], [0], [0], [1], [0, 0, 1, 1], [], []>} : vector<128x128xbf16>, vector<128x128xbf16>, vector<128x128xf32> -> vector<128x128xf32>
    %125 = arith.addf %117, %124 : vector<128x128xf32>
    %c33 = arith.constant 33 : index
    %c0_54 = arith.constant 0 : index
    %126 = vector.load %arg8[%c33, %c0_54] : memref<168x128xbf16, #tpu.memory_space<vmem>>, vector<128x128xbf16>
    %127 = vector.broadcast %64 : vector<128x1xbf16> to vector<128x128xbf16>
    %128 = arith.mulf %126, %127 : vector<128x128xbf16>
    %c7 = arith.constant 7 : index
    %c0_55 = arith.constant 0 : index
    %c0_56 = arith.constant 0 : index
    %129 = vector.load %arg3[%c7, %c0_55, %c0_56] : memref<9x128x128xbf16, #tpu.memory_space<vmem>>, vector<1x128x128xbf16>
    %130 = vector.shape_cast %129 : vector<1x128x128xbf16> to vector<128x128xbf16>
    %cst_57 = arith.constant dense<0.000000e+00> : vector<128x128xf32>
    %131 = tpu.matmul %128, %130, %cst_57 {dimension_numbers = #tpu.dot_dimension_numbers<[1], [0], [0], [1], [0, 0, 1, 1], [], []>} : vector<128x128xbf16>, vector<128x128xbf16>, vector<128x128xf32> -> vector<128x128xf32>
    %132 = arith.addf %125, %131 : vector<128x128xf32>
    %c34 = arith.constant 34 : index
    %c0_58 = arith.constant 0 : index
    %133 = vector.load %arg8[%c34, %c0_58] : memref<168x128xbf16, #tpu.memory_space<vmem>>, vector<128x128xbf16>
    %134 = arith.mulf %64, %74 : vector<128x1xbf16>
    %135 = vector.broadcast %134 : vector<128x1xbf16> to vector<128x128xbf16>
    %136 = arith.mulf %133, %135 : vector<128x128xbf16>
    %c8 = arith.constant 8 : index
    %c0_59 = arith.constant 0 : index
    %c0_60 = arith.constant 0 : index
    %137 = vector.load %arg3[%c8, %c0_59, %c0_60] : memref<9x128x128xbf16, #tpu.memory_space<vmem>>, vector<1x128x128xbf16>
    %138 = vector.shape_cast %137 : vector<1x128x128xbf16> to vector<128x128xbf16>
    %cst_61 = arith.constant dense<0.000000e+00> : vector<128x128xf32>
    %139 = tpu.matmul %136, %138, %cst_61 {dimension_numbers = #tpu.dot_dimension_numbers<[1], [0], [0], [1], [0, 0, 1, 1], [], []>} : vector<128x128xbf16>, vector<128x128xbf16>, vector<128x128xf32> -> vector<128x128xf32>
    %140 = arith.addf %132, %139 : vector<128x128xf32>
    %141 = arith.truncf %140 : vector<128x128xf32> to vector<128x128xbf16>
    %c0_62 = arith.constant 0 : index
    %c0_63 = arith.constant 0 : index
    %142 = vector.load %arg5[%c0_62, %c0_63] : memref<128x128xbf16, #tpu.memory_space<vmem>>, vector<128x128xbf16>
    tpu.vector_store %arg5[%c0_62, %c0_63], %141 {strides = array<i32>} : memref<128x128xbf16, #tpu.memory_space<vmem>>, vector<128x128xbf16>,
    %143 = vector.extract_strided_slice %140 {offsets = [0, 0], sizes = [8, 128], strides = [1, 1]} : vector<128x128xf32> to vector<8x128xf32>
    %144 = arith.mulf %143, %143 : vector<8x128xf32>
    %145 = vector.extract_strided_slice %140 {offsets = [8, 0], sizes = [8, 128], strides = [1, 1]} : vector<128x128xf32> to vector<8x128xf32>
    %146 = arith.addf %143, %145 : vector<8x128xf32>
    %147 = arith.mulf %145, %145 : vector<8x128xf32>
    %148 = arith.addf %144, %147 : vector<8x128xf32>
    %149 = vector.extract_strided_slice %140 {offsets = [16, 0], sizes = [8, 128], strides = [1, 1]} : vector<128x128xf32> to vector<8x128xf32>
    %150 = arith.addf %146, %149 : vector<8x128xf32>
    %151 = arith.mulf %149, %149 : vector<8x128xf32>
    %152 = arith.addf %148, %151 : vector<8x128xf32>
    %153 = vector.extract_strided_slice %140 {offsets = [24, 0], sizes = [8, 128], strides = [1, 1]} : vector<128x128xf32> to vector<8x128xf32>
    %154 = arith.addf %150, %153 : vector<8x128xf32>
    %155 = arith.mulf %153, %153 : vector<8x128xf32>
    %156 = arith.addf %152, %155 : vector<8x128xf32>
    %157 = vector.extract_strided_slice %140 {offsets = [32, 0], sizes = [8, 128], strides = [1, 1]} : vector<128x128xf32> to vector<8x128xf32>
    %158 = arith.addf %154, %157 : vector<8x128xf32>
    %159 = arith.mulf %157, %157 : vector<8x128xf32>
    %160 = arith.addf %156, %159 : vector<8x128xf32>
    %161 = vector.extract_strided_slice %140 {offsets = [40, 0], sizes = [8, 128], strides = [1, 1]} : vector<128x128xf32> to vector<8x128xf32>
    %162 = arith.addf %158, %161 : vector<8x128xf32>
    %163 = arith.mulf %161, %161 : vector<8x128xf32>
    %164 = arith.addf %160, %163 : vector<8x128xf32>
    %165 = vector.extract_strided_slice %140 {offsets = [48, 0], sizes = [8, 128], strides = [1, 1]} : vector<128x128xf32> to vector<8x128xf32>
    %166 = arith.addf %162, %165 : vector<8x128xf32>
    %167 = arith.mulf %165, %165 : vector<8x128xf32>
    %168 = arith.addf %164, %167 : vector<8x128xf32>
    %169 = vector.extract_strided_slice %140 {offsets = [56, 0], sizes = [8, 128], strides = [1, 1]} : vector<128x128xf32> to vector<8x128xf32>
    %170 = arith.addf %166, %169 : vector<8x128xf32>
    %171 = arith.mulf %169, %169 : vector<8x128xf32>
    %172 = arith.addf %168, %171 : vector<8x128xf32>
    %173 = vector.extract_strided_slice %140 {offsets = [64, 0], sizes = [8, 128], strides = [1, 1]} : vector<128x128xf32> to vector<8x128xf32>
    %174 = arith.addf %170, %173 : vector<8x128xf32>
    %175 = arith.mulf %173, %173 : vector<8x128xf32>
    %176 = arith.addf %172, %175 : vector<8x128xf32>
    %177 = vector.extract_strided_slice %140 {offsets = [72, 0], sizes = [8, 128], strides = [1, 1]} : vector<128x128xf32> to vector<8x128xf32>
    %178 = arith.addf %174, %177 : vector<8x128xf32>
    %179 = arith.mulf %177, %177 : vector<8x128xf32>
    %180 = arith.addf %176, %179 : vector<8x128xf32>
    %181 = vector.extract_strided_slice %140 {offsets = [80, 0], sizes = [8, 128], strides = [1, 1]} : vector<128x128xf32> to vector<8x128xf32>
    %182 = arith.addf %178, %181 : vector<8x128xf32>
    %183 = arith.mulf %181, %181 : vector<8x128xf32>
    %184 = arith.addf %180, %183 : vector<8x128xf32>
    %185 = vector.extract_strided_slice %140 {offsets = [88, 0], sizes = [8, 128], strides = [1, 1]} : vector<128x128xf32> to vector<8x128xf32>
    %186 = arith.addf %182, %185 : vector<8x128xf32>
    %187 = arith.mulf %185, %185 : vector<8x128xf32>
    %188 = arith.addf %184, %187 : vector<8x128xf32>
    %189 = vector.extract_strided_slice %140 {offsets = [96, 0], sizes = [8, 128], strides = [1, 1]} : vector<128x128xf32> to vector<8x128xf32>
    %190 = arith.addf %186, %189 : vector<8x128xf32>
    %191 = arith.mulf %189, %189 : vector<8x128xf32>
    %192 = arith.addf %188, %191 : vector<8x128xf32>
    %193 = vector.extract_strided_slice %140 {offsets = [104, 0], sizes = [8, 128], strides = [1, 1]} : vector<128x128xf32> to vector<8x128xf32>
    %194 = arith.addf %190, %193 : vector<8x128xf32>
    %195 = arith.mulf %193, %193 : vector<8x128xf32>
    %196 = arith.addf %192, %195 : vector<8x128xf32>
    %197 = vector.extract_strided_slice %140 {offsets = [112, 0], sizes = [8, 128], strides = [1, 1]} : vector<128x128xf32> to vector<8x128xf32>
    %198 = arith.addf %194, %197 : vector<8x128xf32>
    %199 = arith.mulf %197, %197 : vector<8x128xf32>
    %200 = arith.addf %196, %199 : vector<8x128xf32>
    %201 = vector.extract_strided_slice %140 {offsets = [120, 0], sizes = [8, 128], strides = [1, 1]} : vector<128x128xf32> to vector<8x128xf32>
    %202 = arith.addf %198, %201 : vector<8x128xf32>
    %203 = arith.mulf %201, %201 : vector<8x128xf32>
    %204 = arith.addf %200, %203 : vector<8x128xf32>
    %c0_64 = arith.constant 0 : index
    %c0_65 = arith.constant 0 : index
    %205 = vector.load %arg6[%c0_64, %c0_65] : memref<8x128xf32, #tpu.memory_space<vmem>>, vector<8x128xf32>
    tpu.vector_store %arg6[%c0_64, %c0_65], %202 {strides = array<i32>} : memref<8x128xf32, #tpu.memory_space<vmem>>, vector<8x128xf32>,
    %c0_66 = arith.constant 0 : index
    %c0_67 = arith.constant 0 : index
    %206 = vector.load %arg7[%c0_66, %c0_67] : memref<8x128xf32, #tpu.memory_space<vmem>>, vector<8x128xf32>
    tpu.vector_store %arg7[%c0_66, %c0_67], %204 {strides = array<i32>} : memref<8x128xf32, #tpu.memory_space<vmem>>, vector<8x128xf32>,
    return
  }
  func.func @transform_0(%arg0: i32) -> (i32, i32) {
    %c0_i32 = arith.constant 0 : i32
    %c0_i32_0 = arith.constant 0 : i32
    return %arg0, %c0_i32 : i32, i32
  }
  func.func @transform_1(%arg0: i32) -> (i32, i32) {
    %c1_i32 = arith.constant 1 : i32
    %0 = arith.addi %arg0, %c1_i32 : i32
    %c0_i32 = arith.constant 0 : i32
    %c0_i32_0 = arith.constant 0 : i32
    return %0, %c0_i32 : i32, i32
  }
  func.func @transform_2(%arg0: i32) -> (i32, i32, i32) {
    %c0_i32 = arith.constant 0 : i32
    %c0_i32_0 = arith.constant 0 : i32
    %c0_i32_1 = arith.constant 0 : i32
    %c0_i32_2 = arith.constant 0 : i32
    return %c0_i32, %c0_i32_0, %c0_i32_1 : i32, i32, i32
  }
  func.func @transform_3(%arg0: i32) -> (i32, i32) {
    %c0_i32 = arith.constant 0 : i32
    %c0_i32_0 = arith.constant 0 : i32
    %c0_i32_1 = arith.constant 0 : i32
    return %c0_i32, %c0_i32_0 : i32, i32
  }
  func.func @transform_4(%arg0: i32) -> (i32, i32) {
    %c0_i32 = arith.constant 0 : i32
    %c0_i32_0 = arith.constant 0 : i32
    return %arg0, %c0_i32 : i32, i32
  }
  func.func @transform_5(%arg0: i32) -> (i32, i32) {
    %c0_i32 = arith.constant 0 : i32
    %c0_i32_0 = arith.constant 0 : i32
    return %arg0, %c0_i32 : i32, i32
  }
  func.func @transform_6(%arg0: i32) -> (i32, i32) {
    %c0_i32 = arith.constant 0 : i32
    %c0_i32_0 = arith.constant 0 : i32
    return %arg0, %c0_i32 : i32, i32
  }
}

module attributes {stable_mosaic.version = 11 : i64} {
  func.func @kernel(%arg0: i32, %arg1: memref<128x128xbf16, #tpu.memory_space<vmem>>, %arg2: memref<1x128xf32, #tpu.memory_space<vmem>>, %arg3: memref<1x128xf32, #tpu.memory_space<vmem>>, %arg4: memref<1x1xf32, #tpu.memory_space<smem>>, %arg5: memref<128x128xbf16, #tpu.memory_space<vmem>>, %arg6: memref<128x128xbf16, #tpu.memory_space<vmem>>, %arg7: memref<8x128xf32, #tpu.memory_space<vmem>>, %arg8: memref<8x128xf32, #tpu.memory_space<vmem>>) attributes {dimension_semantics = [#tpu.dimension_semantics<parallel>], iteration_bounds = array<i64: 4>, scalar_prefetch = 0 : i64, scratch_operands = 0 : i64, tpu.core_type = #tpu.core_type<tc>, window_params = [{transform_indices = @transform_0, window_bounds = array<i64: 128, 128>}, {pipeline_mode = #tpu.pipeline_mode<synchronous>, transform_indices = @transform_1, window_bounds = array<i64: 1, 128>}, {pipeline_mode = #tpu.pipeline_mode<synchronous>, transform_indices = @transform_2, window_bounds = array<i64: 1, 128>}, {transform_indices = @transform_3, window_bounds = array<i64: 1, 1>}, {transform_indices = @transform_4, window_bounds = array<i64: 128, 128>}, {transform_indices = @transform_5, window_bounds = array<i64: 128, 128>}, {transform_indices = @transform_6, window_bounds = array<i64: 8, 128>}, {transform_indices = @transform_7, window_bounds = array<i64: 8, 128>}]} {
    %c0 = arith.constant 0 : index
    %c0_0 = arith.constant 0 : index
    %0 = vector.load %arg1[%c0, %c0_0] : memref<128x128xbf16, #tpu.memory_space<vmem>>, vector<128x128xbf16>
    %1 = arith.extf %0 : vector<128x128xbf16> to vector<128x128xf32>
    %c0_1 = arith.constant 0 : index
    %c0_2 = arith.constant 0 : index
    %2 = vector.load %arg2[%c0_1, %c0_2] : memref<1x128xf32, #tpu.memory_space<vmem>>, vector<1x128xf32>
    %3 = vector.broadcast %2 : vector<1x128xf32> to vector<128x128xf32>
    %4 = arith.mulf %1, %3 : vector<128x128xf32>
    %c0_3 = arith.constant 0 : index
    %c0_4 = arith.constant 0 : index
    %5 = vector.load %arg3[%c0_3, %c0_4] : memref<1x128xf32, #tpu.memory_space<vmem>>, vector<1x128xf32>
    %6 = vector.broadcast %5 : vector<1x128xf32> to vector<128x128xf32>
    %7 = arith.addf %4, %6 : vector<128x128xf32>
    %c0_5 = arith.constant 0 : index
    %c0_6 = arith.constant 0 : index
    %8 = vector.load %arg5[%c0_5, %c0_6] : memref<128x128xbf16, #tpu.memory_space<vmem>>, vector<128x128xbf16>
    %9 = arith.extf %8 : vector<128x128xbf16> to vector<128x128xf32>
    %c0_7 = arith.constant 0 : index
    %c0_8 = arith.constant 0 : index
    %10 = memref.load %arg4[%c0_7, %c0_8] : memref<1x1xf32, #tpu.memory_space<smem>>
    %11 = vector.broadcast %10 : f32 to vector<128x128xf32>
    %12 = arith.mulf %9, %11 : vector<128x128xf32>
    %13 = arith.addf %7, %12 : vector<128x128xf32>
    %cst = arith.constant 0.000000e+00 : f32
    %cst_9 = arith.constant 1.000000e+00 : f32
    %14 = vector.broadcast %cst : f32 to vector<128x128xf32>
    %15 = arith.maximumf %14, %13 : vector<128x128xf32>
    %16 = vector.broadcast %cst_9 : f32 to vector<128x128xf32>
    %17 = arith.minimumf %16, %15 : vector<128x128xf32>
    %18 = arith.truncf %17 : vector<128x128xf32> to vector<128x128xbf16>
    %c0_10 = arith.constant 0 : index
    %c0_11 = arith.constant 0 : index
    %19 = vector.load %arg6[%c0_10, %c0_11] : memref<128x128xbf16, #tpu.memory_space<vmem>>, vector<128x128xbf16>
    tpu.vector_store %arg6[%c0_10, %c0_11], %18 {strides = array<i32>} : memref<128x128xbf16, #tpu.memory_space<vmem>>, vector<128x128xbf16>,
    %20 = vector.extract_strided_slice %17 {offsets = [0, 0], sizes = [8, 128], strides = [1, 1]} : vector<128x128xf32> to vector<8x128xf32>
    %21 = arith.mulf %20, %20 : vector<8x128xf32>
    %22 = vector.extract_strided_slice %17 {offsets = [8, 0], sizes = [8, 128], strides = [1, 1]} : vector<128x128xf32> to vector<8x128xf32>
    %23 = arith.addf %20, %22 : vector<8x128xf32>
    %24 = arith.mulf %22, %22 : vector<8x128xf32>
    %25 = arith.addf %21, %24 : vector<8x128xf32>
    %26 = vector.extract_strided_slice %17 {offsets = [16, 0], sizes = [8, 128], strides = [1, 1]} : vector<128x128xf32> to vector<8x128xf32>
    %27 = arith.addf %23, %26 : vector<8x128xf32>
    %28 = arith.mulf %26, %26 : vector<8x128xf32>
    %29 = arith.addf %25, %28 : vector<8x128xf32>
    %30 = vector.extract_strided_slice %17 {offsets = [24, 0], sizes = [8, 128], strides = [1, 1]} : vector<128x128xf32> to vector<8x128xf32>
    %31 = arith.addf %27, %30 : vector<8x128xf32>
    %32 = arith.mulf %30, %30 : vector<8x128xf32>
    %33 = arith.addf %29, %32 : vector<8x128xf32>
    %34 = vector.extract_strided_slice %17 {offsets = [32, 0], sizes = [8, 128], strides = [1, 1]} : vector<128x128xf32> to vector<8x128xf32>
    %35 = arith.addf %31, %34 : vector<8x128xf32>
    %36 = arith.mulf %34, %34 : vector<8x128xf32>
    %37 = arith.addf %33, %36 : vector<8x128xf32>
    %38 = vector.extract_strided_slice %17 {offsets = [40, 0], sizes = [8, 128], strides = [1, 1]} : vector<128x128xf32> to vector<8x128xf32>
    %39 = arith.addf %35, %38 : vector<8x128xf32>
    %40 = arith.mulf %38, %38 : vector<8x128xf32>
    %41 = arith.addf %37, %40 : vector<8x128xf32>
    %42 = vector.extract_strided_slice %17 {offsets = [48, 0], sizes = [8, 128], strides = [1, 1]} : vector<128x128xf32> to vector<8x128xf32>
    %43 = arith.addf %39, %42 : vector<8x128xf32>
    %44 = arith.mulf %42, %42 : vector<8x128xf32>
    %45 = arith.addf %41, %44 : vector<8x128xf32>
    %46 = vector.extract_strided_slice %17 {offsets = [56, 0], sizes = [8, 128], strides = [1, 1]} : vector<128x128xf32> to vector<8x128xf32>
    %47 = arith.addf %43, %46 : vector<8x128xf32>
    %48 = arith.mulf %46, %46 : vector<8x128xf32>
    %49 = arith.addf %45, %48 : vector<8x128xf32>
    %50 = vector.extract_strided_slice %17 {offsets = [64, 0], sizes = [8, 128], strides = [1, 1]} : vector<128x128xf32> to vector<8x128xf32>
    %51 = arith.addf %47, %50 : vector<8x128xf32>
    %52 = arith.mulf %50, %50 : vector<8x128xf32>
    %53 = arith.addf %49, %52 : vector<8x128xf32>
    %54 = vector.extract_strided_slice %17 {offsets = [72, 0], sizes = [8, 128], strides = [1, 1]} : vector<128x128xf32> to vector<8x128xf32>
    %55 = arith.addf %51, %54 : vector<8x128xf32>
    %56 = arith.mulf %54, %54 : vector<8x128xf32>
    %57 = arith.addf %53, %56 : vector<8x128xf32>
    %58 = vector.extract_strided_slice %17 {offsets = [80, 0], sizes = [8, 128], strides = [1, 1]} : vector<128x128xf32> to vector<8x128xf32>
    %59 = arith.addf %55, %58 : vector<8x128xf32>
    %60 = arith.mulf %58, %58 : vector<8x128xf32>
    %61 = arith.addf %57, %60 : vector<8x128xf32>
    %62 = vector.extract_strided_slice %17 {offsets = [88, 0], sizes = [8, 128], strides = [1, 1]} : vector<128x128xf32> to vector<8x128xf32>
    %63 = arith.addf %59, %62 : vector<8x128xf32>
    %64 = arith.mulf %62, %62 : vector<8x128xf32>
    %65 = arith.addf %61, %64 : vector<8x128xf32>
    %66 = vector.extract_strided_slice %17 {offsets = [96, 0], sizes = [8, 128], strides = [1, 1]} : vector<128x128xf32> to vector<8x128xf32>
    %67 = arith.addf %63, %66 : vector<8x128xf32>
    %68 = arith.mulf %66, %66 : vector<8x128xf32>
    %69 = arith.addf %65, %68 : vector<8x128xf32>
    %70 = vector.extract_strided_slice %17 {offsets = [104, 0], sizes = [8, 128], strides = [1, 1]} : vector<128x128xf32> to vector<8x128xf32>
    %71 = arith.addf %67, %70 : vector<8x128xf32>
    %72 = arith.mulf %70, %70 : vector<8x128xf32>
    %73 = arith.addf %69, %72 : vector<8x128xf32>
    %74 = vector.extract_strided_slice %17 {offsets = [112, 0], sizes = [8, 128], strides = [1, 1]} : vector<128x128xf32> to vector<8x128xf32>
    %75 = arith.addf %71, %74 : vector<8x128xf32>
    %76 = arith.mulf %74, %74 : vector<8x128xf32>
    %77 = arith.addf %73, %76 : vector<8x128xf32>
    %78 = vector.extract_strided_slice %17 {offsets = [120, 0], sizes = [8, 128], strides = [1, 1]} : vector<128x128xf32> to vector<8x128xf32>
    %79 = arith.addf %75, %78 : vector<8x128xf32>
    %80 = arith.mulf %78, %78 : vector<8x128xf32>
    %81 = arith.addf %77, %80 : vector<8x128xf32>
    %c0_12 = arith.constant 0 : index
    %c0_13 = arith.constant 0 : index
    %82 = vector.load %arg7[%c0_12, %c0_13] : memref<8x128xf32, #tpu.memory_space<vmem>>, vector<8x128xf32>
    tpu.vector_store %arg7[%c0_12, %c0_13], %81 {strides = array<i32>} : memref<8x128xf32, #tpu.memory_space<vmem>>, vector<8x128xf32>,
    %c0_14 = arith.constant 0 : index
    %c0_15 = arith.constant 0 : index
    %83 = vector.load %arg8[%c0_14, %c0_15] : memref<8x128xf32, #tpu.memory_space<vmem>>, vector<8x128xf32>
    tpu.vector_store %arg8[%c0_14, %c0_15], %79 {strides = array<i32>} : memref<8x128xf32, #tpu.memory_space<vmem>>, vector<8x128xf32>,
    return
  }
  func.func @transform_0(%arg0: i32) -> (i32, i32) {
    %c0_i32 = arith.constant 0 : i32
    %c0_i32_0 = arith.constant 0 : i32
    return %arg0, %c0_i32 : i32, i32
  }
  func.func @transform_1(%arg0: i32) -> (i32, i32) {
    %c0_i32 = arith.constant 0 : i32
    %c0_i32_0 = arith.constant 0 : i32
    %c0_i32_1 = arith.constant 0 : i32
    return %c0_i32, %c0_i32_0 : i32, i32
  }
  func.func @transform_2(%arg0: i32) -> (i32, i32) {
    %c0_i32 = arith.constant 0 : i32
    %c0_i32_0 = arith.constant 0 : i32
    %c0_i32_1 = arith.constant 0 : i32
    return %c0_i32, %c0_i32_0 : i32, i32
  }
  func.func @transform_3(%arg0: i32) -> (i32, i32) {
    %c0_i32 = arith.constant 0 : i32
    %c0_i32_0 = arith.constant 0 : i32
    %c0_i32_1 = arith.constant 0 : i32
    return %c0_i32, %c0_i32_0 : i32, i32
  }
  func.func @transform_4(%arg0: i32) -> (i32, i32) {
    %c0_i32 = arith.constant 0 : i32
    %c0_i32_0 = arith.constant 0 : i32
    return %arg0, %c0_i32 : i32, i32
  }
  func.func @transform_5(%arg0: i32) -> (i32, i32) {
    %c0_i32 = arith.constant 0 : i32
    %c0_i32_0 = arith.constant 0 : i32
    return %arg0, %c0_i32 : i32, i32
  }
  func.func @transform_6(%arg0: i32) -> (i32, i32) {
    %c0_i32 = arith.constant 0 : i32
    %c0_i32_0 = arith.constant 0 : i32
    return %arg0, %c0_i32 : i32, i32
  }
  func.func @transform_7(%arg0: i32) -> (i32, i32) {
    %c0_i32 = arith.constant 0 : i32
    %c0_i32_0 = arith.constant 0 : i32
    return %arg0, %c0_i32 : i32, i32
  }
}

module attributes {stable_mosaic.version = 11 : i64} {
  func.func @kernel(%arg0: i32, %arg1: memref<128x128xbf16, #tpu.memory_space<vmem>>, %arg2: memref<1x1xf32, #tpu.memory_space<smem>>, %arg3: memref<128x128xbf16, #tpu.memory_space<vmem>>) attributes {dimension_semantics = [#tpu.dimension_semantics<parallel>], iteration_bounds = array<i64: 4>, scalar_prefetch = 0 : i64, scratch_operands = 0 : i64, tpu.core_type = #tpu.core_type<tc>, window_params = [{transform_indices = @transform_0, window_bounds = array<i64: 128, 128>}, {transform_indices = @transform_1, window_bounds = array<i64: 1, 1>}, {transform_indices = @transform_2, window_bounds = array<i64: 128, 128>}]} {
    %c0 = arith.constant 0 : index
    %c0_0 = arith.constant 0 : index
    %0 = vector.load %arg1[%c0, %c0_0] : memref<128x128xbf16, #tpu.memory_space<vmem>>, vector<128x128xbf16>
    %1 = arith.extf %0 : vector<128x128xbf16> to vector<128x128xf32>
    %c0_1 = arith.constant 0 : index
    %c0_2 = arith.constant 0 : index
    %2 = memref.load %arg2[%c0_1, %c0_2] : memref<1x1xf32, #tpu.memory_space<smem>>
    %3 = vector.broadcast %2 : f32 to vector<128x128xf32>
    %4 = arith.cmpf oge, %1, %3 : vector<128x128xf32>
    %cst = arith.constant 1.000000e+00 : f32
    %cst_3 = arith.constant 0.000000e+00 : f32
    %5 = vector.broadcast %cst : f32 to vector<128x128xf32>
    %6 = vector.broadcast %cst_3 : f32 to vector<128x128xf32>
    %7 = arith.select %4, %5, %6 : vector<128x128xi1>, vector<128x128xf32>
    %8 = arith.truncf %7 : vector<128x128xf32> to vector<128x128xbf16>
    %c0_4 = arith.constant 0 : index
    %c0_5 = arith.constant 0 : index
    %9 = vector.load %arg3[%c0_4, %c0_5] : memref<128x128xbf16, #tpu.memory_space<vmem>>, vector<128x128xbf16>
    tpu.vector_store %arg3[%c0_4, %c0_5], %8 {strides = array<i32>} : memref<128x128xbf16, #tpu.memory_space<vmem>>, vector<128x128xbf16>,
    return
  }
  func.func @transform_0(%arg0: i32) -> (i32, i32) {
    %c0_i32 = arith.constant 0 : i32
    %c0_i32_0 = arith.constant 0 : i32
    return %arg0, %c0_i32 : i32, i32
  }
  func.func @transform_1(%arg0: i32) -> (i32, i32) {
    %c0_i32 = arith.constant 0 : i32
    %c0_i32_0 = arith.constant 0 : i32
    %c0_i32_1 = arith.constant 0 : i32
    return %c0_i32, %c0_i32_0 : i32, i32
  }
  func.func @transform_2(%arg0: i32) -> (i32, i32) {
    %c0_i32 = arith.constant 0 : i32
    %c0_i32_0 = arith.constant 0 : i32
    return %arg0, %c0_i32 : i32, i32
  }
}

</mosaic_0001>

<bundles_post_ra>
// kernel: basic_block_double_forward.6
= control target key start
LH: loop header
LB: loop body
LE: loop exit
PB: predicated region body
PF: predicated region fallthrough
CT: control target
= control target key end

     0   :  { %s784_s18 = smov 0   ;;  %s881_s0 = inlined_call_operand.vmem [shape: bf16[512,128], index: 0, kind: input, shape index: {}]   ;;  %s882_s1 = inlined_call_operand.vmem [shape: f32[1,128], index: 1, kind: input, shape index: {}]   ;;  %s883_s2 = inlined_call_operand.vmem [shape: f32[1,128], index: 2, kind: input, shape index: {}]   ;;  %s884_s3 = inlined_call_operand.vmem [shape: bf16[512,128], index: 3, kind: output, shape index: {0}]   ;;  %s885_s4 = inlined_call_operand.vmem [shape: f32[32,128], index: 4, kind: output, shape index: {1}]   ;;  %s886_s5 = inlined_call_operand.vmem [shape: f32[32,128], index: 5, kind: output, shape index: {2}]  }
   0x1 LB: > { %s790_s19 = sadd.s32 4294967295, %s752_s18   ;;  %p609_p0 = scmp.ge.s32.totalorder %s752_s18, 1  ;;  %s752_s18 = sphi %s784_s18, %s16_s18  }
   0x2   : > { %p193_p1 = scmp.lt.s32.totalorder %s752_s18, 5 }
   0x4   : > { %p194_p2 = pnand %p609_p0, %p193_p1 }
   0x5   : > { %s610_s20 = sshll.u32 (!%p194_p2), %s790_s19, 4  ;;  %v808_v0 = vld [vmem:[%s882_s1] ss:$0 sm:$0xff] (!%p194_p2)  ;;  %p241_p4 = scmp.lt.s32.totalorder (!%p194_p2), %s790_s19, 3 }
   0x6   : > { %197 = sbr.rel (%p194_p2) target bundleno = 60 (0x3c), region = 32  ;;  %p230_p3 = scmp.lt.s32.totalorder (!%p194_p2), %s610_s20, 63  ;;  %v817_v9 = vld [vmem:[%s883_s2] ss:$0 sm:$0xff] (!%p194_p2) }
   0xd   : > { %s888_s20 = smov (!%p230_p3, %s610_s20), 63  ;;  %s890_s19 = smov (!%p241_p4, %s790_s19), 3 }
   0xe   : > { %s611_s21 = sshll.u32 %s888_s20, 2  ;;  %s614_s7 = sshll.u32 %s890_s19, 3 }
   0xf   : > { %s803_s24 = scalar_lea.vmem %s881_s0, %s611_s21  ;;  %s840_s6 = scalar_lea.vmem %s884_s3, %s611_s21 }
  0x10   : > { %v653_v1 = vld [vmem:[%s803_s24] sm:$0xff]   ;;  %v724_v2 = vld [vmem:[%s803_s24 + $0x8] sm:$0xff]   ;;  %v725_v3 = vld [vmem:[%s803_s24 + $0x10] sm:$0xff]   ;;  %s248_s10 = scalar_lea.vmem %s886_s5, %s614_s7  ;;  %s244_s13 = scalar_lea.vmem %s885_s4, %s614_s7 }
  0x11   : > { %v654_v4 = vunpack.c.l.bf16 %v653_v1  ;;  %v655_v5 = vunpack.c.h.bf16 %v653_v1  ;;  %v658_v6 = vunpack.c.l.bf16 %v724_v2  ;;  %v659_v7 = vunpack.c.h.bf16 %v724_v2  ;;  %v726_v8 = vld [vmem:[%s803_s24 + $0x18] sm:$0xff]   ;;  %v727_v50 = vld [vmem:[%s803_s24 + $0x20] sm:$0xff]   ;;  %v728_v55 = vld [vmem:[%s803_s24 + $0x28] sm:$0xff]  }
  0x12   : > { %v662_v10 = vunpack.c.l.bf16 %v725_v3  ;;  %v663_v11 = vunpack.c.h.bf16 %v725_v3  ;;  %v666_v12 = vunpack.c.l.bf16 %v726_v8  ;;  %v667_v13 = vunpack.c.h.bf16 %v726_v8  ;;  %v729_v60 = vld [vmem:[%s803_s24 + $0x30] sm:$0xff]  }
  0x13   : > { %v288_v14 = vmul.f32 %v654_v4, %v808_v0  ;;  %v289_v15 = vmul.f32 %v655_v5, %v808_v0  ;;  %v290_v16 = vmul.f32 %v658_v6, %v808_v0  ;;  %v291_v17 = vmul.f32 %v659_v7, %v808_v0 }
  0x14   : > { %v292_v18 = vmul.f32 %v662_v10, %v808_v0  ;;  %v293_v19 = vmul.f32 %v663_v11, %v808_v0  ;;  %v294_v20 = vmul.f32 %v666_v12, %v808_v0  ;;  %v295_v21 = vmul.f32 %v667_v13, %v808_v0 }
  0x15   : > { %v311_v22 = vadd.f32 %v817_v9, %v288_v14  ;;  %v312_v23 = vadd.f32 %v817_v9, %v289_v15  ;;  %v313_v24 = vadd.f32 %v817_v9, %v290_v16  ;;  %v314_v25 = vadd.f32 %v817_v9, %v291_v17 }
  0x16   : > { %v315_v26 = vadd.f32 %v817_v9, %v292_v18  ;;  %v316_v27 = vadd.f32 %v817_v9, %v293_v19  ;;  %v317_v28 = vadd.f32 %v817_v9, %v294_v20  ;;  %v318_v29 = vadd.f32 %v817_v9, %v295_v21 }
  0x17   : > { %v327_v30 = vmax.f32 %v311_v22, 0.0  ;;  %v328_v31 = vmax.f32 %v312_v23, 0.0  ;;  %v329_v32 = vmax.f32 %v313_v24, 0.0  ;;  %v330_v33 = vmax.f32 %v314_v25, 0.0 }
  0x18   : > { %v331_v34 = vmax.f32 %v315_v26, 0.0  ;;  %v332_v35 = vmax.f32 %v316_v27, 0.0  ;;  %v333_v36 = vmax.f32 %v317_v28, 0.0  ;;  %v334_v37 = vmax.f32 %v318_v29, 0.0 }
  0x19   : > { %v343_v38 = vmin.f32 %v327_v30, 1.0  ;;  %v344_v39 = vmin.f32 %v328_v31, 1.0  ;;  %v345_v40 = vmin.f32 %v329_v32, 1.0  ;;  %v346_v41 = vmin.f32 %v330_v33, 1.0 }
  0x1a   : > { %v347_v42 = vmin.f32 %v331_v34, 1.0  ;;  %v348_v43 = vmin.f32 %v332_v35, 1.0  ;;  %v349_v44 = vmin.f32 %v333_v36, 1.0  ;;  %v350_v45 = vmin.f32 %v334_v37, 1.0 }
  0x1b   : > { %v687_v46 = vpack.c.bf16 %v344_v39, %v343_v38  ;;  %v439_v47 = vmul.f32 %v343_v38, %v343_v38  ;;  %v440_v48 = vadd.f32 %v344_v39, %v343_v38  ;;  %v441_v49 = vmul.f32 %v344_v39, %v344_v39 }
  0x1c   : > { %v692_v51 = vpack.c.bf16 %v346_v41, %v345_v40  ;;  %v444_v52 = vmul.f32 %v345_v40, %v345_v40  ;;  %v447_v53 = vmul.f32 %v346_v41, %v346_v41  ;;  %v697_v54 = vpack.c.bf16 %v348_v43, %v347_v42 }
  0x1d   : > { %688 = vst [vmem:[%s840_s6] sm:$0xff] %v687_v46   ;;  %v442_v56 = vadd.f32 %v441_v49, %v439_v47  ;;  %v443_v57 = vadd.f32 %v440_v48, %v345_v40  ;;  %v450_v58 = vmul.f32 %v347_v42, %v347_v42  ;;  %v453_v59 = vmul.f32 %v348_v43, %v348_v43 }
  0x1e   : > { %731 = vst [vmem:[%s840_s6 + $0x8] sm:$0xff] %v692_v51   ;;  %732 = vst [vmem:[%s840_s6 + $0x10] sm:$0xff] %v697_v54   ;;  %v702_v61 = vpack.c.bf16 %v350_v45, %v349_v44  ;;  %v456_v62 = vmul.f32 %v349_v44, %v349_v44  ;;  %v459_v63 = vmul.f32 %v350_v45, %v350_v45  ;;  %v670_v1 = vunpack.c.l.bf16 %v727_v50 }
  0x1f   : > { %v445_v2 = vadd.f32 %v444_v52, %v442_v56  ;;  %v446_v3 = vadd.f32 %v443_v57, %v346_v41  ;;  %v671_v4 = vunpack.c.h.bf16 %v727_v50  ;;  %v674_v5 = vunpack.c.l.bf16 %v728_v55 }
  0x20   : > { %733 = vst [vmem:[%s840_s6 + $0x18] sm:$0xff] %v702_v61   ;;  %v296_v6 = vmul.f32 %v670_v1, %v808_v0  ;;  %v675_v7 = vunpack.c.h.bf16 %v728_v55  ;;  %v678_v8 = vunpack.c.l.bf16 %v729_v60  ;;  %v679_v10 = vunpack.c.h.bf16 %v729_v60 }
  0x21   : > { %v448_v11 = vadd.f32 %v447_v53, %v445_v2  ;;  %v449_v12 = vadd.f32 %v446_v3, %v347_v42  ;;  %v297_v13 = vmul.f32 %v671_v4, %v808_v0  ;;  %v298_v14 = vmul.f32 %v674_v5, %v808_v0 }
  0x22   : > { %v319_v15 = vadd.f32 %v817_v9, %v296_v6  ;;  %v299_v16 = vmul.f32 %v675_v7, %v808_v0  ;;  %v300_v17 = vmul.f32 %v678_v8, %v808_v0  ;;  %v301_v18 = vmul.f32 %v679_v10, %v808_v0 }
  0x23   : > { %v451_v19 = vadd.f32 %v450_v58, %v448_v11  ;;  %v452_v20 = vadd.f32 %v449_v12, %v348_v43  ;;  %v320_v21 = vadd.f32 %v817_v9, %v297_v13  ;;  %v321_v22 = vadd.f32 %v817_v9, %v298_v14  ;;  %v730_v43 = vld [vmem:[%s803_s24 + $0x38] sm:$0xff]  }
  0x24   : > { %v335_v23 = vmax.f32 %v319_v15, 0.0  ;;  %v322_v24 = vadd.f32 %v817_v9, %v299_v16  ;;  %v323_v25 = vadd.f32 %v817_v9, %v300_v17  ;;  %v324_v26 = vadd.f32 %v817_v9, %v301_v18 }
  0x25   : > { %v454_v27 = vadd.f32 %v453_v59, %v451_v19  ;;  %v455_v28 = vadd.f32 %v452_v20, %v349_v44  ;;  %v336_v29 = vmax.f32 %v320_v21, 0.0  ;;  %v337_v30 = vmax.f32 %v321_v22, 0.0 }
  0x26   : > { %v351_v31 = vmin.f32 %v335_v23, 1.0  ;;  %v338_v32 = vmax.f32 %v322_v24, 0.0  ;;  %v339_v33 = vmax.f32 %v323_v25, 0.0  ;;  %v340_v34 = vmax.f32 %v324_v26, 0.0 }
  0x27   : > { %v457_v35 = vadd.f32 %v456_v62, %v454_v27  ;;  %v458_v36 = vadd.f32 %v455_v28, %v350_v45  ;;  %v352_v37 = vmin.f32 %v336_v29, 1.0  ;;  %v353_v38 = vmin.f32 %v337_v30, 1.0 }
  0x28   : > { %v462_v39 = vmul.f32 %v351_v31, %v351_v31  ;;  %v354_v40 = vmin.f32 %v338_v32, 1.0  ;;  %v355_v41 = vmin.f32 %v339_v33, 1.0  ;;  %v356_v42 = vmin.f32 %v340_v34, 1.0 }
  0x29   : > { %v460_v44 = vadd.f32 %v459_v63, %v457_v35  ;;  %v707_v46 = vpack.c.bf16 %v352_v37, %v351_v31  ;;  %v461_v47 = vadd.f32 %v458_v36, %v351_v31  ;;  %v465_v48 = vmul.f32 %v352_v37, %v352_v37 }
  0x2a   : > { %v712_v49 = vpack.c.bf16 %v354_v40, %v353_v38  ;;  %v468_v50 = vmul.f32 %v353_v38, %v353_v38  ;;  %v717_v51 = vpack.c.bf16 %v356_v42, %v355_v41  ;;  %v682_v53 = vunpack.c.l.bf16 %v730_v43 }
  0x2b   : > { %734 = vst [vmem:[%s840_s6 + $0x20] sm:$0xff] %v707_v46   ;;  %v463_v52 = vadd.f32 %v462_v39, %v460_v44  ;;  %v464_v45 = vadd.f32 %v461_v47, %v352_v37  ;;  %v683_v54 = vunpack.c.h.bf16 %v730_v43  ;;  %v471_v55 = vmul.f32 %v354_v40, %v354_v40 }
  0x2c   : > { %735 = vst [vmem:[%s840_s6 + $0x28] sm:$0xff] %v712_v49   ;;  %736 = vst [vmem:[%s840_s6 + $0x30] sm:$0xff] %v717_v51   ;;  %v302_v58 = vmul.f32 %v682_v53, %v808_v0  ;;  %v474_v60 = vmul.f32 %v355_v41, %v355_v41  ;;  %v477_v2 = vmul.f32 %v356_v42, %v356_v42 }
  0x2d   : > { %v466_v56 = vadd.f32 %v465_v48, %v463_v52  ;;  %v467_v57 = vadd.f32 %v464_v45, %v353_v38  ;;  %v303_v59 = vmul.f32 %v683_v54, %v808_v0 }
  0x2e   : > { %v325_v61 = vadd.f32 %v817_v9, %v302_v58 }
  0x2f   : > { %v326_v62 = vadd.f32 %v817_v9, %v303_v59  ;;  %v469_v63 = vadd.f32 %v468_v50, %v466_v56  ;;  %v470_v1 = vadd.f32 %v467_v57, %v354_v40 }
  0x30   : > { %v341_v3 = vmax.f32 %v325_v61, 0.0 }
  0x31   : > { %v342_v4 = vmax.f32 %v326_v62, 0.0  ;;  %v472_v5 = vadd.f32 %v471_v55, %v469_v63  ;;  %v473_v6 = vadd.f32 %v470_v1, %v355_v41 }
  0x32   : > { %v357_v7 = vmin.f32 %v341_v3, 1.0 }
  0x33   : > { %v358_v8 = vmin.f32 %v342_v4, 1.0  ;;  %v475_v10 = vadd.f32 %v474_v60, %v472_v5  ;;  %v476_v11 = vadd.f32 %v473_v6, %v356_v42 }
  0x34   : > { %v480_v13 = vmul.f32 %v357_v7, %v357_v7 }
  0x35   : > { %v722_v0 = vpack.c.bf16 %v358_v8, %v357_v7  ;;  %v478_v12 = vadd.f32 %v477_v2, %v475_v10  ;;  %v483_v14 = vmul.f32 %v358_v8, %v358_v8  ;;  %v479_v15 = vadd.f32 %v476_v11, %v357_v7 }
  0x37   : > { %737 = vst [vmem:[%s840_s6 + $0x38] sm:$0xff] %v722_v0   ;;  %v481_v9 = vadd.f32 %v480_v13, %v478_v12  ;;  %v482_v16 = vadd.f32 %v479_v15, %v358_v8 }
  0x39   : > { %v484_v17 = vadd.f32 %v483_v14, %v481_v9  ;;  %486 = vst [vmem:[%s248_s10] sm:$0xff] %v482_v16 }
  0x3b   : > { %485 = vst [vmem:[%s244_s13] sm:$0xff] %v484_v17 }
  0x3c PF: > { %s16_s18 = sadd.s32 1, %s752_s18  }
  0x3d   : > { %p13_p5 = scmp.ge.s32.totalorder %s16_s18, 6  }
  0x3f   :  { %15 = sbr.rel (!%p13_p5) target bundleno = 1 (0x1), region = 86 }

// kernel: basic_block_double_forward.8
= control target key start
LH: loop header
LB: loop body
LE: loop exit
PB: predicated region body
PF: predicated region fallthrough
CT: control target
= control target key end

     0   :  { %s993_s26 = smov 0   ;;  %s1121_s0 = inlined_call_operand.vmem [shape: bf16[512,128], index: 0, kind: input, shape index: {}]   ;;  %s1122_s1 = inlined_call_operand.vmem [shape: f32[1,128], index: 1, kind: input, shape index: {}]   ;;  %s1123_s2 = inlined_call_operand.vmem [shape: f32[1,128], index: 2, kind: input, shape index: {}]   ;;  %s1124_s3 = inlined_call_operand.<no memory space> [shape: f32[1,1], index: 3, kind: input, shape index: {}]   ;;  %s1125_s4 = inlined_call_operand.vmem [shape: bf16[512,128], index: 4, kind: input, shape index: {}]   ;;  %s1126_s5 = inlined_call_operand.vmem [shape: bf16[512,128], index: 5, kind: output, shape index: {0}]   ;;  %s1127_s6 = inlined_call_operand.vmem [shape: f32[32,128], index: 6, kind: output, shape index: {1}]   ;;  %s1128_s7 = inlined_call_operand.vmem [shape: f32[32,128], index: 7, kind: output, shape index: {2}]  }
   0x1   :  { %13 = sst [smem:[#allocation2]] %s1124_s3 }
   0x2 LB: > { %s999_s27 = sadd.s32 4294967295, %s948_s26   ;;  %p764_p0 = scmp.ge.s32.totalorder %s948_s26, 1  ;;  %s948_s26 = sphi %s993_s26, %s19_s26  }
   0x3   : > { %p255_p1 = scmp.lt.s32.totalorder %s948_s26, 5 }
   0x5   : > { %p256_p2 = pnand %p764_p0, %p255_p1 }
   0x6   : > { %s765_s28 = sshll.u32 (!%p256_p2), %s999_s27, 4  ;;  %s436_s3 = sld [smem:[#allocation2]] (!%p256_p2)  ;;  %v1021_v0 = vld [vmem:[%s1122_s1] ss:$0 sm:$0xff] (!%p256_p2) }
   0x7   : > { %259 = sbr.rel (%p256_p2) target bundleno = 71 (0x47), region = 40  ;;  %p301_p3 = scmp.lt.s32.totalorder (!%p256_p2), %s765_s28, 63  ;;  %v1032_v10 = vld [vmem:[%s1123_s2] ss:$0 sm:$0xff] (!%p256_p2) }
   0x8   : > { %p318_p4 = scmp.lt.s32.totalorder (!%p256_p2), %s999_s27, 3 }
   0xc   : > { %v1025_v3 = vstv (!%p256_p2), %s436_s3 }
   0xe   : > { %s1130_s28 = smov (!%p301_p3, %s765_s28), 63  ;;  %s1132_s27 = smov (!%p318_p4, %s999_s27), 3 }
   0xf   : > { %s1004_s29 = sshll.u32 %s1130_s28, 2  ;;  %s771_s20 = sshll.u32 %s1132_s27, 3 }
  0x10   : > { %s1010_s9 = scalar_lea.vmem %s1121_s0, %s1004_s29  ;;  %s1016_s12 = scalar_lea.vmem %s1125_s4, %s1004_s29 }
  0x11   : > { %v810_v1 = vld [vmem:[%s1010_s9] sm:$0xff]   ;;  %v913_v4 = vld [vmem:[%s1010_s9 + $0x8] sm:$0xff]   ;;  %v914_v15 = vld [vmem:[%s1010_s9 + $0x10] sm:$0xff]   ;;  %s1059_s19 = scalar_lea.vmem %s1126_s5, %s1004_s29  ;;  %s325_s23 = scalar_lea.vmem %s1128_s7, %s771_s20 }
  0x12   : > { %v842_v2 = vld [vmem:[%s1016_s12] sm:$0xff]   ;;  %v811_v5 = vunpack.c.l.bf16 %v810_v1  ;;  %v812_v6 = vunpack.c.h.bf16 %v810_v1  ;;  %v920_v9 = vld [vmem:[%s1016_s12 + $0x8] sm:$0xff]   ;;  %v815_v11 = vunpack.c.l.bf16 %v913_v4  ;;  %v816_v12 = vunpack.c.h.bf16 %v913_v4  ;;  %v921_v20 = vld [vmem:[%s1016_s12 + $0x10] sm:$0xff]   ;;  %s321_s28 = scalar_lea.vmem %s1127_s6, %s771_s20 }
  0x13   : > { %v843_v7 = vunpack.c.l.bf16 %v842_v2  ;;  %v844_v8 = vunpack.c.h.bf16 %v842_v2  ;;  %v847_v13 = vunpack.c.l.bf16 %v920_v9  ;;  %v848_v14 = vunpack.c.h.bf16 %v920_v9  ;;  %v915_v37 = vld [vmem:[%s1010_s9 + $0x18] sm:$0xff]  }
  0x14   : > { %v365_v16 = vmul.f32 %v811_v5, %v1021_v0  ;;  %v366_v17 = vmul.f32 %v812_v6, %v1021_v0  ;;  %v367_v21 = vmul.f32 %v815_v11, %v1021_v0  ;;  %v368_v22 = vmul.f32 %v816_v12, %v1021_v0  ;;  %v922_v62 = vld [vmem:[%s1016_s12 + $0x18] sm:$0xff]   ;;  %v916_v5 = vld [vmem:[%s1010_s9 + $0x20] sm:$0xff]  }
  0x15   : > { %v438_v18 = vmul.f32 %v843_v7, %v1025_v3  ;;  %v439_v19 = vmul.f32 %v844_v8, %v1025_v3  ;;  %v440_v23 = vmul.f32 %v847_v13, %v1025_v3  ;;  %v441_v24 = vmul.f32 %v848_v14, %v1025_v3 }
  0x16   : > { %v388_v25 = vadd.f32 %v1032_v10, %v365_v16  ;;  %v389_v26 = vadd.f32 %v1032_v10, %v366_v17  ;;  %v819_v27 = vunpack.c.l.bf16 %v914_v15  ;;  %v820_v28 = vunpack.c.h.bf16 %v914_v15 }
  0x17   : > { %v390_v29 = vadd.f32 %v1032_v10, %v367_v21  ;;  %v391_v30 = vadd.f32 %v1032_v10, %v368_v22  ;;  %v851_v31 = vunpack.c.l.bf16 %v921_v20  ;;  %v852_v32 = vunpack.c.h.bf16 %v921_v20 }
  0x18   : > { %v454_v33 = vadd.f32 %v438_v18, %v388_v25  ;;  %v455_v34 = vadd.f32 %v439_v19, %v389_v26  ;;  %v369_v35 = vmul.f32 %v819_v27, %v1021_v0  ;;  %v370_v36 = vmul.f32 %v820_v28, %v1021_v0 }
  0x19   : > { %v456_v38 = vadd.f32 %v440_v23, %v390_v29  ;;  %v457_v39 = vadd.f32 %v441_v24, %v391_v30  ;;  %v442_v40 = vmul.f32 %v851_v31, %v1025_v3  ;;  %v443_v41 = vmul.f32 %v852_v32, %v1025_v3  ;;  %v923_v23 = vld [vmem:[%s1016_s12 + $0x20] sm:$0xff]   ;;  %v917_v32 = vld [vmem:[%s1010_s9 + $0x28] sm:$0xff]  }
  0x1a   : > { %v470_v42 = vmax.f32 %v454_v33, 0.0  ;;  %v471_v43 = vmax.f32 %v455_v34, 0.0  ;;  %v392_v44 = vadd.f32 %v1032_v10, %v369_v35  ;;  %v393_v45 = vadd.f32 %v1032_v10, %v370_v36 }
  0x1b   : > { %v472_v46 = vmax.f32 %v456_v38, 0.0  ;;  %v473_v47 = vmax.f32 %v457_v39, 0.0  ;;  %v823_v48 = vunpack.c.l.bf16 %v915_v37  ;;  %v824_v49 = vunpack.c.h.bf16 %v915_v37  ;;  %v924_v37 = vld [vmem:[%s1016_s12 + $0x28] sm:$0xff]  }
  0x1c   : > { %v486_v50 = vmin.f32 %v470_v42, 1.0  ;;  %v487_v51 = vmin.f32 %v471_v43, 1.0  ;;  %v458_v52 = vadd.f32 %v442_v40, %v392_v44  ;;  %v459_v53 = vadd.f32 %v443_v41, %v393_v45 }
  0x1d   : > { %v488_v54 = vmin.f32 %v472_v46, 1.0  ;;  %v489_v55 = vmin.f32 %v473_v47, 1.0  ;;  %v371_v56 = vmul.f32 %v823_v48, %v1021_v0  ;;  %v372_v57 = vmul.f32 %v824_v49, %v1021_v0 }
  0x1e   : > { %v876_v58 = vpack.c.bf16 %v487_v51, %v486_v50  ;;  %v582_v59 = vmul.f32 %v486_v50, %v486_v50  ;;  %v583_v60 = vadd.f32 %v487_v51, %v486_v50  ;;  %v584_v61 = vmul.f32 %v487_v51, %v487_v51 }
  0x1f   : > { %v881_v63 = vpack.c.bf16 %v489_v55, %v488_v54  ;;  %v587_v1 = vmul.f32 %v488_v54, %v488_v54  ;;  %v590_v2 = vmul.f32 %v489_v55, %v489_v55  ;;  %v474_v4 = vmax.f32 %v458_v52, 0.0 }
  0x20   : > { %877 = vst [vmem:[%s1059_s19] sm:$0xff] %v876_v58   ;;  %v585_v6 = vadd.f32 %v584_v61, %v582_v59  ;;  %v586_v7 = vadd.f32 %v583_v60, %v488_v54  ;;  %v475_v8 = vmax.f32 %v459_v53, 0.0  ;;  %v394_v9 = vadd.f32 %v1032_v10, %v371_v56  ;;  %v918_v58 = vld [vmem:[%s1010_s9 + $0x30] sm:$0xff]  }
  0x21   : > { %927 = vst [vmem:[%s1059_s19 + $0x8] sm:$0xff] %v881_v63   ;;  %v490_v11 = vmin.f32 %v474_v4, 1.0  ;;  %v395_v12 = vadd.f32 %v1032_v10, %v372_v57  ;;  %v855_v13 = vunpack.c.l.bf16 %v922_v62  ;;  %v856_v14 = vunpack.c.h.bf16 %v922_v62  ;;  %v925_v63 = vld [vmem:[%s1016_s12 + $0x30] sm:$0xff]  }
  0x22   : > { %v588_v15 = vadd.f32 %v587_v1, %v585_v6  ;;  %v589_v16 = vadd.f32 %v586_v7, %v489_v55  ;;  %v491_v17 = vmin.f32 %v475_v8, 1.0  ;;  %v827_v18 = vunpack.c.l.bf16 %v916_v5 }
  0x23   : > { %v593_v19 = vmul.f32 %v490_v11, %v490_v11  ;;  %v444_v20 = vmul.f32 %v855_v13, %v1025_v3  ;;  %v445_v21 = vmul.f32 %v856_v14, %v1025_v3  ;;  %v828_v22 = vunpack.c.h.bf16 %v916_v5 }
  0x24   : > { %v591_v24 = vadd.f32 %v590_v2, %v588_v15  ;;  %v886_v25 = vpack.c.bf16 %v491_v17, %v490_v11  ;;  %v592_v26 = vadd.f32 %v589_v16, %v490_v11  ;;  %v596_v27 = vmul.f32 %v491_v17, %v491_v17 }
  0x25   : > { %v460_v28 = vadd.f32 %v444_v20, %v394_v9  ;;  %v461_v29 = vadd.f32 %v445_v21, %v395_v12  ;;  %v373_v30 = vmul.f32 %v827_v18, %v1021_v0  ;;  %v374_v31 = vmul.f32 %v828_v22, %v1021_v0 }
  0x26   : > { %928 = vst [vmem:[%s1059_s19 + $0x10] sm:$0xff] %v886_v25   ;;  %v594_v33 = vadd.f32 %v593_v19, %v591_v24  ;;  %v595_v34 = vadd.f32 %v592_v26, %v491_v17  ;;  %v859_v35 = vunpack.c.l.bf16 %v923_v23  ;;  %v860_v36 = vunpack.c.h.bf16 %v923_v23  ;;  %v919_v23 = vld [vmem:[%s1010_s9 + $0x38] sm:$0xff]  }
  0x27   : > { %v476_v38 = vmax.f32 %v460_v28, 0.0  ;;  %v477_v39 = vmax.f32 %v461_v29, 0.0  ;;  %v396_v40 = vadd.f32 %v1032_v10, %v373_v30  ;;  %v397_v41 = vadd.f32 %v1032_v10, %v374_v31 }
  0x28   : > { %v597_v42 = vadd.f32 %v596_v27, %v594_v33  ;;  %v446_v43 = vmul.f32 %v859_v35, %v1025_v3  ;;  %v447_v44 = vmul.f32 %v860_v36, %v1025_v3  ;;  %v831_v45 = vunpack.c.l.bf16 %v917_v32 }
  0x29   : > { %v492_v46 = vmin.f32 %v476_v38, 1.0  ;;  %v493_v47 = vmin.f32 %v477_v39, 1.0  ;;  %v832_v48 = vunpack.c.h.bf16 %v917_v32  ;;  %v863_v49 = vunpack.c.l.bf16 %v924_v37  ;;  %v926_v32 = vld [vmem:[%s1016_s12 + $0x38] sm:$0xff]  }
  0x2a   : > { %v462_v50 = vadd.f32 %v446_v43, %v396_v40  ;;  %v463_v51 = vadd.f32 %v447_v44, %v397_v41  ;;  %v375_v52 = vmul.f32 %v831_v45, %v1021_v0  ;;  %v864_v53 = vunpack.c.h.bf16 %v924_v37 }
  0x2b   : > { %v891_v54 = vpack.c.bf16 %v493_v47, %v492_v46  ;;  %v598_v55 = vadd.f32 %v595_v34, %v492_v46  ;;  %v599_v56 = vmul.f32 %v492_v46, %v492_v46  ;;  %v602_v57 = vmul.f32 %v493_v47, %v493_v47 }
  0x2c   : > { %v478_v59 = vmax.f32 %v462_v50, 0.0  ;;  %v479_v60 = vmax.f32 %v463_v51, 0.0  ;;  %v376_v61 = vmul.f32 %v832_v48, %v1021_v0  ;;  %v398_v62 = vadd.f32 %v1032_v10, %v375_v52 }
  0x2d   : > { %929 = vst [vmem:[%s1059_s19 + $0x18] sm:$0xff] %v891_v54   ;;  %v600_v1 = vadd.f32 %v599_v56, %v597_v42  ;;  %v601_v2 = vadd.f32 %v598_v55, %v493_v47  ;;  %v448_v4 = vmul.f32 %v863_v49, %v1025_v3  ;;  %v449_v5 = vmul.f32 %v864_v53, %v1025_v3 }
  0x2e   : > { %v494_v6 = vmin.f32 %v478_v59, 1.0  ;;  %v495_v7 = vmin.f32 %v479_v60, 1.0  ;;  %v399_v8 = vadd.f32 %v1032_v10, %v376_v61  ;;  %v835_v9 = vunpack.c.l.bf16 %v918_v58 }
  0x2f   : > { %v603_v11 = vadd.f32 %v602_v57, %v600_v1  ;;  %v464_v12 = vadd.f32 %v448_v4, %v398_v62  ;;  %v836_v13 = vunpack.c.h.bf16 %v918_v58  ;;  %v867_v14 = vunpack.c.l.bf16 %v925_v63 }
  0x30   : > { %v896_v15 = vpack.c.bf16 %v495_v7, %v494_v6  ;;  %v604_v16 = vadd.f32 %v601_v2, %v494_v6  ;;  %v605_v17 = vmul.f32 %v494_v6, %v494_v6  ;;  %v608_v18 = vmul.f32 %v495_v7, %v495_v7 }
  0x31   : > { %v465_v19 = vadd.f32 %v449_v5, %v399_v8  ;;  %v480_v20 = vmax.f32 %v464_v12, 0.0  ;;  %v377_v21 = vmul.f32 %v835_v9, %v1021_v0  ;;  %v378_v22 = vmul.f32 %v836_v13, %v1021_v0 }
  0x32   : > { %930 = vst [vmem:[%s1059_s19 + $0x20] sm:$0xff] %v896_v15   ;;  %v606_v24 = vadd.f32 %v605_v17, %v603_v11  ;;  %v607_v25 = vadd.f32 %v604_v16, %v495_v7  ;;  %v868_v26 = vunpack.c.h.bf16 %v925_v63  ;;  %v450_v27 = vmul.f32 %v867_v14, %v1025_v3 }
  0x33   : > { %v481_v28 = vmax.f32 %v465_v19, 0.0  ;;  %v496_v29 = vmin.f32 %v480_v20, 1.0  ;;  %v400_v30 = vadd.f32 %v1032_v10, %v377_v21  ;;  %v401_v31 = vadd.f32 %v1032_v10, %v378_v22 }
  0x34   : > { %v609_v33 = vadd.f32 %v608_v18, %v606_v24  ;;  %v451_v34 = vmul.f32 %v868_v26, %v1025_v3  ;;  %v839_v35 = vunpack.c.l.bf16 %v919_v23  ;;  %v840_v36 = vunpack.c.h.bf16 %v919_v23 }
  0x35   : > { %v497_v37 = vmin.f32 %v481_v28, 1.0  ;;  %v610_v38 = vadd.f32 %v607_v25, %v496_v29  ;;  %v611_v39 = vmul.f32 %v496_v29, %v496_v29  ;;  %v466_v40 = vadd.f32 %v450_v27, %v400_v30 }
  0x36   : > { %v467_v41 = vadd.f32 %v451_v34, %v401_v31  ;;  %v379_v42 = vmul.f32 %v839_v35, %v1021_v0  ;;  %v380_v43 = vmul.f32 %v840_v36, %v1021_v0  ;;  %v871_v44 = vunpack.c.l.bf16 %v926_v32 }
  0x37   : > { %v901_v45 = vpack.c.bf16 %v497_v37, %v496_v29  ;;  %v614_v46 = vmul.f32 %v497_v37, %v497_v37  ;;  %v482_v47 = vmax.f32 %v466_v40, 0.0  ;;  %v872_v48 = vunpack.c.h.bf16 %v926_v32 }
  0x38   : > { %v483_v49 = vmax.f32 %v467_v41, 0.0  ;;  %v402_v50 = vadd.f32 %v1032_v10, %v379_v42  ;;  %v403_v51 = vadd.f32 %v1032_v10, %v380_v43  ;;  %v452_v52 = vmul.f32 %v871_v44, %v1025_v3 }
  0x39   : > { %931 = vst [vmem:[%s1059_s19 + $0x28] sm:$0xff] %v901_v45   ;;  %v498_v53 = vmin.f32 %v482_v47, 1.0  ;;  %v453_v54 = vmul.f32 %v872_v48, %v1025_v3  ;;  %v612_v0 = vadd.f32 %v611_v39, %v609_v33  ;;  %v613_v55 = vadd.f32 %v610_v38, %v497_v37 }
  0x3a   : > { %v499_v56 = vmin.f32 %v483_v49, 1.0  ;;  %v468_v57 = vadd.f32 %v452_v52, %v402_v50 }
  0x3b   : > { %v469_v58 = vadd.f32 %v453_v54, %v403_v51  ;;  %v615_v59 = vadd.f32 %v614_v46, %v612_v0  ;;  %v617_v60 = vmul.f32 %v498_v53, %v498_v53  ;;  %v616_v61 = vadd.f32 %v613_v55, %v498_v53 }
  0x3c   : > { %v906_v62 = vpack.c.bf16 %v499_v56, %v498_v53  ;;  %v484_v63 = vmax.f32 %v468_v57, 0.0  ;;  %v620_v10 = vmul.f32 %v499_v56, %v499_v56 }
  0x3d   : > { %v485_v1 = vmax.f32 %v469_v58, 0.0  ;;  %v618_v2 = vadd.f32 %v617_v60, %v615_v59  ;;  %v619_v4 = vadd.f32 %v616_v61, %v499_v56 }
  0x3e   : > { %932 = vst [vmem:[%s1059_s19 + $0x30] sm:$0xff] %v906_v62   ;;  %v500_v3 = vmin.f32 %v484_v63, 1.0 }
  0x3f   : > { %v501_v5 = vmin.f32 %v485_v1, 1.0  ;;  %v621_v6 = vadd.f32 %v620_v10, %v618_v2 }
  0x40   : > { %v623_v7 = vmul.f32 %v500_v3, %v500_v3  ;;  %v622_v8 = vadd.f32 %v619_v4, %v500_v3 }
  0x41   : > { %v911_v9 = vpack.c.bf16 %v501_v5, %v500_v3  ;;  %v626_v11 = vmul.f32 %v501_v5, %v501_v5 }
  0x42   : > { %v624_v12 = vadd.f32 %v623_v7, %v621_v6  ;;  %v625_v13 = vadd.f32 %v622_v8, %v501_v5 }
  0x43   : > { %933 = vst [vmem:[%s1059_s19 + $0x38] sm:$0xff] %v911_v9  }
  0x44   : > { %v627_v14 = vadd.f32 %v626_v11, %v624_v12  ;;  %629 = vst [vmem:[%s325_s23] sm:$0xff] %v625_v13 }
  0x46   : > { %628 = vst [vmem:[%s321_s28] sm:$0xff] %v627_v14 }
  0x47 PF: > { %s19_s26 = sadd.s32 1, %s948_s26  }
  0x48   : > { %p16_p5 = scmp.ge.s32.totalorder %s19_s26, 6  }
  0x4a   :  { %18 = sbr.rel (!%p16_p5) target bundleno = 2 (0x2), region = 97 }

// kernel: basic_block_double_forward.9
= control target key start
LH: loop header
LB: loop body
LE: loop exit
PB: predicated region body
PF: predicated region fallthrough
CT: control target
= control target key end

     0   :  { %s499_s11 = smov 0   ;;  %s554_s0 = inlined_call_operand.vmem [shape: bf16[512,128], index: 0, kind: input, shape index: {}]   ;;  %s555_s1 = inlined_call_operand.<no memory space> [shape: f32[1,1], index: 1, kind: input, shape index: {}]   ;;  %s556_s2 = inlined_call_operand.vmem [shape: bf16[512,128], index: 2, kind: output, shape index: {}]  }
   0x1   :  { %7 = sst [smem:[#allocation2]] %s555_s1 }
   0x2 LB: > { %s350_s12 = sadd.s32 4294967295, %s478_s11   ;;  %p354_p0 = scmp.ge.s32.totalorder %s478_s11, 1  ;;  %s478_s11 = sphi %s499_s11, %s13_s11  }
   0x3   : > { %p114_p1 = scmp.lt.s32.totalorder %s478_s11, 5 }
   0x5   : > { %p115_p2 = pnand %p354_p0, %p114_p1 }
   0x6   : > { %s355_s13 = sshll.u32 (!%p115_p2), %s350_s12, 4  ;;  %s180_s14 = sld [smem:[#allocation2]] (!%p115_p2)  ;;  %v480_v13 = vmov (!%p115_p2), 0.0  }
   0x7   : > { %118 = sbr.rel (%p115_p2) target bundleno = 37 (0x25), region = 28  ;;  %p137_p3 = scmp.lt.s32.totalorder (!%p115_p2), %s355_s13, 63 }
   0xc   : > { %v513_v1 = vstv (!%p115_p2), %s180_s14 }
   0xe   : > { %s558_s13 = smov (!%p137_p3, %s355_s13), 63 }
   0xf   : > { %s356_s1 = sshll.u32 %s558_s13, 2 }
  0x10   : > { %s510_s17 = scalar_lea.vmem %s554_s0, %s356_s1  ;;  %s525_s20 = scalar_lea.vmem %s556_s2, %s356_s1 }
  0x11   : > { %v394_v0 = vld [vmem:[%s510_s17] sm:$0xff]   ;;  %v449_v2 = vld [vmem:[%s510_s17 + $0x8] sm:$0xff]   ;;  %v450_v3 = vld [vmem:[%s510_s17 + $0x10] sm:$0xff]  }
  0x12   : > { %v395_v4 = vunpack.c.l.bf16 %v394_v0  ;;  %v396_v5 = vunpack.c.h.bf16 %v394_v0  ;;  %v399_v6 = vunpack.c.l.bf16 %v449_v2  ;;  %v400_v7 = vunpack.c.h.bf16 %v449_v2  ;;  %v451_v8 = vld [vmem:[%s510_s17 + $0x18] sm:$0xff]   ;;  %v452_v18 = vld [vmem:[%s510_s17 + $0x20] sm:$0xff]   ;;  %v453_v21 = vld [vmem:[%s510_s17 + $0x28] sm:$0xff]  }
  0x13   : > { %v403_v9 = vunpack.c.l.bf16 %v450_v3  ;;  %v404_v10 = vunpack.c.h.bf16 %v450_v3  ;;  %v407_v11 = vunpack.c.l.bf16 %v451_v8  ;;  %v408_v12 = vunpack.c.h.bf16 %v451_v8  ;;  %v454_v24 = vld [vmem:[%s510_s17 + $0x30] sm:$0xff]   ;;  %v455_v25 = vld [vmem:[%s510_s17 + $0x38] sm:$0xff]  }
  0x14   : > { %vm182_vm0 = vcmp.ge.f32.partialorder %v395_v4, %v513_v1  ;;  %vm183_vm1 = vcmp.ge.f32.partialorder %v396_v5, %v513_v1  ;;  %vm184_vm2 = vcmp.ge.f32.partialorder %v399_v6, %v513_v1  ;;  %vm185_vm3 = vcmp.ge.f32.partialorder %v400_v7, %v513_v1 }
  0x15   : > { %v198_v14 = vsel %vm182_vm0, 1.0, %v480_v13  ;;  %v199_v15 = vsel %vm183_vm1, 1.0, %v480_v13  ;;  %v200_v16 = vsel %vm184_vm2, 1.0, %v480_v13  ;;  %v201_v17 = vsel %vm185_vm3, 1.0, %v480_v13 }
  0x16   : > { %v426_v19 = vpack.c.bf16 %v199_v15, %v198_v14  ;;  %v429_v20 = vpack.c.bf16 %v201_v17, %v200_v16  ;;  %vm186_vm4 = vcmp.ge.f32.partialorder %v403_v9, %v513_v1  ;;  %vm187_vm5 = vcmp.ge.f32.partialorder %v404_v10, %v513_v1 }
  0x17   : > { %v202_v22 = vsel %vm186_vm4, 1.0, %v480_v13  ;;  %v203_v23 = vsel %vm187_vm5, 1.0, %v480_v13  ;;  %vm188_vm6 = vcmp.ge.f32.partialorder %v407_v11, %v513_v1  ;;  %vm189_vm7 = vcmp.ge.f32.partialorder %v408_v12, %v513_v1 }
  0x18   : > { %427 = vst [vmem:[%s525_s20] sm:$0xff] %v426_v19   ;;  %456 = vst [vmem:[%s525_s20 + $0x8] sm:$0xff] %v429_v20   ;;  %v432_v26 = vpack.c.bf16 %v203_v23, %v202_v22  ;;  %v204_v27 = vsel %vm188_vm6, 1.0, %v480_v13  ;;  %v205_v28 = vsel %vm189_vm7, 1.0, %v480_v13  ;;  %v411_v29 = vunpack.c.l.bf16 %v452_v18 }
  0x19   : > { %v435_v30 = vpack.c.bf16 %v205_v28, %v204_v27  ;;  %v412_v31 = vunpack.c.h.bf16 %v452_v18  ;;  %v415_v32 = vunpack.c.l.bf16 %v453_v21  ;;  %v416_v33 = vunpack.c.h.bf16 %v453_v21 }
  0x1a   : > { %457 = vst [vmem:[%s525_s20 + $0x10] sm:$0xff] %v432_v26   ;;  %vm190_vm8 = vcmp.ge.f32.partialorder %v411_v29, %v513_v1  ;;  %v419_v34 = vunpack.c.l.bf16 %v454_v24  ;;  %v420_v35 = vunpack.c.h.bf16 %v454_v24  ;;  %v423_v36 = vunpack.c.l.bf16 %v455_v25 }
  0x1b   : > { %458 = vst [vmem:[%s525_s20 + $0x18] sm:$0xff] %v435_v30   ;;  %vm191_vm9 = vcmp.ge.f32.partialorder %v412_v31, %v513_v1  ;;  %v206_v37 = vsel %vm190_vm8, 1.0, %v480_v13  ;;  %vm192_vm10 = vcmp.ge.f32.partialorder %v415_v32, %v513_v1  ;;  %vm193_vm11 = vcmp.ge.f32.partialorder %v416_v33, %v513_v1 }
  0x1c   : > { %v207_v38 = vsel %vm191_vm9, 1.0, %v480_v13  ;;  %v208_v39 = vsel %vm192_vm10, 1.0, %v480_v13  ;;  %v209_v40 = vsel %vm193_vm11, 1.0, %v480_v13  ;;  %vm194_vm12 = vcmp.ge.f32.partialorder %v419_v34, %v513_v1 }
  0x1d   : > { %v438_v41 = vpack.c.bf16 %v207_v38, %v206_v37  ;;  %v441_v42 = vpack.c.bf16 %v209_v40, %v208_v39  ;;  %vm195_vm13 = vcmp.ge.f32.partialorder %v420_v35, %v513_v1  ;;  %v210_v43 = vsel %vm194_vm12, 1.0, %v480_v13 }
  0x1e   : > { %v211_v44 = vsel %vm195_vm13, 1.0, %v480_v13  ;;  %v424_v45 = vunpack.c.h.bf16 %v455_v25  ;;  %vm196_vm14 = vcmp.ge.f32.partialorder %v423_v36, %v513_v1 }
  0x1f   : > { %459 = vst [vmem:[%s525_s20 + $0x20] sm:$0xff] %v438_v41   ;;  %460 = vst [vmem:[%s525_s20 + $0x28] sm:$0xff] %v441_v42   ;;  %v444_v46 = vpack.c.bf16 %v211_v44, %v210_v43  ;;  %v212_v47 = vsel %vm196_vm14, 1.0, %v480_v13 }
  0x20   : > { %vm197_vm15 = vcmp.ge.f32.partialorder %v424_v45, %v513_v1 }
  0x21   : > { %461 = vst [vmem:[%s525_s20 + $0x30] sm:$0xff] %v444_v46   ;;  %v213_v48 = vsel %vm197_vm15, 1.0, %v480_v13 }
  0x22   : > { %v447_v49 = vpack.c.bf16 %v213_v48, %v212_v47 }
  0x24   : > { %462 = vst [vmem:[%s525_s20 + $0x38] sm:$0xff] %v447_v49  }
  0x25 PF: > { %s13_s11 = sadd.s32 1, %s478_s11  }
  0x26   : > { %p10_p4 = scmp.ge.s32.totalorder %s13_s11, 6  }
  0x28   :  { %12 = sbr.rel (!%p10_p4) target bundleno = 2 (0x2), region = 58 }

// kernel: basic_block_double_forward.5
= control target key start
LH: loop header
LB: loop body
LE: loop exit
PB: predicated region body
PF: predicated region fallthrough
CT: control target
= control target key end

     0   :  { %s6486_s18 = smov 0   ;;  %s8237_s0 = inlined_call_operand.vmem [shape: bf16[640,128], index: 0, kind: input, shape index: {}, may-alias: {0,1}]   ;;  %s8238_s1 = inlined_call_operand.vmem [shape: bf16[640,128], index: 1, kind: input, shape index: {}, may-alias: {0,1}]   ;;  %s8239_s2 = inlined_call_operand.vmem [shape: bf16[9,128,128], index: 2, kind: input, shape index: {}]   ;;  %s8240_s3 = inlined_call_operand.vmem [shape: bf16[512,128], index: 3, kind: output, shape index: {0}]   ;;  %s8241_s4 = inlined_call_operand.vmem [shape: f32[32,128], index: 4, kind: output, shape index: {1}]   ;;  %s8242_s5 = inlined_call_operand.vmem [shape: f32[32,128], index: 5, kind: output, shape index: {2}]  }
   0x1 LB: > { %s6492_s19 = sadd.s32 4294967295, %s6451_s18   ;;  %p5279_p0 = scmp.ge.s32.totalorder %s6451_s18, 1  ;;  %s6451_s18 = sphi %s6486_s18, %s16_s18  }
   0x2   : > { %p208_p1 = scmp.lt.s32.totalorder %s6451_s18, 5 }
   0x4   : > { %p209_p2 = pnand %p5279_p0, %p208_p1 }
   0x6   : > { %212 = sbr.rel (%p209_p2) target bundleno = 603 (0x25b), region = 32 }
   0xd   : > { %v6333_v0 = vld [vmem:[%s8239_s2 + $0x100] sm:$0xff]   ;;  %s6500_s22 = sshll.u32 %s6492_s19, 4  ;;  %v322_v1 = vlaneseq  ;;  %v6334_v2 = vld [vmem:[%s8239_s2 + $0x108] sm:$0xff]   ;;  %v6335_v3 = vld [vmem:[%s8239_s2 + $0x110] sm:$0xff]   ;;  %s5288_s27 = sshll.u32 %s6492_s19, 7  ;;  %vm2061_vm13 = vcmask 1040384  }
   0xe   : > { %p251_p3 = scmp.lt.s32.totalorder %s6500_s22, 79  ;;  %6018 = vmatprep.subr.bf16.mxu0 %v6333_v0  ;;  %v6336_v4 = vld [vmem:[%s8239_s2 + $0x40] sm:$0xff]   ;;  %v6338_v6 = vld [vmem:[%s8239_s2 + $0x48] sm:$0xff]   ;;  %v6519_v7 = vstv %s5288_s27  ;;  %v6337_v8 = vld [vmem:[%s8239_s2 + $0x118] sm:$0xff]   ;;  %v6453_v38 = vmov 839922192  }
   0xf   : > { %6019 = vmatpush3.bf16.msra.mxu0 %v6333_v0  ;;  %v6514_v5 = vshrl.u32 %v322_v1, 7  ;;  %5890 = vmatprep.subr.bf16.mxu1 %v6336_v4  ;;  %v6340_v10 = vld [vmem:[%s8239_s2 + $0x50] sm:$0xff]   ;;  %v6342_v16 = vld [vmem:[%s8239_s2 + $0x58] sm:$0xff]   ;;  %v6339_v19 = vld [vmem:[%s8239_s2 + $0x120] sm:$0xff]   ;;  %v6590_v39 = vunpack.c.l.s4 %v6453_v38  ;;  %v6454_v40 = vmov 1985246804  }
  0x10   : > { %6020 = vmatprep.subr.bf16.mxu0 %v6334_v2  ;;  %s252_s30 = scalar_select %p251_p3, %s6500_s22, 79  ;;  %5891 = vmatpush3.bf16.msra.mxu1 %v6336_v4  ;;  %v6341_v23 = vld [vmem:[%s8239_s2 + $0x128] sm:$0xff]   ;;  %v6344_v27 = vld [vmem:[%s8239_s2 + $0x60] sm:$0xff]   ;;  %v6343_v35 = vld [vmem:[%s8239_s2 + $0x130] sm:$0xff]   ;;  %v6592_v41 = vunpack.c.l.s4 %v6454_v40  ;;  %vm1517_vm3 = vsmask.f32 7424 }
  0x11   : > { %v325_v9 = vadd.s32 16, %v6514_v5  ;;  %5892 = vmatprep.subr.bf16.mxu1 %v6338_v6  ;;  %v326_v11 = vadd.s32 24, %v6514_v5  ;;  %v327_v12 = vadd.s32 32, %v6514_v5  ;;  %v328_v14 = vadd.s32 40, %v6514_v5  ;;  %v6346_v36 = vld [vmem:[%s8239_s2 + $0x68] sm:$0xff]   ;;  %v6351_v60 = vld [vmem:[%s8239_s2 + $0x70] sm:$0xff]  }
  0x12   : > { %s5281_s12 = sshll.u32 %s252_s30, 2  ;;  %v998_v53 = vunpack.c.0.s8 %v6590_v39  ;;  %v1005_v54 = vunpack.c.0.s8 %v6592_v41  ;;  %v6607_v55 = vadd.s32 %v6519_v7, %v6514_v5  ;;  %v6345_v61 = vld [vmem:[%s8239_s2 + $0x138] sm:$0xff]   ;;  %vm2062_vm14 = vcmask 1044484   ;;  %s5682_s21 = sadd.s32 16, %s6500_s22 }
  0x13   : > { %6021 = vmatpush3.bf16.msra.mxu0 %v6334_v2  ;;  %v6531_v13 = vadd.s32 %v6519_v7, %v325_v9  ;;  %v6535_v15 = vadd.s32 %v6519_v7, %v326_v11  ;;  %s6543_s17 = scalar_lea.vmem %s8237_s0, %s5281_s12  ;;  %v6546_v17 = vadd.s32 %v6519_v7, %v327_v12  ;;  %v6553_v20 = vadd.s32 %v6519_v7, %v328_v14  ;;  %p6736_p4 = scmp.lt.s32.totalorder %s5682_s21, 79 }
  0x14   : > { %6022 = vmatprep.subr.bf16.mxu0 %v6335_v3  ;;  %5893 = vmatpush3.bf16.msra.mxu1 %v6338_v6  ;;  %v281_v24 = vld [vmem:[%s6543_s17 + $0x8] sm:$0xff]   ;;  %v283_v25 = vld [vmem:[%s6543_s17 + $0x10] sm:$0xff]   ;;  %v285_v26 = vld [vmem:[%s6543_s17 + $0x18] sm:$0xff]   ;;  %p265_p5 = scmp.lt.s32.totalorder %s6500_s22, 63  ;;  %p270_p6 = scmp.lt.s32.totalorder %s6492_s19, 3 }
  0x15   : > { %5894 = vmatprep.subr.bf16.mxu1 %v6340_v10  ;;  %v371_v18 = vsub.s32 0, %v6531_v13  ;;  %v378_v22 = vsub.s32 0, %v6535_v15  ;;  %302 = vst [vmem:[#allocation2 + $0x8] sm:$0xff] %v281_v24   ;;  %304 = vst [vmem:[#allocation2 + $0x10] sm:$0xff] %v283_v25   ;;  %vm370_vm0 = vcmp.lt.s32.totalorder %v6531_v13, 0  ;;  %v385_v30 = vsub.s32 0, %v6546_v17 }
  0x16   : > { %306 = vst [vmem:[#allocation2 + $0x18] sm:$0xff] %v285_v26   ;;  %vm377_vm1 = vcmp.lt.s32.totalorder %v6535_v15, 0  ;;  %v392_v31 = vsub.s32 0, %v6553_v20  ;;  %vm384_vm2 = vcmp.lt.s32.totalorder %v6546_v17, 0  ;;  %vm391_vm6 = vcmp.lt.s32.totalorder %v6553_v20, 0  ;;  %v287_v63 = vld [vmem:[%s6543_s17 + $0x20] sm:$0xff]  }
  0x17   : > { %6023 = vmatpush3.bf16.msra.mxu0 %v6335_v3  ;;  %v6556_v21 = vmin.u32 %v371_v18, %v6531_v13  ;;  %v6571_v29 = vmin.u32 %v378_v22, %v6535_v15  ;;  %v6578_v34 = vmin.u32 %v385_v30, %v6546_v17  ;;  %v6353_v6 = vld [vmem:[%s8239_s2 + $0x78] sm:$0xff]   ;;  %308 = vst [vmem:[#allocation2 + $0x20] sm:$0xff] %v287_v63   ;;  %v8243_v24 = vmov 0.0   ;;  %v291_v12 = vld [vmem:[%s6543_s17 + $0x30] sm:$0xff]   ;;  %s8403_s21 = smov (!%p6736_p4, %s5682_s21), 79  ;;  %s8405_s22 = smov (!%p265_p5, %s6500_s22), 63 }
  0x18   : > { %6024 = vmatprep.subr.bf16.mxu0 %v6337_v8  ;;  %5895 = vmatpush3.bf16.msra.mxu1 %v6340_v10  ;;  %v6588_v37 = vmin.u32 %v392_v31, %v6553_v20  ;;  %312 = vst [vmem:[#allocation2 + $0x30] sm:$0xff] %v291_v12   ;;  %s5283_s27 = sshll.u32 %s8403_s21, 2  ;;  %s5285_s24 = sshll.u32 %s8405_s22, 2 }
  0x19   : > { %5896 = vmatprep.subr.bf16.mxu1 %v6342_v16  ;;  %v374_v28 = vand.u32 15, %v6556_v21  ;;  %v381_v33 = vand.u32 15, %v6571_v29  ;;  %v388_v44 = vand.u32 15, %v6578_v34  ;;  %s6795_s7 = scalar_lea.vmem %s8238_s1, %s5283_s27  ;;  %s8210_s27 = scalar_lea.vmem %s8240_s3, %s5285_s24 }
  0x1a   : > { %v395_v45 = vand.u32 15, %v6588_v37  ;;  %s8407_s19 = smov (!%p270_p6, %s6492_s19), 3 }
  0x1b   : > { %6025 = vmatpush3.bf16.msra.mxu0 %v6337_v8  ;;  %v375_v32 = vsub.s32 0, %v374_v28  ;;  %v382_v43 = vsub.s32 0, %v381_v33  ;;  %v389_v48 = vsub.s32 0, %v388_v44  ;;  %v289_v8 = vld [vmem:[%s6543_s17 + $0x28] sm:$0xff]   ;;  %s5286_s22 = sshll.u32 %s8407_s19, 3 }
  0x1c   : > { %6026 = vmatprep.subr.bf16.mxu0 %v6339_v19  ;;  %5897 = vmatpush3.bf16.msra.mxu1 %v6342_v16  ;;  %v2786_v49 = vld [vmem:[#allocation2 + $0x8] sm:$0xf]  ;;  %v2787_v50 = vld [vmem:[#allocation2 + $0xc] sm:$0xf]  ;;  %v2788_v51 = vld [vmem:[#allocation2 + $0x10] sm:$0xf]  ;;  %s273_s30 = scalar_lea.vmem %s8241_s4, %s5286_s22  ;;  %s277_s8 = scalar_lea.vmem %s8242_s5, %s5286_s22 }
  0x1d   : > { %5898 = vmatprep.subr.bf16.mxu1 %v6344_v27  ;;  %v376_v42 = vsel %vm370_vm0, %v375_v32, %v374_v28  ;;  %v383_v47 = vsel %vm377_vm1, %v382_v43, %v381_v33  ;;  %v2789_v56 = vld [vmem:[#allocation2 + $0x14] sm:$0xf]  ;;  %v5515_v57 = vcombine.low %v2786_v49, %v2787_v50  ;;  %v390_v58 = vsel %vm384_vm2, %v389_v48, %v388_v44  ;;  %v6642_v18 = vld [vmem:[#allocation2 + $0x18] sm:$0xf]  ;;  %v6649_v26 = vld [vmem:[#allocation2 + $0x1c] sm:$0xf] }
  0x1e   : > { %vm470_vm4 = vcmp.ne.s32.totalorder %v376_v42, 0  ;;  %vm486_vm5 = vcmp.lt.s32.totalorder %v376_v42, 0  ;;  %v518_v46 = vadd.s32 16, %v376_v42  ;;  %v396_v59 = vsub.s32 0, %v395_v45  ;;  %310 = vst [vmem:[#allocation2 + $0x28] sm:$0xff] %v289_v8  }
  0x1f   : > { %6027 = vmatpush3.bf16.msra.mxu0 %v6339_v19  ;;  %vm502_vm7 = vmand %vm486_vm5, %vm470_vm4  ;;  %vm471_vm8 = vcmp.ne.s32.totalorder %v383_v47, 0  ;;  %v6617_v62 = vcombine.low %v2788_v51, %v2789_v56  ;;  %vm472_vm9 = vcmp.ne.s32.totalorder %v390_v58, 0  ;;  %vm487_vm10 = vcmp.lt.s32.totalorder %v383_v47, 0  ;;  %v279_v19 = vld [vmem:[%s6543_s17] sm:$0xff]   ;;  %v967_v15 = vld [vmem:[#allocation2 + $0xc] sm:$0xf] }
  0x20   : > { %6028 = vmatprep.subr.bf16.mxu0 %v6341_v23  ;;  %5899 = vmatpush3.bf16.msra.mxu1 %v6344_v27  ;;  %v6601_v52 = vsel %vm502_vm7, %v518_v46, %v376_v42  ;;  %vm488_vm11 = vcmp.lt.s32.totalorder %v390_v58, 0  ;;  %v2864_v0 = vshrl.u32 %v5515_v57, 16  ;;  %v2866_v1 = vshll.u32 %v5515_v57, 16  ;;  %vm6622_vm12 = vmand %vm487_vm10, %vm471_vm8  ;;  %v6350_v27 = vld [vmem:[%s8239_s2 + $0x140] sm:$0xff]   ;;  %300 = vst [vmem:[#allocation2] sm:$0xff] %v279_v19  }
  0x21   : > { %5900 = vmatprep.subr.bf16.mxu1 %v6346_v36  ;;  %v397_v2 = vsel %vm391_vm6, %v396_v59, %v395_v45  ;;  %v519_v4 = vadd.s32 16, %v383_v47  ;;  %v2871_v9 = vshll.u32 %v6617_v62, 16  ;;  %vm504_vm5 = vmand %vm488_vm11, %vm472_vm9  ;;  %v520_v10 = vadd.s32 16, %v390_v58  ;;  %v2792_v46 = vld [vmem:[#allocation2 + $0x20] sm:$0xf] }
  0x22   : > { %vm473_vm15 = vcmp.ne.s32.totalorder %v397_v2, 0  ;;  %vm489_vm4 = vcmp.lt.s32.totalorder %v397_v2, 0  ;;  %v2868_v11 = vrot.slane %v2866_v1, 1  ;;  %v521_v14 = vadd.s32 16, %v397_v2 }
  0x23   : > { %6029 = vmatpush3.bf16.msra.mxu0 %v6341_v23  ;;  %vm6633_vm7 = vmand %vm489_vm4, %vm473_vm15  ;;  %v6639_v16 = vsel %vm6622_vm12, %v519_v4, %v383_v47  ;;  %vm910_vm8 = vcmp.lt.s32.totalorder %v6601_v52, 15  ;;  %v2873_v22 = vrot.slane %v2871_v9, 1  ;;  %v6645_v23 = vsel %vm504_vm5, %v520_v10, %v390_v58  ;;  %v2793_v47 = vld [vmem:[#allocation2 + $0x24] sm:$0xf]  ;;  %v6352_v4 = vld [vmem:[%s8239_s2 + $0x148] sm:$0xff]  }
  0x24   : > { %6030 = vmatprep.subr.bf16.mxu0 %v6343_v35  ;;  %5901 = vmatpush3.bf16.msra.mxu1 %v6346_v36  ;;  %vm911_vm9 = vcmp.lt.s32.totalorder %v6639_v16, 15  ;;  %v5371_v25 = vsel %vm910_vm8, 1.0, %v8243_v24  ;;  %v2869_v28 = vor.u32 %v2868_v11, %v2864_v0  ;;  %v6656_v30 = vsel %vm6633_vm7, %v521_v14, %v397_v2  ;;  %v6670_v36 = vld [vmem:[%s8239_s2] sm:$0xff]   ;;  %vm6701_vm12 = vmor %vm2061_vm13, %vm2062_vm14  ;;  %v293_v14 = vld [vmem:[%s6543_s17 + $0x38] sm:$0xff]  }
  0x25   : > { %5902 = vmatprep.subr.bf16.mxu1 %v6351_v60  ;;  %vm912_vm10 = vcmp.lt.s32.totalorder %v6645_v23, 15  ;;  %v5372_v31 = vsel %vm911_vm9, 1.0, %v8243_v24  ;;  %vm913_vm11 = vcmp.lt.s32.totalorder %v6656_v30, 15  ;;  %v5517_v41 = vcombine.low %v6642_v18, %v6649_v26  ;;  %v2794_v56 = vld [vmem:[#allocation2 + $0x28] sm:$0xf]  ;;  %314 = vst [vmem:[#allocation2 + $0x38] sm:$0xff] %v293_v14  }
  0x26   : > { %v5373_v32 = vsel %vm912_vm10, 1.0, %v8243_v24  ;;  %v6662_v33 = vpack.c.bf16 %v5372_v31, %v5371_v25  ;;  %v2874_v38 = vsel %vm1517_vm3, %v2869_v28, %v2873_v22  ;;  %v5374_v40 = vsel %vm913_vm11, 1.0, %v8243_v24  ;;  %v2795_v57 = vld [vmem:[#allocation2 + $0x2c] sm:$0xf] }
  0x27   : > { %6031 = vmatpush3.bf16.msra.mxu0 %v6343_v35  ;;  %v6665_v35 = vsub.s32 %v1005_v54, %v6514_v5  ;;  %v2875_v42 = vshrl.u32 %v6617_v62, 16  ;;  %6034 = vmatprep.mubr.bf16.mxu0 %v2874_v38  ;;  %v6677_v43 = vpack.c.bf16 %v5374_v40, %v5373_v32  ;;  %v6682_v44 = vsub.s32 %v998_v53, %v6514_v5  ;;  %v6356_v38 = vld [vmem:[%s8239_s2 + $0x150] sm:$0xff]  }
  0x28   : > { %6032 = vmatprep.subr.bf16.mxu0 %v6345_v61  ;;  %8300 = vst [vmem:[#allocation3_spill] sm:$0xff] %v6662_v33  ;;  %5903 = vmatpush3.bf16.msra.mxu1 %v6351_v60  ;;  %v324_v48 = vadd.s32 8, %v6514_v5  ;;  %v2879_v50 = vshll.u32 %v5517_v41, 16  ;;  %v5518_v51 = vcombine.low %v2792_v46, %v2793_v47  ;;  %v2883_v54 = vshrl.u32 %v5517_v41, 16 }
  0x29   : > { %5904 = vmatprep.subr.bf16.mxu1 %v6353_v6  ;;  %8301 = vst [vmem:[#allocation4_spill] sm:$0xff] %v6677_v43  ;;  %v3136_v45 = vrot.slane %v6662_v33, %v6665_v35  ;;  %v2877_v49 = vor.u32 %v2875_v42, %v2873_v22  ;;  %v3143_v58 = vrot.slane %v6677_v43, %v6682_v44  ;;  %v357_v11 = vsub.s32 0, %v6607_v55 }
  0x2a   : > { %v3150_v39 = vrot.slane %v6677_v43, %v6665_v35  ;;  %v6693_v59 = vcombine.low %v2794_v56, %v2795_v57  ;;  %v2881_v60 = vrot.slane %v2879_v50, 1  ;;  %v2891_v62 = vshrl.u32 %v5518_v51, 16 }
  0x2b   : > { %6033 = vmatpush3.bf16.msra.mxu0 %v6345_v61  ;;  %v6691_v53 = vrot.slane %v3136_v45, 7  ;;  %v2887_v61 = vshll.u32 %v5518_v51, 16  ;;  %v6696_v63 = vadd.s32 %v6519_v7, %v324_v48  ;;  %v3232_v2 = vrot.slane %v3143_v58, 7 }
  0x2c   : > { %6050 = vmatprep.subr.bf16.mxu0 %v6350_v27  ;;  %5905 = vmatpush3.bf16.msra.mxu1 %v6353_v6  ;;  %v6706_v3 = vrot.slane %v3150_v39, 7  ;;  %v2895_v6 = vshll.u32 %v6693_v59, 16  ;;  %v2882_v8 = vsel %vm1517_vm3, %v2877_v49, %v2881_v60  ;;  %v2885_v9 = vor.u32 %v2883_v54, %v2881_v60 }
  0x2d   : > { %5922 = vmatprep.subr.bf16.mxu1 %v6670_v36  ;;  %v3231_v1 = vrot.slane %v6691_v53, 4  ;;  %v2889_v10 = vrot.slane %v2887_v61, 1  ;;  %v3234_v19 = vrot.slane %v3232_v2, 4  ;;  %vm356_vm13 = vcmp.lt.s32.totalorder %v6607_v55, 0 }
  0x2e   : > { %6035 = vmatmul.mubr.bf16.vlgmr.msra.gmra.mrb[0].mxu0 %v2882_v8  ;;  %v6719_v28 = vrot.slane %v2895_v6, 1  ;;  %v6722_v31 = vmin.u32 %v357_v11, %v6607_v55  ;;  %v566_v40 = vand.u32 255, %v6556_v21  ;;  %v573_v41 = vand.u32 255, %v6571_v29  ;;  %v6362_v8 = vld [vmem:[%s8239_s2 + $0x160] sm:$0xff]  }
  0x2f   : > { %6051 = vmatpush3.bf16.msra.mxu0 %v6350_v27  ;;  %v2890_v22 = vsel %vm1517_vm3, %v2885_v9, %v2889_v10  ;;  %v2893_v25 = vor.u32 %v2891_v62, %v2889_v10  ;;  %v6726_v32 = vsel %vm6701_vm12, %v3231_v1, %v3232_v2  ;;  %v364_v27 = vsub.s32 0, %v6696_v63  ;;  %v2797_v10 = vld [vmem:[#allocation2 + $0x34] sm:$0xf]  ;;  %v295_v11 = vld [vmem:[%s6795_s7] sm:$0xff]  }
  0x30   : > { %6052 = vmatprep.subr.bf16.mxu0 %v6352_v4  ;;  %6038 = vmatprep.mubr.bf16.mxu0 %v2890_v22  ;;  %v6743_v42 = vsel %vm6701_vm12, %v3234_v19, %v6706_v3  ;;  %vm363_vm14 = vcmp.lt.s32.totalorder %v6696_v63, 0  ;;  %v552_v45 = vand.u32 255, %v6722_v31  ;;  %vm854_vm15 = vcmp.ge.s32.totalorder %v6601_v52, 1  ;;  %v6358_v52 = vld [vmem:[%s8239_s2 + $0x158] sm:$0xff]   ;;  %316 = vst [vmem:[#allocation2 + $0x40] sm:$0xff] %v295_v11  }
  0x31   : > { %v6749_v21 = vmin.u32 %v364_v27, %v6696_v63  ;;  %v567_v29 = vsub.s32 0, %v566_v40  ;;  %v574_v46 = vsub.s32 0, %v573_v41  ;;  %vm855_vm4 = vcmp.ge.s32.totalorder %v6639_v16, 1  ;;  %v297_v22 = vld [vmem:[%s6795_s7 + $0x8] sm:$0xf] }
  0x32   : > { %v2898_v47 = vsel %vm1517_vm3, %v2893_v25, %v6719_v28  ;;  %v553_v48 = vsub.s32 0, %v552_v45  ;;  %v5355_v49 = vsel %vm854_vm15, 1.0, %v8243_v24  ;;  %v5356_v50 = vsel %vm855_vm4, 1.0, %v8243_v24  ;;  %318 = vst [vmem:[#allocation2 + $0x48] sm:$0xf] %v297_v22 }
  0x33   : > { %6053 = vmatpush3.bf16.msra.mxu0 %v6352_v4  ;;  %v559_v51 = vand.u32 255, %v6749_v21  ;;  %v568_v54 = vsel %vm370_vm0, %v567_v29, %v566_v40  ;;  %v575_v16 = vsel %vm377_vm1, %v574_v46, %v573_v41  ;;  %v6764_v56 = vpack.c.bf16 %v5356_v50, %v5355_v49  ;;  %v966_v11 = vld [vmem:[#allocation2 + $0x8] sm:$0xf] }
  0x34   : > { %6054 = vmatprep.subr.bf16.mxu0 %v6356_v38  ;;  %v554_v57 = vsel %vm356_vm13, %v553_v48, %v552_v45  ;;  %vm662_vm5 = vcmp.ne.s32.totalorder %v568_v54, 0  ;;  %vm663_vm7 = vcmp.ne.s32.totalorder %v575_v16, 0  ;;  %vm678_vm8 = vcmp.lt.s32.totalorder %v568_v54, 0  ;;  %v6364_v45 = vld [vmem:[%s8239_s2 + $0x168] sm:$0xff]  }
  0x35   : > { %8305 = vst [vmem:[#allocation5_spill] sm:$0xff] %v6764_v56  ;;  %v560_v58 = vsub.s32 0, %v559_v51  ;;  %vm660_vm9 = vcmp.ne.s32.totalorder %v554_v57, 0  ;;  %vm676_vm10 = vcmp.lt.s32.totalorder %v554_v57, 0  ;;  %vm679_vm11 = vcmp.lt.s32.totalorder %v575_v16, 0  ;;  %vm6772_vm0 = vmand %vm678_vm8, %vm662_vm5 }
  0x36   : > { %6039 = vmatmul.mubr.bf16.gmra.mrb[4].mxu0 %v2898_v47  ;;  %vm6778_vm1 = vmand %vm676_vm10, %vm660_vm9  ;;  %v708_v60 = vadd.s32 256, %v554_v57  ;;  %v710_v61 = vadd.s32 256, %v568_v54  ;;  %v711_v62 = vadd.s32 256, %v575_v16  ;;  %v580_v4 = vand.u32 255, %v6578_v34 }
  0x37   : > { %6055 = vmatpush3.bf16.msra.mxu0 %v6356_v38  ;;  %v561_v2 = vsel %vm363_vm14, %v560_v58, %v559_v51  ;;  %vm695_vm15 = vmand %vm679_vm11, %vm663_vm7  ;;  %v587_v6 = vand.u32 255, %v6588_v37  ;;  %v2796_v37 = vld [vmem:[#allocation2 + $0x30] sm:$0xf]  ;;  %vm1277_vm9 = vsmask.f32 256  ;;  %v2899_v13 = vshrl.u32 %v6693_v59, 16 }
  0x38   : > { %6056 = vmatprep.subr.bf16.mxu0 %v6358_v52  ;;  %vm661_vm4 = vcmp.ne.s32.totalorder %v561_v2, 0  ;;  %vm677_vm5 = vcmp.lt.s32.totalorder %v561_v2, 0  ;;  %v709_v9 = vadd.s32 256, %v561_v2  ;;  %v6799_v34 = vsel %vm6778_vm1, %v708_v60, %v554_v57  ;;  %v964_v59 = vld [vmem:[#allocation2] sm:$0xf] }
  0x39   : > { %8310 = vst [vmem:[#allocation6_spill] sm:$0xff] %v6799_v34  ;;  %vm693_vm7 = vmand %vm677_vm5, %vm661_vm4  ;;  %v6804_v12 = vsel %vm6772_vm0, %v710_v61, %v568_v54  ;;  %v6806_v14 = vsel %vm695_vm15, %v711_v62, %v575_v16  ;;  %vm740_vm8 = vcmp.ge.s32.totalorder %v6799_v34, 16  ;;  %v581_v19 = vsub.s32 0, %v580_v4  ;;  %v6368_v54 = vld [vmem:[%s8239_s2 + $0x170] sm:$0xff]  }
  0x3a   : > { %8311 = vst [vmem:[#allocation7_spill] sm:$0xff] %v6804_v12  ;;  %8312 = vst [vmem:[#allocation8_spill] sm:$0xff] %v6806_v14  ;;  %v6810_v25 = vsel %vm693_vm7, %v709_v9, %v561_v2  ;;  %vm742_vm10 = vcmp.ge.s32.totalorder %v6804_v12, 16  ;;  %vm743_vm11 = vcmp.ge.s32.totalorder %v6806_v14, 16  ;;  %v5321_v38 = vsel %vm740_vm8, 1.0, %v8243_v24 }
  0x3b   : > { %8313 = vst [vmem:[#allocation9_spill] sm:$0xff] %v6810_v25  ;;  %6057 = vmatpush3.bf16.msra.mxu0 %v6358_v52  ;;  %vm741_vm0 = vcmp.ge.s32.totalorder %v6810_v25, 16  ;;  %v5323_v27 = vsel %vm742_vm10, 1.0, %v8243_v24  ;;  %v5324_v40 = vsel %vm743_vm11, 1.0, %v8243_v24  ;;  %v582_v41 = vsel %vm384_vm2, %v581_v19, %v580_v4 }
  0x3c   : > { %6058 = vmatprep.subr.bf16.mxu0 %v6362_v8  ;;  %v5322_v29 = vsel %vm741_vm0, 1.0, %v8243_v24  ;;  %v6824_v46 = vpack.c.bf16 %v5324_v40, %v5323_v27  ;;  %vm1278_vm1 = vsmask.f32 4368  ;;  %v588_v47 = vsub.s32 0, %v587_v6 }
  0x3d   : > { %v6826_v48 = vpack.c.bf16 %v5322_v29, %v5321_v38  ;;  %vm664_vm15 = vcmp.ne.s32.totalorder %v582_v41, 0  ;;  %vm680_vm4 = vcmp.lt.s32.totalorder %v582_v41, 0  ;;  %v6828_v49 = vcombine.low %v2796_v37, %v2797_v10  ;;  %v965_v29 = vld [vmem:[#allocation2 + $0x4] sm:$0xf]  ;;  %vm6869_vm8 = vmor %vm1277_vm9, %vm1278_vm1 }
  0x3e   : > { %8314 = vst [vmem:[#allocation10_spill] sm:$0xff] %v6824_v46  ;;  %v6832_v17 = vmul.bf16 %v6764_v56, %v6824_v46  ;;  %v1185_v50 = vrot.slane %v6824_v46, %v6682_v44  ;;  %v1192_v52 = vrot.slane %v6824_v46, %v6665_v35  ;;  %v589_v51 = vsel %vm391_vm6, %v588_v47, %v587_v6  ;;  %vm6850_vm6 = vmand %vm680_vm4, %vm664_vm15  ;;  %v6370_v6 = vld [vmem:[%s8239_s2 + $0x178] sm:$0xff]  }
  0x3f   : > { %6059 = vmatpush3.bf16.msra.mxu0 %v6362_v8  ;;  %v1171_v16 = vrot.slane %v6826_v48, %v6682_v44  ;;  %v1178_v57 = vrot.slane %v6826_v48, %v6665_v35  ;;  %v712_v58 = vadd.s32 256, %v582_v41  ;;  %vm665_vm2 = vcmp.ne.s32.totalorder %v589_v51, 0 }
  0x40   : > { %6060 = vmatprep.subr.bf16.mxu0 %v6364_v45  ;;  %v1298_v39 = vshrl.u32 %v1185_v50, 16  ;;  %v1301_v60 = vshll.u32 %v1185_v50, 16  ;;  %vm681_vm5 = vcmp.lt.s32.totalorder %v589_v51, 0  ;;  %v1016_v8 = vrot.slane %v6832_v17, %v6682_v44 }
  0x41   : > { %v1281_v20 = vshrl.u32 %v1171_v16, 16  ;;  %v1284_v61 = vshll.u32 %v1171_v16, 16  ;;  %v1289_v62 = vshrl.u32 %v1178_v57, 16  ;;  %v1292_v2 = vshll.u32 %v1178_v57, 16  ;;  %vm6863_vm7 = vmand %vm681_vm5, %vm665_vm2 }
  0x42   : > { %v1300_v37 = vrot.slane %v1298_v39, 7  ;;  %v1307_v10 = vshrl.u32 %v1192_v52, 16  ;;  %v1310_v38 = vshll.u32 %v1192_v52, 16  ;;  %v713_v40 = vadd.s32 256, %v589_v51 }
  0x43   : > { %6061 = vmatpush3.bf16.msra.mxu0 %v6364_v45  ;;  %v1283_v19 = vrot.slane %v1281_v20, 7  ;;  %v1291_v22 = vrot.slane %v1289_v62, 7  ;;  %v6877_v52 = vsel %vm6850_vm6, %v712_v58, %v582_v41  ;;  %v6879_v1 = vmul.bf16 %v1016_v8, %v966_v11 }
  0x44   : > { %6062 = vmatprep.subr.bf16.mxu0 %v6368_v54  ;;  %v1303_v45 = vor.u32 %v1301_v60, %v1300_v37  ;;  %v1305_v50 = vrot.slane %v1300_v37, 4  ;;  %v6873_v16 = vrot.slane %v1307_v10, 7  ;;  %8321 = vst [vmem:[#allocation11_spill] sm:$0xff] %v6877_v52  ;;  %v6884_v24 = vsel %vm6863_vm7, %v713_v40, %v589_v51  ;;  %v2798_v60 = vld [vmem:[#allocation2 + $0x38] sm:$0xf]  ;;  %v6895_v51 = vld [vmem:[%s8239_s2 + $0x180] sm:$0xff]  }
  0x45   : > { %v1286_v57 = vor.u32 %v1284_v61, %v1283_v19  ;;  %v1287_v39 = vrot.slane %v1283_v19, 4  ;;  %v1294_v20 = vor.u32 %v1292_v2, %v1291_v22  ;;  %v1296_v62 = vrot.slane %v1291_v22, 4  ;;  %8322 = vst [vmem:[#allocation12_spill] sm:$0xff] %v6884_v24  ;;  %v2799_v2 = vld [vmem:[#allocation2 + $0x3c] sm:$0xf] }
  0x46   : > { %v1312_v9 = vor.u32 %v1310_v38, %v6873_v16  ;;  %vm744_vm9 = vcmp.ge.s32.totalorder %v6877_v52, 16  ;;  %vm745_vm10 = vcmp.ge.s32.totalorder %v6884_v24, 16  ;;  %v8323_v37 = vmov 0.0  }
  0x47   : > { %6063 = vmatpush3.bf16.msra.mxu0 %v6368_v54  ;;  %v1295_v41 = vsel %vm6869_vm8, %v1287_v39, %v1294_v20  ;;  %v1304_v58 = vsel %vm6869_vm8, %v1296_v62, %v1303_v45  ;;  %v1440_v61 = vmul.bf16 %v1286_v57, %v964_v59  ;;  %v5325_v10 = vsel %vm744_vm9, 1.0, %v8323_v37 }
  0x48   : > { %6064 = vmatprep.subr.bf16.mxu0 %v6370_v6  ;;  %v1313_v4 = vsel %vm6869_vm8, %v1305_v50, %v1312_v9  ;;  %v1441_v54 = vmul.bf16 %v1295_v41, %v965_v29  ;;  %v1442_v8 = vmul.bf16 %v1304_v58, %v966_v11  ;;  %v5326_v22 = vsel %vm745_vm10, 1.0, %v8323_v37 }
  0x49   : > { %v1443_v19 = vmul.bf16 %v1313_v4, %v967_v15  ;;  %v2901_v59 = vor.u32 %v2899_v13, %v6719_v28  ;;  %v2903_v38 = vshll.u32 %v6828_v49, 16  ;;  %v6903_v40 = vpack.c.bf16 %v5326_v22, %v5325_v10  ;;  %v968_v22 = vld [vmem:[#allocation2 + $0x10] sm:$0xf] }
  0x4a   : > { %v5401_v27 = vcombine.low %v1440_v61, %v1441_v54  ;;  %v6905_v45 = vcombine.low %v2798_v60, %v2799_v2  ;;  %v2907_v57 = vshrl.u32 %v6828_v49, 16  ;;  %v329_v11 = vadd.s32 48, %v6514_v5 }
  0x4b   : > { %6065 = vmatpush3.bf16.msra.mxu0 %v6370_v6  ;;  %v5402_v9 = vcombine.low %v1442_v8, %v1443_v19  ;;  %v2905_v29 = vrot.slane %v2903_v38, 1  ;;  %v330_v50 = vadd.s32 56, %v6514_v5  ;;  %v1199_v13 = vrot.slane %v6903_v40, %v6682_v44  ;;  %v969_v38 = vld [vmem:[#allocation2 + $0x14] sm:$0xf] }
  0x4c   : > { %6082 = vmatprep.subr.bf16.mxu0 %v6895_v51  ;;  %v1519_v39 = vshrl.u32 %v5401_v27, 16  ;;  %v1521_v28 = vshll.u32 %v5401_v27, 16  ;;  %v1206_v20 = vrot.slane %v6903_v40, %v6665_v35  ;;  %v1314_v49 = vrot.slane %v6873_v16, 4 }
  0x4d   : > { %v1526_v62 = vshll.u32 %v5402_v9, 16  ;;  %v2906_v6 = vsel %vm1517_vm3, %v2901_v59, %v2905_v29  ;;  %v2909_v60 = vor.u32 %v2907_v57, %v2905_v29  ;;  %v1316_v58 = vshrl.u32 %v1199_v13, 16 }
  0x4e   : > { %v1523_v41 = vrot.slane %v1521_v28, 1  ;;  %v1319_v61 = vshll.u32 %v1199_v13, 16  ;;  %v1325_v2 = vshrl.u32 %v1206_v20, 16  ;;  %6042 = vmatprep.mubr.bf16.mxu0 %v2906_v6  ;;  %v1328_v54 = vshll.u32 %v1206_v20, 16 }
  0x4f   : > { %v1528_v4 = vrot.slane %v1526_v62, 1  ;;  %v2911_v8 = vshll.u32 %v6905_v45, 16  ;;  %v6919_v10 = vadd.s32 %v6519_v7, %v329_v11  ;;  %v1318_v27 = vrot.slane %v1316_v58, 7  ;;  %v2801_v58 = vld [vmem:[#allocation2 + $0x44] sm:$0xf] }
  0x50   : > { %v1524_v19 = vor.u32 %v1523_v41, %v1519_v39  ;;  %v6921_v16 = vrot.slane %v1325_v2, 7  ;;  %v6924_v59 = vadd.s32 %v6519_v7, %v330_v50  ;;  %v8324_v57 = vrot.slane %v6832_v17, %v6665_v35  ;;  %v2800_v41 = vld [vmem:[#allocation2 + $0x40] sm:$0xf] }
  0x51   : > { %v1530_v28 = vshrl.u32 %v5402_v9, 16  ;;  %v2913_v13 = vrot.slane %v2911_v8, 1  ;;  %v399_v20 = vsub.s32 0, %v6919_v10  ;;  %v1321_v39 = vor.u32 %v1319_v61, %v1318_v27  ;;  %v2802_v9 = vld [vmem:[#allocation2 + $0x48] sm:$0x1] }
  0x52   : > { %v6929_v29 = vmul.bf16 %v8324_v57, %v967_v15  ;;  %v1529_v11 = vsel %vm1517_vm3, %v1524_v19, %v1528_v4  ;;  %v1323_v62 = vrot.slane %v1318_v27, 4  ;;  %v1330_v6 = vor.u32 %v1328_v54, %v6921_v16 }
  0x53   : > { %5906 = vmatprep.mubr.bf16.mxu1 %v1529_v11  ;;  %v2914_v50 = vsel %vm1517_vm3, %v2909_v60, %v2913_v13  ;;  %vm398_vm11 = vcmp.lt.s32.totalorder %v6919_v10, 0  ;;  %v6937_v15 = vmin.u32 %v399_v20, %v6919_v10  ;;  %v406_v17 = vsub.s32 0, %v6924_v59 }
  0x54   : > { %v1322_v2 = vsel %vm6869_vm8, %v1314_v49, %v1321_v39  ;;  %v1331_v61 = vsel %vm6869_vm8, %v1323_v62, %v1330_v6  ;;  %6043 = vmatmul.mubr.bf16.gmra.mrb[8].mxu0 %v2914_v50  ;;  %vm405_vm0 = vcmp.lt.s32.totalorder %v6924_v59, 0  ;;  %v331_v54 = vadd.s32 64, %v6514_v5 }
  0x55   : > { %v1444_v60 = vmul.bf16 %v1322_v2, %v968_v22  ;;  %v1445_v8 = vmul.bf16 %v1331_v61, %v969_v38  ;;  %v6947_v19 = vmin.u32 %v406_v17, %v6924_v59  ;;  %v594_v27 = vand.u32 255, %v6937_v15 }
  0x56   : > { %v1532_v57 = vor.u32 %v1530_v28, %v1528_v4  ;;  %v332_v20 = vadd.s32 72, %v6514_v5  ;;  %v6952_v49 = vadd.s32 %v6519_v7, %v331_v54  ;;  %v2915_v11 = vshrl.u32 %v6905_v45, 16 }
  0x57   : > { %v6955_v39 = vcombine.low %v1444_v60, %v1445_v8  ;;  %v595_v62 = vsub.s32 0, %v594_v27  ;;  %v601_v6 = vand.u32 255, %v6947_v19  ;;  %v5522_v22 = vcombine.low %v2800_v41, %v2801_v58 }
  0x58   : > { %v6959_v38 = vadd.s32 %v6519_v7, %v332_v20  ;;  %vm412_vm1 = vcmp.lt.s32.totalorder %v6952_v49, 0  ;;  %v413_v4 = vsub.s32 0, %v6952_v49  ;;  %v5523_v28 = vcombine.low %v2802_v9, %v2802_v9 }
  0x59   : > { %v1534_v50 = vshll.u32 %v6955_v39, 16  ;;  %v596_v17 = vsel %vm398_vm11, %v595_v62, %v594_v27  ;;  %v602_v45 = vsub.s32 0, %v601_v6  ;;  %v2917_v2 = vor.u32 %v2915_v11, %v2913_v13  ;;  %v6359_v13 = vld [vmem:[%s8239_s2 + $0x8] sm:$0xff]  }
  0x5a   : > { %vm666_vm15 = vcmp.ne.s32.totalorder %v596_v17, 0  ;;  %vm682_vm4 = vcmp.lt.s32.totalorder %v596_v17, 0  ;;  %v714_v61 = vadd.s32 256, %v596_v17  ;;  %v6967_v41 = vmin.u32 %v413_v4, %v6952_v49 }
  0x5b   : > { %v6969_v58 = vrot.slane %v1534_v50, 1  ;;  %v603_v54 = vsel %vm405_vm0, %v602_v45, %v601_v6  ;;  %vm698_vm2 = vmand %vm682_vm4, %vm666_vm15  ;;  %v420_v60 = vsub.s32 0, %v6959_v38  ;;  %vm8270_vm10 = vcmp.lt.s32.totalorder %v6959_v38, 0  ;;  %v6363_v50 = vld [vmem:[%s8239_s2 + $0x10] sm:$0xff]  }
  0x5c   : > { %vm667_vm5 = vcmp.ne.s32.totalorder %v603_v54, 0  ;;  %vm683_vm6 = vcmp.lt.s32.totalorder %v603_v54, 0  ;;  %v715_v8 = vadd.s32 256, %v603_v54  ;;  %v6978_v27 = vsel %vm698_vm2, %v714_v61, %v596_v17 }
  0x5d   : > { %8325 = vst [vmem:[#allocation13_spill] sm:$0xff] %v6978_v27  ;;  %v1537_v20 = vsel %vm1517_vm3, %v1532_v57, %v6969_v58  ;;  %vm699_vm7 = vmand %vm683_vm6, %vm667_vm5  ;;  %vm746_vm9 = vcmp.ge.s32.totalorder %v6978_v27, 16  ;;  %v6985_v11 = vmin.u32 %v420_v60, %v6959_v38  ;;  %v608_v4 = vand.u32 255, %v6967_v41 }
  0x5e   : > { %5907 = vmatmul.mubr.bf16.vlgmr.msra.gmra.mrb[0].mxu1 %v1537_v20  ;;  %v6987_v62 = vsel %vm699_vm7, %v715_v8, %v603_v54  ;;  %v5327_v6 = vsel %vm746_vm9, 1.0, %v8323_v37  ;;  %v2919_v57 = vshll.u32 %v5522_v22, 16  ;;  %v2923_v45 = vshrl.u32 %v5522_v22, 16 }
  0x5f   : > { %8326 = vst [vmem:[#allocation14_spill] sm:$0xff] %v6987_v62  ;;  %5923 = vmatpush3.bf16.msra.mxu1 %v6670_v36  ;;  %vm747_vm15 = vcmp.ge.s32.totalorder %v6987_v62, 16  ;;  %v615_v17 = vand.u32 255, %v6985_v11  ;;  %v2927_v61 = vshll.u32 %v5523_v28, 16  ;;  %v609_v60 = vsub.s32 0, %v608_v4 }
  0x60   : > { %5924 = vmatprep.subr.bf16.mxu1 %v6359_v13  ;;  %v5328_v54 = vsel %vm747_vm15, 1.0, %v8323_v37  ;;  %v2921_v8 = vrot.slane %v2919_v57, 1  ;;  %v333_v20 = vadd.s32 80, %v6514_v5  ;;  %v334_v27 = vadd.s32 88, %v6514_v5 }
  0x61   : > { %v6999_v9 = vpack.c.bf16 %v5328_v54, %v5327_v6  ;;  %v616_v43 = vsub.s32 0, %v615_v17  ;;  %v2929_v46 = vrot.slane %v2927_v61, 1  ;;  %v610_v36 = vsel %vm412_vm1, %v609_v60, %v608_v4 }
  0x62   : > { %v2922_v62 = vsel %vm1517_vm3, %v2917_v2, %v2921_v8  ;;  %v2925_v22 = vor.u32 %v2923_v45, %v2921_v8  ;;  %v7006_v28 = vadd.s32 %v6519_v7, %v333_v20  ;;  %vm668_vm4 = vcmp.ne.s32.totalorder %v610_v36, 0 }
  0x63   : > { %8327 = vst [vmem:[#allocation15_spill] sm:$0xff] %v6999_v9  ;;  %5925 = vmatpush3.bf16.msra.mxu1 %v6359_v13  ;;  %v1213_v57 = vrot.slane %v6999_v9, %v6682_v44  ;;  %v1220_v6 = vrot.slane %v6999_v9, %v6665_v35  ;;  %v617_v61 = vsel %vm8270_vm10, %v616_v43, %v615_v17  ;;  %vm684_vm5 = vcmp.lt.s32.totalorder %v610_v36, 0  ;;  %v6365_v13 = vld [vmem:[%s8239_s2 + $0x18] sm:$0xff]  }
  0x64   : > { %6046 = vmatprep.mubr.bf16.mxu0 %v2922_v62  ;;  %vm669_vm2 = vcmp.ne.s32.totalorder %v617_v61, 0  ;;  %vm685_vm6 = vcmp.lt.s32.totalorder %v617_v61, 0  ;;  %v716_v2 = vadd.s32 256, %v610_v36  ;;  %5926 = vmatprep.subr.bf16.mxu1 %v6363_v50  ;;  %vm700_vm7 = vmand %vm684_vm5, %vm668_vm4  ;;  %v717_v8 = vadd.s32 256, %v617_v61  ;;  %v970_v17 = vld [vmem:[#allocation2 + $0x18] sm:$0xf] }
  0x65   : > { %v1334_v4 = vshrl.u32 %v1213_v57, 16  ;;  %v1337_v45 = vshll.u32 %v1213_v57, 16  ;;  %v1343_v54 = vshrl.u32 %v1220_v6, 16  ;;  %v1346_v60 = vshll.u32 %v1220_v6, 16  ;;  %vm701_vm9 = vmand %vm685_vm6, %vm669_vm2  ;;  %v971_v57 = vld [vmem:[#allocation2 + $0x1c] sm:$0xf] }
  0x66   : > { %v7017_v20 = vsel %vm700_vm7, %v716_v2, %v610_v36  ;;  %v2930_v43 = vsel %vm1517_vm3, %v2925_v22, %v2929_v46  ;;  %v7021_v62 = vadd.s32 %v6519_v7, %v334_v27  ;;  %v1332_v24 = vrot.slane %v6921_v16, 4  ;;  %v6369_v16 = vld [vmem:[%s8239_s2 + $0x20] sm:$0xff]  }
  0x67   : > { %8328 = vst [vmem:[#allocation16_spill] sm:$0xff] %v7017_v20  ;;  %v1336_v52 = vrot.slane %v1334_v4, 7  ;;  %v7024_v56 = vrot.slane %v1343_v54, 7  ;;  %vm748_vm15 = vcmp.ge.s32.totalorder %v7017_v20, 16  ;;  %5927 = vmatpush3.bf16.msra.mxu1 %v6363_v50  ;;  %6047 = vmatmul.mubr.bf16.gmra.mrb[12].mxu0 %v2930_v43  ;;  %v8329_v36 = vshrl.u32 %v6955_v39, 16 }
  0x68   : > { %v7030_v2 = vsel %vm701_vm9, %v717_v8, %v617_v61  ;;  %v5329_v46 = vsel %vm748_vm15, 1.0, %v8323_v37  ;;  %5928 = vmatprep.subr.bf16.mxu1 %v6365_v13  ;;  %v427_v27 = vsub.s32 0, %v7006_v28  ;;  %vm8268_vm2 = vcmp.lt.s32.totalorder %v7006_v28, 0 }
  0x69   : > { %v1540_v6 = vor.u32 %v8329_v36, %v6969_v58  ;;  %8330 = vst [vmem:[#allocation17_spill] sm:$0xff] %v7030_v2  ;;  %v1339_v22 = vor.u32 %v1337_v45, %v1336_v52  ;;  %v1341_v4 = vrot.slane %v1336_v52, 4  ;;  %v1348_v50 = vor.u32 %v1346_v60, %v7024_v56 }
  0x6a   : > { %vm749_vm4 = vcmp.ge.s32.totalorder %v7030_v2, 16  ;;  %v7042_v58 = vmin.u32 %v427_v27, %v7006_v28  ;;  %v434_v61 = vsub.s32 0, %v7021_v62  ;;  %v335_v60 = vadd.s32 96, %v6514_v5 }
  0x6b   : > { %v5330_v39 = vsel %vm749_vm4, 1.0, %v8323_v37  ;;  %v1340_v54 = vsel %vm6869_vm8, %v1332_v24, %v1339_v22  ;;  %v1349_v45 = vsel %vm6869_vm8, %v1341_v4, %v1348_v50  ;;  %5929 = vmatpush3.bf16.msra.mxu1 %v6365_v13  ;;  %v6371_v24 = vld [vmem:[%s8239_s2 + $0x28] sm:$0xff]   ;;  %vm8265_vm5 = vcmp.lt.s32.totalorder %v7021_v62, 0 }
  0x6c   : > { %v7049_v52 = vpack.c.bf16 %v5330_v39, %v5329_v46  ;;  %v1446_v8 = vmul.bf16 %v1340_v54, %v970_v17  ;;  %v1447_v43 = vmul.bf16 %v1349_v45, %v971_v57  ;;  %v7053_v36 = vmin.u32 %v434_v61, %v7021_v62  ;;  %5930 = vmatprep.subr.bf16.mxu1 %v6369_v16 }
  0x6d   : > { %v622_v27 = vand.u32 255, %v7042_v58  ;;  %v1350_v46 = vrot.slane %v7024_v56, 4  ;;  %v336_v50 = vadd.s32 104, %v6514_v5  ;;  %v7070_v56 = vadd.s32 %v6519_v7, %v335_v60 }
  0x6e   : > { %8331 = vst [vmem:[#allocation18_spill] sm:$0xff] %v7049_v52  ;;  %v1227_v22 = vrot.slane %v7049_v52, %v6682_v44  ;;  %v1234_v13 = vrot.slane %v7049_v52, %v6665_v35  ;;  %v5404_v17 = vcombine.low %v1446_v8, %v1447_v43  ;;  %v629_v4 = vand.u32 255, %v7053_v36  ;;  %v6373_v8 = vld [vmem:[%s8239_s2 + $0x30] sm:$0xff]   ;;  %v972_v43 = vld [vmem:[#allocation2 + $0x20] sm:$0xf] }
  0x6f   : > { %v623_v57 = vsub.s32 0, %v622_v27  ;;  %5931 = vmatpush3.bf16.msra.mxu1 %v6369_v16 }
  0x70   : > { %v1352_v39 = vshrl.u32 %v1227_v22, 16  ;;  %v1355_v61 = vshll.u32 %v1227_v22, 16  ;;  %v1361_v54 = vshrl.u32 %v1234_v13, 16  ;;  %v1364_v45 = vshll.u32 %v1234_v13, 16  ;;  %5932 = vmatprep.subr.bf16.mxu1 %v6371_v24  ;;  %v973_v22 = vld [vmem:[#allocation2 + $0x24] sm:$0xf] }
  0x71   : > { %v1542_v2 = vshll.u32 %v5404_v17, 16  ;;  %v624_v20 = vsel %vm8268_vm2, %v623_v57, %v622_v27  ;;  %v630_v14 = vsub.s32 0, %v629_v4  ;;  %v1546_v13 = vshrl.u32 %v5404_v17, 16 }
  0x72   : > { %v1354_v12 = vrot.slane %v1352_v39, 7  ;;  %v7075_v25 = vrot.slane %v1361_v54, 7  ;;  %vm670_vm6 = vcmp.ne.s32.totalorder %v624_v20, 0  ;;  %vm686_vm7 = vcmp.lt.s32.totalorder %v624_v20, 0 }
  0x73   : > { %v1544_v16 = vrot.slane %v1542_v2, 1  ;;  %v631_v27 = vsel %vm8265_vm5, %v630_v14, %v629_v4  ;;  %vm7079_vm9 = vmand %vm686_vm7, %vm670_vm6  ;;  %v718_v57 = vadd.s32 256, %v624_v20  ;;  %5933 = vmatpush3.bf16.msra.mxu1 %v6371_v24  ;;  %v6375_v2 = vld [vmem:[%s8239_s2 + $0x38] sm:$0xff]   ;;  %v7089_v14 = vadd.s32 %v6519_v7, %v336_v50 }
  0x74   : > { %v1357_v34 = vor.u32 %v1355_v61, %v1354_v12  ;;  %v1359_v52 = vrot.slane %v1354_v12, 4  ;;  %v1366_v9 = vor.u32 %v1364_v45, %v7075_v25  ;;  %vm671_vm15 = vcmp.ne.s32.totalorder %v631_v27, 0  ;;  %5934 = vmatprep.subr.bf16.mxu1 %v6373_v8 }
  0x75   : > { %v1545_v17 = vsel %vm1517_vm3, %v1540_v6, %v1544_v16  ;;  %vm687_vm4 = vcmp.lt.s32.totalorder %v631_v27, 0  ;;  %v719_v39 = vadd.s32 256, %v631_v27  ;;  %v7097_v24 = vsel %vm7079_vm9, %v718_v57, %v624_v20 }
  0x76   : > { %5910 = vmatprep.mubr.bf16.mxu1 %v1545_v17  ;;  %v1358_v12 = vsel %vm6869_vm8, %v1350_v46, %v1357_v34  ;;  %v1367_v4 = vsel %vm6869_vm8, %v1359_v52, %v1366_v9  ;;  %vm703_vm6 = vmand %vm687_vm4, %vm671_vm15  ;;  %8334 = vst [vmem:[#allocation19_spill] sm:$0xff] %v7097_v24  ;;  %v360_v6 = vand.u32 15, %v6722_v31  ;;  %vm750_vm7 = vcmp.ge.s32.totalorder %v7097_v24, 16 }
  0x77   : > { %v1448_v61 = vmul.bf16 %v1358_v12, %v972_v43  ;;  %v1449_v54 = vmul.bf16 %v1367_v4, %v973_v22  ;;  %v7100_v45 = vsel %vm703_vm6, %v719_v39, %v631_v27  ;;  %v1548_v50 = vor.u32 %v1546_v13, %v1544_v16  ;;  %5935 = vmatpush3.bf16.msra.mxu1 %v6373_v8  ;;  %v7112_v43 = vld [vmem:[%s8239_s2 + $0x80] sm:$0xff]  }
  0x78   : > { %8335 = vst [vmem:[#allocation20_spill] sm:$0xff] %v7100_v45  ;;  %vm751_vm5 = vcmp.ge.s32.totalorder %v7100_v45, 16  ;;  %v5331_v34 = vsel %vm750_vm7, 1.0, %v8323_v37  ;;  %v441_v9 = vsub.s32 0, %v7070_v56  ;;  %v1368_v46 = vrot.slane %v7075_v25, 4  ;;  %5936 = vmatprep.subr.bf16.mxu1 %v6375_v2 }
  0x79   : > { %v5405_v52 = vcombine.low %v1448_v61, %v1449_v54  ;;  %v5332_v20 = vsel %vm751_vm5, 1.0, %v8323_v37  ;;  %v448_v31 = vsub.s32 0, %v7089_v14  ;;  %v361_v13 = vsub.s32 0, %v360_v6 }
  0x7a   : > { %v7114_v16 = vpack.c.bf16 %v5332_v20, %v5331_v34  ;;  %v7117_v22 = vmin.u32 %v441_v9, %v7070_v56  ;;  %v367_v8 = vand.u32 15, %v6749_v21  ;;  %vm8269_vm5 = vcmp.lt.s32.totalorder %v7070_v56, 0 }
  0x7b   : > { %v1550_v27 = vshll.u32 %v5405_v52, 16  ;;  %vm8271_vm9 = vcmp.lt.s32.totalorder %v7089_v14, 0  ;;  %v7123_v25 = vmin.u32 %v448_v31, %v7089_v14  ;;  %v362_v39 = vsel %vm356_vm13, %v361_v13, %v360_v6  ;;  %5937 = vmatpush3.bf16.msra.mxu1 %v6375_v2 }
  0x7c   : > { %8336 = vst [vmem:[#allocation21_spill] sm:$0xff] %v7114_v16  ;;  %v1241_v60 = vrot.slane %v7114_v16, %v6682_v44  ;;  %v1248_v57 = vrot.slane %v7114_v16, %v6665_v35  ;;  %v636_v17 = vand.u32 255, %v7117_v22  ;;  %v1554_v12 = vshrl.u32 %v5405_v52, 16  ;;  %5954 = vmatprep.subr.bf16.mxu1 %v7112_v43  ;;  %v7139_v52 = vld [vmem:[#allocation2 + $0x28] sm:$0xf] }
  0x7d   : > { %v1552_v21 = vrot.slane %v1550_v27, 1  ;;  %v643_v4 = vand.u32 255, %v7123_v25  ;;  %v368_v61 = vsub.s32 0, %v367_v8  ;;  %vm468_vm15 = vcmp.ne.s32.totalorder %v362_v39, 0  ;;  %v7145_v27 = vld [vmem:[#allocation2 + $0x2c] sm:$0xf] }
  0x7e   : > { %v1370_v54 = vshrl.u32 %v1241_v60, 16  ;;  %v1373_v34 = vshll.u32 %v1241_v60, 16  ;;  %v1379_v9 = vshrl.u32 %v1248_v57, 16  ;;  %v1382_v20 = vshll.u32 %v1248_v57, 16 }
  0x7f   : > { %v1553_v31 = vsel %vm1517_vm3, %v1548_v50, %v1552_v21  ;;  %v637_v45 = vsub.s32 0, %v636_v17  ;;  %v644_v24 = vsub.s32 0, %v643_v4  ;;  %v369_v6 = vsel %vm363_vm14, %v368_v61, %v367_v8  ;;  %v298_v8 = vld [vmem:[%s6795_s7 + $0xc] sm:$0xf] }
  0x80   : > { %5911 = vmatmul.mubr.bf16.gmra.mrb[4].mxu1 %v1553_v31  ;;  %v1372_v55 = vrot.slane %v1370_v54, 7  ;;  %v7135_v2 = vrot.slane %v1379_v9, 7  ;;  %vm484_vm13 = vcmp.lt.s32.totalorder %v362_v39, 0  ;;  %vm469_vm4 = vcmp.ne.s32.totalorder %v369_v6, 0  ;;  %319 = vst [vmem:[#allocation2 + $0x4c] sm:$0xf] %v298_v8 }
  0x81   : > { %v638_v13 = vsel %vm8269_vm5, %v637_v45, %v636_v17  ;;  %v645_v50 = vsel %vm8271_vm9, %v644_v24, %v643_v4  ;;  %vm485_vm6 = vcmp.lt.s32.totalorder %v369_v6, 0  ;;  %vm7149_vm14 = vmand %vm484_vm13, %vm468_vm15  ;;  %v1556_v61 = vor.u32 %v1554_v12, %v1552_v21 }
  0x82   : > { %v1375_v60 = vor.u32 %v1373_v34, %v1372_v55  ;;  %v1377_v57 = vrot.slane %v1372_v55, 4  ;;  %v1384_v54 = vor.u32 %v1382_v20, %v7135_v2  ;;  %vm672_vm7 = vcmp.ne.s32.totalorder %v638_v13, 0  ;;  %vm7154_vm9 = vmand %vm485_vm6, %vm469_vm4 }
  0x83   : > { %vm673_vm2 = vcmp.ne.s32.totalorder %v645_v50, 0  ;;  %vm688_vm5 = vcmp.lt.s32.totalorder %v638_v13, 0  ;;  %vm689_vm10 = vcmp.lt.s32.totalorder %v645_v50, 0  ;;  %v720_v45 = vadd.s32 256, %v638_v13 }
  0x84   : > { %v1376_v17 = vsel %vm6869_vm8, %v1368_v46, %v1375_v60  ;;  %v1385_v4 = vsel %vm6869_vm8, %v1377_v57, %v1384_v54  ;;  %vm704_vm15 = vmand %vm688_vm5, %vm672_vm7  ;;  %v721_v34 = vadd.s32 256, %v645_v50  ;;  %v516_v55 = vadd.s32 16, %v362_v39 }
  0x85   : > { %v1450_v9 = vmul.bf16 %v1376_v17, %v7139_v52  ;;  %v1451_v20 = vmul.bf16 %v1385_v4, %v7145_v27  ;;  %vm705_vm13 = vmand %vm689_vm10, %vm673_vm2  ;;  %v7164_v31 = vsel %vm704_vm15, %v720_v45, %v638_v13  ;;  %v517_v8 = vadd.s32 16, %v369_v6 }
  0x86   : > { %8341 = vst [vmem:[#allocation22_spill] sm:$0xff] %v7164_v31  ;;  %v7166_v16 = vsel %vm705_vm13, %v721_v34, %v645_v50  ;;  %vm752_vm4 = vcmp.ge.s32.totalorder %v7164_v31, 16  ;;  %v3129_v46 = vrot.slane %v6662_v33, %v6682_v44  ;;  %v7175_v12 = vsel %vm7149_vm14, %v516_v55, %v362_v39  ;;  %v7224_v33 = vld [vmem:[#allocation2 + $0x34] sm:$0xf] }
  0x87   : > { %8342 = vst [vmem:[#allocation23_spill] sm:$0xff] %v7166_v16  ;;  %v5406_v60 = vcombine.low %v1450_v9, %v1451_v20  ;;  %vm753_vm5 = vcmp.ge.s32.totalorder %v7166_v16, 16  ;;  %v5333_v21 = vsel %vm752_vm4, 1.0, %v8323_v37  ;;  %v7180_v50 = vsel %vm7154_vm9, %v517_v8, %v369_v6 }
  0x88   : > { %v5334_v13 = vsel %vm753_vm5, 1.0, %v8323_v37  ;;  %vm908_vm10 = vcmp.lt.s32.totalorder %v7175_v12, 15  ;;  %v3226_v57 = vrot.slane %v3129_v46, 7  ;;  %vm909_vm2 = vcmp.lt.s32.totalorder %v7180_v50, 15 }
  0x89   : > { %v1558_v54 = vshll.u32 %v5406_v60, 16  ;;  %v7183_v45 = vpack.c.bf16 %v5334_v13, %v5333_v21  ;;  %v1562_v17 = vshrl.u32 %v5406_v60, 16  ;;  %v5369_v4 = vsel %vm908_vm10, 1.0, %v8323_v37 }
  0x8a   : > { %v5370_v39 = vsel %vm909_vm2, 1.0, %v8323_v37  ;;  %v3228_v63 = vrot.slane %v3226_v57, 4  ;;  %v8344_v34 = vmul.bf16 %v6743_v42, %v6649_v26  ;;  %v8345_v6 = vmul.bf16 %v6726_v32, %v6642_v18 }
  0x8b   : > { %8343 = vst [vmem:[#allocation24_spill] sm:$0xff] %v7183_v45  ;;  %v1560_v9 = vrot.slane %v1558_v54, 1  ;;  %v1255_v20 = vrot.slane %v7183_v45, %v6682_v44  ;;  %v1262_v55 = vrot.slane %v7183_v45, %v6665_v35  ;;  %v7200_v8 = vpack.c.bf16 %v5370_v39, %v5369_v4  ;;  %v6416_v45 = vld [vmem:[#allocation2 + $0x10] sm:$0xf] }
  0x8c   : > { %v7194_v24 = vcombine.low %v8345_v6, %v8344_v34  ;;  %v1386_v46 = vrot.slane %v7135_v2, 4  ;;  %v3230_v26 = vsel %vm6701_vm12, %v3228_v63, %v6691_v53  ;;  %v337_v42 = vadd.s32 112, %v6514_v5  ;;  %v3100_v6 = vld [vmem:[#allocation2 + $0x8] sm:$0xe] }
  0x8d   : > { %8346 = vst [vmem:[#allocation25_spill] sm:$0xff] %v7200_v8  ;;  %v338_v18 = vadd.s32 120, %v6514_v5  ;;  %v1561_v32 = vsel %vm1517_vm3, %v1556_v61, %v1560_v9  ;;  %v1388_v60 = vshrl.u32 %v1255_v20, 16  ;;  %v1391_v21 = vshll.u32 %v1255_v20, 16  ;;  %v7219_v61 = vld [vmem:[#allocation2 + $0x30] sm:$0xf] }
  0x8e   : > { %v1397_v13 = vshrl.u32 %v1262_v55, 16  ;;  %5914 = vmatprep.mubr.bf16.mxu1 %v1561_v32  ;;  %v1400_v54 = vshll.u32 %v1262_v55, 16  ;;  %v3115_v4 = vrot.slane %v7200_v8, %v6682_v44  ;;  %v3122_v2 = vrot.slane %v7200_v8, %v6665_v35  ;;  %v6414_v32 = vld [vmem:[#allocation2 + $0x14] sm:$0xf] }
  0x8f   : > { %v1390_v53 = vrot.slane %v1388_v60, 7  ;;  %v1564_v34 = vor.u32 %v1562_v17, %v1560_v9  ;;  %v7217_v5 = vadd.s32 %v6519_v7, %v337_v42  ;;  %vm2205_vm9 = vcmask 1046528  }
  0x90   : > { %v7214_v63 = vrot.slane %v1397_v13, 7  ;;  %v3221_v20 = vrot.slane %v3115_v4, 7  ;;  %v3223_v55 = vrot.slane %v3122_v2, 7  ;;  %v3288_v16 = vmul.bf16 %v6414_v32, %v3230_v26  ;;  %v6415_v32 = vld [vmem:[#allocation2 + $0xc] sm:$0xf] }
  0x91   : > { %v7222_v31 = vadd.s32 %v6519_v7, %v338_v18  ;;  %v1393_v60 = vor.u32 %v1391_v21, %v1390_v53  ;;  %v1395_v13 = vrot.slane %v1390_v53, 4  ;;  %v402_v9 = vand.u32 15, %v6937_v15 }
  0x92   : > { %v1402_v17 = vor.u32 %v1400_v54, %v7214_v63  ;;  %v3222_v42 = vrot.slane %v3221_v20, 4  ;;  %v3225_v39 = vrot.slane %v3223_v55, 4  ;;  %vm8284_vm6 = vcmp.lt.s32.totalorder %v7217_v5, 0 }
  0x93   : > { %v455_v4 = vsub.s32 0, %v7217_v5  ;;  %v1394_v26 = vsel %vm6869_vm8, %v1386_v46, %v1393_v60  ;;  %v3285_v18 = vmul.bf16 %v3221_v20, %v3100_v6  ;;  %v462_v21 = vsub.s32 0, %v7222_v31 }
  0x94   : > { %v1403_v7 = vsel %vm6869_vm8, %v1395_v13, %v1402_v17  ;;  %v1452_v2 = vmul.bf16 %v1394_v26, %v7219_v61  ;;  %v3224_v15 = vsel %vm6701_vm12, %v3222_v42, %v3223_v55  ;;  %v3227_v53 = vsel %vm6701_vm12, %v3225_v39, %v3226_v57 }
  0x95   : > { %v1453_v54 = vmul.bf16 %v1403_v7, %v7224_v33  ;;  %v3286_v8 = vmul.bf16 %v6415_v32, %v3224_v15  ;;  %v3287_v46 = vmul.bf16 %v6416_v45, %v3227_v53  ;;  %v7242_v60 = vmin.u32 %v455_v4, %v7217_v5  ;;  %v6374_v32 = vld [vmem:[%s8239_s2 + $0x188] sm:$0xff]  }
  0x96   : > { %v7245_v6 = vmin.u32 %v462_v21, %v7222_v31  ;;  %vm8283_vm7 = vcmp.lt.s32.totalorder %v7222_v31, 0  ;;  %v403_v13 = vsub.s32 0, %v402_v9  ;;  %v409_v17 = vand.u32 15, %v6947_v19 }
  0x97   : > { %v5407_v20 = vcombine.low %v1452_v2, %v1453_v54  ;;  %v5548_v55 = vcombine.low %v3285_v18, %v3286_v8  ;;  %v5549_v42 = vcombine.low %v3287_v46, %v3288_v16  ;;  %v650_v57 = vand.u32 255, %v7242_v60 }
  0x98   : > { %v657_v39 = vand.u32 255, %v7245_v6  ;;  %v404_v4 = vsel %vm398_vm11, %v403_v13, %v402_v9  ;;  %v410_v7 = vsub.s32 0, %v409_v17  ;;  %v8347_v8 = vrot.slane %v7194_v24, 1 }
  0x99   : > { %v1566_v26 = vshll.u32 %v5407_v20, 16  ;;  %v1570_v45 = vshrl.u32 %v5407_v20, 16  ;;  %v3362_v21 = vrot.slane %v5548_v55, 1  ;;  %v3363_v15 = vrot.slane %v5549_v42, 1 }
  0x9a   : > { %v651_v2 = vsub.s32 0, %v650_v57  ;;  %v658_v54 = vsub.s32 0, %v657_v39  ;;  %v411_v19 = vsel %vm405_vm0, %v410_v7, %v409_v17  ;;  %vm474_vm14 = vcmp.ne.s32.totalorder %v404_v4, 0  ;;  %v6376_v7 = vld [vmem:[%s8239_s2 + $0x190] sm:$0xff]   ;;  %v6417_v17 = vld [vmem:[#allocation2 + $0x20] sm:$0xf] }
  0x9b   : > { %v1568_v53 = vrot.slane %v1566_v26, 1  ;;  %vm490_vm15 = vcmp.lt.s32.totalorder %v404_v4, 0  ;;  %v3364_v16 = vsel %vm2205_vm9, %v3362_v21, %v3363_v15  ;;  %v3366_v18 = vsel %vm2205_vm9, %v3363_v15, %v8347_v8  ;;  %v6378_v8 = vld [vmem:[%s8239_s2 + $0x198] sm:$0xff]  }
  0x9c   : > { %v652_v10 = vsel %vm8284_vm6, %v651_v2, %v650_v57  ;;  %v659_v9 = vsel %vm8283_vm7, %v658_v54, %v657_v39  ;;  %6066 = vmatprep.mubr.bf16.mxu0 %v3364_v16  ;;  %vm7267_vm4 = vmand %vm490_vm15, %vm474_vm14  ;;  %vm475_vm7 = vcmp.ne.s32.totalorder %v411_v19, 0  ;;  %vm491_vm6 = vcmp.lt.s32.totalorder %v411_v19, 0 }
  0x9d   : > { %v1569_v59 = vsel %vm1517_vm3, %v1564_v34, %v1568_v53  ;;  %vm674_vm11 = vcmp.ne.s32.totalorder %v652_v10, 0  ;;  %vm675_vm0 = vcmp.ne.s32.totalorder %v659_v9, 0  ;;  %vm690_vm13 = vcmp.lt.s32.totalorder %v652_v10, 0  ;;  %6067 = vmatmul.mubr.bf16.vlgmr.msra.gmra.mrb[0].mxu0 %v3366_v18  ;;  %vm507_vm14 = vmand %vm491_vm6, %vm475_vm7 }
  0x9e   : > { %5915 = vmatmul.mubr.bf16.gmra.mrb[8].mxu1 %v1569_v59  ;;  %vm691_vm5 = vcmp.lt.s32.totalorder %v659_v9, 0  ;;  %vm706_vm10 = vmand %vm690_vm13, %vm674_vm11  ;;  %v722_v20 = vadd.s32 256, %v652_v10  ;;  %v723_v13 = vadd.s32 256, %v659_v9  ;;  %6083 = vmatpush3.bf16.msra.mxu0 %v6895_v51  ;;  %v522_v34 = vadd.s32 16, %v404_v4 }
  0x9f   : > { %vm707_vm2 = vmand %vm691_vm5, %vm675_vm0  ;;  %v523_v55 = vadd.s32 16, %v411_v19  ;;  %v7277_v39 = vor.u32 %v1570_v45, %v1568_v53  ;;  %6084 = vmatprep.subr.bf16.mxu0 %v6374_v32  ;;  %v416_v26 = vand.u32 15, %v6967_v41  ;;  %v423_v16 = vand.u32 15, %v6985_v11 }
  0xa0   : > { %v7273_v42 = vsel %vm706_vm10, %v722_v20, %v652_v10  ;;  %v7275_v57 = vsel %vm707_vm2, %v723_v13, %v659_v9  ;;  %v7287_v51 = vsel %vm7267_vm4, %v522_v34, %v404_v4  ;;  %vm852_vm0 = vcmp.ge.s32.totalorder %v7175_v12, 1 }
  0xa1   : > { %8350 = vst [vmem:[#allocation26_spill] sm:$0xff] %v7275_v57  ;;  %vm754_vm15 = vcmp.ge.s32.totalorder %v7273_v42, 16  ;;  %vm755_vm11 = vcmp.ge.s32.totalorder %v7275_v57, 16  ;;  %v7289_v21 = vsel %vm507_vm14, %v523_v55, %v411_v19  ;;  %vm914_vm6 = vcmp.lt.s32.totalorder %v7287_v51, 15 }
  0xa2   : > { %v5335_v45 = vsel %vm754_vm15, 1.0, %v8323_v37  ;;  %v5336_v15 = vsel %vm755_vm11, 1.0, %v8323_v37  ;;  %vm915_vm7 = vcmp.lt.s32.totalorder %v7289_v21, 15  ;;  %6085 = vmatpush3.bf16.msra.mxu0 %v6374_v32  ;;  %v5375_v2 = vsel %vm914_vm6, 1.0, %v8323_v37 }
  0xa3   : > { %v7295_v41 = vpack.c.bf16 %v5336_v15, %v5335_v45  ;;  %v5376_v54 = vsel %vm915_vm7, 1.0, %v8323_v37  ;;  %v417_v53 = vsub.s32 0, %v416_v26  ;;  %v3237_v19 = vrot.slane %v6706_v3, 4  ;;  %6086 = vmatprep.subr.bf16.mxu0 %v6376_v7 }
  0xa4   : > { %v7299_v4 = vpack.c.bf16 %v5376_v54, %v5375_v2  ;;  %vm853_vm13 = vcmp.ge.s32.totalorder %v7180_v50, 1  ;;  %v7315_v3 = vsel %vm852_vm0, 1.0, %v8323_v37  ;;  %v424_v32 = vsub.s32 0, %v423_v16 }
  0xa5   : > { %v1269_v18 = vrot.slane %v7295_v41, %v6682_v44  ;;  %v1276_v10 = vrot.slane %v7295_v41, %v6665_v35  ;;  %v418_v9 = vsel %vm412_vm1, %v417_v53, %v416_v26  ;;  %vm8351_vm1 = vcmp.lt.s32.totalorder %v6959_v38, 0  ;;  %v6380_v26 = vld [vmem:[%s8239_s2 + $0x1a0] sm:$0xff]  }
  0xa6   : > { %v3157_v11 = vrot.slane %v7299_v4, %v6682_v44  ;;  %v3164_v12 = vrot.slane %v7299_v4, %v6665_v35  ;;  %vm476_vm4 = vcmp.ne.s32.totalorder %v418_v9, 0  ;;  %6087 = vmatpush3.bf16.msra.mxu0 %v6376_v7  ;;  %v425_v55 = vsel %vm8351_vm1, %v424_v32, %v423_v16  ;;  %v1156_v7 = vld [vmem:[#allocation2 + $0x40] sm:$0x1] }
  0xa7   : > { %v1406_v59 = vshrl.u32 %v1269_v18, 16  ;;  %v1409_v46 = vshll.u32 %v1269_v18, 16  ;;  %v1415_v20 = vshrl.u32 %v1276_v10, 16  ;;  %v1418_v13 = vshll.u32 %v1276_v10, 16  ;;  %6088 = vmatprep.subr.bf16.mxu0 %v6378_v8  ;;  %v7335_v18 = vld [vmem:[#allocation2 + $0x38] sm:$0xf] }
  0xa8   : > { %v3238_v49 = vrot.slane %v3157_v11, 7  ;;  %v7321_v34 = vrot.slane %v3164_v12, 7  ;;  %vm492_vm5 = vcmp.lt.s32.totalorder %v418_v9, 0  ;;  %vm477_vm10 = vcmp.ne.s32.totalorder %v425_v55, 0  ;;  %v7337_v10 = vld [vmem:[#allocation2 + $0x3c] sm:$0xf] }
  0xa9   : > { %v1408_v45 = vrot.slane %v1406_v59, 7  ;;  %v1417_v15 = vrot.slane %v1415_v20, 7  ;;  %vm493_vm2 = vcmp.lt.s32.totalorder %v425_v55, 0  ;;  %vm7329_vm14 = vmand %vm492_vm5, %vm476_vm4  ;;  %v524_v53 = vadd.s32 16, %v418_v9 }
  0xaa   : > { %v3239_v38 = vsel %vm6701_vm12, %v3237_v19, %v3238_v49  ;;  %v3240_v54 = vrot.slane %v3238_v49, 4  ;;  %vm509_vm15 = vmand %vm493_vm2, %vm477_vm10  ;;  %v525_v16 = vadd.s32 16, %v425_v55  ;;  %6089 = vmatpush3.bf16.msra.mxu0 %v6378_v8  ;;  %vm8357_vm7 = vcmp.lt.s32.totalorder %v7006_v28, 0  ;;  %v7417_v28 = vld [vmem:[%s8239_s2 + $0x1c0] sm:$0xff]  }
  0xab   : > { %v1411_v11 = vor.u32 %v1409_v46, %v1408_v45  ;;  %v1413_v12 = vrot.slane %v1408_v45, 4  ;;  %v1420_v32 = vor.u32 %v1418_v13, %v1417_v15  ;;  %v1422_v59 = vrot.slane %v1417_v15, 4  ;;  %6090 = vmatprep.subr.bf16.mxu0 %v6380_v26  ;;  %v6382_v46 = vld [vmem:[%s8239_s2 + $0x1a8] sm:$0xff]   ;;  %v6418_v15 = vld [vmem:[#allocation2 + $0x24] sm:$0xf] }
  0xac   : > { %v3242_v20 = vsel %vm6701_vm12, %v3240_v54, %v7321_v34  ;;  %v3291_v57 = vmul.bf16 %v6417_v17, %v3239_v38  ;;  %v7344_v19 = vsel %vm7329_vm14, %v524_v53, %v418_v9  ;;  %v7346_v49 = vsel %vm509_vm15, %v525_v16, %v425_v55 }
  0xad   : > { %v8354_v13 = vrot.slane %v7214_v63, 4  ;;  %v1421_v45 = vsel %vm6869_vm8, %v1413_v12, %v1420_v32  ;;  %v1456_v17 = vmul.bf16 %v1422_v59, %v1156_v7  ;;  %v3292_v2 = vmul.bf16 %v6418_v15, %v3242_v20 }
  0xae   : > { %v1455_v55 = vmul.bf16 %v1421_v45, %v7337_v10  ;;  %vm916_vm11 = vcmp.lt.s32.totalorder %v7344_v19, 15  ;;  %vm917_vm6 = vcmp.lt.s32.totalorder %v7346_v49, 15  ;;  %6091 = vmatpush3.bf16.msra.mxu0 %v6380_v26  ;;  %v5354_v12 = vsel %vm853_vm13, 1.0, %v8323_v37 }
  0xaf   : > { %v1412_v8 = vsel %vm6869_vm8, %v8354_v13, %v1411_v11  ;;  %v5409_v38 = vcombine.low %v1456_v17, %v1456_v17  ;;  %v7361_v54 = vcombine.low %v3291_v57, %v3292_v2  ;;  %v5377_v63 = vsel %vm916_vm11, 1.0, %v8323_v37  ;;  %6092 = vmatprep.subr.bf16.mxu0 %v6382_v46  ;;  %v6384_v57 = vld [vmem:[%s8239_s2 + $0x1b0] sm:$0xff]  }
  0xb0   : > { %v1454_v9 = vmul.bf16 %v1412_v8, %v7335_v18  ;;  %v5378_v53 = vsel %vm917_vm6, 1.0, %v8323_v37  ;;  %v3243_v11 = vrot.slane %v7321_v34, 4  ;;  %v7376_v20 = vpack.c.bf16 %v5354_v12, %v7315_v3 }
  0xb1   : > { %v7365_v7 = vpack.c.bf16 %v5378_v53, %v5377_v63  ;;  %v1582_v32 = vshll.u32 %v5409_v38, 16  ;;  %v8286_v59 = vrot.slane %v7361_v54, 1  ;;  %v8356_v17 = vrot.slane %v7194_v24, 1 }
  0xb2   : > { %v5408_v16 = vcombine.low %v1454_v9, %v1455_v55  ;;  %8355 = vst [vmem:[#allocation27_spill] sm:$0xff] %v7376_v20  ;;  %v980_v3 = vmul.bf16 %v7376_v20, %v6826_v48  ;;  %v430_v2 = vand.u32 15, %v7042_v58  ;;  %6093 = vmatpush3.bf16.msra.mxu0 %v6382_v46  ;;  %v437_v63 = vand.u32 15, %v7053_v36  ;;  %v6386_v58 = vld [vmem:[%s8239_s2 + $0x1b8] sm:$0xff]  }
  0xb3   : > { %v3171_v50 = vrot.slane %v7365_v7, %v6682_v44  ;;  %v3178_v8 = vrot.slane %v7365_v7, %v6665_v35  ;;  %v1584_v45 = vrot.slane %v1582_v32, 1  ;;  %v3368_v15 = vsel %vm2205_vm9, %v8356_v17, %v8286_v59  ;;  %6094 = vmatprep.subr.bf16.mxu0 %v6384_v57  ;;  %v6420_v17 = vld [vmem:[#allocation2] sm:$0xf] }
  0xb4   : > { %v1574_v13 = vshll.u32 %v5408_v16, 16  ;;  %v1578_v34 = vshrl.u32 %v5408_v16, 16  ;;  %6070 = vmatprep.mubr.bf16.mxu0 %v3368_v15  ;;  %v1002_v53 = vrot.slane %v980_v3, %v6682_v44  ;;  %v1009_v24 = vrot.slane %v980_v3, %v6665_v35  ;;  %v7405_v3 = vld [vmem:[#allocation2 + $0x4] sm:$0xf] }
  0xb5   : > { %v3244_v55 = vrot.slane %v3171_v50, 7  ;;  %v7392_v38 = vrot.slane %v3178_v8, 7  ;;  %v431_v16 = vsub.s32 0, %v430_v2  ;;  %v444_v12 = vand.u32 15, %v7117_v22  ;;  %v6419_v50 = vld [vmem:[#allocation2 + $0x28] sm:$0xf] }
  0xb6   : > { %v1576_v9 = vrot.slane %v1574_v13, 1  ;;  %v1124_v15 = vmul.bf16 %v6420_v17, %v1002_v53  ;;  %v1125_v22 = vmul.bf16 %v7405_v3, %v1009_v24  ;;  %6095 = vmatpush3.bf16.msra.mxu0 %v6384_v57  ;;  %vm8358_vm4 = vcmp.lt.s32.totalorder %v7021_v62, 0 }
  0xb7   : > { %v3245_v13 = vsel %vm6701_vm12, %v3243_v11, %v3244_v55  ;;  %v3246_v36 = vrot.slane %v3244_v55, 4  ;;  %v432_v26 = vsel %vm8357_vm7, %v431_v16, %v430_v2  ;;  %v438_v11 = vsub.s32 0, %v437_v63  ;;  %6096 = vmatprep.subr.bf16.mxu0 %v6386_v58 }
  0xb8   : > { %v1577_v46 = vsel %vm1517_vm3, %v7277_v39, %v1576_v9  ;;  %v1580_v32 = vor.u32 %v1578_v34, %v1576_v9  ;;  %v3293_v8 = vmul.bf16 %v6419_v50, %v3245_v13  ;;  %vm478_vm0 = vcmp.ne.s32.totalorder %v432_v26, 0  ;;  %v6422_v34 = vld [vmem:[#allocation2 + $0x2c] sm:$0xf]  ;;  %v8367_v50 = vld [vmem:[#allocation15_spill] sm:$0xff] }
  0xb9   : > { %5918 = vmatprep.mubr.bf16.mxu1 %v1577_v46  ;;  %v3248_v39 = vsel %vm6701_vm12, %v3246_v36, %v7392_v38  ;;  %v5418_v55 = vcombine.low %v1124_v15, %v1125_v22  ;;  %vm494_vm13 = vcmp.lt.s32.totalorder %v432_v26, 0  ;;  %v526_v53 = vadd.s32 16, %v432_v26  ;;  %v6379_v13 = vld [vmem:[%s8239_s2 + $0x88] sm:$0xff]  }
  0xba   : > { %v1585_v59 = vsel %vm1517_vm3, %v1580_v32, %v1584_v45  ;;  %v3294_v9 = vmul.bf16 %v6422_v34, %v3248_v39  ;;  %v439_v45 = vsel %vm8358_vm4, %v438_v11, %v437_v63  ;;  %vm510_vm1 = vmand %vm494_vm13, %vm478_vm0  ;;  %v3249_v2 = vrot.slane %v7392_v38, 4  ;;  %6097 = vmatpush3.bf16.msra.mxu0 %v6386_v58  ;;  %v6383_v38 = vld [vmem:[%s8239_s2 + $0x98] sm:$0xff]  }
  0xbb   : > { %5919 = vmatmul.mubr.bf16.gmra.mrb[12].mxu1 %v1585_v59  ;;  %v445_v24 = vsub.s32 0, %v444_v12  ;;  %v451_v57 = vand.u32 15, %v7123_v25  ;;  %vm479_vm5 = vcmp.ne.s32.totalorder %v439_v45, 0  ;;  %vm495_vm10 = vcmp.lt.s32.totalorder %v439_v45, 0  ;;  %6114 = vmatprep.subr.bf16.mxu0 %v7417_v28 }
  0xbc   : > { %v7423_v59 = vcombine.low %v3293_v8, %v3294_v9  ;;  %5938 = vmatprep.mubr.bf16.mxu1 %v5418_v55  ;;  %v527_v16 = vadd.s32 16, %v439_v45  ;;  %vm511_vm2 = vmand %vm495_vm10, %vm479_vm5  ;;  %v7425_v46 = vsel %vm510_vm1, %v526_v53, %v432_v26  ;;  %vm8359_vm14 = vcmp.lt.s32.totalorder %v7070_v56, 0 }
  0xbd   : > { %v446_v32 = vsel %vm8359_vm14, %v445_v24, %v444_v12  ;;  %v452_v62 = vsub.s32 0, %v451_v57  ;;  %vm856_vm15 = vcmp.ge.s32.totalorder %v6645_v23, 1  ;;  %vm918_vm11 = vcmp.lt.s32.totalorder %v7425_v46, 15 }
  0xbe   : > { %v3369_v63 = vrot.slane %v7423_v59, 1  ;;  %v7431_v25 = vsel %vm511_vm2, %v527_v16, %v439_v45  ;;  %vm480_vm6 = vcmp.ne.s32.totalorder %v446_v32, 0  ;;  %v5379_v26 = vsel %vm918_vm11, 1.0, %v8323_v37 }
  0xbf   : > { %vm919_vm7 = vcmp.lt.s32.totalorder %v7431_v25, 15  ;;  %vm8360_vm0 = vcmp.lt.s32.totalorder %v7089_v14, 0  ;;  %vm496_vm13 = vcmp.lt.s32.totalorder %v446_v32, 0  ;;  %v8361_v12 = vrot.slane %v7361_v54, 1  ;;  %v299_v14 = vld [vmem:[%s6795_s7 + $0x10] sm:$0xf] }
  0xc0   : > { %v453_v56 = vsel %vm8360_vm0, %v452_v62, %v451_v57  ;;  %v5380_v36 = vsel %vm919_vm7, 1.0, %v8323_v37  ;;  %vm7448_vm5 = vmand %vm496_vm13, %vm480_vm6  ;;  %v528_v54 = vadd.s32 16, %v446_v32  ;;  %vm857_vm2 = vcmp.ge.s32.totalorder %v6656_v30, 1  ;;  %320 = vst [vmem:[#allocation2 + $0x50] sm:$0xf] %v299_v14 }
  0xc1   : > { %v3370_v58 = vsel %vm2205_vm9, %v8361_v12, %v3369_v63  ;;  %vm481_vm4 = vcmp.ne.s32.totalorder %v453_v56, 0  ;;  %vm497_vm1 = vcmp.lt.s32.totalorder %v453_v56, 0  ;;  %v7453_v8 = vpack.c.bf16 %v5380_v36, %v5379_v26  ;;  %v6423_v12 = vld [vmem:[#allocation2 + $0x30] sm:$0xf] }
  0xc2   : > { %6071 = vmatmul.mubr.bf16.gmra.mrb[4].mxu0 %v3370_v58  ;;  %vm513_vm10 = vmand %vm497_vm1, %vm481_vm4  ;;  %v529_v17 = vadd.s32 16, %v453_v56  ;;  %v8364_v15 = vcombine.low %v6879_v1, %v6929_v29  ;;  %v5357_v22 = vsel %vm856_vm15, 1.0, %v8323_v37  ;;  %v5358_v39 = vsel %vm857_vm2, 1.0, %v8323_v37 }
  0xc3   : > { %vm858_vm14 = vcmp.ge.s32.totalorder %v7287_v51, 1  ;;  %vm859_vm11 = vcmp.ge.s32.totalorder %v7289_v21, 1  ;;  %v3185_v30 = vrot.slane %v7453_v8, %v6682_v44  ;;  %v3192_v11 = vrot.slane %v7453_v8, %v6665_v35  ;;  %v6381_v51 = vld [vmem:[%s8239_s2 + $0x90] sm:$0xff]  }
  0xc4   : > { %5939 = vmatmul.mubr.bf16.vlgmr.msra.gmra.mrb[0].mxu1 %v8364_v15  ;;  %v7472_v1 = vsel %vm7448_vm5, %v528_v54, %v446_v32  ;;  %v7474_v23 = vsel %vm513_vm10, %v529_v17, %v453_v56  ;;  %v7478_v29 = vpack.c.bf16 %v5358_v39, %v5357_v22  ;;  %v5360_v57 = vsel %vm859_vm11, 1.0, %v8323_v37  ;;  %v6424_v17 = vld [vmem:[#allocation2 + $0x34] sm:$0xf] }
  0xc5   : > { %5955 = vmatpush3.bf16.msra.mxu1 %v7112_v43  ;;  %vm920_vm15 = vcmp.lt.s32.totalorder %v7472_v1, 15  ;;  %vm921_vm6 = vcmp.lt.s32.totalorder %v7474_v23, 15  ;;  %v5359_v43 = vsel %vm858_vm14, 1.0, %v8323_v37  ;;  %v3250_v34 = vrot.slane %v3185_v30, 7  ;;  %v7515_v30 = vld [vmem:[#allocation2 + $0x10] sm:$0xf] }
  0xc6   : > { %5956 = vmatprep.subr.bf16.mxu1 %v6379_v13  ;;  %8365 = vst [vmem:[#allocation28_spill] sm:$0xff] %v7478_v29  ;;  %v3253_v9 = vrot.slane %v3192_v11, 7  ;;  %v5381_v55 = vsel %vm920_vm15, 1.0, %v8323_v37  ;;  %v5382_v53 = vsel %vm921_vm6, 1.0, %v8323_v37  ;;  %v982_v24 = vmul.bf16 %v7478_v29, %v6903_v40 }
  0xc7   : > { %v7486_v45 = vpack.c.bf16 %v5382_v53, %v5381_v55  ;;  %v458_v16 = vand.u32 15, %v7242_v60  ;;  %v3251_v32 = vsel %vm6701_vm12, %v3249_v2, %v3250_v34  ;;  %v3252_v62 = vrot.slane %v3250_v34, 4 }
  0xc8   : > { %v3255_v26 = vrot.slane %v3253_v9, 4  ;;  %v7498_v56 = vpack.c.bf16 %v5360_v57, %v5359_v43  ;;  %v3295_v58 = vmul.bf16 %v6423_v12, %v3251_v32  ;;  %v1030_v60 = vrot.slane %v982_v24, %v6682_v44  ;;  %v7518_v43 = vld [vmem:[#allocation2 + $0x14] sm:$0xf]  ;;  %v6385_v12 = vld [vmem:[%s8239_s2 + $0xa0] sm:$0xff]  }
  0xc9   : > { %5957 = vmatpush3.bf16.msra.mxu1 %v6379_v13  ;;  %v3199_v36 = vrot.slane %v7486_v45, %v6682_v44  ;;  %v3206_v21 = vrot.slane %v7486_v45, %v6665_v35  ;;  %v3254_v2 = vsel %vm6701_vm12, %v3252_v62, %v3253_v9  ;;  %v1037_v13 = vrot.slane %v982_v24, %v6665_v35 }
  0xca   : > { %8366 = vst [vmem:[#allocation29_spill] sm:$0xff] %v7498_v56  ;;  %5958 = vmatprep.subr.bf16.mxu1 %v6381_v51  ;;  %v983_v14 = vmul.bf16 %v7498_v56, %v8367_v50  ;;  %v459_v54 = vsub.s32 0, %v458_v16  ;;  %v3296_v15 = vmul.bf16 %v6424_v17, %v3254_v2  ;;  %v1128_v11 = vmul.bf16 %v7515_v30, %v1030_v60  ;;  %v7531_v2 = vld [vmem:[#allocation2 + $0x18] sm:$0xf] }
  0xcb   : > { %v3256_v22 = vrot.slane %v3199_v36, 7  ;;  %v7513_v39 = vrot.slane %v3206_v21, 7  ;;  %v1129_v34 = vmul.bf16 %v7518_v43, %v1037_v13  ;;  %vm8368_vm7 = vcmp.lt.s32.totalorder %v7217_v5, 0  ;;  %v6427_v36 = vld [vmem:[#allocation2 + $0x38] sm:$0xf] }
  0xcc   : > { %v1044_v9 = vrot.slane %v983_v14, %v6682_v44  ;;  %v1051_v55 = vrot.slane %v983_v14, %v6665_v35  ;;  %v460_v53 = vsel %vm8368_vm7, %v459_v54, %v458_v16  ;;  %v5553_v24 = vcombine.low %v3295_v58, %v3296_v15  ;;  %v6430_v13 = vld [vmem:[#allocation2 + $0x3c] sm:$0xf] }
  0xcd   : > { %5959 = vmatpush3.bf16.msra.mxu1 %v6381_v51  ;;  %v3257_v57 = vsel %vm6701_vm12, %v3255_v26, %v3256_v22  ;;  %v3258_v32 = vrot.slane %v3256_v22, 4  ;;  %v465_v62 = vand.u32 15, %v7245_v6  ;;  %v5420_v60 = vcombine.low %v1128_v11, %v1129_v34  ;;  %v7534_v51 = vld [vmem:[#allocation2 + $0x1c] sm:$0xf]  ;;  %v6387_v34 = vld [vmem:[%s8239_s2 + $0xa8] sm:$0xff]  }
  0xce   : > { %5960 = vmatprep.subr.bf16.mxu1 %v6383_v38  ;;  %v3297_v21 = vmul.bf16 %v6427_v36, %v3257_v57  ;;  %v1130_v5 = vmul.bf16 %v7531_v2, %v1044_v9  ;;  %v1131_v16 = vmul.bf16 %v7534_v51, %v1051_v55  ;;  %v3371_v26 = vrot.slane %v5553_v24, 1 }
  0xcf   : > { %v3260_v6 = vsel %vm6701_vm12, %v3258_v32, %v7513_v39  ;;  %v466_v58 = vsub.s32 0, %v465_v62  ;;  %vm482_vm0 = vcmp.ne.s32.totalorder %v460_v53, 0  ;;  %5942 = vmatprep.mubr.bf16.mxu1 %v5420_v60  ;;  %vm498_vm13 = vcmp.lt.s32.totalorder %v460_v53, 0  ;;  %v8372_v60 = vld [vmem:[#allocation9_spill] sm:$0xff] }
  0xd0   : > { %v3298_v14 = vmul.bf16 %v6430_v13, %v3260_v6  ;;  %v5421_v54 = vcombine.low %v1130_v5, %v1131_v16  ;;  %v530_v17 = vadd.s32 16, %v460_v53  ;;  %v3372_v15 = vsel %vm2205_vm9, %v3369_v63, %v3371_v26  ;;  %vm514_vm1 = vmand %vm498_vm13, %vm482_vm0  ;;  %v8373_v16 = vld [vmem:[#allocation7_spill] sm:$0xff] }
  0xd1   : > { %5961 = vmatpush3.bf16.msra.mxu1 %v6383_v38  ;;  %vm8369_vm4 = vcmp.lt.s32.totalorder %v7222_v31, 0  ;;  %v3261_v11 = vrot.slane %v7513_v39, 4  ;;  %vm860_vm5 = vcmp.ge.s32.totalorder %v7344_v19, 1  ;;  %6074 = vmatprep.mubr.bf16.mxu0 %v3372_v15  ;;  %vm861_vm11 = vcmp.ge.s32.totalorder %v7346_v49, 1  ;;  %v6389_v49 = vld [vmem:[%s8239_s2 + $0xb0] sm:$0xff]  }
  0xd2   : > { %v467_v22 = vsel %vm8369_vm4, %v466_v58, %v465_v62  ;;  %5962 = vmatprep.subr.bf16.mxu1 %v6385_v12  ;;  %v7550_v38 = vcombine.low %v3297_v21, %v3298_v14  ;;  %5943 = vmatmul.mubr.bf16.gmra.mrb[4].mxu1 %v5421_v54  ;;  %v7552_v31 = vsel %vm514_vm1, %v530_v17, %v460_v53  ;;  %v5361_v63 = vsel %vm860_vm5, 1.0, %v8323_v37  ;;  %v8371_v21 = vld [vmem:[#allocation6_spill] sm:$0xff]  ;;  %v6391_v54 = vld [vmem:[%s8239_s2 + $0xb8] sm:$0xff]   ;;  %v8375_v17 = vld [vmem:[#allocation21_spill] sm:$0xff] }
  0xd3   : > { %vm483_vm10 = vcmp.ne.s32.totalorder %v467_v22, 0  ;;  %vm499_vm2 = vcmp.lt.s32.totalorder %v467_v22, 0  ;;  %v531_v59 = vadd.s32 16, %v467_v22  ;;  %vm862_vm15 = vcmp.ge.s32.totalorder %v7425_v46, 1 }
  0xd4   : > { %vm515_vm14 = vmand %vm499_vm2, %vm483_vm10  ;;  %v8287_v19 = vrot.slane %v7550_v38, 1  ;;  %vm922_vm6 = vcmp.lt.s32.totalorder %v7552_v31, 15  ;;  %v5362_v9 = vsel %vm861_vm11, 1.0, %v8323_v37  ;;  %vm863_vm0 = vcmp.ge.s32.totalorder %v7431_v25, 1 }
  0xd5   : > { %v7558_v39 = vsel %vm515_vm14, %v531_v59, %v467_v22  ;;  %5963 = vmatpush3.bf16.msra.mxu1 %v6385_v12  ;;  %v5383_v55 = vsel %vm922_vm6, 1.0, %v8323_v37  ;;  %v7564_v53 = vpack.c.bf16 %v5362_v9, %v5361_v63  ;;  %v5363_v57 = vsel %vm862_vm15, 1.0, %v8323_v37  ;;  %v8370_v12 = vld [vmem:[#allocation18_spill] sm:$0xff] }
  0xd6   : > { %vm923_vm7 = vcmp.lt.s32.totalorder %v7558_v39, 15  ;;  %5964 = vmatprep.subr.bf16.mxu1 %v6387_v34  ;;  %v3374_v46 = vsel %vm2205_vm9, %v3371_v26, %v8287_v19  ;;  %v5364_v32 = vsel %vm863_vm0, 1.0, %v8323_v37  ;;  %vm796_vm13 = vcmp.lt.s32.totalorder %v8371_v21, 240  ;;  %v8374_v26 = vld [vmem:[#allocation8_spill] sm:$0xff] }
  0xd7   : > { %v5384_v24 = vsel %vm923_vm7, 1.0, %v8323_v37  ;;  %6075 = vmatmul.mubr.bf16.gmra.mrb[8].mxu0 %v3374_v46  ;;  %v984_v25 = vmul.bf16 %v7564_v53, %v8370_v12  ;;  %v7580_v36 = vpack.c.bf16 %v5364_v32, %v5363_v57  ;;  %vm797_vm4 = vcmp.lt.s32.totalorder %v8372_v60, 240 }
  0xd8   : > { %v7576_v62 = vpack.c.bf16 %v5384_v24, %v5383_v55  ;;  %v5337_v5 = vsel %vm796_vm13, 1.0, %v8323_v37  ;;  %vm798_vm1 = vcmp.lt.s32.totalorder %v8373_v16, 240  ;;  %vm799_vm5 = vcmp.lt.s32.totalorder %v8374_v26, 240  ;;  %v7601_v55 = vld [vmem:[#allocation2 + $0x20] sm:$0xf] }
  0xd9   : > { %5965 = vmatpush3.bf16.msra.mxu1 %v6387_v34  ;;  %v1058_v13 = vrot.slane %v984_v25, %v6682_v44  ;;  %v1065_v14 = vrot.slane %v984_v25, %v6665_v35  ;;  %v985_v15 = vmul.bf16 %v7580_v36, %v8375_v17  ;;  %v5338_v22 = vsel %vm797_vm4, 1.0, %v8323_v37  ;;  %v7604_v24 = vld [vmem:[#allocation2 + $0x24] sm:$0xf] }
  0xda   : > { %v3213_v6 = vrot.slane %v7576_v62, %v6682_v44  ;;  %v3220_v58 = vrot.slane %v7576_v62, %v6665_v35  ;;  %5966 = vmatprep.subr.bf16.mxu1 %v6389_v49  ;;  %v5339_v34 = vsel %vm798_vm1, 1.0, %v8323_v37  ;;  %v5340_v59 = vsel %vm799_vm5, 1.0, %v8323_v37 }
  0xdb   : > { %v1132_v46 = vmul.bf16 %v7601_v55, %v1058_v13  ;;  %v1133_v57 = vmul.bf16 %v7604_v24, %v1065_v14  ;;  %v1072_v32 = vrot.slane %v985_v15, %v6682_v44  ;;  %v1079_v25 = vrot.slane %v985_v15, %v6665_v35  ;;  %v7618_v13 = vld [vmem:[%s8239_s2 + $0xc0] sm:$0xff]  }
  0xdc   : > { %v3262_v63 = vrot.slane %v3213_v6, 7  ;;  %v3265_v9 = vrot.slane %v3220_v58, 7  ;;  %v7609_v21 = vpack.c.bf16 %v5338_v22, %v5337_v5  ;;  %v7611_v60 = vpack.c.bf16 %v5340_v59, %v5339_v34  ;;  %v6433_v14 = vld [vmem:[#allocation2 + $0x40] sm:$0xf]  ;;  %v6434_v22 = vld [vmem:[#allocation2 + $0x48] sm:$0x1] }
  0xdd   : > { %5967 = vmatpush3.bf16.msra.mxu1 %v6389_v49  ;;  %v5422_v58 = vcombine.low %v1132_v46, %v1133_v57  ;;  %v1134_v5 = vmul.bf16 %v1072_v32, %v7139_v52  ;;  %v1135_v15 = vmul.bf16 %v1079_v25, %v7145_v27  ;;  %v3548_v59 = vld [vmem:[#allocation2 + $0x10] sm:$0xf]  ;;  %v8376_v46 = vld [vmem:[#allocation5_spill] sm:$0xff]  ;;  %vm864_vm10 = vcmp.ge.s32.totalorder %v7472_v1, 1 }
  0xde   : > { %v3263_v16 = vsel %vm6701_vm12, %v3261_v11, %v3262_v63  ;;  %v3264_v26 = vrot.slane %v3262_v63, 4  ;;  %v3267_v6 = vrot.slane %v3265_v9, 4  ;;  %5968 = vmatprep.subr.bf16.mxu1 %v6391_v54  ;;  %v3564_v49 = vmul.bf16 %v7376_v20, %v7609_v21  ;;  %v3549_v63 = vld [vmem:[#allocation2 + $0x14] sm:$0xf]  ;;  %v3551_v20 = vld [vmem:[#allocation2 + $0x1c] sm:$0xf] }
  0xdf   : > { %v3299_v19 = vmul.bf16 %v6433_v14, %v3263_v16  ;;  %5946 = vmatprep.mubr.bf16.mxu1 %v5422_v58  ;;  %v3565_v57 = vmul.bf16 %v8376_v46, %v7611_v60  ;;  %v6435_v16 = vld [vmem:[#allocation2 + $0x44] sm:$0xf]  ;;  %v5423_v32 = vcombine.low %v1134_v5, %v1135_v15  ;;  %v3550_v14 = vld [vmem:[#allocation2 + $0x18] sm:$0xf]  ;;  %vm865_vm2 = vcmp.ge.s32.totalorder %v7474_v23, 1 }
  0xe0   : > { %v3266_v11 = vsel %vm6701_vm12, %v3264_v26, %v3265_v9  ;;  %v3301_v34 = vmul.bf16 %v6434_v22, %v3267_v6  ;;  %v3586_v27 = vrot.slane %v3564_v49, %v6682_v44  ;;  %v3593_v25 = vrot.slane %v3564_v49, %v6665_v35 }
  0xe1   : > { %v3300_v52 = vmul.bf16 %v6435_v16, %v3266_v11  ;;  %5969 = vmatpush3.bf16.msra.mxu1 %v6391_v54  ;;  %v3600_v26 = vrot.slane %v3565_v57, %v6682_v44  ;;  %v3607_v6 = vrot.slane %v3565_v57, %v6665_v35  ;;  %v5365_v15 = vsel %vm864_vm10, 1.0, %v8323_v37 }
  0xe2   : > { %v5556_v9 = vcombine.low %v3301_v34, %v3301_v34  ;;  %5986 = vmatprep.subr.bf16.mxu1 %v7618_v13  ;;  %5947 = vmatmul.mubr.bf16.gmra.mrb[8].mxu1 %v5423_v32  ;;  %v3708_v11 = vmul.bf16 %v3586_v27, %v3548_v59  ;;  %v3709_v5 = vmul.bf16 %v3593_v25, %v3549_v63  ;;  %v5366_v34 = vsel %vm865_vm2, 1.0, %v8323_v37  ;;  %v8377_v59 = vld [vmem:[#allocation11_spill] sm:$0xff]  ;;  %v8380_v25 = vld [vmem:[#allocation12_spill] sm:$0xff] }
  0xe3   : > { %v5555_v58 = vcombine.low %v3299_v19, %v3300_v52  ;;  %v3710_v22 = vmul.bf16 %v3600_v26, %v3550_v14  ;;  %v3711_v54 = vmul.bf16 %v3607_v6, %v3551_v20  ;;  %v7639_v57 = vpack.c.bf16 %v5366_v34, %v5365_v15  ;;  %v8379_v52 = vld [vmem:[#allocation24_spill] sm:$0xff]  ;;  %v8381_v14 = vld [vmem:[#allocation13_spill] sm:$0xff]  ;;  %v8382_v6 = vld [vmem:[#allocation14_spill] sm:$0xff] }
  0xe4   : > { %v3377_v49 = vrot.slane %v5556_v9, 1  ;;  %v5581_v46 = vcombine.low %v3708_v11, %v3709_v5  ;;  %vm866_vm14 = vcmp.ge.s32.totalorder %v7552_v31, 1  ;;  %vm867_vm11 = vcmp.ge.s32.totalorder %v7558_v39, 1  ;;  %v8384_v34 = vld [vmem:[#allocation25_spill] sm:$0xff] }
  0xe5   : > { %v3375_v16 = vrot.slane %v5555_v58, 1  ;;  %v5582_v23 = vcombine.low %v3710_v22, %v3711_v54  ;;  %v5367_v19 = vsel %vm866_vm14, 1.0, %v8323_v37  ;;  %vm800_vm15 = vcmp.lt.s32.totalorder %v8377_v59, 240 }
  0xe6   : > { %v8378_v1 = vrot.slane %v7550_v38, 1  ;;  %v986_v32 = vmul.bf16 %v7639_v57, %v8379_v52  ;;  %v5368_v27 = vsel %vm867_vm11, 1.0, %v8323_v37  ;;  %vm801_vm6 = vcmp.lt.s32.totalorder %v8380_v25, 240 }
  0xe7   : > { %v3378_v20 = vsel %vm2205_vm9, %v3375_v16, %v3377_v49  ;;  %v7652_v31 = vpack.c.bf16 %v5368_v27, %v5367_v19  ;;  %v5341_v39 = vsel %vm800_vm15, 1.0, %v8323_v37  ;;  %vm802_vm7 = vcmp.lt.s32.totalorder %v8381_v14, 240  ;;  %v3552_v27 = vld [vmem:[#allocation2 + $0x20] sm:$0xf] }
  0xe8   : > { %v3376_v63 = vsel %vm2205_vm9, %v8378_v1, %v3375_v16  ;;  %v1086_v38 = vrot.slane %v986_v32, %v6682_v44  ;;  %v1093_v9 = vrot.slane %v986_v32, %v6665_v35  ;;  %v5342_v26 = vsel %vm801_vm6, 1.0, %v8323_v37  ;;  %v8385_v1 = vld [vmem:[#allocation10_spill] sm:$0xff] }
  0xe9   : > { %6078 = vmatprep.mubr.bf16.mxu0 %v3376_v63  ;;  %vm803_vm0 = vcmp.lt.s32.totalorder %v8382_v6, 240  ;;  %v987_v58 = vmul.bf16 %v7652_v31, %v7295_v41  ;;  %v7663_v11 = vpack.c.bf16 %v5342_v26, %v5341_v39  ;;  %v5343_v5 = vsel %vm802_vm7, 1.0, %v8323_v37  ;;  %v8386_v63 = vld [vmem:[#allocation3_spill] sm:$0xff]  ;;  %v3554_v26 = vld [vmem:[#allocation2 + $0x28] sm:$0xf] }
  0xea   : > { %6079 = vmatmul.mubr.bf16.gmra.mrb[12].mxu0 %v3378_v20  ;;  %v5344_v15 = vsel %vm803_vm0, 1.0, %v8323_v37  ;;  %v1136_v49 = vmul.bf16 %v1086_v38, %v7219_v61  ;;  %v1137_v22 = vmul.bf16 %v1093_v9, %v7224_v33  ;;  %v1933_v16 = vmul.bf16 %v8384_v34, %v6826_v48  ;;  %v3553_v61 = vld [vmem:[#allocation2 + $0x24] sm:$0xf]  ;;  %v3555_v6 = vld [vmem:[#allocation2 + $0x2c] sm:$0xf] }
  0xeb   : > { %6098 = vmatprep.mubr.bf16.mxu0 %v5581_v46  ;;  %v7669_v54 = vpack.c.bf16 %v5344_v15, %v5343_v5  ;;  %v1100_v46 = vrot.slane %v987_v58, %v6682_v44  ;;  %v1107_v19 = vrot.slane %v987_v58, %v6665_v35  ;;  %v3566_v59 = vmul.bf16 %v7478_v29, %v7663_v11  ;;  %v6390_v58 = vld [vmem:[%s8239_s2 + $0x1c8] sm:$0xff]  }
  0xec   : > { %v1934_v20 = vmul.bf16 %v8386_v63, %v8385_v1  ;;  %v5424_v32 = vcombine.low %v1136_v49, %v1137_v22  ;;  %v1955_v25 = vrot.slane %v1933_v16, %v6682_v44  ;;  %v1962_v48 = vrot.slane %v1933_v16, %v6665_v35  ;;  %v1932_v49 = vld [vmem:[#allocation2] sm:$0xe] }
  0xed   : > { %8383 = vst [vmem:[#allocation15_spill] sm:$0xff] %v7669_v54  ;;  %v3567_v33 = vmul.bf16 %v7498_v56, %v7669_v54  ;;  %v1138_v39 = vmul.bf16 %v1100_v46, %v7335_v18  ;;  %v1139_v14 = vmul.bf16 %v1107_v19, %v7337_v10  ;;  %v3614_v38 = vrot.slane %v3566_v59, %v6682_v44 }
  0xee   : > { %v3621_v9 = vrot.slane %v3566_v59, %v6665_v35  ;;  %5950 = vmatprep.mubr.bf16.mxu1 %v5424_v32  ;;  %v1969_v18 = vrot.slane %v1934_v20, %v6682_v44  ;;  %v1976_v10 = vrot.slane %v1934_v20, %v6665_v35  ;;  %v2064_v19 = vrot.slane %v1955_v25, 7  ;;  %v6392_v20 = vld [vmem:[%s8239_s2 + $0x1d0] sm:$0xff]  }
  0xef   : > { %v3628_v5 = vrot.slane %v3567_v33, %v6682_v44  ;;  %v3635_v15 = vrot.slane %v3567_v33, %v6665_v35  ;;  %v5425_v22 = vcombine.low %v1138_v39, %v1139_v14  ;;  %v3712_v16 = vmul.bf16 %v3614_v38, %v3552_v27  ;;  %v8388_v39 = vld [vmem:[#allocation16_spill] sm:$0xff]  ;;  %v8389_v14 = vld [vmem:[#allocation17_spill] sm:$0xff] }
  0xf0   : > { %v3713_v46 = vmul.bf16 %v3621_v9, %v3553_v61  ;;  %v2066_v32 = vrot.slane %v1962_v48, 7  ;;  %v2069_v63 = vrot.slane %v1969_v18, 7  ;;  %v2065_v56 = vrot.slane %v2064_v19, 4 }
  0xf1   : > { %v3714_v59 = vmul.bf16 %v3628_v5, %v3554_v26  ;;  %v3715_v1 = vmul.bf16 %v3635_v15, %v3555_v6  ;;  %5951 = vmatmul.mubr.bf16.gmra.mrb[12].mxu1 %v5425_v22  ;;  %v2072_v33 = vrot.slane %v1976_v10, 7  ;;  %v2128_v29 = vmul.bf16 %v2064_v19, %v1932_v49  ;;  %v6437_v5 = vld [vmem:[#allocation2 + $0xc] sm:$0xf]  ;;  %v8391_v19 = vld [vmem:[#allocation20_spill] sm:$0xff] }
  0xf2   : > { %6099 = vmatmul.mubr.bf16.vlgmr.msra.gmra.mrb[0].mxu0 %v5582_v23  ;;  %v5583_v34 = vcombine.low %v3712_v16, %v3713_v46  ;;  %v2068_v27 = vrot.slane %v2066_v32, 4  ;;  %v2071_v61 = vrot.slane %v2069_v63, 4  ;;  %v8387_v23 = vld [vmem:[#allocation4_spill] sm:$0xff]  ;;  %vm804_vm13 = vcmp.lt.s32.totalorder %v8388_v39, 240  ;;  %v3557_v39 = vld [vmem:[#allocation2 + $0x34] sm:$0xf] }
  0xf3   : > { %6115 = vmatpush3.bf16.msra.mxu0 %v7417_v28  ;;  %v5584_v54 = vcombine.low %v3714_v59, %v3715_v1  ;;  %v1935_v25 = vmul.bf16 %v8387_v23, %v6903_v40  ;;  %v2067_v28 = vsel %vm6701_vm12, %v2065_v56, %v2066_v32  ;;  %v2074_v48 = vrot.slane %v2072_v33, 4  ;;  %v6436_v40 = vld [vmem:[#allocation2 + $0x8] sm:$0xf] }
  0xf4   : > { %6116 = vmatprep.subr.bf16.mxu0 %v6390_v58  ;;  %6102 = vmatprep.mubr.bf16.mxu0 %v5583_v34  ;;  %vm805_vm4 = vcmp.lt.s32.totalorder %v8389_v14, 240  ;;  %v2070_v38 = vsel %vm6701_vm12, %v2068_v27, %v2069_v63  ;;  %v2073_v9 = vsel %vm6701_vm12, %v2071_v61, %v2072_v33  ;;  %v2129_v26 = vmul.bf16 %v7405_v3, %v2067_v28  ;;  %v6394_v63 = vld [vmem:[%s8239_s2 + $0x1d8] sm:$0xff]  }
  0xf5   : > { %v1983_v6 = vrot.slane %v1935_v25, %v6682_v44  ;;  %v2130_v34 = vmul.bf16 %v6436_v40, %v2070_v38  ;;  %v2131_v56 = vmul.bf16 %v6437_v5, %v2073_v9  ;;  %v1990_v15 = vrot.slane %v1935_v25, %v6665_v35 }
  0xf6   : > { %v5345_v49 = vsel %vm804_vm13, 1.0, %v8323_v37  ;;  %v5450_v18 = vcombine.low %v2128_v29, %v2129_v26  ;;  %v5346_v3 = vsel %vm805_vm4, 1.0, %v8323_v37  ;;  %vm807_vm5 = vcmp.lt.s32.totalorder %v8391_v19, 240 }
  0xf7   : > { %6117 = vmatpush3.bf16.msra.mxu0 %v6390_v58  ;;  %v2075_v10 = vrot.slane %v1983_v6, 7  ;;  %v8390_v58 = vld [vmem:[#allocation19_spill] sm:$0xff]  ;;  %v5451_v22 = vcombine.low %v2130_v34, %v2131_v56  ;;  %v2078_v16 = vrot.slane %v1990_v15, 7  ;;  %v7719_v46 = vpack.c.bf16 %v5346_v3, %v5345_v49 }
  0xf8   : > { %6118 = vmatprep.subr.bf16.mxu0 %v6392_v20  ;;  %vm806_vm1 = vcmp.lt.s32.totalorder %v8390_v58, 240  ;;  %v2206_v59 = vrot.slane %v5450_v18, 1  ;;  %v5348_v25 = vsel %vm807_vm5, 1.0, %v8323_v37  ;;  %v3558_v49 = vld [vmem:[#allocation2 + $0x38] sm:$0xf]  ;;  %vm810_vm14 = vcmp.lt.s32.totalorder %v7273_v42, 240 }
  0xf9   : > { %v2076_v29 = vsel %vm6701_vm12, %v2074_v48, %v2075_v10  ;;  %v2077_v1 = vrot.slane %v2075_v10, 4  ;;  %v5347_v32 = vsel %vm806_vm1, 1.0, %v8323_v37  ;;  %v2207_v33 = vrot.slane %v5451_v22, 1  ;;  %v6396_v48 = vld [vmem:[%s8239_s2 + $0x1e0] sm:$0xff]   ;;  %v3559_v18 = vld [vmem:[#allocation2 + $0x3c] sm:$0xf] }
  0xfa   : > { %6103 = vmatmul.mubr.bf16.gmra.mrb[4].mxu0 %v5584_v54  ;;  %v2132_v27 = vmul.bf16 %v7515_v30, %v2076_v29  ;;  %v3568_v61 = vmul.bf16 %v7564_v53, %v7719_v46  ;;  %v3556_v54 = vld [vmem:[#allocation2 + $0x30] sm:$0xf]  ;;  %v7731_v14 = vpack.c.bf16 %v5348_v25, %v5347_v32  ;;  %v1936_v30 = vmul.bf16 %v7299_v4, %v8367_v50 }
  0xfb   : > { %6119 = vmatpush3.bf16.msra.mxu0 %v6392_v20  ;;  %v2079_v28 = vsel %vm6701_vm12, %v2077_v1, %v2078_v16  ;;  %v2080_v20 = vrot.slane %v2078_v16, 4  ;;  %v2208_v38 = vsel %vm2205_vm9, %v2206_v59, %v2207_v33  ;;  %v1937_v50 = vmul.bf16 %v7365_v7, %v8370_v12  ;;  %v8392_v10 = vld [vmem:[#allocation22_spill] sm:$0xff] }
  0xfc   : > { %6120 = vmatprep.subr.bf16.mxu0 %v6394_v63  ;;  %v2133_v9 = vmul.bf16 %v7518_v43, %v2079_v28  ;;  %v3642_v26 = vrot.slane %v3568_v61, %v6682_v44  ;;  %v3649_v6 = vrot.slane %v3568_v61, %v6665_v35  ;;  %5970 = vmatprep.mubr.bf16.mxu1 %v2208_v38  ;;  %vm808_vm10 = vcmp.lt.s32.totalorder %v8392_v10, 240  ;;  %v6398_v12 = vld [vmem:[%s8239_s2 + $0x1e8] sm:$0xff]   ;;  %v6402_v10 = vld [vmem:[%s8239_s2 + $0x1f8] sm:$0xff]  }
  0xfd   : > { %v3569_v40 = vmul.bf16 %v7580_v36, %v7731_v14  ;;  %v1997_v34 = vrot.slane %v1936_v30, %v6682_v44  ;;  %v2004_v5 = vrot.slane %v1936_v30, %v6665_v35  ;;  %v2011_v59 = vrot.slane %v1937_v50, %v6682_v44  ;;  %v6395_v1 = vld [vmem:[%s8239_s2 + $0xc8] sm:$0xff]  }
  0xfe   : > { %v7748_v56 = vcombine.low %v2132_v27, %v2133_v9  ;;  %v3716_v15 = vmul.bf16 %v3642_v26, %v3556_v54  ;;  %v3717_v43 = vmul.bf16 %v3649_v6, %v3557_v39  ;;  %v2018_v29 = vrot.slane %v1937_v50, %v6665_v35  ;;  %v8393_v6 = vld [vmem:[#allocation23_spill] sm:$0xff] }
  0xff   : > { %6121 = vmatpush3.bf16.msra.mxu0 %v6394_v63  ;;  %v3656_v3 = vrot.slane %v3569_v40, %v6682_v44  ;;  %v3663_v58 = vrot.slane %v3569_v40, %v6665_v35  ;;  %v2081_v22 = vrot.slane %v1997_v34, 7  ;;  %v2084_v16 = vrot.slane %v2004_v5, 7  ;;  %v6397_v5 = vld [vmem:[%s8239_s2 + $0xd0] sm:$0xff]  }
 0x100   : > { %6122 = vmatprep.subr.bf16.mxu0 %v6396_v48  ;;  %v2209_v19 = vrot.slane %v7748_v56, 1  ;;  %v5585_v63 = vcombine.low %v3716_v15, %v3717_v43  ;;  %v2087_v30 = vrot.slane %v2011_v59, 7  ;;  %v2090_v26 = vrot.slane %v2018_v29, 7 }
 0x101   : > { %v3718_v32 = vmul.bf16 %v3656_v3, %v3558_v49  ;;  %v3719_v27 = vmul.bf16 %v3663_v58, %v3559_v18  ;;  %v2082_v61 = vsel %vm6701_vm12, %v2080_v20, %v2081_v22  ;;  %v2083_v25 = vrot.slane %v2081_v22, 4  ;;  %v6400_v20 = vld [vmem:[%s8239_s2 + $0x1f0] sm:$0xff]  }
 0x102   : > { %v2210_v28 = vsel %vm2205_vm9, %v2207_v33, %v2209_v19  ;;  %6106 = vmatprep.mubr.bf16.mxu0 %v5585_v63  ;;  %v2134_v54 = vmul.bf16 %v7531_v2, %v2082_v61  ;;  %v2086_v39 = vrot.slane %v2084_v16, 4  ;;  %vm809_vm2 = vcmp.lt.s32.totalorder %v8393_v6, 240 }
 0x103   : > { %6123 = vmatpush3.bf16.msra.mxu0 %v6396_v48  ;;  %5971 = vmatmul.mubr.bf16.vlgmr.msra.gmra.mrb[0].mxu1 %v2210_v28  ;;  %v5586_v38 = vcombine.low %v3718_v32, %v3719_v27  ;;  %v2085_v9 = vsel %vm6701_vm12, %v2083_v25, %v2084_v16  ;;  %v2089_v48 = vrot.slane %v2087_v30, 4  ;;  %v5349_v40 = vsel %vm808_vm10, 1.0, %v8323_v37  ;;  %v3560_v16 = vld [vmem:[#allocation2 + $0x40] sm:$0xf]  ;;  %v3562_v27 = vld [vmem:[#allocation2 + $0x48] sm:$0xf] }
 0x104   : > { %6124 = vmatprep.subr.bf16.mxu0 %v6398_v12  ;;  %5987 = vmatpush3.bf16.msra.mxu1 %v7618_v13  ;;  %v2135_v2 = vmul.bf16 %v7534_v51, %v2085_v9  ;;  %v2088_v33 = vsel %vm6701_vm12, %v2086_v39, %v2087_v30  ;;  %v5350_v13 = vsel %vm809_vm2, 1.0, %v8323_v37  ;;  %v8394_v51 = vld [vmem:[#allocation26_spill] sm:$0xff]  ;;  %v5351_v43 = vsel %vm810_vm14, 1.0, %v8323_v37 }
 0x105   : > { %5988 = vmatprep.subr.bf16.mxu1 %v6395_v1  ;;  %6107 = vmatmul.mubr.bf16.gmra.mrb[8].mxu0 %v5586_v38  ;;  %v2136_v34 = vmul.bf16 %v7601_v55, %v2088_v33  ;;  %vm811_vm11 = vcmp.lt.s32.totalorder %v8394_v51, 240  ;;  %v2091_v56 = vsel %vm6701_vm12, %v2089_v48, %v2090_v26  ;;  %v7788_v15 = vpack.c.bf16 %v5350_v13, %v5349_v40  ;;  %v3563_v28 = vld [vmem:[#allocation2 + $0x4c] sm:$0xf]  ;;  %v6401_v48 = vld [vmem:[%s8239_s2 + $0xe0] sm:$0xff]   ;;  %v6438_v51 = vld [vmem:[#allocation2 + $0x28] sm:$0xf] }
 0x106   : > { %v5453_v50 = vcombine.low %v2134_v54, %v2135_v2  ;;  %v2137_v55 = vmul.bf16 %v7604_v24, %v2091_v56  ;;  %v5352_v49 = vsel %vm811_vm11, 1.0, %v8323_v37  ;;  %v1938_v18 = vmul.bf16 %v7453_v8, %v8375_v17  ;;  %v6399_v17 = vld [vmem:[%s8239_s2 + $0xd8] sm:$0xff]   ;;  %v7836_v40 = vld [vmem:[%s8239_s2 + $0x200] sm:$0xff]  }
 0x107   : > { %6125 = vmatpush3.bf16.msra.mxu0 %v6398_v12  ;;  %v2092_v42 = vrot.slane %v2090_v26, 4  ;;  %v3570_v58 = vmul.bf16 %v7639_v57, %v7788_v15  ;;  %v7800_v22 = vpack.c.bf16 %v5352_v49, %v5351_v43  ;;  %v1939_v24 = vmul.bf16 %v7486_v45, %v8379_v52  ;;  %v3561_v12 = vld [vmem:[#allocation2 + $0x44] sm:$0xf] }
 0x108   : > { %6126 = vmatprep.subr.bf16.mxu0 %v6400_v20  ;;  %5989 = vmatpush3.bf16.msra.mxu1 %v6395_v1  ;;  %v2211_v3 = vrot.slane %v5453_v50, 1  ;;  %v7804_v37 = vcombine.low %v2136_v34, %v2137_v55  ;;  %v2025_v63 = vrot.slane %v1938_v18, %v6682_v44  ;;  %v2032_v59 = vrot.slane %v1938_v18, %v6665_v35 }
 0x109   : > { %5990 = vmatprep.subr.bf16.mxu1 %v6397_v5  ;;  %v7813_v29 = vrot.slane %v7609_v21, %v6682_v44  ;;  %v3670_v52 = vrot.slane %v3570_v58, %v6682_v44  ;;  %v3677_v32 = vrot.slane %v3570_v58, %v6665_v35  ;;  %v3571_v61 = vmul.bf16 %v7652_v31, %v7800_v22 }
 0x10a   : > { %v2212_v1 = vsel %vm2205_vm9, %v2209_v19, %v2211_v3  ;;  %v2213_v25 = vrot.slane %v7804_v37, 1  ;;  %v2093_v54 = vrot.slane %v2025_v63, 7  ;;  %v2096_v39 = vrot.slane %v2032_v59, 7  ;;  %v6403_v63 = vld [vmem:[%s8239_s2 + $0xe8] sm:$0xff]  }
 0x10b   : > { %6127 = vmatpush3.bf16.msra.mxu0 %v6400_v20  ;;  %5974 = vmatprep.mubr.bf16.mxu1 %v2212_v1  ;;  %v2039_v30 = vrot.slane %v1939_v24, %v6682_v44  ;;  %v3720_v19 = vmul.bf16 %v3670_v52, %v3560_v16  ;;  %v3721_v38 = vmul.bf16 %v3677_v32, %v3561_v12  ;;  %v6440_v1 = vld [vmem:[#allocation2 + $0x30] sm:$0xf] }
 0x10c   : > { %6128 = vmatprep.subr.bf16.mxu0 %v6402_v10  ;;  %5991 = vmatpush3.bf16.msra.mxu1 %v6397_v5  ;;  %v3684_v9 = vrot.slane %v3571_v61, %v6682_v44  ;;  %v3691_v26 = vrot.slane %v3571_v61, %v6665_v35  ;;  %v2214_v6 = vsel %vm2205_vm9, %v2211_v3, %v2213_v25  ;;  %v2095_v2 = vrot.slane %v2093_v54, 4 }
 0x10d   : > { %5992 = vmatprep.subr.bf16.mxu1 %v6399_v17  ;;  %v2094_v20 = vsel %vm6701_vm12, %v2092_v42, %v2093_v54  ;;  %v2046_v33 = vrot.slane %v1939_v24, %v6665_v35  ;;  %5975 = vmatmul.mubr.bf16.gmra.mrb[4].mxu1 %v2214_v6  ;;  %v5587_v34 = vcombine.low %v3720_v19, %v3721_v38  ;;  %v2098_v43 = vrot.slane %v2096_v39, 4  ;;  %v6439_v42 = vld [vmem:[#allocation2 + $0x2c] sm:$0xf]  ;;  %v6441_v38 = vld [vmem:[#allocation2 + $0x34] sm:$0xf] }
 0x10e   : > { %v3722_v5 = vmul.bf16 %v3684_v9, %v3562_v27  ;;  %v3723_v13 = vmul.bf16 %v3691_v26, %v3563_v28  ;;  %v2138_v50 = vmul.bf16 %v6438_v51, %v2094_v20  ;;  %v2097_v56 = vsel %vm6701_vm12, %v2095_v2, %v2096_v39  ;;  %v3950_v28 = vld [vmem:[#allocation2 + $0x10] sm:$0xf] }
 0x10f   : > { %v2099_v55 = vrot.slane %v2039_v30, 7  ;;  %v7840_v49 = vrot.slane %v2046_v33, 7  ;;  %6129 = vmatpush3.bf16.msra.mxu0 %v6402_v10  ;;  %6110 = vmatprep.mubr.bf16.mxu0 %v5587_v34  ;;  %v2139_v3 = vmul.bf16 %v6439_v42, %v2097_v56  ;;  %v3988_v58 = vrot.slane %v7609_v21, %v6665_v35  ;;  %v7869_v56 = vld [vmem:[#allocation2 + $0x18] sm:$0xf] }
 0x110   : > { %5993 = vmatpush3.bf16.msra.mxu1 %v6399_v17  ;;  %v5588_v18 = vcombine.low %v3722_v5, %v3723_v13  ;;  %v4088_v24 = vshrl.u32 %v7813_v29, 16  ;;  %v3995_v10 = vrot.slane %v7611_v60, %v6682_v44  ;;  %v4002_v17 = vrot.slane %v7611_v60, %v6665_v35  ;;  %6146 = vmatprep.subr.bf16.mxu0 %v7836_v40 }
 0x111   : > { %v2100_v16 = vsel %vm6701_vm12, %v2098_v43, %v2099_v55  ;;  %v2101_v12 = vrot.slane %v2099_v55, 4  ;;  %5994 = vmatprep.subr.bf16.mxu1 %v6401_v48  ;;  %v5455_v59 = vcombine.low %v2138_v50, %v2139_v3  ;;  %v4091_v27 = vshll.u32 %v7813_v29, 16  ;;  %v6405_v29 = vld [vmem:[%s8239_s2 + $0xf0] sm:$0xff]  }
 0x112   : > { %6111 = vmatmul.mubr.bf16.gmra.mrb[12].mxu0 %v5588_v18  ;;  %v2140_v52 = vmul.bf16 %v6440_v1, %v2100_v16  ;;  %v4090_v32 = vrot.slane %v4088_v24, 7  ;;  %v4096_v54 = vshrl.u32 %v3988_v58, 16  ;;  %v4099_v39 = vshll.u32 %v3988_v58, 16 }
 0x113   : > { %v2103_v61 = vsel %vm6701_vm12, %v2101_v12, %v7840_v49  ;;  %v4105_v30 = vshrl.u32 %v3995_v10, 16  ;;  %v2215_v19 = vrot.slane %v5455_v59, 1  ;;  %v4108_v33 = vshll.u32 %v3995_v10, 16  ;;  %v7889_v59 = vld [vmem:[#allocation2 + $0x1c] sm:$0xf] }
 0x114   : > { %v2141_v9 = vmul.bf16 %v6441_v38, %v2103_v61  ;;  %5995 = vmatpush3.bf16.msra.mxu1 %v6401_v48  ;;  %v4093_v26 = vor.u32 %v4091_v27, %v4090_v32  ;;  %v4094_v6 = vrot.slane %v4090_v32, 4  ;;  %v4098_v20 = vrot.slane %v4096_v54, 7  ;;  %v7867_v48 = vld [vmem:[#allocation2 + $0x14] sm:$0xf] }
 0x115   : > { %5996 = vmatprep.subr.bf16.mxu1 %v6403_v63  ;;  %v4107_v2 = vrot.slane %v4105_v30, 7  ;;  %v4114_v34 = vshrl.u32 %v4002_v17, 16  ;;  %v2216_v5 = vsel %vm2205_vm9, %v2213_v25, %v2215_v19  ;;  %v4117_v51 = vshll.u32 %v4002_v17, 16 }
 0x116   : > { %v7865_v13 = vcombine.low %v2140_v52, %v2141_v9  ;;  %v4247_v50 = vmul.bf16 %v4093_v26, %v3950_v28  ;;  %5978 = vmatprep.mubr.bf16.mxu1 %v2216_v5  ;;  %v4101_v43 = vor.u32 %v4099_v39, %v4098_v20  ;;  %v4103_v55 = vrot.slane %v4098_v20, 4 }
 0x117   : > { %v4110_v18 = vor.u32 %v4108_v33, %v4107_v2  ;;  %v4112_v42 = vrot.slane %v4107_v2, 4  ;;  %v4116_v58 = vrot.slane %v4114_v34, 7  ;;  %v4009_v37 = vrot.slane %v7663_v11, %v6682_v44  ;;  %v8395_v33 = vld [vmem:[#allocation15_spill] sm:$0xff] }
 0x118   : > { %v2217_v3 = vrot.slane %v7865_v13, 1  ;;  %5997 = vmatpush3.bf16.msra.mxu1 %v6403_v63  ;;  %v4016_v25 = vrot.slane %v7663_v11, %v6665_v35  ;;  %v4102_v24 = vsel %vm6869_vm8, %v4094_v6, %v4101_v43  ;;  %v1940_v12 = vmul.bf16 %v7576_v62, %v7295_v41  ;;  %v6407_v63 = vld [vmem:[%s8239_s2 + $0xf8] sm:$0xff]  }
 0x119   : > { %v4111_v16 = vsel %vm6869_vm8, %v4103_v55, %v4110_v18  ;;  %v2104_v10 = vrot.slane %v7840_v49, 4  ;;  %5998 = vmatprep.subr.bf16.mxu1 %v6405_v29  ;;  %v4119_v1 = vor.u32 %v4117_v51, %v4116_v58  ;;  %v4248_v52 = vmul.bf16 %v4102_v24, %v7867_v48  ;;  %v7902_v51 = vld [vmem:[#allocation2 + $0x20] sm:$0xf] }
 0x11a   : > { %v2218_v17 = vsel %vm2205_vm9, %v2215_v19, %v2217_v3  ;;  %v4249_v32 = vmul.bf16 %v4111_v16, %v7869_v56  ;;  %v4121_v41 = vrot.slane %v4116_v58, 4  ;;  %v4123_v27 = vshrl.u32 %v4009_v37, 16 }
 0x11b   : > { %5979 = vmatmul.mubr.bf16.gmra.mrb[8].mxu1 %v2218_v17  ;;  %v4126_v49 = vshll.u32 %v4009_v37, 16  ;;  %v4132_v61 = vshrl.u32 %v4016_v25, 16  ;;  %v4120_v28 = vsel %vm6869_vm8, %v4112_v42, %v4119_v1  ;;  %v5613_v54 = vcombine.low %v4247_v50, %v4248_v52  ;;  %v7904_v50 = vld [vmem:[#allocation2 + $0x24] sm:$0xf] }
 0x11c   : > { %v4135_v39 = vshll.u32 %v4016_v25, 16  ;;  %v2053_v30 = vrot.slane %v1940_v12, %v6682_v44  ;;  %5999 = vmatpush3.bf16.msra.mxu1 %v6405_v29  ;;  %v4250_v19 = vmul.bf16 %v4120_v28, %v7889_v59  ;;  %v4125_v38 = vrot.slane %v4123_v27, 7 }
 0x11d   : > { %v7897_v9 = vrot.slane %v4132_v61, 7  ;;  %v2060_v26 = vrot.slane %v1940_v12, %v6665_v35  ;;  %6000 = vmatprep.subr.bf16.mxu1 %v6407_v63  ;;  %v4325_v6 = vshrl.u32 %v5613_v54, 16  ;;  %v4327_v20 = vshll.u32 %v5613_v54, 16 }
 0x11e   : > { %v2105_v2 = vrot.slane %v2053_v30, 7  ;;  %v4023_v34 = vrot.slane %v8395_v33, %v6682_v44  ;;  %v5614_v5 = vcombine.low %v4249_v32, %v4250_v19  ;;  %v4128_v29 = vor.u32 %v4126_v49, %v4125_v38  ;;  %v6443_v49 = vld [vmem:[#allocation2 + $0x3c] sm:$0xf] }
 0x11f   : > { %v4130_v43 = vrot.slane %v4125_v38, 4  ;;  %v4137_v55 = vor.u32 %v4135_v39, %v7897_v9  ;;  %v4329_v18 = vrot.slane %v4327_v20, 1  ;;  %v2108_v37 = vrot.slane %v2060_v26, 7 }
 0x120   : > { %v2106_v42 = vsel %vm6701_vm12, %v2104_v10, %v2105_v2  ;;  %v2107_v58 = vrot.slane %v2105_v2, 4  ;;  %6001 = vmatpush3.bf16.msra.mxu1 %v6407_v63  ;;  %v4332_v25 = vshll.u32 %v5614_v5, 16  ;;  %v4336_v24 = vshrl.u32 %v5614_v5, 16  ;;  %v6442_v63 = vld [vmem:[#allocation2 + $0x38] sm:$0xf] }
 0x121   : > { %v4129_v16 = vsel %vm6869_vm8, %v4121_v41, %v4128_v29  ;;  %v4138_v12 = vsel %vm6869_vm8, %v4130_v43, %v4137_v55  ;;  %6178 = vmatprep.subr.bf16.mxu1 %v7836_v40  ;;  %v4330_v17 = vor.u32 %v4329_v18, %v4325_v6  ;;  %v2142_v27 = vmul.bf16 %v6442_v63, %v2106_v42  ;;  %v6444_v6 = vld [vmem:[#allocation2 + $0x40] sm:$0x1] }
 0x122   : > { %v4251_v1 = vmul.bf16 %v4129_v16, %v7902_v51  ;;  %v4252_v52 = vmul.bf16 %v4138_v12, %v7904_v50  ;;  %v2109_v10 = vsel %vm6701_vm12, %v2107_v58, %v2108_v37  ;;  %v4334_v32 = vrot.slane %v4332_v25, 1  ;;  %v7922_v25 = vld [vmem:[#allocation2 + $0x28] sm:$0xf] }
 0x123   : > { %v2143_v61 = vmul.bf16 %v6443_v49, %v2109_v10  ;;  %v2110_v28 = vrot.slane %v2108_v37, 4  ;;  %v4030_v54 = vrot.slane %v8395_v33, %v6665_v35  ;;  %v4139_v39 = vrot.slane %v7897_v9, 4 }
 0x124   : > { %v5615_v41 = vcombine.low %v4251_v1, %v4252_v52  ;;  %v4141_v30 = vshrl.u32 %v4023_v34, 16  ;;  %v4335_v19 = vsel %vm1517_vm3, %v4330_v17, %v4334_v32  ;;  %v4338_v38 = vor.u32 %v4336_v24, %v4334_v32  ;;  %v7937_v32 = vld [vmem:[#allocation2 + $0x2c] sm:$0xf] }
 0x125   : > { %v5457_v26 = vcombine.low %v2142_v27, %v2143_v61  ;;  %v2144_v20 = vmul.bf16 %v6444_v6, %v2110_v28  ;;  %6130 = vmatprep.mubr.bf16.mxu0 %v4335_v19  ;;  %v4144_v29 = vshll.u32 %v4023_v34, 16  ;;  %v4150_v43 = vshrl.u32 %v4030_v54, 16  ;;  %v7930_v34 = vld [vmem:[%s8239_s2 + $0x208] sm:$0xff]  }
 0x126   : > { %v4340_v2 = vshll.u32 %v5615_v41, 16  ;;  %v4143_v5 = vrot.slane %v4141_v30, 7  ;;  %v4153_v42 = vshll.u32 %v4030_v54, 16  ;;  %v4344_v58 = vshrl.u32 %v5615_v41, 16  ;;  %v2392_v41 = vld [vmem:[#allocation2 + $0x8] sm:$0xf] }
 0x127   : > { %v2219_v55 = vrot.slane %v5457_v26, 1  ;;  %v5458_v18 = vcombine.low %v2144_v20, %v2144_v20  ;;  %v4152_v12 = vrot.slane %v4150_v43, 7  ;;  %v4037_v1 = vrot.slane %v7719_v46, %v6682_v44  ;;  %v7951_v20 = vld [vmem:[%s8239_s2 + $0x210] sm:$0xff]  }
 0x128   : > { %v4342_v37 = vrot.slane %v4340_v2, 1  ;;  %v4146_v9 = vor.u32 %v4144_v29, %v4143_v5  ;;  %v4148_v16 = vrot.slane %v4143_v5, 4  ;;  %v4044_v52 = vrot.slane %v7719_v46, %v6665_v35  ;;  %v8396_v2 = vld [vmem:[#allocation27_spill] sm:$0xff]  ;;  %v2394_v43 = vld [vmem:[#allocation2 + $0x10] sm:$0xf] }
 0x129   : > { %v2220_v24 = vsel %vm2205_vm9, %v2217_v3, %v2219_v55  ;;  %v2221_v17 = vrot.slane %v5458_v18, 1  ;;  %v4155_v3 = vor.u32 %v4153_v42, %v4152_v12  ;;  %v4157_v61 = vrot.slane %v4152_v12, 4  ;;  %v8397_v42 = vld [vmem:[#allocation5_spill] sm:$0xff]  ;;  %v7965_v12 = vld [vmem:[#allocation2 + $0x30] sm:$0xf] }
 0x12a   : > { %v4343_v10 = vsel %vm1517_vm3, %v4338_v38, %v4342_v37  ;;  %5982 = vmatprep.mubr.bf16.mxu1 %v2220_v24  ;;  %v4147_v13 = vsel %vm6869_vm8, %v4139_v39, %v4146_v9  ;;  %v4346_v63 = vor.u32 %v4344_v58, %v4342_v37  ;;  %v4159_v28 = vshrl.u32 %v4037_v1, 16  ;;  %v2393_v39 = vld [vmem:[#allocation2 + $0xc] sm:$0xf] }
 0x12b   : > { %6131 = vmatmul.mubr.bf16.vlgmr.msra.gmra.mrb[0].mxu0 %v4343_v10  ;;  %v2222_v27 = vsel %vm2205_vm9, %v2219_v55, %v2221_v17  ;;  %v4253_v49 = vmul.bf16 %v4147_v13, %v7922_v25  ;;  %v4156_v54 = vsel %vm6869_vm8, %v4148_v16, %v4155_v3  ;;  %v4162_v30 = vshll.u32 %v4037_v1, 16  ;;  %v2395_v55 = vld [vmem:[#allocation2 + $0x14] sm:$0xf] }
 0x12c   : > { %6147 = vmatpush3.bf16.msra.mxu0 %v7836_v40  ;;  %5983 = vmatmul.mubr.bf16.gmra.mrb[12].mxu1 %v2222_v27  ;;  %v4168_v19 = vshrl.u32 %v4044_v52, 16  ;;  %v4171_v38 = vshll.u32 %v4044_v52, 16  ;;  %v4254_v26 = vmul.bf16 %v4156_v54, %v7937_v32  ;;  %v4161_v6 = vrot.slane %v4159_v28, 7  ;;  %v7968_v52 = vld [vmem:[#allocation2 + $0x34] sm:$0xf] }
 0x12d   : > { %6148 = vmatprep.subr.bf16.mxu0 %v7930_v34  ;;  %v2422_v5 = vrot.slane %v8396_v2, %v6682_v44  ;;  %v2429_v29 = vrot.slane %v8396_v2, %v6665_v35  ;;  %v2436_v58 = vrot.slane %v8397_v42, %v6682_v44  ;;  %v2443_v37 = vrot.slane %v8397_v42, %v6665_v35 }
 0x12e   : > { %v7957_v18 = vrot.slane %v4168_v19, 7  ;;  %v4051_v9 = vrot.slane %v7731_v14, %v6682_v44  ;;  %v5616_v16 = vcombine.low %v4253_v49, %v4254_v26  ;;  %v4164_v24 = vor.u32 %v4162_v30, %v4161_v6  ;;  %v7977_v49 = vld [vmem:[%s8239_s2 + $0x218] sm:$0xff]  }
 0x12f   : > { %v4166_v17 = vrot.slane %v4161_v6, 4  ;;  %v2544_v1 = vmul.bf16 %v2422_v5, %v2392_v41  ;;  %v2545_v13 = vmul.bf16 %v2429_v29, %v2393_v39  ;;  %v2546_v3 = vmul.bf16 %v2436_v58, %v2394_v43 }
 0x130   : > { %6149 = vmatpush3.bf16.msra.mxu0 %v7930_v34  ;;  %v4173_v10 = vor.u32 %v4171_v38, %v7957_v18  ;;  %v2547_v27 = vmul.bf16 %v2443_v37, %v2395_v55  ;;  %v4348_v28 = vshll.u32 %v5616_v16, 16  ;;  %v4165_v54 = vsel %vm6869_vm8, %v4157_v61, %v4164_v24 }
 0x131   : > { %v4352_v19 = vshrl.u32 %v5616_v16, 16  ;;  %6150 = vmatprep.subr.bf16.mxu0 %v7951_v20  ;;  %v4058_v41 = vrot.slane %v7731_v14, %v6665_v35  ;;  %v4255_v38 = vmul.bf16 %v4165_v54, %v7965_v12  ;;  %v5483_v39 = vcombine.low %v2544_v1, %v2545_v13  ;;  %v8000_v13 = vld [vmem:[#allocation2 + $0x38] sm:$0xf]  ;;  %v8003_v54 = vld [vmem:[#allocation2 + $0x3c] sm:$0xf] }
 0x132   : > { %v4174_v30 = vsel %vm6869_vm8, %v4166_v17, %v4173_v10  ;;  %v5484_v26 = vcombine.low %v2546_v3, %v2547_v27  ;;  %v4350_v6 = vrot.slane %v4348_v28, 1  ;;  %v4175_v2 = vrot.slane %v7957_v18, 4  ;;  %v7994_v18 = vld [vmem:[%s8239_s2 + $0x220] sm:$0xff]  }
 0x133   : > { %v4256_v61 = vmul.bf16 %v4174_v30, %v7968_v52  ;;  %v4177_v5 = vshrl.u32 %v4051_v9, 16  ;;  %6002 = vmatprep.mubr.bf16.mxu1 %v5483_v39  ;;  %v4180_v29 = vshll.u32 %v4051_v9, 16  ;;  %v4186_v43 = vshrl.u32 %v4058_v41, 16 }
 0x134   : > { %6151 = vmatpush3.bf16.msra.mxu0 %v7951_v20  ;;  %v4189_v55 = vshll.u32 %v4058_v41, 16  ;;  %v4065_v42 = vrot.slane %v7788_v15, %v6682_v44  ;;  %v4351_v58 = vsel %vm1517_vm3, %v4346_v63, %v4350_v6  ;;  %v4354_v16 = vor.u32 %v4352_v19, %v4350_v6  ;;  %6003 = vmatmul.mubr.bf16.vlgmr.msra.gmra.mrb[0].mxu1 %v5484_v26  ;;  %v2396_v6 = vld [vmem:[#allocation2 + $0x18] sm:$0xf] }
 0x135   : > { %v5617_v37 = vcombine.low %v4255_v38, %v4256_v61  ;;  %6152 = vmatprep.subr.bf16.mxu0 %v7977_v49  ;;  %v4179_v24 = vrot.slane %v4177_v5, 7  ;;  %6134 = vmatprep.mubr.bf16.mxu0 %v4351_v58  ;;  %v4188_v9 = vrot.slane %v4186_v43, 7  ;;  %v4072_v17 = vrot.slane %v7788_v15, %v6665_v35  ;;  %v8398_v61 = vld [vmem:[#allocation28_spill] sm:$0xff] }
 0x136   : > { %6186 = vmatpush3.bf16.msra.mxu1 %v7836_v40  ;;  %v4195_v1 = vshrl.u32 %v4065_v42, 16  ;;  %v4198_v63 = vshll.u32 %v4065_v42, 16  ;;  %v2450_v5 = vrot.slane %v8398_v61, %v6682_v44 }
 0x137   : > { %v4356_v10 = vshll.u32 %v5617_v37, 16  ;;  %6179 = vmatprep.subr.bf16.mxu1 %v7930_v34  ;;  %v4182_v3 = vor.u32 %v4180_v29, %v4179_v24  ;;  %v4184_v27 = vrot.slane %v4179_v24, 4  ;;  %v4360_v28 = vshrl.u32 %v5617_v37, 16 }
 0x138   : > { %6153 = vmatpush3.bf16.msra.mxu0 %v7977_v49  ;;  %v4191_v19 = vor.u32 %v4189_v55, %v4188_v9  ;;  %v4193_v40 = vrot.slane %v4188_v9, 4  ;;  %v4197_v41 = vrot.slane %v4195_v1, 7  ;;  %v4204_v30 = vshrl.u32 %v4072_v17, 16  ;;  %v8014_v55 = vld [vmem:[#allocation2 + $0x40] sm:$0xf] }
 0x139   : > { %v4358_v38 = vrot.slane %v4356_v10, 1  ;;  %v4183_v39 = vsel %vm6869_vm8, %v4175_v2, %v4182_v3  ;;  %v4207_v26 = vshll.u32 %v4072_v17, 16  ;;  %6154 = vmatprep.subr.bf16.mxu0 %v7994_v18  ;;  %v8019_v2 = vld [vmem:[%s8239_s2 + $0x228] sm:$0xff]   ;;  %v2397_v1 = vld [vmem:[#allocation2 + $0x1c] sm:$0xf]  ;;  %v2548_v3 = vmul.bf16 %v2450_v5, %v2396_v6 }
 0x13a   : > { %v4192_v29 = vsel %vm6869_vm8, %v4184_v27, %v4191_v19  ;;  %v4257_v43 = vmul.bf16 %v4183_v39, %v8000_v13  ;;  %6187 = vmatpush3.bf16.msra.mxu1 %v7930_v34  ;;  %v4200_v42 = vor.u32 %v4198_v63, %v4197_v41  ;;  %v4202_v58 = vrot.slane %v4197_v41, 4  ;;  %v2398_v10 = vld [vmem:[#allocation2 + $0x20] sm:$0xf]  ;;  %v2399_v27 = vld [vmem:[#allocation2 + $0x24] sm:$0xf] }
 0x13b   : > { %v4359_v37 = vsel %vm1517_vm3, %v4354_v16, %v4358_v38  ;;  %v4258_v24 = vmul.bf16 %v4192_v29, %v8003_v54  ;;  %v4362_v9 = vor.u32 %v4360_v28, %v4358_v38  ;;  %v8023_v17 = vrot.slane %v4204_v30, 7  ;;  %6180 = vmatprep.subr.bf16.mxu1 %v7951_v20  ;;  %v8399_v16 = vld [vmem:[#allocation29_spill] sm:$0xff] }
 0x13c   : > { %6135 = vmatmul.mubr.bf16.gmra.mrb[4].mxu0 %v4359_v37  ;;  %v4201_v34 = vsel %vm6869_vm8, %v4193_v40, %v4200_v42  ;;  %v2457_v63 = vrot.slane %v8398_v61, %v6665_v35  ;;  %v2464_v19 = vrot.slane %v8399_v16, %v6682_v44  ;;  %v8032_v28 = vld [vmem:[#allocation2 + $0x44] sm:$0xf]  ;;  %v2471_v40 = vrot.slane %v8399_v16, %v6665_v35  ;;  %v8050_v37 = vld [vmem:[%s8239_s2 + $0x230] sm:$0xff]  }
 0x13d   : > { %v5618_v41 = vcombine.low %v4257_v43, %v4258_v24  ;;  %v4209_v30 = vor.u32 %v4207_v26, %v8023_v17  ;;  %v4259_v38 = vmul.bf16 %v4201_v34, %v8014_v55  ;;  %6155 = vmatpush3.bf16.msra.mxu0 %v7994_v18  ;;  %v4079_v6 = vrot.slane %v7800_v22, %v6682_v44 }
 0x13e   : > { %v2549_v39 = vmul.bf16 %v2457_v63, %v2397_v1  ;;  %v2550_v29 = vmul.bf16 %v2464_v19, %v2398_v10  ;;  %6188 = vmatpush3.bf16.msra.mxu1 %v7951_v20  ;;  %6156 = vmatprep.subr.bf16.mxu0 %v8019_v2  ;;  %v4211_v61 = vrot.slane %v8023_v17, 4  ;;  %v2551_v42 = vmul.bf16 %v2471_v40, %v2399_v27  ;;  %v2400_v63 = vld [vmem:[#allocation2 + $0x28] sm:$0xf]  ;;  %v8062_v40 = vld [vmem:[%s8239_s2 + $0x238] sm:$0xff]  }
 0x13f   : > { %v4364_v5 = vshll.u32 %v5618_v41, 16  ;;  %v4210_v26 = vsel %vm6869_vm8, %v4202_v58, %v4209_v30  ;;  %v4368_v43 = vshrl.u32 %v5618_v41, 16  ;;  %6181 = vmatprep.subr.bf16.mxu1 %v7977_v49  ;;  %v4086_v1 = vrot.slane %v7800_v22, %v6665_v35 }
 0x140   : > { %v4260_v20 = vmul.bf16 %v4210_v26, %v8032_v28  ;;  %v5485_v24 = vcombine.low %v2548_v3, %v2549_v39  ;;  %v4213_v17 = vshrl.u32 %v4079_v6, 16  ;;  %v5486_v34 = vcombine.low %v2550_v29, %v2551_v42  ;;  %v2401_v3 = vld [vmem:[#allocation2 + $0x2c] sm:$0xf] }
 0x141   : > { %v4366_v10 = vrot.slane %v4364_v5, 1  ;;  %6157 = vmatpush3.bf16.msra.mxu0 %v8019_v2  ;;  %v4216_v58 = vshll.u32 %v4079_v6, 16  ;;  %v2478_v27 = vrot.slane %v7564_v53, %v6682_v44  ;;  %v4222_v41 = vshrl.u32 %v4086_v1, 16  ;;  %v8065_v6 = vld [vmem:[#allocation2 + $0x48] sm:$0xf] }
 0x142   : > { %v5619_v16 = vcombine.low %v4259_v38, %v4260_v20  ;;  %6006 = vmatprep.mubr.bf16.mxu1 %v5485_v24  ;;  %v4215_v19 = vrot.slane %v4213_v17, 7  ;;  %v4225_v30 = vshll.u32 %v4086_v1, 16  ;;  %6189 = vmatpush3.bf16.msra.mxu1 %v7977_v49  ;;  %v2485_v38 = vrot.slane %v7564_v53, %v6665_v35  ;;  %v2402_v20 = vld [vmem:[#allocation2 + $0x30] sm:$0xf]  ;;  %v8076_v53 = vld [vmem:[#allocation2 + $0x4c] sm:$0xf] }
 0x143   : > { %v4367_v39 = vsel %vm1517_vm3, %v4362_v9, %v4366_v10  ;;  %v4370_v29 = vor.u32 %v4368_v43, %v4366_v10  ;;  %6007 = vmatmul.mubr.bf16.gmra.mrb[4].mxu1 %v5486_v34  ;;  %6158 = vmatprep.subr.bf16.mxu0 %v8050_v37  ;;  %v4224_v42 = vrot.slane %v4222_v41, 7  ;;  %v8071_v1 = vld [vmem:[#allocation2 + $0x50] sm:$0x1]  ;;  %v2552_v9 = vmul.bf16 %v2478_v27, %v2400_v63  ;;  %v2403_v41 = vld [vmem:[#allocation2 + $0x34] sm:$0xf] }
 0x144   : > { %6138 = vmatprep.mubr.bf16.mxu0 %v4367_v39  ;;  %v4372_v5 = vshll.u32 %v5619_v16, 16  ;;  %v4218_v49 = vor.u32 %v4216_v58, %v4215_v19  ;;  %v4220_v26 = vrot.slane %v4215_v19, 4  ;;  %6182 = vmatprep.subr.bf16.mxu1 %v7994_v18  ;;  %v4376_v24 = vshrl.u32 %v5619_v16, 16 }
 0x145   : > { %v2553_v43 = vmul.bf16 %v2485_v38, %v2401_v3  ;;  %6159 = vmatpush3.bf16.msra.mxu0 %v8050_v37  ;;  %v2492_v17 = vrot.slane %v7580_v36, %v6682_v44  ;;  %v4227_v58 = vor.u32 %v4225_v30, %v4224_v42  ;;  %v4229_v19 = vrot.slane %v4224_v42, 4 }
 0x146   : > { %v4374_v10 = vrot.slane %v4372_v5, 1  ;;  %v4219_v34 = vsel %vm6869_vm8, %v4211_v61, %v4218_v49  ;;  %6190 = vmatpush3.bf16.msra.mxu1 %v7994_v18  ;;  %6160 = vmatprep.subr.bf16.mxu0 %v8062_v40  ;;  %v2499_v16 = vrot.slane %v7580_v36, %v6665_v35  ;;  %v8400_v49 = vld [vmem:[#allocation25_spill] sm:$0xff] }
 0x147   : > { %v4261_v63 = vmul.bf16 %v4219_v34, %v8065_v6  ;;  %v5487_v27 = vcombine.low %v2552_v9, %v2553_v43  ;;  %v2554_v3 = vmul.bf16 %v2492_v17, %v2402_v20  ;;  %6183 = vmatprep.subr.bf16.mxu1 %v8019_v2  ;;  %v4228_v61 = vsel %vm6869_vm8, %v4220_v26, %v4227_v58  ;;  %v4561_v17 = vld [vmem:[#allocation2 + $0x10] sm:$0xe] }
 0x148   : > { %v4375_v39 = vsel %vm1517_vm3, %v4370_v29, %v4374_v10  ;;  %v4378_v30 = vor.u32 %v4376_v24, %v4374_v10  ;;  %v4263_v38 = vmul.bf16 %v4229_v19, %v8071_v1  ;;  %v4262_v18 = vmul.bf16 %v4228_v61, %v8076_v53  ;;  %v8401_v29 = vld [vmem:[#allocation3_spill] sm:$0xff] }
 0x149   : > { %6139 = vmatmul.mubr.bf16.gmra.mrb[8].mxu0 %v4375_v39  ;;  %6010 = vmatprep.mubr.bf16.mxu1 %v5487_v27  ;;  %v2555_v5 = vmul.bf16 %v2499_v16, %v2403_v41  ;;  %v4562_v42 = vmul.bf16 %v8400_v49, %v7609_v21  ;;  %v4563_v47 = vmul.bf16 %v8401_v29, %v7611_v60 }
 0x14a   : > { %v5621_v36 = vcombine.low %v4263_v38, %v4263_v38  ;;  %6161 = vmatpush3.bf16.msra.mxu0 %v8062_v40  ;;  %6191 = vmatpush3.bf16.msra.mxu1 %v8019_v2  ;;  %v4564_v26 = vmul.bf16 %v8387_v23, %v7663_v11  ;;  %v5620_v20 = vcombine.low %v4261_v63, %v4262_v18 }
 0x14b   : > { %v5488_v24 = vcombine.low %v2554_v3, %v2555_v5  ;;  %v4584_v9 = vrot.slane %v4562_v42, %v6682_v44  ;;  %v4591_v43 = vrot.slane %v4562_v42, %v6665_v35  ;;  %6184 = vmatprep.subr.bf16.mxu1 %v8050_v37  ;;  %v4598_v10 = vrot.slane %v4563_v47, %v6682_v44 }
 0x14c   : > { %v4388_v21 = vshll.u32 %v5621_v36, 16  ;;  %v4605_v2 = vrot.slane %v4563_v47, %v6665_v35  ;;  %v4612_v34 = vrot.slane %v4564_v26, %v6682_v44  ;;  %v4380_v60 = vshll.u32 %v5620_v20, 16 }
 0x14d   : > { %v4384_v58 = vshrl.u32 %v5620_v20, 16  ;;  %6011 = vmatmul.mubr.bf16.gmra.mrb[8].mxu1 %v5488_v24  ;;  %v4690_v11 = vrot.slane %v4584_v9, 7  ;;  %v4692_v23 = vrot.slane %v4591_v43, 7  ;;  %v4695_v41 = vrot.slane %v4598_v10, 7  ;;  %v2405_v10 = vld [vmem:[#allocation2 + $0x3c] sm:$0xf] }
 0x14e   : > { %v4390_v19 = vrot.slane %v4388_v21, 1  ;;  %v4698_v63 = vrot.slane %v4605_v2, 7  ;;  %v4619_v27 = vrot.slane %v4564_v26, %v6665_v35  ;;  %6192 = vmatpush3.bf16.msra.mxu1 %v8050_v37  ;;  %v4382_v16 = vrot.slane %v4380_v60, 1  ;;  %v2407_v60 = vld [vmem:[#allocation2 + $0x44] sm:$0xf] }
 0x14f   : > { %v4691_v3 = vrot.slane %v4690_v11, 4  ;;  %v4694_v39 = vrot.slane %v4692_v23, 4  ;;  %v4754_v61 = vmul.bf16 %v4690_v11, %v4561_v17  ;;  %6185 = vmatprep.subr.bf16.mxu1 %v8062_v40  ;;  %v4697_v38 = vrot.slane %v4695_v41, 4  ;;  %v2404_v17 = vld [vmem:[#allocation2 + $0x38] sm:$0xf] }
 0x150   : > { %v4700_v18 = vrot.slane %v4698_v63, 4  ;;  %v4701_v5 = vrot.slane %v4612_v34, 7  ;;  %v4704_v49 = vrot.slane %v4619_v27, 7  ;;  %v4383_v42 = vsel %vm1517_vm3, %v4378_v30, %v4382_v16  ;;  %v2406_v34 = vld [vmem:[#allocation2 + $0x40] sm:$0xf] }
 0x151   : > { %v4386_v36 = vor.u32 %v4384_v58, %v4382_v16  ;;  %v4693_v29 = vsel %vm6701_vm12, %v4691_v3, %v4692_v23  ;;  %v4696_v47 = vsel %vm6701_vm12, %v4694_v39, %v4695_v41  ;;  %6142 = vmatprep.mubr.bf16.mxu0 %v4383_v42  ;;  %v4699_v37 = vsel %vm6701_vm12, %v4697_v38, %v4698_v63 }
 0x152   : > { %v4755_v26 = vmul.bf16 %v4693_v29, %v7867_v48  ;;  %v4756_v20 = vmul.bf16 %v4696_v47, %v7869_v56  ;;  %v4702_v24 = vsel %vm6701_vm12, %v4700_v18, %v4701_v5  ;;  %v4757_v9 = vmul.bf16 %v4699_v37, %v7889_v59  ;;  %6193 = vmatpush3.bf16.msra.mxu1 %v8062_v40 }
 0x153   : > { %v4391_v30 = vsel %vm1517_vm3, %v4386_v36, %v4390_v19  ;;  %v4703_v43 = vrot.slane %v4701_v5, 4  ;;  %v4758_v21 = vmul.bf16 %v4702_v24, %v7902_v51  ;;  %v2506_v48 = vrot.slane %v7639_v57, %v6682_v44 }
 0x154   : > { %6143 = vmatmul.mubr.bf16.gmra.mrb[12].mxu0 %v4391_v30  ;;  %v5646_v2 = vcombine.low %v4754_v61, %v4755_v26  ;;  %v2513_v56 = vrot.slane %v7639_v57, %v6665_v35  ;;  %v2520_v59 = vrot.slane %v7652_v31, %v6682_v44  ;;  %v5647_v58 = vcombine.low %v4756_v20, %v4757_v9 }
 0x155   : > { %v4705_v51 = vsel %vm6701_vm12, %v4703_v43, %v4704_v49  ;;  %v2527_v40 = vrot.slane %v7652_v31, %v6665_v35  ;;  %v4565_v11 = vmul.bf16 %v7299_v4, %v8395_v33  ;;  %v2556_v41 = vmul.bf16 %v2506_v48, %v2404_v17 }
 0x156   : > { %v4831_v23 = vrot.slane %v5646_v2, 1  ;;  %v4759_v19 = vmul.bf16 %v4705_v51, %v7904_v50  ;;  %v2557_v57 = vmul.bf16 %v2513_v56, %v2405_v10  ;;  %v4832_v63 = vrot.slane %v5647_v58, 1 }
 0x157   : > { %v2558_v27 = vmul.bf16 %v2520_v59, %v2406_v34  ;;  %v2559_v16 = vmul.bf16 %v2527_v40, %v2407_v60  ;;  %v4626_v3 = vrot.slane %v4565_v11, %v6682_v44  ;;  %v4633_v38 = vrot.slane %v4565_v11, %v6665_v35 }
 0x158   : > { %v5648_v39 = vcombine.low %v4758_v21, %v4759_v19  ;;  %v5489_v61 = vcombine.low %v2556_v41, %v2557_v57  ;;  %v4706_v18 = vrot.slane %v4704_v49, 4  ;;  %v4833_v31 = vsel %vm2205_vm9, %v4831_v23, %v4832_v63 }
 0x159   : > { %v5490_v5 = vcombine.low %v2558_v27, %v2559_v16  ;;  %v4707_v42 = vrot.slane %v4626_v3, 7  ;;  %v4566_v4 = vmul.bf16 %v7365_v7, %v7719_v46  ;;  %6162 = vmatprep.mubr.bf16.mxu0 %v4833_v31  ;;  %v4710_v50 = vrot.slane %v4633_v38, 7 }
 0x15a   : > { %v4834_v33 = vrot.slane %v5648_v39, 1  ;;  %6014 = vmatprep.mubr.bf16.mxu1 %v5489_v61  ;;  %v4567_v36 = vmul.bf16 %v7453_v8, %v7731_v14  ;;  %v4568_v29 = vmul.bf16 %v7486_v45, %v7788_v15 }
 0x15b   : > { %6015 = vmatmul.mubr.bf16.gmra.mrb[12].mxu1 %v5490_v5  ;;  %v4708_v49 = vsel %vm6701_vm12, %v4706_v18, %v4707_v42  ;;  %v4709_v47 = vrot.slane %v4707_v42, 4  ;;  %v4640_v37 = vrot.slane %v4566_v4, %v6682_v44  ;;  %v4647_v26 = vrot.slane %v4566_v4, %v6665_v35 }
 0x15c   : > { %v4835_v7 = vsel %vm2205_vm9, %v4832_v63, %v4834_v33  ;;  %v4760_v46 = vmul.bf16 %v4708_v49, %v7922_v25  ;;  %v4712_v20 = vrot.slane %v4710_v50, 4  ;;  %v4654_v24 = vrot.slane %v4567_v36, %v6682_v44 }
 0x15d   : > { %6163 = vmatmul.mubr.bf16.vlgmr.msra.gmra.mrb[0].mxu0 %v4835_v7  ;;  %v4711_v8 = vsel %vm6701_vm12, %v4709_v47, %v4710_v50  ;;  %v4713_v45 = vrot.slane %v4640_v37, 7  ;;  %v4716_v14 = vrot.slane %v4647_v26, 7  ;;  %v4661_v15 = vrot.slane %v4567_v36, %v6665_v35 }
 0x15e   : > { %v4761_v30 = vmul.bf16 %v4711_v8, %v7937_v32  ;;  %v4719_v9 = vrot.slane %v4654_v24, 7  ;;  %v4668_v43 = vrot.slane %v4568_v29, %v6682_v44  ;;  %v4675_v21 = vrot.slane %v4568_v29, %v6665_v35 }
 0x15f   : > { %v4714_v25 = vsel %vm6701_vm12, %v4712_v20, %v4713_v45  ;;  %v4715_v17 = vrot.slane %v4713_v45, 4  ;;  %v4718_v10 = vrot.slane %v4716_v14, 4  ;;  %v4722_v2 = vrot.slane %v4661_v15, 7 }
 0x160   : > { %v5649_v48 = vcombine.low %v4760_v46, %v4761_v30  ;;  %v4762_v56 = vmul.bf16 %v4714_v25, %v7965_v12  ;;  %v4721_v34 = vrot.slane %v4719_v9, 4  ;;  %v4725_v60 = vrot.slane %v4668_v43, 7 }
 0x161   : > { %v4717_v59 = vsel %vm6701_vm12, %v4715_v17, %v4716_v14  ;;  %v4720_v32 = vsel %vm6701_vm12, %v4718_v10, %v4719_v9  ;;  %v4724_v58 = vrot.slane %v4722_v2, 4  ;;  %v4728_v51 = vrot.slane %v4675_v21, 7 }
 0x162   : > { %v4836_v40 = vrot.slane %v5649_v48, 1  ;;  %v4763_v11 = vmul.bf16 %v4717_v59, %v7968_v52  ;;  %v4723_v23 = vsel %vm6701_vm12, %v4721_v34, %v4722_v2  ;;  %v4764_v19 = vmul.bf16 %v4720_v32, %v8000_v13 }
 0x163   : > { %v4765_v12 = vmul.bf16 %v4723_v23, %v8003_v54  ;;  %v4726_v41 = vsel %vm6701_vm12, %v4724_v58, %v4725_v60  ;;  %v4727_v57 = vrot.slane %v4725_v60, 4  ;;  %v4569_v63 = vmul.bf16 %v7576_v62, %v7800_v22 }
 0x164   : > { %v4837_v27 = vsel %vm2205_vm9, %v4834_v33, %v4836_v40  ;;  %v5650_v16 = vcombine.low %v4762_v56, %v4763_v11  ;;  %v4766_v3 = vmul.bf16 %v4726_v41, %v8014_v55  ;;  %v4730_v52 = vrot.slane %v4728_v51, 4 }
 0x165   : > { %6166 = vmatprep.mubr.bf16.mxu0 %v4837_v27  ;;  %v5651_v39 = vcombine.low %v4764_v19, %v4765_v12  ;;  %v4729_v13 = vsel %vm6701_vm12, %v4727_v57, %v4728_v51  ;;  %v4682_v54 = vrot.slane %v4569_v63, %v6682_v44  ;;  %v4689_v61 = vrot.slane %v4569_v63, %v6665_v35 }
 0x166   : > { %v4838_v38 = vrot.slane %v5650_v16, 1  ;;  %v4767_v18 = vmul.bf16 %v4729_v13, %v8032_v28 }
 0x167   : > { %v4840_v31 = vrot.slane %v5651_v39, 1  ;;  %v4731_v62 = vrot.slane %v4682_v54, 7  ;;  %v4734_v22 = vrot.slane %v4689_v61, 7 }
 0x168   : > { %v4839_v5 = vsel %vm2205_vm9, %v4836_v40, %v4838_v38  ;;  %v5652_v42 = vcombine.low %v4766_v3, %v4767_v18 }
 0x169   : > { %6167 = vmatmul.mubr.bf16.gmra.mrb[4].mxu0 %v4839_v5  ;;  %v4841_v55 = vsel %vm2205_vm9, %v4838_v38, %v4840_v31  ;;  %v4732_v4 = vsel %vm6701_vm12, %v4730_v52, %v4731_v62  ;;  %v4733_v33 = vrot.slane %v4731_v62, 4  ;;  %v4736_v50 = vrot.slane %v4734_v22, 4 }
 0x16a   : > { %6170 = vmatprep.mubr.bf16.mxu1 %v4841_v55  ;;  %v4842_v44 = vrot.slane %v5652_v42, 1  ;;  %v4768_v35 = vmul.bf16 %v4732_v4, %v8065_v6 }
 0x16b   : > { %v4735_v28 = vsel %vm6701_vm12, %v4733_v33, %v4734_v22  ;;  %v4770_v36 = vmul.bf16 %v4736_v50, %v8071_v1 }
 0x16c   : > { %v4843_v29 = vsel %vm2205_vm9, %v4840_v31, %v4842_v44  ;;  %v4769_v49 = vmul.bf16 %v4735_v28, %v8076_v53 }
 0x16d   : > { %6171 = vmatmul.mubr.bf16.vlgmr.msra.gmra.mrb[16].mxu1 %v4843_v29  ;;  %v5654_v47 = vcombine.low %v4770_v36, %v4770_v36 }
 0x16e   : > { %v5653_v37 = vcombine.low %v4768_v35, %v4769_v49 }
 0x16f   : > { %v4846_v26 = vrot.slane %v5654_v47, 1 }
 0x170   : > { %v4844_v7 = vrot.slane %v5653_v37, 1 }
 0x172   : > { %v4845_v46 = vsel %vm2205_vm9, %v4842_v44, %v4844_v7  ;;  %v4847_v20 = vsel %vm2205_vm9, %v4844_v7, %v4846_v26 }
 0x173   : > { %6174 = vmatprep.mubr.bf16.mxu1 %v4845_v46 }
 0x175   : > { %6175 = vmatmul.mubr.bf16.gmra.mrb[20].mxu1 %v4847_v20 }
 0x207   : > { %v6004_v6 = vpop.f32.mrb[0].mxu1 }
 0x208   : > { %v2707_v0 = vpop.f32.mrb[1].mxu1 }
 0x209   : > { %v6005_v24 = vpop.f32.mrb[2].mxu1 }
 0x20a   : > { %v2710_v8 = vpop.f32.mrb[3].mxu1 }
 0x216   : > { %v6008_v1 = vpop.f32.mrb[4].mxu1 }
 0x217   : > { %v2723_v45 = vpop.f32.mrb[5].mxu1 }
 0x218   : > { %v6009_v14 = vpop.f32.mrb[6].mxu1 }
 0x219   : > { %v2726_v15 = vpop.f32.mrb[7].mxu1 }
 0x21c   : > { %v6140_v53 = vpop.f32.mrb[8].mxu0 }
 0x21d   : > { %v4514_v30 = vpop.f32.mrb[9].mxu0 }
 0x21e   : > { %v6141_v9 = vpop.f32.mrb[10].mxu0 }
 0x21f   : > { %v4517_v43 = vpop.f32.mrb[11].mxu0 }
 0x220   : > { %v6012_v21 = vpop.f32.mrb[8].mxu1 }
 0x221   : > { %v6202_v25 = vadd.f32 %v6140_v53, %v6012_v21  ;;  %v2739_v17 = vpop.f32.mrb[9].mxu1 }
 0x222   : > { %v8193_v10 = vadd.f32 %v4514_v30, %v2739_v17  ;;  %v6013_v2 = vpop.f32.mrb[10].mxu1 }
 0x223   : > { %v6206_v48 = vadd.f32 %v6141_v9, %v6013_v2  ;;  %v2742_v56 = vpop.f32.mrb[11].mxu1 }
 0x224   : > { %v8195_v34 = vadd.f32 %v4517_v43, %v2742_v56 }
 0x227   : > { %v6144_v60 = vpop.f32.mrb[12].mxu0 }
 0x228   : > { %v4530_v59 = vpop.f32.mrb[13].mxu0 }
 0x229   : > { %v6145_v32 = vpop.f32.mrb[14].mxu0 }
 0x22a   : > { %v4533_v58 = vpop.f32.mrb[15].mxu0 }
 0x22e   : > { %v6016_v51 = vpop.f32.mrb[12].mxu1 }
 0x22f   : > { %v8199_v40 = vadd.f32 %v6144_v60, %v6016_v51  ;;  %v2755_v11 = vpop.f32.mrb[13].mxu1 }
 0x230   : > { %v6164_v23 = vpop.f32.mrb[0].mxu0  ;;  %v8201_v19 = vadd.f32 %v4530_v59, %v2755_v11  ;;  %v6017_v12 = vpop.f32.mrb[14].mxu1 }
 0x231   : > { %v6194_v41 = vadd.f32 %v6164_v23, %v6004_v6  ;;  %v4938_v57 = vpop.f32.mrb[1].mxu0  ;;  %v8203_v63 = vadd.f32 %v6145_v32, %v6017_v12  ;;  %v2758_v27 = vpop.f32.mrb[15].mxu1 }
 0x232   : > { %v6195_v16 = vadd.f32 %v4938_v57, %v2707_v0  ;;  %v6165_v3 = vpop.f32.mrb[2].mxu0  ;;  %v8205_v52 = vadd.f32 %v4533_v58, %v2758_v27 }
 0x233   : > { %v6196_v39 = vadd.f32 %v6165_v3, %v6005_v24  ;;  %v4941_v13 = vpop.f32.mrb[3].mxu0  ;;  %v5102_v22 = vmul.f32 %v6194_v41, %v6194_v41 }
 0x234   : > { %v6197_v54 = vadd.f32 %v4941_v13, %v2710_v8  ;;  %v5097_v38 = vmul.f32 %v6195_v16, %v6195_v16 }
 0x235   : > { %v5707_v61 = vpack.c.bf16 %v6196_v39, %v6194_v41  ;;  %v5105_v55 = vmul.f32 %v6196_v39, %v6196_v39 }
 0x236   : > { %v5702_v18 = vpack.c.bf16 %v6197_v54, %v6195_v16  ;;  %v5098_v31 = vadd.f32 %v6197_v54, %v6195_v16  ;;  %v5099_v62 = vmul.f32 %v6197_v54, %v6197_v54 }
 0x237   : > { %5739 = vst [vmem:[%s8210_s27 + $0x8] sm:$0xff] %v5707_v61  }
 0x238   : > { %5703 = vst [vmem:[%s8210_s27] sm:$0xff] %v5702_v18   ;;  %v5100_v5 = vadd.f32 %v5099_v62, %v5097_v38  ;;  %v5101_v42 = vadd.f32 %v6194_v41, %v5098_v31 }
 0x23a   : > { %v5103_v4 = vadd.f32 %v5102_v22, %v5100_v5  ;;  %v5104_v33 = vadd.f32 %v6196_v39, %v5101_v42 }
 0x23c   : > { %v6168_v50 = vpop.f32.mrb[4].mxu0  ;;  %v5106_v44 = vadd.f32 %v5105_v55, %v5103_v4 }
 0x23d   : > { %v6198_v35 = vadd.f32 %v6168_v50, %v6008_v1  ;;  %v4954_v28 = vpop.f32.mrb[5].mxu0 }
 0x23e   : > { %v6199_v36 = vadd.f32 %v4954_v28, %v2723_v45  ;;  %v6169_v29 = vpop.f32.mrb[6].mxu0 }
 0x23f   : > { %v6200_v49 = vadd.f32 %v6169_v29, %v6009_v14  ;;  %v4957_v47 = vpop.f32.mrb[7].mxu0  ;;  %v5114_v43 = vmul.f32 %v6198_v35, %v6198_v35 }
 0x240   : > { %v5107_v37 = vadd.f32 %v6199_v36, %v5104_v33  ;;  %v5108_v26 = vmul.f32 %v6199_v36, %v6199_v36  ;;  %v6172_v7 = vpop.f32.mrb[16].mxu1  ;;  %v6201_v46 = vadd.f32 %v4957_v47, %v2726_v15 }
 0x241   : > { %v5717_v20 = vpack.c.bf16 %v6200_v49, %v6198_v35  ;;  %v6203_v6 = vadd.f32 %v6202_v25, %v6172_v7  ;;  %v4970_v0 = vpop.f32.mrb[17].mxu1  ;;  %v5117_v2 = vmul.f32 %v6200_v49, %v6200_v49 }
 0x242   : > { %v5109_v24 = vadd.f32 %v5108_v26, %v5106_v44  ;;  %v5712_v8 = vpack.c.bf16 %v6201_v46, %v6199_v36  ;;  %v5110_v53 = vadd.f32 %v6201_v46, %v5107_v37  ;;  %v5111_v30 = vmul.f32 %v6201_v46, %v6201_v46  ;;  %v6173_v1 = vpop.f32.mrb[18].mxu1 }
 0x243   : > { %5741 = vst [vmem:[%s8210_s27 + $0x18] sm:$0xff] %v5717_v20   ;;  %v6205_v45 = vadd.f32 %v8193_v10, %v4970_v0  ;;  %v6207_v9 = vadd.f32 %v6206_v48, %v6173_v1  ;;  %v4973_v14 = vpop.f32.mrb[19].mxu1  ;;  %v5126_v3 = vmul.f32 %v6203_v6, %v6203_v6 }
 0x244   : > { %5740 = vst [vmem:[%s8210_s27 + $0x10] sm:$0xff] %v5712_v8   ;;  %v5112_v21 = vadd.f32 %v5111_v30, %v5109_v24  ;;  %v5113_v17 = vadd.f32 %v6198_v35, %v5110_v53  ;;  %v6209_v15 = vadd.f32 %v8195_v34, %v4973_v14 }
 0x245   : > { %v5727_v25 = vpack.c.bf16 %v6207_v9, %v6203_v6  ;;  %v5120_v51 = vmul.f32 %v6205_v45, %v6205_v45  ;;  %v5129_v61 = vmul.f32 %v6207_v9, %v6207_v9 }
 0x246   : > { %v5115_v56 = vadd.f32 %v5114_v43, %v5112_v21  ;;  %v5116_v60 = vadd.f32 %v6200_v49, %v5113_v17  ;;  %v5722_v59 = vpack.c.bf16 %v6209_v15, %v6205_v45  ;;  %v5123_v41 = vmul.f32 %v6209_v15, %v6209_v15 }
 0x247   : > { %5743 = vst [vmem:[%s8210_s27 + $0x28] sm:$0xff] %v5727_v25  }
 0x248   : > { %v5118_v32 = vadd.f32 %v5117_v2, %v5115_v56  ;;  %v5119_v58 = vadd.f32 %v6205_v45, %v5116_v60  ;;  %5742 = vst [vmem:[%s8210_s27 + $0x20] sm:$0xff] %v5722_v59   ;;  %v6176_v10 = vpop.f32.mrb[20].mxu1 }
 0x249   : > { %v6211_v48 = vadd.f32 %v8199_v40, %v6176_v10  ;;  %v4986_v11 = vpop.f32.mrb[21].mxu1 }
 0x24a   : > { %v5121_v23 = vadd.f32 %v5120_v51, %v5118_v32  ;;  %v5122_v12 = vadd.f32 %v6209_v15, %v5119_v58  ;;  %v6213_v34 = vadd.f32 %v8201_v19, %v4986_v11  ;;  %v6177_v57 = vpop.f32.mrb[22].mxu1 }
 0x24b   : > { %v6215_v27 = vadd.f32 %v8203_v63, %v6177_v57  ;;  %v4989_v16 = vpop.f32.mrb[23].mxu1  ;;  %v5138_v55 = vmul.f32 %v6211_v48, %v6211_v48 }
 0x24c   : > { %v5124_v39 = vadd.f32 %v5123_v41, %v5121_v23  ;;  %v5125_v13 = vadd.f32 %v6203_v6, %v5122_v12  ;;  %v6217_v54 = vadd.f32 %v8205_v52, %v4989_v16  ;;  %v5132_v22 = vmul.f32 %v6213_v34, %v6213_v34 }
 0x24d   : > { %v5737_v40 = vpack.c.bf16 %v6215_v27, %v6211_v48  ;;  %v5141_v52 = vmul.f32 %v6215_v27, %v6215_v27 }
 0x24e   : > { %v5127_v38 = vadd.f32 %v5126_v3, %v5124_v39  ;;  %v5128_v18 = vadd.f32 %v6207_v9, %v5125_v13  ;;  %v5732_v31 = vpack.c.bf16 %v6217_v54, %v6213_v34  ;;  %v5135_v42 = vmul.f32 %v6217_v54, %v6217_v54 }
 0x24f   : > { %5745 = vst [vmem:[%s8210_s27 + $0x38] sm:$0xff] %v5737_v40  }
 0x250   : > { %v5130_v62 = vadd.f32 %v5129_v61, %v5127_v38  ;;  %v5131_v19 = vadd.f32 %v6213_v34, %v5128_v18  ;;  %5744 = vst [vmem:[%s8210_s27 + $0x30] sm:$0xff] %v5732_v31  }
 0x252   : > { %v5133_v5 = vadd.f32 %v5132_v22, %v5130_v62  ;;  %v5134_v63 = vadd.f32 %v6217_v54, %v5131_v19 }
 0x254   : > { %v5136_v4 = vadd.f32 %v5135_v42, %v5133_v5  ;;  %v5137_v33 = vadd.f32 %v6211_v48, %v5134_v63 }
 0x256   : > { %v5139_v50 = vadd.f32 %v5138_v55, %v5136_v4  ;;  %v5140_v44 = vadd.f32 %v6215_v27, %v5137_v33 }
 0x258   : > { %v5142_v35 = vadd.f32 %v5141_v52, %v5139_v50  ;;  %5143 = vst [vmem:[%s273_s30] sm:$0xff] %v5140_v44 }
 0x25a   : > { %5144 = vst [vmem:[%s277_s8] sm:$0xff] %v5142_v35 }
 0x25b PF: > { %s16_s18 = sadd.s32 1, %s6451_s18  }
 0x25c   : > { %p13_p7 = scmp.ge.s32.totalorder %s16_s18, 6  }
 0x25e   :  { %15 = sbr.rel (!%p13_p7) target bundleno = 1 (0x1), region = 97 }

// kernel: basic_block_double_forward.7
= control target key start
LH: loop header
LB: loop body
LE: loop exit
PB: predicated region body
PF: predicated region fallthrough
CT: control target
= control target key end

     0   :  { %s6802_s23 = smov 0   ;;  %s8609_s0 = inlined_call_operand.vmem [shape: bf16[640,128], index: 0, kind: input, shape index: {}, may-alias: {0,1}]   ;;  %s8610_s1 = inlined_call_operand.vmem [shape: bf16[640,128], index: 1, kind: input, shape index: {}, may-alias: {0,1}]   ;;  %s8611_s2 = inlined_call_operand.vmem [shape: bf16[9,128,128], index: 2, kind: input, shape index: {}]   ;;  %s8612_s3 = inlined_call_operand.<no memory space> [shape: f32[1,1], index: 3, kind: input, shape index: {}]   ;;  %s8613_s4 = inlined_call_operand.vmem [shape: bf16[512,128], index: 4, kind: output, shape index: {0}]   ;;  %s8614_s5 = inlined_call_operand.vmem [shape: f32[32,128], index: 5, kind: output, shape index: {1}]   ;;  %s8615_s6 = inlined_call_operand.vmem [shape: f32[32,128], index: 6, kind: output, shape index: {2}]  }
   0x1   :  { %12 = sst [smem:[#allocation3]] %s8612_s3 }
   0x2 LB: > { %s6808_s24 = sadd.s32 4294967295, %s6759_s23   ;;  %p5457_p0 = scmp.ge.s32.totalorder %s6759_s23, 1  ;;  %s6759_s23 = sphi %s6802_s23, %s18_s23  }
   0x3   : > { %p234_p1 = scmp.lt.s32.totalorder %s6759_s23, 5 }
   0x5   : > { %p235_p2 = pnand %p5457_p0, %p234_p1 }
   0x7   : > { %238 = sbr.rel (%p235_p2) target bundleno = 620 (0x26c), region = 36 }
   0xe   : > { %v6640_v0 = vld [vmem:[%s8611_s2 + $0x100] sm:$0xff]   ;;  %s6816_s3 = sshll.u32 %s6808_s24, 4  ;;  %v6641_v1 = vld [vmem:[%s8611_s2 + $0x108] sm:$0xff]   ;;  %v500_v2 = vlaneseq  ;;  %v6642_v4 = vld [vmem:[%s8611_s2 + $0x110] sm:$0xff]   ;;  %s5487_s10 = sshll.u32 %s6808_s24, 7  ;;  %v8616_v48 = vmov 0.0  }
   0xf   : > { %p279_p3 = scmp.lt.s32.totalorder %s6816_s3, 79  ;;  %6325 = vmatprep.subr.bf16.mxu0 %v6640_v0  ;;  %v6643_v3 = vld [vmem:[%s8611_s2 + $0x40] sm:$0xff]   ;;  %v6645_v5 = vld [vmem:[%s8611_s2 + $0x48] sm:$0xff]   ;;  %v6644_v6 = vld [vmem:[%s8611_s2 + $0x118] sm:$0xff]   ;;  %v6841_v9 = vstv %s5487_s10  ;;  %s6873_s29 = sld [smem:[#allocation3]] }
  0x10   : > { %6326 = vmatpush3.bf16.msra.mxu0 %v6640_v0  ;;  %6197 = vmatprep.subr.bf16.mxu1 %v6643_v3  ;;  %v6836_v7 = vshrl.u32 %v500_v2, 7  ;;  %v6647_v8 = vld [vmem:[%s8611_s2 + $0x50] sm:$0xff]   ;;  %v6649_v14 = vld [vmem:[%s8611_s2 + $0x58] sm:$0xff]   ;;  %v6646_v16 = vld [vmem:[%s8611_s2 + $0x120] sm:$0xff]   ;;  %v6761_v40 = vmov 839922192  }
  0x11   : > { %s280_s7 = scalar_select %p279_p3, %s6816_s3, 79  ;;  %6327 = vmatprep.subr.bf16.mxu0 %v6641_v1  ;;  %6198 = vmatpush3.bf16.msra.mxu1 %v6643_v3  ;;  %v6651_v20 = vld [vmem:[%s8611_s2 + $0x60] sm:$0xff]   ;;  %v6648_v25 = vld [vmem:[%s8611_s2 + $0x128] sm:$0xff]   ;;  %v6901_v41 = vunpack.c.l.s4 %v6761_v40  ;;  %v6650_v42 = vld [vmem:[%s8611_s2 + $0x130] sm:$0xff]   ;;  %v6762_v46 = vmov 1985246804  }
  0x12   : > { %6199 = vmatprep.subr.bf16.mxu1 %v6645_v5  ;;  %v503_v10 = vadd.s32 16, %v6836_v7  ;;  %v504_v11 = vadd.s32 24, %v6836_v7  ;;  %v505_v12 = vadd.s32 32, %v6836_v7  ;;  %v506_v15 = vadd.s32 40, %v6836_v7  ;;  %v6653_v30 = vld [vmem:[%s8611_s2 + $0x68] sm:$0xff]   ;;  %v6658_v56 = vld [vmem:[%s8611_s2 + $0x70] sm:$0xff]  }
  0x13   : > { %s5459_s17 = sshll.u32 %s280_s7, 2  ;;  %v6913_v47 = vunpack.c.l.s4 %v6762_v46  ;;  %v6652_v57 = vld [vmem:[%s8611_s2 + $0x138] sm:$0xff]   ;;  %s5881_s9 = sadd.s32 16, %s6816_s3 }
  0x14   : > { %6328 = vmatpush3.bf16.msra.mxu0 %v6641_v1  ;;  %v6847_v13 = vadd.s32 %v6841_v9, %v503_v10  ;;  %s6855_s22 = scalar_lea.vmem %s8609_s0, %s5459_s17  ;;  %v6862_v17 = vadd.s32 %v6841_v9, %v504_v11  ;;  %v6865_v18 = vadd.s32 %v6841_v9, %v505_v12  ;;  %v6876_v23 = vadd.s32 %v6841_v9, %v506_v15  ;;  %v6660_v3 = vld [vmem:[%s8611_s2 + $0x78] sm:$0xff]   ;;  %p7140_p4 = scmp.lt.s32.totalorder %s5881_s9, 79 }
  0x15   : > { %6329 = vmatprep.subr.bf16.mxu0 %v6642_v4  ;;  %6200 = vmatpush3.bf16.msra.mxu1 %v6645_v5  ;;  %v6029_v21 = vld [vmem:[%s6855_s22 + $0x8] sm:$0xff]   ;;  %v6030_v22 = vld [vmem:[%s6855_s22 + $0x10] sm:$0xff]   ;;  %v6031_v24 = vld [vmem:[%s6855_s22 + $0x18] sm:$0xff]   ;;  %v6907_v43 = vstv %s6873_s29  ;;  %v1183_v10 = vunpack.c.0.s8 %v6913_v47  ;;  %p293_p5 = scmp.lt.s32.totalorder %s6816_s3, 63  ;;  %p298_p6 = scmp.lt.s32.totalorder %s6808_s24, 3 }
  0x16   : > { %6201 = vmatprep.subr.bf16.mxu1 %v6647_v8  ;;  %v549_v19 = vsub.s32 0, %v6847_v13  ;;  %vm548_vm0 = vcmp.lt.s32.totalorder %v6847_v13, 0  ;;  %v5925_v26 = vunpack.c.l.bf16 %v6029_v21  ;;  %v5926_v27 = vunpack.c.h.bf16 %v6029_v21  ;;  %8669 = vst [vmem:[#allocation4_spill] sm:$0xff] %v6907_v43  ;;  %s8779_s9 = smov (!%p7140_p4, %s5881_s9), 79 }
  0x17   : > { %v5929_v28 = vunpack.c.l.bf16 %v6030_v22  ;;  %v5930_v31 = vunpack.c.h.bf16 %v6030_v22  ;;  %v5933_v32 = vunpack.c.l.bf16 %v6031_v24  ;;  %v556_v33 = vsub.s32 0, %v6862_v17  ;;  %s5461_s19 = sshll.u32 %s8779_s9, 2  ;;  %s8781_s3 = smov (!%p293_p5, %s6816_s3), 63 }
  0x18   : > { %6330 = vmatpush3.bf16.msra.mxu0 %v6642_v4  ;;  %v6884_v29 = vmin.u32 %v549_v19, %v6847_v13  ;;  %v563_v34 = vsub.s32 0, %v6865_v18  ;;  %vm555_vm1 = vcmp.lt.s32.totalorder %v6862_v17, 0  ;;  %v570_v36 = vsub.s32 0, %v6876_v23  ;;  %s7254_s25 = scalar_lea.vmem %s8610_s1, %s5461_s19  ;;  %s5463_s10 = sshll.u32 %s8781_s3, 2 }
  0x19   : > { %6331 = vmatprep.subr.bf16.mxu0 %v6644_v6  ;;  %6202 = vmatpush3.bf16.msra.mxu1 %v6647_v8  ;;  %v5934_v37 = vunpack.c.h.bf16 %v6031_v24  ;;  %v6895_v38 = vmin.u32 %v556_v33, %v6862_v17  ;;  %vm562_vm2 = vcmp.lt.s32.totalorder %v6865_v18, 0  ;;  %vm569_vm3 = vcmp.lt.s32.totalorder %v6876_v23, 0  ;;  %v6970_v24 = vld [vmem:[%s8611_s2] sm:$0xff]   ;;  %s8582_s13 = scalar_lea.vmem %s8613_s4, %s5463_s10  ;;  %s8783_s24 = smov (!%p298_p6, %s6808_s24), 3 }
  0x1a   : > { %6203 = vmatprep.subr.bf16.mxu1 %v6649_v14  ;;  %v552_v35 = vand.u32 15, %v6884_v29  ;;  %v6899_v39 = vmin.u32 %v563_v34, %v6865_v18  ;;  %v6911_v45 = vmin.u32 %v570_v36, %v6876_v23  ;;  %vm348_vm4 = vcmp.ge.f32.partialorder %v5925_v26, %v6907_v43  ;;  %s5464_s3 = sshll.u32 %s8783_s24, 3 }
  0x1b   : > { %vm349_vm5 = vcmp.ge.f32.partialorder %v5926_v27, %v6907_v43  ;;  %vm350_vm6 = vcmp.ge.f32.partialorder %v5929_v28, %v6907_v43  ;;  %vm351_vm7 = vcmp.ge.f32.partialorder %v5930_v31, %v6907_v43  ;;  %v364_v49 = vsel %vm348_vm4, 1.0, %v8616_v48  ;;  %s301_s16 = scalar_lea.vmem %s8614_s5, %s5464_s3  ;;  %s305_s19 = scalar_lea.vmem %s8615_s6, %s5464_s3 }
  0x1c   : > { %6332 = vmatpush3.bf16.msra.mxu0 %v6644_v6  ;;  %v553_v44 = vsub.s32 0, %v552_v35  ;;  %v365_v50 = vsel %vm349_vm5, 1.0, %v8616_v48  ;;  %v366_v51 = vsel %vm350_vm6, 1.0, %v8616_v48  ;;  %v367_v52 = vsel %vm351_vm7, 1.0, %v8616_v48 }
  0x1d   : > { %6333 = vmatprep.subr.bf16.mxu0 %v6646_v16  ;;  %6204 = vmatpush3.bf16.msra.mxu1 %v6649_v14  ;;  %v5963_v53 = vpack.c.bf16 %v365_v50, %v364_v49  ;;  %v5966_v54 = vpack.c.bf16 %v367_v52, %v366_v51  ;;  %vm352_vm8 = vcmp.ge.f32.partialorder %v5933_v32, %v6907_v43  ;;  %v559_v55 = vand.u32 15, %v6895_v38  ;;  %v6954_v14 = vld [vmem:[%s8611_s2 + $0x140] sm:$0xff]  }
  0x1e   : > { %6205 = vmatprep.subr.bf16.mxu1 %v6651_v20  ;;  %vm353_vm9 = vcmp.ge.f32.partialorder %v5934_v37, %v6907_v43  ;;  %v368_v58 = vsel %vm352_vm8, 1.0, %v8616_v48  ;;  %v554_v59 = vsel %vm548_vm0, %v553_v44, %v552_v35  ;;  %v566_v60 = vand.u32 15, %v6899_v39 }
  0x1f   : > { %6037 = vst [vmem:[#allocation2 + $0x8] sm:$0xff] %v5963_v53   ;;  %6038 = vst [vmem:[#allocation2 + $0x10] sm:$0xff] %v5966_v54   ;;  %v369_v61 = vsel %vm353_vm9, 1.0, %v8616_v48  ;;  %v560_v62 = vsub.s32 0, %v559_v55  ;;  %v573_v63 = vand.u32 15, %v6911_v45  ;;  %vm648_vm10 = vcmp.ne.s32.totalorder %v554_v59, 0 }
  0x20   : > { %6334 = vmatpush3.bf16.msra.mxu0 %v6646_v16  ;;  %v5969_v0 = vpack.c.bf16 %v369_v61, %v368_v58  ;;  %v567_v1 = vsub.s32 0, %v566_v60  ;;  %vm664_vm11 = vcmp.lt.s32.totalorder %v554_v59, 0  ;;  %v696_v2 = vadd.s32 16, %v554_v59 }
  0x21   : > { %6335 = vmatprep.subr.bf16.mxu0 %v6648_v25  ;;  %6206 = vmatpush3.bf16.msra.mxu1 %v6651_v20  ;;  %v561_v4 = vsel %vm555_vm1, %v560_v62, %v559_v55  ;;  %v574_v5 = vsub.s32 0, %v573_v63  ;;  %vm6943_vm12 = vmand %vm664_vm11, %vm648_vm10  ;;  %v1176_v8 = vunpack.c.0.s8 %v6901_v41  ;;  %vm2239_vm6 = vcmask 1040384   ;;  %v6032_v20 = vld [vmem:[%s6855_s22 + $0x20] sm:$0xff]  }
  0x22   : > { %6207 = vmatprep.subr.bf16.mxu1 %v6653_v30  ;;  %6039 = vst [vmem:[#allocation2 + $0x18] sm:$0xff] %v5969_v0   ;;  %v568_v11 = vsel %vm562_vm2, %v567_v1, %v566_v60  ;;  %vm649_vm13 = vcmp.ne.s32.totalorder %v561_v4, 0  ;;  %vm665_vm14 = vcmp.lt.s32.totalorder %v561_v4, 0  ;;  %v697_v12 = vadd.s32 16, %v561_v4 }
  0x23   : > { %v575_v15 = vsel %vm569_vm3, %v574_v5, %v573_v63  ;;  %vm650_vm15 = vcmp.ne.s32.totalorder %v568_v11, 0  ;;  %vm666_vm4 = vcmp.lt.s32.totalorder %v568_v11, 0  ;;  %vm6958_vm5 = vmand %vm665_vm14, %vm649_vm13  ;;  %v698_v19 = vadd.s32 16, %v568_v11  ;;  %v6033_v63 = vld [vmem:[%s6855_s22 + $0x28] sm:$0xff]  }
  0x24   : > { %6336 = vmatpush3.bf16.msra.mxu0 %v6648_v25  ;;  %vm2240_vm7 = vcmask 1044484   ;;  %vm1695_vm8 = vsmask.f32 7424  ;;  %vm651_vm9 = vcmp.ne.s32.totalorder %v575_v15, 0  ;;  %vm667_vm10 = vcmp.lt.s32.totalorder %v575_v15, 0  ;;  %vm682_vm11 = vmand %vm666_vm4, %vm650_vm15 }
  0x25   : > { %6337 = vmatprep.subr.bf16.mxu0 %v6650_v42  ;;  %6208 = vmatpush3.bf16.msra.mxu1 %v6653_v30  ;;  %v699_v21 = vadd.s32 16, %v575_v15  ;;  %v6965_v22 = vsel %vm6943_vm12, %v696_v2, %v554_v59  ;;  %vm683_vm13 = vmand %vm667_vm10, %vm651_vm9  ;;  %v6974_v25 = vsel %vm6958_vm5, %v697_v12, %v561_v4  ;;  %v6976_v26 = vsel %vm682_vm11, %v698_v19, %v568_v11  ;;  %v5920_v4 = vld [vmem:[%s6855_s22] sm:$0xff]  }
  0x26   : > { %6209 = vmatprep.subr.bf16.mxu1 %v6658_v56  ;;  %vm1088_vm14 = vcmp.lt.s32.totalorder %v6965_v22, 15  ;;  %v6980_v27 = vsub.s32 %v1176_v8, %v6836_v7  ;;  %v2964_v28 = vld [vmem:[#allocation2 + $0x8] sm:$0xf]  ;;  %v2965_v30 = vld [vmem:[#allocation2 + $0xc] sm:$0xf]  ;;  %v6985_v33 = vsub.s32 %v1183_v10, %v6836_v7  ;;  %v5937_v34 = vunpack.c.l.bf16 %v6032_v20  ;;  %vm7024_vm10 = vmor %vm2239_vm6, %vm2240_vm7 }
  0x27   : > { %v2966_v31 = vld [vmem:[#allocation2 + $0x10] sm:$0xf]  ;;  %v6982_v32 = vsel %vm683_vm13, %v699_v21, %v575_v15  ;;  %v5938_v35 = vunpack.c.h.bf16 %v6032_v20  ;;  %v2967_v36 = vld [vmem:[#allocation2 + $0x14] sm:$0xf]  ;;  %v5714_v37 = vcombine.low %v2964_v28, %v2965_v30  ;;  %vm1089_vm12 = vcmp.lt.s32.totalorder %v6974_v25, 15  ;;  %v6659_v21 = vld [vmem:[%s8611_s2 + $0x148] sm:$0xff]  }
  0x28   : > { %6338 = vmatpush3.bf16.msra.mxu0 %v6650_v42  ;;  %vm1090_vm15 = vcmp.lt.s32.totalorder %v6976_v26, 15  ;;  %vm1091_vm4 = vcmp.lt.s32.totalorder %v6982_v32, 15  ;;  %v5715_v40 = vcombine.low %v2966_v31, %v2967_v36  ;;  %v5570_v41 = vsel %vm1088_vm14, 1.0, %v8616_v48 }
  0x29   : > { %6339 = vmatprep.subr.bf16.mxu0 %v6652_v57  ;;  %6210 = vmatpush3.bf16.msra.mxu1 %v6658_v56  ;;  %v5571_v42 = vsel %vm1089_vm12, 1.0, %v8616_v48  ;;  %v5572_v44 = vsel %vm1090_vm15, 1.0, %v8616_v48  ;;  %v3042_v46 = vshrl.u32 %v5714_v37, 16  ;;  %v3044_v47 = vshll.u32 %v5714_v37, 16  ;;  %v6999_v51 = vld [vmem:[#allocation2 + $0x18] sm:$0xf] }
  0x2a   : > { %6211 = vmatprep.subr.bf16.mxu1 %v6660_v3  ;;  %v5573_v49 = vsel %vm1091_vm4, 1.0, %v8616_v48  ;;  %v6997_v50 = vpack.c.bf16 %v5571_v42, %v5570_v41  ;;  %v3049_v52 = vshll.u32 %v5715_v40, 16  ;;  %v7004_v54 = vld [vmem:[#allocation2 + $0x1c] sm:$0xf]  ;;  %v3053_v55 = vshrl.u32 %v5715_v40, 16 }
  0x2b   : > { %v7002_v53 = vpack.c.bf16 %v5573_v49, %v5572_v44  ;;  %vm354_vm5 = vcmp.ge.f32.partialorder %v5937_v34, %v6907_v43  ;;  %v3046_v56 = vrot.slane %v3044_v47, 1  ;;  %vm355_vm9 = vcmp.ge.f32.partialorder %v5938_v35, %v6907_v43  ;;  %v6663_v49 = vld [vmem:[%s8611_s2 + $0x150] sm:$0xff]  }
  0x2c   : > { %6340 = vmatpush3.bf16.msra.mxu0 %v6652_v57  ;;  %8674 = vst [vmem:[#allocation5_spill] sm:$0xff] %v6997_v50  ;;  %v5716_v57 = vcombine.low %v6999_v51, %v7004_v54  ;;  %v3314_v58 = vrot.slane %v6997_v50, %v6985_v33  ;;  %v3051_v59 = vrot.slane %v3049_v52, 1  ;;  %v370_v62 = vsel %vm354_vm5, 1.0, %v8616_v48 }
  0x2d   : > { %6357 = vmatprep.subr.bf16.mxu0 %v6954_v14  ;;  %6212 = vmatpush3.bf16.msra.mxu1 %v6660_v3  ;;  %8675 = vst [vmem:[#allocation6_spill] sm:$0xff] %v7002_v53  ;;  %v3321_v60 = vrot.slane %v7002_v53, %v6980_v27  ;;  %v3328_v61 = vrot.slane %v7002_v53, %v6985_v33  ;;  %v371_v3 = vsel %vm355_vm9, 1.0, %v8616_v48  ;;  %v5941_v28 = vunpack.c.l.bf16 %v6033_v63 }
  0x2e   : > { %6229 = vmatprep.subr.bf16.mxu1 %v6970_v24  ;;  %v3047_v0 = vor.u32 %v3046_v56, %v3042_v46  ;;  %v3057_v1 = vshll.u32 %v5716_v57, 16  ;;  %v7018_v2 = vrot.slane %v3314_v58, 7  ;;  %v3055_v6 = vor.u32 %v3053_v55, %v3051_v59  ;;  %v7066_v56 = vld [vmem:[%s6855_s22 + $0x30] sm:$0xff]  }
  0x2f   : > { %v3410_v8 = vrot.slane %v3321_v60, 7  ;;  %v7028_v10 = vrot.slane %v3328_v61, 7  ;;  %v5972_v11 = vpack.c.bf16 %v371_v3, %v370_v62  ;;  %v3061_v19 = vshrl.u32 %v5716_v57, 16 }
  0x30   : > { %v3052_v12 = vsel %vm1695_vm8, %v3047_v0, %v3051_v59  ;;  %v3059_v15 = vrot.slane %v3057_v1, 1  ;;  %v3409_v16 = vrot.slane %v7018_v2, 4  ;;  %v5942_v30 = vunpack.c.h.bf16 %v6033_v63 }
  0x31   : > { %6341 = vmatprep.mubr.bf16.mxu0 %v3052_v12  ;;  %v3412_v20 = vrot.slane %v3410_v8, 4  ;;  %6040 = vst [vmem:[#allocation2 + $0x20] sm:$0xff] %v5972_v11   ;;  %v5921_v31 = vunpack.c.l.bf16 %v5920_v4  ;;  %v5922_v36 = vunpack.c.h.bf16 %v5920_v4  ;;  %v7042_v37 = vadd.s32 %v6841_v9, %v6836_v7 }
  0x32   : > { %v3060_v34 = vsel %vm1695_vm8, %v3055_v6, %v3059_v15  ;;  %v7038_v35 = vsel %vm7024_vm10, %v3409_v16, %v3410_v8  ;;  %v7049_v41 = vor.u32 %v3061_v19, %v3059_v15  ;;  %vm356_vm6 = vcmp.ge.f32.partialorder %v5941_v28, %v6907_v43  ;;  %v6665_v6 = vld [vmem:[%s8611_s2 + $0x158] sm:$0xff]  }
  0x33   : > { %6342 = vmatmul.mubr.bf16.vlgmr.msra.gmra.mrb[0].mxu0 %v3060_v34  ;;  %v7047_v40 = vsel %vm7024_vm10, %v3412_v20, %v7028_v10  ;;  %vm357_vm7 = vcmp.ge.f32.partialorder %v5942_v30, %v6907_v43  ;;  %v372_v44 = vsel %vm356_vm6, 1.0, %v8616_v48  ;;  %vm346_vm11 = vcmp.ge.f32.partialorder %v5921_v31, %v6907_v43 }
  0x34   : > { %6358 = vmatpush3.bf16.msra.mxu0 %v6954_v14  ;;  %v373_v46 = vsel %vm357_vm7, 1.0, %v8616_v48  ;;  %vm347_vm13 = vcmp.ge.f32.partialorder %v5922_v36, %v6907_v43  ;;  %v362_v52 = vsel %vm346_vm11, 1.0, %v8616_v48  ;;  %v502_v55 = vadd.s32 8, %v6836_v7 }
  0x35   : > { %6359 = vmatprep.subr.bf16.mxu0 %v6659_v21  ;;  %v5975_v47 = vpack.c.bf16 %v373_v46, %v372_v44  ;;  %v363_v14 = vsel %vm347_vm13, 1.0, %v8616_v48  ;;  %vm534_vm14 = vcmp.lt.s32.totalorder %v7042_v37, 0  ;;  %v535_v57 = vsub.s32 0, %v7042_v37  ;;  %v6677_v44 = vld [vmem:[%s8611_s2 + $0x178] sm:$0xff]  }
  0x36   : > { %v744_v58 = vand.u32 255, %v6884_v29  ;;  %v5960_v59 = vpack.c.bf16 %v363_v14, %v362_v52  ;;  %v7073_v60 = vadd.s32 %v6841_v9, %v502_v55  ;;  %v751_v61 = vand.u32 255, %v6895_v38 }
  0x37   : > { %6041 = vst [vmem:[#allocation2 + $0x28] sm:$0xff] %v5975_v47   ;;  %vm1032_vm12 = vcmp.ge.s32.totalorder %v6965_v22, 1  ;;  %v7078_v0 = vmin.u32 %v535_v57, %v7042_v37  ;;  %vm1033_vm15 = vcmp.ge.s32.totalorder %v6974_v25, 1  ;;  %v5945_v29 = vunpack.c.l.bf16 %v7066_v56 }
  0x38   : > { %6360 = vmatpush3.bf16.msra.mxu0 %v6659_v21  ;;  %v2970_v62 = vld [vmem:[#allocation2 + $0x20] sm:$0xf]  ;;  %v2971_v63 = vld [vmem:[#allocation2 + $0x24] sm:$0xf]  ;;  %v745_v1 = vsub.s32 0, %v744_v58  ;;  %5961 = vst [vmem:[#allocation2] sm:$0xff] %v5960_v59  }
  0x39   : > { %v5717_v3 = vcombine.low %v2970_v62, %v2971_v63  ;;  %6361 = vmatprep.subr.bf16.mxu0 %v6663_v49  ;;  %vm541_vm4 = vcmp.lt.s32.totalorder %v7073_v60, 0  ;;  %v542_v38 = vsub.s32 0, %v7073_v60  ;;  %v752_v4 = vsub.s32 0, %v751_v61  ;;  %v6669_v21 = vld [vmem:[%s8611_s2 + $0x160] sm:$0xff]   ;;  %v6671_v62 = vld [vmem:[%s8611_s2 + $0x168] sm:$0xff]  }
  0x3a   : > { %v730_v8 = vand.u32 255, %v7078_v0  ;;  %v746_v11 = vsel %vm548_vm0, %v745_v1, %v744_v58  ;;  %v5554_v25 = vsel %vm1032_vm12, 1.0, %v8616_v48  ;;  %v5555_v12 = vsel %vm1033_vm15, 1.0, %v8616_v48 }
  0x3b   : > { %v3065_v15 = vshll.u32 %v5717_v3, 16  ;;  %v3069_v16 = vshrl.u32 %v5717_v3, 16  ;;  %v7095_v19 = vmin.u32 %v542_v38, %v7073_v60  ;;  %v753_v20 = vsel %vm555_vm1, %v752_v4, %v751_v61 }
  0x3c   : > { %v731_v13 = vsub.s32 0, %v730_v8  ;;  %vm840_vm0 = vcmp.ne.s32.totalorder %v746_v11, 0  ;;  %vm841_vm5 = vcmp.ne.s32.totalorder %v753_v20, 0  ;;  %vm856_vm9 = vcmp.lt.s32.totalorder %v746_v11, 0  ;;  %6362 = vmatpush3.bf16.msra.mxu0 %v6663_v49 }
  0x3d   : > { %v3067_v22 = vrot.slane %v3065_v15, 1  ;;  %v737_v28 = vand.u32 255, %v7095_v19  ;;  %vm857_vm6 = vcmp.lt.s32.totalorder %v753_v20, 0  ;;  %vm7103_vm7 = vmand %vm856_vm9, %vm840_vm0  ;;  %v888_v17 = vadd.s32 256, %v746_v11  ;;  %6363 = vmatprep.subr.bf16.mxu0 %v6665_v6 }
  0x3e   : > { %v2972_v31 = vld [vmem:[#allocation2 + $0x28] sm:$0xf]  ;;  %v2973_v34 = vld [vmem:[#allocation2 + $0x2c] sm:$0xf]  ;;  %v732_v36 = vsel %vm534_vm14, %v731_v13, %v730_v8  ;;  %vm7109_vm1 = vmand %vm857_vm6, %vm841_vm5  ;;  %v889_v46 = vadd.s32 256, %v753_v20  ;;  %v7113_v47 = vpack.c.bf16 %v5555_v12, %v5554_v25  ;;  %v758_v49 = vand.u32 255, %v6899_v39 }
  0x3f   : > { %v3068_v52 = vsel %vm1695_vm8, %v7049_v41, %v3067_v22  ;;  %v7118_v55 = vcombine.low %v2972_v31, %v2973_v34  ;;  %v3071_v14 = vor.u32 %v3069_v16, %v3067_v22  ;;  %v738_v57 = vsub.s32 0, %v737_v28  ;;  %v6675_v12 = vld [vmem:[%s8611_s2 + $0x170] sm:$0xff]   ;;  %v1143_v23 = vld [vmem:[#allocation2 + $0x4] sm:$0xf]  ;;  %v7552_v60 = vld [vmem:[#allocation2 + $0x2c] sm:$0xf] }
  0x40   : > { %8682 = vst [vmem:[#allocation7_spill] sm:$0xff] %v7113_v47  ;;  %6345 = vmatprep.mubr.bf16.mxu0 %v3068_v52  ;;  %vm838_vm11 = vcmp.ne.s32.totalorder %v732_v36, 0  ;;  %vm854_vm13 = vcmp.lt.s32.totalorder %v732_v36, 0  ;;  %v886_v58 = vadd.s32 256, %v732_v36  ;;  %v7123_v59 = vsel %vm7103_vm7, %v888_v17, %v746_v11  ;;  %6364 = vmatpush3.bf16.msra.mxu0 %v6665_v6  ;;  %v7182_v17 = vld [vmem:[#allocation2 + $0x8] sm:$0xf] }
  0x41   : > { %8683 = vst [vmem:[#allocation8_spill] sm:$0xff] %v7123_v59  ;;  %v3073_v39 = vshll.u32 %v7118_v55, 16  ;;  %v739_v41 = vsel %vm541_vm4, %v738_v57, %v737_v28  ;;  %vm870_vm12 = vmand %vm854_vm13, %vm838_vm11  ;;  %v7130_v61 = vsel %vm7109_vm1, %v889_v46, %v753_v20  ;;  %vm920_vm15 = vcmp.ge.s32.totalorder %v7123_v59, 16  ;;  %6365 = vmatprep.subr.bf16.mxu0 %v6669_v21 }
  0x42   : > { %8684 = vst [vmem:[#allocation9_spill] sm:$0xff] %v7130_v61  ;;  %vm839_vm0 = vcmp.ne.s32.totalorder %v739_v41, 0  ;;  %vm855_vm5 = vcmp.lt.s32.totalorder %v739_v41, 0  ;;  %v887_v63 = vadd.s32 256, %v739_v41  ;;  %v7136_v1 = vsel %vm870_vm12, %v886_v58, %v732_v36  ;;  %8714 = vst [vmem:[#allocation24_spill] sm:$0xff] %v7552_v60 }
  0x43   : > { %8685 = vst [vmem:[#allocation10_spill] sm:$0xff] %v7136_v1  ;;  %v7144_v3 = vrot.slane %v3073_v39, 1  ;;  %vm871_vm9 = vmand %vm855_vm5, %vm839_vm0  ;;  %vm918_vm6 = vcmp.ge.s32.totalorder %v7136_v1, 16  ;;  %vm921_vm7 = vcmp.ge.s32.totalorder %v7130_v61, 16  ;;  %v5522_v38 = vsel %vm920_vm15, 1.0, %v8616_v48 }
  0x44   : > { %v7149_v4 = vsel %vm871_vm9, %v887_v63, %v739_v41  ;;  %v5520_v6 = vsel %vm918_vm6, 1.0, %v8616_v48  ;;  %v5523_v8 = vsel %vm921_vm7, 1.0, %v8616_v48  ;;  %vm1455_vm1 = vsmask.f32 256  ;;  %6366 = vmatpush3.bf16.msra.mxu0 %v6669_v21  ;;  %v1145_v63 = vld [vmem:[#allocation2 + $0xc] sm:$0xf] }
  0x45   : > { %8687 = vst [vmem:[#allocation11_spill] sm:$0xff] %v7149_v4  ;;  %v3076_v11 = vsel %vm1695_vm8, %v3071_v14, %v7144_v3  ;;  %vm919_vm11 = vcmp.ge.s32.totalorder %v7149_v4, 16  ;;  %v7156_v25 = vpack.c.bf16 %v5523_v8, %v5522_v38  ;;  %vm1456_vm13 = vsmask.f32 4368  ;;  %6367 = vmatprep.subr.bf16.mxu0 %v6671_v62 }
  0x46   : > { %6346 = vmatmul.mubr.bf16.gmra.mrb[4].mxu0 %v3076_v11  ;;  %v5521_v15 = vsel %vm919_vm11, 1.0, %v8616_v48  ;;  %v759_v16 = vsub.s32 0, %v758_v49  ;;  %v765_v20 = vand.u32 255, %v6911_v45  ;;  %v5946_v21 = vunpack.c.h.bf16 %v7066_v56  ;;  %vm7216_vm15 = vmor %vm1455_vm1, %vm1456_vm13 }
  0x47   : > { %8688 = vst [vmem:[#allocation12_spill] sm:$0xff] %v7156_v25  ;;  %v7164_v13 = vpack.c.bf16 %v5521_v15, %v5520_v6  ;;  %v7168_v22 = vmul.bf16 %v7113_v47, %v7156_v25  ;;  %v1363_v28 = vrot.slane %v7156_v25, %v6980_v27  ;;  %v1370_v30 = vrot.slane %v7156_v25, %v6985_v33 }
  0x48   : > { %v760_v31 = vsel %vm562_vm2, %v759_v16, %v758_v49  ;;  %v766_v34 = vsub.s32 0, %v765_v20  ;;  %vm7189_vm12 = vcmp.ge.f32.partialorder %v5945_v29, %v6907_v43  ;;  %6368 = vmatpush3.bf16.msra.mxu0 %v6671_v62  ;;  %vm7203_vm2 = vcmp.ge.f32.partialorder %v5946_v21, %v6907_v43 }
  0x49   : > { %v1194_v46 = vrot.slane %v7168_v22, %v6980_v27  ;;  %v1349_v18 = vrot.slane %v7164_v13, %v6980_v27  ;;  %v1356_v49 = vrot.slane %v7164_v13, %v6985_v33  ;;  %6369 = vmatprep.subr.bf16.mxu0 %v6675_v12  ;;  %v1476_v29 = vshrl.u32 %v1363_v28, 16 }
  0x4a   : > { %v1479_v52 = vshll.u32 %v1363_v28, 16  ;;  %v1485_v14 = vshrl.u32 %v1370_v30, 16  ;;  %v1488_v57 = vshll.u32 %v1370_v30, 16  ;;  %v1201_v58 = vrot.slane %v7168_v22, %v6985_v33  ;;  %v6679_v22 = vld [vmem:[%s8611_s2 + $0x180] sm:$0xff]  }
  0x4b   : > { %v7210_v39 = vmul.bf16 %v1194_v46, %v7182_v17  ;;  %v1459_v41 = vshrl.u32 %v1349_v18, 16  ;;  %v1462_v62 = vshll.u32 %v1349_v18, 16  ;;  %v1467_v38 = vshrl.u32 %v1356_v49, 16  ;;  %v1142_v28 = vld [vmem:[#allocation2] sm:$0xf] }
  0x4c   : > { %v1470_v6 = vshll.u32 %v1356_v49, 16  ;;  %v1478_v8 = vrot.slane %v1476_v29, 7  ;;  %v7212_v11 = vrot.slane %v1485_v14, 7  ;;  %6370 = vmatpush3.bf16.msra.mxu0 %v6675_v12  ;;  %v767_v21 = vsel %vm569_vm3, %v766_v34, %v765_v20 }
  0x4d   : > { %v1461_v16 = vrot.slane %v1459_v41, 7  ;;  %vm842_vm0 = vcmp.ne.s32.totalorder %v760_v31, 0  ;;  %vm858_vm5 = vcmp.lt.s32.totalorder %v760_v31, 0  ;;  %6371 = vmatprep.subr.bf16.mxu0 %v6677_v44  ;;  %v1469_v30 = vrot.slane %v1467_v38, 7 }
  0x4e   : > { %v1481_v12 = vor.u32 %v1479_v52, %v1478_v8  ;;  %v1483_v46 = vrot.slane %v1478_v8, 4  ;;  %v1490_v18 = vor.u32 %v1488_v57, %v7212_v11  ;;  %vm843_vm9 = vcmp.ne.s32.totalorder %v767_v21, 0  ;;  %vm874_vm7 = vmand %vm858_vm5, %vm842_vm0 }
  0x4f   : > { %v1464_v49 = vor.u32 %v1462_v62, %v1461_v16  ;;  %v1465_v29 = vrot.slane %v1461_v16, 4  ;;  %vm859_vm6 = vcmp.lt.s32.totalorder %v767_v21, 0  ;;  %v1472_v20 = vor.u32 %v1470_v6, %v1469_v30 }
  0x50   : > { %v1474_v34 = vrot.slane %v1469_v30, 4  ;;  %v1491_v14 = vsel %vm7216_vm15, %v1483_v46, %v1490_v18  ;;  %vm875_vm3 = vmand %vm859_vm6, %vm843_vm9  ;;  %v890_v41 = vadd.s32 256, %v760_v31  ;;  %6372 = vmatpush3.bf16.msra.mxu0 %v6677_v44  ;;  %v891_v8 = vadd.s32 256, %v767_v21 }
  0x51   : > { %v1618_v52 = vmul.bf16 %v1464_v49, %v1142_v28  ;;  %v1621_v38 = vmul.bf16 %v1491_v14, %v1145_v63  ;;  %v1492_v57 = vrot.slane %v7212_v11, 4  ;;  %6389 = vmatprep.subr.bf16.mxu0 %v6679_v22  ;;  %v1473_v62 = vsel %vm7216_vm15, %v1465_v29, %v1472_v20  ;;  %v6035_v22 = vld [vmem:[%s6855_s22 + $0x38] sm:$0xff]  }
  0x52   : > { %v1482_v6 = vsel %vm7216_vm15, %v1474_v34, %v1481_v12  ;;  %v7233_v16 = vsel %vm874_vm7, %v890_v41, %v760_v31  ;;  %v374_v30 = vsel %vm7189_vm12, 1.0, %v8616_v48  ;;  %v1619_v44 = vmul.bf16 %v1473_v62, %v1143_v23 }
  0x53   : > { %8695 = vst [vmem:[#allocation13_spill] sm:$0xff] %v7233_v16  ;;  %v1620_v28 = vmul.bf16 %v1482_v6, %v7182_v17  ;;  %v7240_v46 = vsel %vm875_vm3, %v891_v8, %v767_v21  ;;  %vm922_vm1 = vcmp.ge.s32.totalorder %v7233_v16, 16  ;;  %v375_v31 = vsel %vm7203_vm2, 1.0, %v8616_v48 }
  0x54   : > { %8696 = vst [vmem:[#allocation14_spill] sm:$0xff] %v7240_v46  ;;  %vm923_vm11 = vcmp.ge.s32.totalorder %v7240_v46, 16  ;;  %v5524_v18 = vsel %vm922_vm1, 1.0, %v8616_v48  ;;  %v3077_v36 = vshrl.u32 %v7118_v55, 16  ;;  %v5600_v12 = vcombine.low %v1618_v52, %v1619_v44 }
  0x55   : > { %v5601_v49 = vcombine.low %v1620_v28, %v1621_v38  ;;  %v5525_v29 = vsel %vm923_vm11, 1.0, %v8616_v48  ;;  %v5978_v17 = vpack.c.bf16 %v375_v31, %v374_v30  ;;  %v7256_v21 = vmul.bf16 %v1201_v58, %v1145_v63  ;;  %v7270_v58 = vld [vmem:[%s7254_s25] sm:$0xff]  }
  0x56   : > { %v7258_v23 = vpack.c.bf16 %v5525_v29, %v5524_v18  ;;  %v5949_v20 = vunpack.c.l.bf16 %v6035_v22  ;;  %v5950_v56 = vunpack.c.h.bf16 %v6035_v22  ;;  %v1697_v34 = vshrl.u32 %v5600_v12, 16  ;;  %v1147_v29 = vld [vmem:[#allocation2 + $0x14] sm:$0xf] }
  0x57   : > { %v1699_v14 = vshll.u32 %v5600_v12, 16  ;;  %v1704_v55 = vshll.u32 %v5601_v49, 16  ;;  %6042 = vst [vmem:[#allocation2 + $0x30] sm:$0xff] %v5978_v17   ;;  %v7261_v41 = vor.u32 %v3077_v36, %v7144_v3  ;;  %v1708_v18 = vshrl.u32 %v5601_v49, 16  ;;  %v1146_v12 = vld [vmem:[#allocation2 + $0x10] sm:$0xf] }
  0x58   : > { %v1377_v52 = vrot.slane %v7258_v23, %v6980_v27  ;;  %v1384_v38 = vrot.slane %v7258_v23, %v6985_v33  ;;  %vm360_vm13 = vcmp.ge.f32.partialorder %v5949_v20, %v6907_v43  ;;  %vm361_vm12 = vcmp.ge.f32.partialorder %v5950_v56, %v6907_v43 }
  0x59   : > { %v1701_v63 = vrot.slane %v1699_v14, 1  ;;  %v1706_v8 = vrot.slane %v1704_v55, 1  ;;  %v376_v62 = vsel %vm360_vm13, 1.0, %v8616_v48  ;;  %v377_v6 = vsel %vm361_vm12, 1.0, %v8616_v48 }
  0x5a   : > { %v1494_v3 = vshrl.u32 %v1377_v52, 16  ;;  %v1497_v30 = vshll.u32 %v1377_v52, 16  ;;  %v1503_v44 = vshrl.u32 %v1384_v38, 16  ;;  %v1506_v28 = vshll.u32 %v1384_v38, 16 }
  0x5b   : > { %v1702_v22 = vor.u32 %v1701_v63, %v1697_v34  ;;  %v5981_v31 = vpack.c.bf16 %v377_v6, %v376_v62  ;;  %v507_v36 = vadd.s32 48, %v6836_v7  ;;  %v508_v56 = vadd.s32 56, %v6836_v7 }
  0x5c   : > { %v1496_v17 = vrot.slane %v1494_v3, 7  ;;  %v7275_v20 = vrot.slane %v1503_v44, 7  ;;  %v509_v14 = vadd.s32 64, %v6836_v7  ;;  %v510_v49 = vadd.s32 72, %v6836_v7 }
  0x5d   : > { %v1707_v55 = vsel %vm1695_vm8, %v1702_v22, %v1706_v8  ;;  %6043 = vst [vmem:[#allocation2 + $0x38] sm:$0xff] %v5981_v31   ;;  %v7281_v52 = vadd.s32 %v6841_v9, %v507_v36  ;;  %v5953_v34 = vunpack.c.l.bf16 %v7270_v58  ;;  %v7287_v44 = vadd.s32 %v6841_v9, %v508_v56  ;;  %v7301_v56 = vld [vmem:[%s7254_s25 + $0x8] sm:$0xff]  }
  0x5e   : > { %6213 = vmatprep.mubr.bf16.mxu1 %v1707_v55  ;;  %v1499_v38 = vor.u32 %v1497_v30, %v1496_v17  ;;  %v1501_v63 = vrot.slane %v1496_v17, 4  ;;  %v1508_v62 = vor.u32 %v1506_v28, %v7275_v20  ;;  %v2974_v6 = vld [vmem:[#allocation2 + $0x30] sm:$0xf]  ;;  %v2975_v3 = vld [vmem:[#allocation2 + $0x34] sm:$0xf]  ;;  %v1710_v45 = vor.u32 %v1708_v18, %v1706_v8 }
  0x5f   : > { %v5719_v22 = vcombine.low %v2974_v6, %v2975_v3  ;;  %vm576_vm2 = vcmp.lt.s32.totalorder %v7281_v52, 0  ;;  %v577_v31 = vsub.s32 0, %v7281_v52  ;;  %vm8620_vm0 = vcmp.lt.s32.totalorder %v7287_v44, 0 }
  0x60   : > { %v1500_v30 = vsel %vm7216_vm15, %v1492_v57, %v1499_v38  ;;  %v1509_v28 = vsel %vm7216_vm15, %v1501_v63, %v1508_v62  ;;  %v584_v17 = vsub.s32 0, %v7287_v44  ;;  %v7310_v57 = vadd.s32 %v6841_v9, %v509_v14 }
  0x61   : > { %v1622_v55 = vmul.bf16 %v1500_v30, %v1146_v12  ;;  %v1623_v6 = vmul.bf16 %v1509_v28, %v1147_v29  ;;  %v3081_v3 = vshll.u32 %v5719_v22, 16  ;;  %v3085_v42 = vshrl.u32 %v5719_v22, 16 }
  0x62   : > { %v7304_v36 = vmin.u32 %v577_v31, %v7281_v52  ;;  %v7307_v11 = vmin.u32 %v584_v17, %v7287_v44  ;;  %v7313_v62 = vadd.s32 %v6841_v9, %v510_v49  ;;  %v5954_v12 = vunpack.c.h.bf16 %v7270_v58  ;;  %v6724_v52 = vld [vmem:[%s8611_s2 + $0x180] sm:$0xff]  }
  0x63   : > { %v5602_v38 = vcombine.low %v1622_v55, %v1623_v6  ;;  %v3083_v63 = vrot.slane %v3081_v3, 1  ;;  %vm7319_vm5 = vcmp.ge.f32.partialorder %v5953_v34, %v6907_v43  ;;  %v5957_v14 = vunpack.c.l.bf16 %v7301_v56 }
  0x64   : > { %v2976_v29 = vld [vmem:[#allocation2 + $0x38] sm:$0xf]  ;;  %v2977_v30 = vld [vmem:[#allocation2 + $0x3c] sm:$0xf]  ;;  %v772_v8 = vand.u32 255, %v7304_v36  ;;  %v779_v18 = vand.u32 255, %v7307_v11  ;;  %v5958_v58 = vunpack.c.h.bf16 %v7301_v56  ;;  %vm7341_vm6 = vcmp.ge.f32.partialorder %v5954_v12, %v6907_v43 }
  0x65   : > { %v1712_v31 = vshll.u32 %v5602_v38, 16  ;;  %v3084_v49 = vsel %vm1695_vm8, %v7261_v41, %v3083_v63  ;;  %v7326_v28 = vcombine.low %v2976_v29, %v2977_v30  ;;  %v3087_v17 = vor.u32 %v3085_v42, %v3083_v63  ;;  %v6666_v41 = vld [vmem:[%s8611_s2 + $0x8] sm:$0xff]  }
  0x66   : > { %6349 = vmatprep.mubr.bf16.mxu0 %v3084_v49  ;;  %v773_v55 = vsub.s32 0, %v772_v8  ;;  %v780_v6 = vsub.s32 0, %v779_v18  ;;  %v1716_v3 = vshrl.u32 %v5602_v38, 16  ;;  %vm590_vm9 = vcmp.lt.s32.totalorder %v7310_v57, 0 }
  0x67   : > { %v1714_v48 = vrot.slane %v1712_v31, 1  ;;  %v3089_v34 = vshll.u32 %v7326_v28, 16  ;;  %v591_v53 = vsub.s32 0, %v7310_v57  ;;  %v598_v56 = vsub.s32 0, %v7313_v62 }
  0x68   : > { %v774_v29 = vsel %vm576_vm2, %v773_v55, %v772_v8  ;;  %v781_v42 = vsel %vm8620_vm0, %v780_v6, %v779_v18  ;;  %vm597_vm12 = vcmp.lt.s32.totalorder %v7313_v62, 0  ;;  %v8702_v55 = vmov 0.0  }
  0x69   : > { %v1715_v63 = vsel %vm1695_vm8, %v1710_v45, %v1714_v48  ;;  %v7346_v30 = vrot.slane %v3089_v34, 1  ;;  %vm844_vm7 = vcmp.ne.s32.totalorder %v774_v29, 0  ;;  %vm845_vm3 = vcmp.ne.s32.totalorder %v781_v42, 0 }
  0x6a   : > { %6214 = vmatmul.mubr.bf16.vlgmr.msra.gmra.mrb[0].mxu1 %v1715_v63  ;;  %vm860_vm1 = vcmp.lt.s32.totalorder %v774_v29, 0  ;;  %vm861_vm11 = vcmp.lt.s32.totalorder %v781_v42, 0  ;;  %v892_v8 = vadd.s32 256, %v774_v29  ;;  %v893_v31 = vadd.s32 256, %v781_v42 }
  0x6b   : > { %6230 = vmatpush3.bf16.msra.mxu1 %v6970_v24  ;;  %v3092_v18 = vsel %vm1695_vm8, %v3087_v17, %v7346_v30  ;;  %vm876_vm13 = vmand %vm860_vm1, %vm844_vm7  ;;  %v7352_v12 = vmin.u32 %v591_v53, %v7310_v57  ;;  %v7356_v45 = vmin.u32 %v598_v56, %v7313_v62  ;;  %v6670_v24 = vld [vmem:[%s8611_s2 + $0x10] sm:$0xff]   ;;  %v396_v17 = vsel %vm7319_vm5, 1.0, %v8702_v55  ;;  %v6726_v62 = vld [vmem:[#allocation2 + $0x24] sm:$0xf] }
  0x6c   : > { %6231 = vmatprep.subr.bf16.mxu1 %v6666_v41  ;;  %6350 = vmatmul.mubr.bf16.gmra.mrb[8].mxu0 %v3092_v18  ;;  %vm877_vm0 = vmand %vm861_vm11, %vm845_vm3  ;;  %v7358_v49 = vsel %vm876_vm13, %v892_v8, %v774_v29  ;;  %v397_v53 = vsel %vm7341_vm6, 1.0, %v8702_v55  ;;  %v3093_v6 = vshrl.u32 %v7326_v28, 16  ;;  %v7377_v22 = vor.u32 %v1716_v3, %v1714_v48 }
  0x6d   : > { %8701 = vst [vmem:[#allocation15_spill] sm:$0xff] %v7358_v49  ;;  %v7370_v34 = vsel %vm877_vm0, %v893_v31, %v781_v42  ;;  %vm924_vm7 = vcmp.ge.s32.totalorder %v7358_v49, 16  ;;  %v786_v29 = vand.u32 255, %v7352_v12  ;;  %v793_v56 = vand.u32 255, %v7356_v45  ;;  %v6672_v42 = vld [vmem:[%s8611_s2 + $0x18] sm:$0xff]  }
  0x6e   : > { %8703 = vst [vmem:[#allocation16_spill] sm:$0xff] %v7370_v34  ;;  %vm925_vm3 = vcmp.ge.s32.totalorder %v7370_v34, 16  ;;  %v5526_v63 = vsel %vm924_vm7, 1.0, %v8702_v55  ;;  %v5984_v8 = vpack.c.bf16 %v397_v53, %v396_v17  ;;  %vm393_vm0 = vcmp.ge.f32.partialorder %v5957_v14, %v6907_v43 }
  0x6f   : > { %6232 = vmatpush3.bf16.msra.mxu1 %v6666_v41  ;;  %v5527_v38 = vsel %vm925_vm3, 1.0, %v8702_v55  ;;  %v787_v18 = vsub.s32 0, %v786_v29  ;;  %v794_v28 = vsub.s32 0, %v793_v56  ;;  %vm394_vm5 = vcmp.ge.f32.partialorder %v5958_v58, %v6907_v43 }
  0x70   : > { %v7384_v31 = vpack.c.bf16 %v5527_v38, %v5526_v63  ;;  %6233 = vmatprep.subr.bf16.mxu1 %v6670_v24  ;;  %6044 = vst [vmem:[#allocation2 + $0x40] sm:$0xff] %v5984_v8   ;;  %v398_v48 = vsel %vm393_vm0, 1.0, %v8702_v55  ;;  %v511_v3 = vadd.s32 80, %v6836_v7  ;;  %v399_v53 = vsel %vm394_vm5, 1.0, %v8702_v55 }
  0x71   : > { %v788_v41 = vsel %vm590_vm9, %v787_v18, %v786_v29  ;;  %v795_v17 = vsel %vm597_vm12, %v794_v28, %v793_v56  ;;  %v512_v14 = vadd.s32 88, %v6836_v7  ;;  %v6676_v29 = vld [vmem:[%s8611_s2 + $0x20] sm:$0xff]   ;;  %v3095_v34 = vor.u32 %v3093_v6, %v7346_v30 }
  0x72   : > { %v1391_v63 = vrot.slane %v7384_v31, %v6980_v27  ;;  %v1398_v58 = vrot.slane %v7384_v31, %v6985_v33  ;;  %vm846_vm6 = vcmp.ne.s32.totalorder %v788_v41, 0  ;;  %vm847_vm1 = vcmp.ne.s32.totalorder %v795_v17, 0 }
  0x73   : > { %vm862_vm11 = vcmp.lt.s32.totalorder %v788_v41, 0  ;;  %vm863_vm13 = vcmp.lt.s32.totalorder %v795_v17, 0  ;;  %v894_v8 = vadd.s32 256, %v788_v41  ;;  %v895_v38 = vadd.s32 256, %v795_v17  ;;  %6234 = vmatpush3.bf16.msra.mxu1 %v6670_v24  ;;  %v7408_v24 = vld [vmem:[#allocation2 + $0x18] sm:$0xf] }
  0x74   : > { %v1512_v56 = vshrl.u32 %v1391_v63, 16  ;;  %v1515_v18 = vshll.u32 %v1391_v63, 16  ;;  %v1521_v28 = vshrl.u32 %v1398_v58, 16  ;;  %v1524_v43 = vshll.u32 %v1398_v58, 16  ;;  %vm878_vm7 = vmand %vm862_vm11, %vm846_vm6  ;;  %6235 = vmatprep.subr.bf16.mxu1 %v6672_v42 }
  0x75   : > { %vm879_vm3 = vmand %vm863_vm13, %vm847_vm1  ;;  %v7402_v25 = vsel %vm878_vm7, %v894_v8, %v788_v41  ;;  %v5987_v49 = vpack.c.bf16 %v399_v53, %v398_v48  ;;  %v7406_v46 = vadd.s32 %v6841_v9, %v511_v3  ;;  %v7418_v6 = vadd.s32 %v6841_v9, %v512_v14  ;;  %v7428_v53 = vld [vmem:[#allocation2 + $0x1c] sm:$0xf] }
  0x76   : > { %8704 = vst [vmem:[#allocation17_spill] sm:$0xff] %v7402_v25  ;;  %v1514_v16 = vrot.slane %v1512_v56, 7  ;;  %v7410_v47 = vrot.slane %v1521_v28, 7  ;;  %v7412_v61 = vsel %vm879_vm3, %v895_v38, %v795_v17  ;;  %vm926_vm0 = vcmp.ge.s32.totalorder %v7402_v25, 16 }
  0x77   : > { %8705 = vst [vmem:[#allocation18_spill] sm:$0xff] %v7412_v61  ;;  %vm927_vm5 = vcmp.ge.s32.totalorder %v7412_v61, 16  ;;  %v5528_v41 = vsel %vm926_vm0, 1.0, %v8702_v55  ;;  %6236 = vmatpush3.bf16.msra.mxu1 %v6672_v42  ;;  %v2978_v63 = vld [vmem:[#allocation2 + $0x40] sm:$0xf]  ;;  %6045 = vst [vmem:[#allocation2 + $0x48] sm:$0xff] %v5987_v49   ;;  %v8706_v48 = vmul.bf16 %v7047_v40, %v7004_v54  ;;  %v8707_v3 = vmul.bf16 %v7038_v35, %v6999_v51 }
  0x78   : > { %v2979_v30 = vld [vmem:[#allocation2 + $0x44] sm:$0xf]  ;;  %v1517_v58 = vor.u32 %v1515_v18, %v1514_v16  ;;  %v1519_v8 = vrot.slane %v1514_v16, 4  ;;  %v1526_v42 = vor.u32 %v1524_v43, %v7410_v47  ;;  %v5529_v38 = vsel %vm927_vm5, 1.0, %v8702_v55  ;;  %6237 = vmatprep.subr.bf16.mxu1 %v6676_v29  ;;  %v6678_v49 = vld [vmem:[%s8611_s2 + $0x28] sm:$0xff]  }
  0x79   : > { %v7426_v17 = vcombine.low %v8707_v3, %v8706_v48  ;;  %v7435_v14 = vpack.c.bf16 %v5529_v38, %v5528_v41  ;;  %v1528_v54 = vrot.slane %v7410_v47, 4  ;;  %v5721_v51 = vcombine.low %v2978_v63, %v2979_v30  ;;  %v6680_v3 = vld [vmem:[%s8611_s2 + $0x30] sm:$0xff]  }
  0x7a   : > { %v8708_v40 = vrot.slane %v7275_v20, 4  ;;  %v1527_v16 = vsel %vm7216_vm15, %v1519_v8, %v1526_v42  ;;  %vm8638_vm6 = vcmp.lt.s32.totalorder %v7406_v46, 0  ;;  %v605_v56 = vsub.s32 0, %v7406_v46 }
  0x7b   : > { %v1625_v47 = vmul.bf16 %v1527_v16, %v7428_v53  ;;  %v1405_v28 = vrot.slane %v7435_v14, %v6980_v27  ;;  %v1412_v20 = vrot.slane %v7435_v14, %v6985_v33  ;;  %6238 = vmatpush3.bf16.msra.mxu1 %v6676_v29  ;;  %v3097_v41 = vshll.u32 %v5721_v51, 16 }
  0x7c   : > { %v1518_v43 = vsel %vm7216_vm15, %v8708_v40, %v1517_v58  ;;  %v3101_v63 = vshrl.u32 %v5721_v51, 16  ;;  %v7455_v30 = vmin.u32 %v605_v56, %v7406_v46  ;;  %v612_v48 = vsub.s32 0, %v7418_v6  ;;  %6239 = vmatprep.subr.bf16.mxu1 %v6678_v49 }
  0x7d   : > { %v1624_v18 = vmul.bf16 %v1518_v43, %v7408_v24  ;;  %v1530_v8 = vshrl.u32 %v1405_v28, 16  ;;  %v1533_v42 = vshll.u32 %v1405_v28, 16  ;;  %v1539_v38 = vshrl.u32 %v1412_v20, 16  ;;  %v6682_v28 = vld [vmem:[%s8611_s2 + $0x38] sm:$0xff]  }
  0x7e   : > { %v1542_v40 = vshll.u32 %v1412_v20, 16  ;;  %v3099_v43 = vrot.slane %v3097_v41, 1  ;;  %v2980_v16 = vld [vmem:[#allocation2 + $0x48] sm:$0x1]  ;;  %v7462_v29 = vmin.u32 %v612_v48, %v7418_v6  ;;  %v800_v51 = vand.u32 255, %v7455_v30 }
  0x7f   : > { %v5603_v58 = vcombine.low %v1624_v18, %v1625_v47  ;;  %v1532_v35 = vrot.slane %v1530_v8, 7  ;;  %v7465_v61 = vrot.slane %v1539_v38, 7  ;;  %6240 = vmatpush3.bf16.msra.mxu1 %v6678_v49  ;;  %v5722_v18 = vcombine.low %v2980_v16, %v2980_v16  ;;  %v7472_v41 = vld [vmem:[#allocation2 + $0x20] sm:$0xf]  ;;  %v7474_v48 = vld [vmem:[#allocation2 + $0x24] sm:$0xf] }
  0x80   : > { %v3100_v59 = vsel %vm1695_vm8, %v3095_v34, %v3099_v43  ;;  %vm8641_vm1 = vcmp.lt.s32.totalorder %v7418_v6, 0  ;;  %v801_v47 = vsub.s32 0, %v800_v51  ;;  %6241 = vmatprep.subr.bf16.mxu1 %v6680_v3  ;;  %8709 = vst [vmem:[#allocation19_spill] sm:$0xff] %v7472_v41  ;;  %8710 = vst [vmem:[#allocation20_spill] sm:$0xff] %v7474_v48  ;;  %v3103_v34 = vor.u32 %v3101_v63, %v3099_v43 }
  0x81   : > { %v1720_v56 = vshll.u32 %v5603_v58, 16  ;;  %v1724_v25 = vshrl.u32 %v5603_v58, 16  ;;  %v1535_v8 = vor.u32 %v1533_v42, %v1532_v35  ;;  %v1537_v38 = vrot.slane %v1532_v35, 4  ;;  %6353 = vmatprep.mubr.bf16.mxu0 %v3100_v59 }
  0x82   : > { %v1544_v49 = vor.u32 %v1542_v40, %v7465_v61  ;;  %v3105_v58 = vshll.u32 %v5722_v18, 16  ;;  %v802_v16 = vsel %vm8638_vm6, %v801_v47, %v800_v51  ;;  %v807_v4 = vand.u32 255, %v7462_v29 }
  0x83   : > { %v1722_v20 = vrot.slane %v1720_v56, 1  ;;  %v1536_v56 = vsel %vm7216_vm15, %v1528_v54, %v1535_v8  ;;  %6242 = vmatpush3.bf16.msra.mxu1 %v6680_v3  ;;  %vm848_vm11 = vcmp.ne.s32.totalorder %v802_v16, 0  ;;  %vm864_vm13 = vcmp.lt.s32.totalorder %v802_v16, 0 }
  0x84   : > { %v1545_v42 = vsel %vm7216_vm15, %v1537_v38, %v1544_v49  ;;  %v1626_v59 = vmul.bf16 %v1536_v56, %v7472_v41  ;;  %v3107_v40 = vrot.slane %v3105_v58, 1  ;;  %v808_v43 = vsub.s32 0, %v807_v4  ;;  %6243 = vmatprep.subr.bf16.mxu1 %v6682_v28  ;;  %vm880_vm7 = vmand %vm864_vm13, %vm848_vm11 }
  0x85   : > { %v1723_v1 = vsel %vm1695_vm8, %v7377_v22, %v1722_v20  ;;  %v1726_v35 = vor.u32 %v1724_v25, %v1722_v20  ;;  %v1627_v63 = vmul.bf16 %v1545_v42, %v7474_v48  ;;  %v7491_v22 = vld [vmem:[%s8611_s2 + $0x80] sm:$0xff]   ;;  %v896_v54 = vadd.s32 256, %v802_v16 }
  0x86   : > { %6217 = vmatprep.mubr.bf16.mxu1 %v1723_v1  ;;  %v513_v51 = vadd.s32 96, %v6836_v7  ;;  %v3108_v1 = vsel %vm1695_vm8, %v3103_v34, %v3107_v40  ;;  %v809_v3 = vsel %vm8641_vm1, %v808_v43, %v807_v4  ;;  %v514_v18 = vadd.s32 104, %v6836_v7 }
  0x87   : > { %v5604_v25 = vcombine.low %v1626_v59, %v1627_v63  ;;  %6354 = vmatmul.mubr.bf16.gmra.mrb[12].mxu0 %v3108_v1  ;;  %vm849_vm3 = vcmp.ne.s32.totalorder %v809_v3, 0  ;;  %vm865_vm0 = vcmp.lt.s32.totalorder %v809_v3, 0  ;;  %v897_v47 = vadd.s32 256, %v809_v3  ;;  %6244 = vmatpush3.bf16.msra.mxu1 %v6682_v28 }
  0x88   : > { %v7498_v20 = vsel %vm880_vm7, %v896_v54, %v802_v16  ;;  %vm881_vm5 = vmand %vm865_vm0, %vm849_vm3  ;;  %v7502_v49 = vadd.s32 %v6841_v9, %v513_v51  ;;  %6261 = vmatprep.subr.bf16.mxu1 %v7491_v22  ;;  %v7509_v58 = vadd.s32 %v6841_v9, %v514_v18  ;;  %v538_v16 = vand.u32 15, %v7078_v0 }
  0x89   : > { %8711 = vst [vmem:[#allocation21_spill] sm:$0xff] %v7498_v20  ;;  %v1728_v8 = vshll.u32 %v5604_v25, 16  ;;  %vm928_vm6 = vcmp.ge.s32.totalorder %v7498_v20, 16  ;;  %v1732_v38 = vshrl.u32 %v5604_v25, 16  ;;  %v7505_v4 = vsel %vm881_vm5, %v897_v47, %v809_v3  ;;  %v7550_v20 = vld [vmem:[#allocation2 + $0x28] sm:$0xf] }
  0x8a   : > { %8712 = vst [vmem:[#allocation22_spill] sm:$0xff] %v7505_v4  ;;  %v5530_v34 = vsel %vm928_vm6, 1.0, %v8702_v55  ;;  %vm929_vm11 = vcmp.ge.s32.totalorder %v7505_v4, 16  ;;  %v1546_v56 = vrot.slane %v7465_v61, 4  ;;  %v619_v42 = vsub.s32 0, %v7502_v49  ;;  %8713 = vst [vmem:[#allocation23_spill] sm:$0xff] %v7550_v20 }
  0x8b   : > { %v1730_v28 = vrot.slane %v1728_v8, 1  ;;  %v5531_v59 = vsel %vm929_vm11, 1.0, %v8702_v55  ;;  %vm8643_vm13 = vcmp.lt.s32.totalorder %v7502_v49, 0  ;;  %v626_v63 = vsub.s32 0, %v7509_v58 }
  0x8c   : > { %v539_v40 = vsub.s32 0, %v538_v16  ;;  %v7519_v54 = vpack.c.bf16 %v5531_v59, %v5530_v34  ;;  %v7522_v0 = vmin.u32 %v619_v42, %v7502_v49  ;;  %vm8642_vm6 = vcmp.lt.s32.totalorder %v7509_v58, 0 }
  0x8d   : > { %v1731_v43 = vsel %vm1695_vm8, %v1726_v35, %v1730_v28  ;;  %v7525_v61 = vor.u32 %v1732_v38, %v1730_v28  ;;  %v7528_v51 = vmin.u32 %v626_v63, %v7509_v58  ;;  %v545_v1 = vand.u32 15, %v7095_v19 }
  0x8e   : > { %6218 = vmatmul.mubr.bf16.gmra.mrb[4].mxu1 %v1731_v43  ;;  %v540_v25 = vsel %vm534_vm14, %v539_v40, %v538_v16  ;;  %v1419_v35 = vrot.slane %v7519_v54, %v6980_v27  ;;  %v1426_v3 = vrot.slane %v7519_v54, %v6985_v33  ;;  %v814_v18 = vand.u32 255, %v7522_v0 }
  0x8f   : > { %vm646_vm7 = vcmp.ne.s32.totalorder %v540_v25, 0  ;;  %v821_v47 = vand.u32 255, %v7528_v51  ;;  %v546_v8 = vsub.s32 0, %v545_v1  ;;  %vm662_vm3 = vcmp.lt.s32.totalorder %v540_v25, 0 }
  0x90   : > { %v694_v38 = vadd.s32 16, %v540_v25  ;;  %v1548_v34 = vshrl.u32 %v1419_v35, 16  ;;  %v1551_v28 = vshll.u32 %v1419_v35, 16  ;;  %v1557_v37 = vshrl.u32 %v1426_v3, 16  ;;  %vm678_vm14 = vmand %vm662_vm3, %vm646_vm7 }
  0x91   : > { %v1560_v16 = vshll.u32 %v1426_v3, 16  ;;  %v815_v19 = vsub.s32 0, %v814_v18  ;;  %v822_v42 = vsub.s32 0, %v821_v47  ;;  %v547_v59 = vsel %vm541_vm4, %v546_v8, %v545_v1 }
  0x92   : > { %v7541_v63 = vsel %vm678_vm14, %v694_v38, %v540_v25  ;;  %v1550_v40 = vrot.slane %v1548_v34, 7  ;;  %v7543_v43 = vrot.slane %v1557_v37, 7  ;;  %vm647_vm0 = vcmp.ne.s32.totalorder %v547_v59, 0 }
  0x93   : > { %vm663_vm5 = vcmp.lt.s32.totalorder %v547_v59, 0  ;;  %v816_v4 = vsel %vm8643_vm13, %v815_v19, %v814_v18  ;;  %v823_v35 = vsel %vm8642_vm6, %v822_v42, %v821_v47  ;;  %v695_v3 = vadd.s32 16, %v547_v59 }
  0x94   : > { %vm1086_vm11 = vcmp.lt.s32.totalorder %v7541_v63, 15  ;;  %v1553_v25 = vor.u32 %v1551_v28, %v1550_v40  ;;  %v1555_v1 = vrot.slane %v1550_v40, 4  ;;  %v1562_v8 = vor.u32 %v1560_v16, %v7543_v43  ;;  %vm679_vm7 = vmand %vm663_vm5, %vm647_vm0 }
  0x95   : > { %vm850_vm4 = vcmp.ne.s32.totalorder %v816_v4, 0  ;;  %vm851_vm3 = vcmp.ne.s32.totalorder %v823_v35, 0  ;;  %vm866_vm14 = vcmp.lt.s32.totalorder %v816_v4, 0  ;;  %vm867_vm1 = vcmp.lt.s32.totalorder %v823_v35, 0 }
  0x96   : > { %v898_v18 = vadd.s32 256, %v816_v4  ;;  %v1554_v47 = vsel %vm7216_vm15, %v1546_v56, %v1553_v25  ;;  %v1563_v38 = vsel %vm7216_vm15, %v1555_v1, %v1562_v8  ;;  %vm882_vm6 = vmand %vm866_vm14, %vm850_vm4  ;;  %v899_v34 = vadd.s32 256, %v823_v35 }
  0x97   : > { %v1628_v28 = vmul.bf16 %v1554_v47, %v7550_v20  ;;  %v1629_v16 = vmul.bf16 %v1563_v38, %v7552_v60  ;;  %vm883_vm13 = vmand %vm867_vm1, %vm851_vm3  ;;  %v7564_v42 = vsel %vm679_vm7, %v695_v3, %v547_v59  ;;  %v5568_v56 = vsel %vm1086_vm11, 1.0, %v8702_v55 }
  0x98   : > { %v7562_v19 = vsel %vm882_vm6, %v898_v18, %v816_v4  ;;  %v7566_v40 = vsel %vm883_vm13, %v899_v34, %v823_v35  ;;  %vm1087_vm5 = vcmp.lt.s32.totalorder %v7564_v42, 15  ;;  %v8718_v35 = vrot.slane %v6997_v50, %v6980_v27 }
  0x99   : > { %8715 = vst [vmem:[#allocation25_spill] sm:$0xff] %v7562_v19  ;;  %8716 = vst [vmem:[#allocation26_spill] sm:$0xff] %v7566_v40  ;;  %vm930_vm0 = vcmp.ge.s32.totalorder %v7562_v19, 16  ;;  %v5605_v25 = vcombine.low %v1628_v28, %v1629_v16  ;;  %vm931_vm4 = vcmp.ge.s32.totalorder %v7566_v40, 16  ;;  %v5569_v4 = vsel %vm1087_vm5, 1.0, %v8702_v55 }
  0x9a   : > { %v5532_v1 = vsel %vm930_vm0, 1.0, %v8702_v55  ;;  %v5533_v59 = vsel %vm931_vm4, 1.0, %v8702_v55  ;;  %v7577_v3 = vpack.c.bf16 %v5569_v4, %v5568_v56  ;;  %v3404_v8 = vrot.slane %v8718_v35, 7 }
  0x9b   : > { %v1736_v47 = vshll.u32 %v5605_v25, 16  ;;  %v7583_v38 = vpack.c.bf16 %v5533_v59, %v5532_v1  ;;  %v1740_v34 = vshrl.u32 %v5605_v25, 16  ;;  %v515_v28 = vadd.s32 112, %v6836_v7  ;;  %v3278_v59 = vld [vmem:[#allocation2 + $0x8] sm:$0xe] }
  0x9c   : > { %8717 = vst [vmem:[#allocation27_spill] sm:$0xff] %v7577_v3  ;;  %v3293_v16 = vrot.slane %v7577_v3, %v6980_v27  ;;  %v3300_v37 = vrot.slane %v7577_v3, %v6985_v33  ;;  %v3406_v56 = vrot.slane %v3404_v8, 4  ;;  %v516_v4 = vadd.s32 120, %v6836_v7 }
  0x9d   : > { %8719 = vst [vmem:[#allocation28_spill] sm:$0xff] %v7583_v38  ;;  %v1738_v40 = vrot.slane %v1736_v47, 1  ;;  %v1433_v35 = vrot.slane %v7583_v38, %v6980_v27  ;;  %v1440_v1 = vrot.slane %v7583_v38, %v6985_v33  ;;  %v7596_v25 = vadd.s32 %v6841_v9, %v515_v28 }
  0x9e   : > { %v3399_v18 = vrot.slane %v3293_v16, 7  ;;  %v3401_v19 = vrot.slane %v3300_v37, 7  ;;  %v3408_v50 = vsel %vm7024_vm10, %v3406_v56, %v7018_v2  ;;  %v7602_v3 = vadd.s32 %v6841_v9, %v516_v4  ;;  %v6721_v56 = vld [vmem:[#allocation2 + $0x14] sm:$0xf] }
  0x9f   : > { %v1739_v7 = vsel %vm1695_vm8, %v7525_v61, %v1738_v40  ;;  %v1566_v47 = vshrl.u32 %v1433_v35, 16  ;;  %v1569_v60 = vshll.u32 %v1433_v35, 16  ;;  %v1575_v20 = vshrl.u32 %v1440_v1, 16 }
  0xa0   : > { %vm2383_vm1 = vcmask 1046528   ;;  %6221 = vmatprep.mubr.bf16.mxu1 %v1739_v7  ;;  %v1578_v28 = vshll.u32 %v1440_v1, 16  ;;  %v7606_v38 = vor.u32 %v1740_v34, %v1738_v40  ;;  %v3400_v16 = vrot.slane %v3399_v18, 4  ;;  %v7616_v40 = vld [vmem:[#allocation2 + $0x30] sm:$0xf] }
  0xa1   : > { %v3403_v37 = vrot.slane %v3401_v19, 4  ;;  %v1568_v48 = vrot.slane %v1566_v47, 7  ;;  %v7608_v41 = vrot.slane %v1575_v20, 7  ;;  %v3463_v2 = vmul.bf16 %v3399_v18, %v3278_v59  ;;  %8720 = vst [vmem:[#allocation29_spill] sm:$0xff] %v7616_v40  ;;  %v7618_v34 = vld [vmem:[#allocation2 + $0x34] sm:$0xf] }
  0xa2   : > { %v3466_v9 = vmul.bf16 %v6721_v56, %v3408_v50  ;;  %v3402_v4 = vsel %vm7024_vm10, %v3400_v16, %v3401_v19  ;;  %vm8658_vm13 = vcmp.lt.s32.totalorder %v7596_v25, 0  ;;  %v633_v35 = vsub.s32 0, %v7596_v25  ;;  %8721 = vst [vmem:[#allocation30_spill] sm:$0xff] %v7618_v34  ;;  %v6722_v59 = vld [vmem:[#allocation2 + $0xc] sm:$0xf] }
  0xa3   : > { %v3405_v61 = vsel %vm7024_vm10, %v3403_v37, %v3404_v8  ;;  %v1571_v1 = vor.u32 %v1569_v60, %v1568_v48  ;;  %v1573_v20 = vrot.slane %v1568_v48, 4  ;;  %v1580_v18 = vor.u32 %v1578_v28, %v7608_v41  ;;  %v6723_v7 = vld [vmem:[#allocation2 + $0x10] sm:$0xf] }
  0xa4   : > { %v3464_v50 = vmul.bf16 %v6722_v59, %v3402_v4  ;;  %v3465_v47 = vmul.bf16 %v6723_v7, %v3405_v61  ;;  %v7622_v19 = vmin.u32 %v633_v35, %v7596_v25  ;;  %vm8657_vm6 = vcmp.lt.s32.totalorder %v7602_v3, 0 }
  0xa5   : > { %v640_v8 = vsub.s32 0, %v7602_v3  ;;  %v8722_v16 = vrot.slane %v7543_v43, 4  ;;  %v1581_v48 = vsel %vm7216_vm15, %v1573_v20, %v1580_v18  ;;  %v580_v7 = vand.u32 15, %v7304_v36 }
  0xa6   : > { %v5747_v60 = vcombine.low %v3463_v2, %v3464_v50  ;;  %v1631_v4 = vmul.bf16 %v1581_v48, %v7618_v34  ;;  %v5748_v61 = vcombine.low %v3465_v47, %v3466_v9  ;;  %v828_v43 = vand.u32 255, %v7622_v19 }
  0xa7   : > { %v1572_v37 = vsel %vm7216_vm15, %v8722_v16, %v1571_v1  ;;  %v7636_v35 = vmin.u32 %v640_v8, %v7602_v3  ;;  %v587_v1 = vand.u32 15, %v7307_v11  ;;  %v594_v9 = vand.u32 15, %v7352_v12  ;;  %v6681_v11 = vld [vmem:[%s8611_s2 + $0x188] sm:$0xff]  }
  0xa8   : > { %v1630_v56 = vmul.bf16 %v1572_v37, %v7616_v40  ;;  %v3540_v59 = vrot.slane %v5747_v60, 1  ;;  %v3541_v20 = vrot.slane %v5748_v61, 1  ;;  %v829_v50 = vsub.s32 0, %v828_v43 }
  0xa9   : > { %v835_v2 = vand.u32 255, %v7636_v35  ;;  %v581_v37 = vsub.s32 0, %v580_v7  ;;  %v588_v48 = vsub.s32 0, %v587_v1  ;;  %v8723_v60 = vrot.slane %v7426_v17, 1 }
  0xaa   : > { %v5606_v16 = vcombine.low %v1630_v56, %v1631_v4  ;;  %v3542_v8 = vsel %vm2383_vm1, %v3540_v59, %v3541_v20  ;;  %v830_v56 = vsel %vm8658_vm13, %v829_v50, %v828_v43  ;;  %vm8724_vm11 = vcmp.lt.s32.totalorder %v7287_v44, 0 }
  0xab   : > { %v3544_v36 = vsel %vm2383_vm1, %v3541_v20, %v8723_v60  ;;  %v836_v28 = vsub.s32 0, %v835_v2  ;;  %6373 = vmatprep.mubr.bf16.mxu0 %v3542_v8  ;;  %v582_v12 = vsel %vm576_vm2, %v581_v37, %v580_v7  ;;  %v589_v61 = vsel %vm8724_vm11, %v588_v48, %v587_v1 }
  0xac   : > { %v1744_v47 = vshll.u32 %v5606_v16, 16  ;;  %v1748_v4 = vshrl.u32 %v5606_v16, 16  ;;  %6374 = vmatmul.mubr.bf16.vlgmr.msra.gmra.mrb[0].mxu0 %v3544_v36  ;;  %vm852_vm7 = vcmp.ne.s32.totalorder %v830_v56, 0  ;;  %vm868_vm3 = vcmp.lt.s32.totalorder %v830_v56, 0 }
  0xad   : > { %v837_v20 = vsel %vm8657_vm6, %v836_v28, %v835_v2  ;;  %vm884_vm5 = vmand %vm868_vm3, %vm852_vm7  ;;  %v900_v8 = vadd.s32 256, %v830_v56  ;;  %6390 = vmatpush3.bf16.msra.mxu0 %v6724_v52  ;;  %vm652_vm4 = vcmp.ne.s32.totalorder %v582_v12, 0  ;;  %vm653_vm11 = vcmp.ne.s32.totalorder %v589_v61, 0  ;;  %v6683_v28 = vld [vmem:[%s8611_s2 + $0x190] sm:$0xff]  }
  0xae   : > { %v1746_v59 = vrot.slane %v1744_v47, 1  ;;  %vm853_vm14 = vcmp.ne.s32.totalorder %v837_v20, 0  ;;  %vm869_vm0 = vcmp.lt.s32.totalorder %v837_v20, 0  ;;  %v901_v60 = vadd.s32 256, %v837_v20  ;;  %6391 = vmatprep.subr.bf16.mxu0 %v6681_v11 }
  0xaf   : > { %vm885_vm2 = vmand %vm869_vm0, %vm853_vm14  ;;  %v7669_v7 = vsel %vm884_vm5, %v900_v8, %v830_v56  ;;  %vm668_vm7 = vcmp.lt.s32.totalorder %v582_v12, 0  ;;  %vm669_vm3 = vcmp.lt.s32.totalorder %v589_v61, 0  ;;  %v701_v16 = vadd.s32 16, %v589_v61 }
  0xb0   : > { %v1747_v44 = vsel %vm1695_vm8, %v7606_v38, %v1746_v59  ;;  %v7664_v43 = vor.u32 %v1748_v4, %v1746_v59  ;;  %8725 = vst [vmem:[#allocation31_spill] sm:$0xff] %v7669_v7  ;;  %v7671_v1 = vsel %vm885_vm2, %v901_v60, %v837_v20  ;;  %vm932_vm6 = vcmp.ge.s32.totalorder %v7669_v7, 16  ;;  %vm684_vm0 = vmand %vm668_vm7, %vm652_vm4  ;;  %v6685_v4 = vld [vmem:[%s8611_s2 + $0x198] sm:$0xff]  }
  0xb1   : > { %6222 = vmatmul.mubr.bf16.gmra.mrb[8].mxu1 %v1747_v44  ;;  %8726 = vst [vmem:[#allocation32_spill] sm:$0xff] %v7671_v1  ;;  %vm933_vm14 = vcmp.ge.s32.totalorder %v7671_v1, 16  ;;  %v700_v38 = vadd.s32 16, %v582_v12  ;;  %v5534_v2 = vsel %vm932_vm6, 1.0, %v8702_v55  ;;  %6392 = vmatpush3.bf16.msra.mxu0 %v6681_v11  ;;  %vm685_vm13 = vmand %vm669_vm3, %vm653_vm11  ;;  %v595_v37 = vsub.s32 0, %v594_v9 }
  0xb2   : > { %v5535_v50 = vsel %vm933_vm14, 1.0, %v8702_v55  ;;  %v601_v48 = vand.u32 15, %v7356_v45  ;;  %v7683_v56 = vsel %vm685_vm13, %v701_v16, %v589_v61  ;;  %6393 = vmatprep.subr.bf16.mxu0 %v6683_v28  ;;  %vm1030_vm5 = vcmp.ge.s32.totalorder %v7541_v63, 1  ;;  %v7726_v1 = vld [vmem:[#allocation2 + $0x3c] sm:$0xf] }
  0xb3   : > { %v7679_v47 = vpack.c.bf16 %v5535_v50, %v5534_v2  ;;  %v7681_v36 = vsel %vm684_vm0, %v700_v38, %v582_v12  ;;  %vm1093_vm2 = vcmp.lt.s32.totalorder %v7683_v56, 15  ;;  %v596_v45 = vsel %vm590_vm9, %v595_v37, %v594_v9  ;;  %v6687_v38 = vld [vmem:[%s8611_s2 + $0x1a0] sm:$0xff]  }
  0xb4   : > { %vm1092_vm6 = vcmp.lt.s32.totalorder %v7681_v36, 15  ;;  %v602_v11 = vsub.s32 0, %v601_v48  ;;  %v5575_v20 = vsel %vm1093_vm2, 1.0, %v8702_v55  ;;  %vm654_vm13 = vcmp.ne.s32.totalorder %v596_v45, 0 }
  0xb5   : > { %v1447_v12 = vrot.slane %v7679_v47, %v6980_v27  ;;  %v1454_v61 = vrot.slane %v7679_v47, %v6985_v33  ;;  %v5574_v59 = vsel %vm1092_vm6, 1.0, %v8702_v55  ;;  %vm670_vm4 = vcmp.lt.s32.totalorder %v596_v45, 0  ;;  %6394 = vmatpush3.bf16.msra.mxu0 %v6683_v28  ;;  %v7714_v28 = vld [vmem:[#allocation2 + $0x38] sm:$0xf] }
  0xb6   : > { %v7699_v8 = vpack.c.bf16 %v5575_v20, %v5574_v59  ;;  %v603_v60 = vsel %vm597_vm12, %v602_v11, %v601_v48  ;;  %6395 = vmatprep.subr.bf16.mxu0 %v6685_v4  ;;  %vm7710_vm11 = vmand %vm670_vm4, %vm654_vm13  ;;  %v702_v11 = vadd.s32 16, %v596_v45  ;;  %vm1031_vm3 = vcmp.ge.s32.totalorder %v7564_v42, 1 }
  0xb7   : > { %v1584_v57 = vshrl.u32 %v1447_v12, 16  ;;  %v1587_v9 = vshll.u32 %v1447_v12, 16  ;;  %v1593_v52 = vshrl.u32 %v1454_v61, 16  ;;  %v1596_v44 = vshll.u32 %v1454_v61, 16  ;;  %v1334_v61 = vld [vmem:[#allocation2 + $0x40] sm:$0x1] }
  0xb8   : > { %8727 = vst [vmem:[#allocation33_spill] sm:$0xff] %v7699_v8  ;;  %v3335_v16 = vrot.slane %v7699_v8, %v6980_v27  ;;  %v3342_v2 = vrot.slane %v7699_v8, %v6985_v33  ;;  %vm655_vm9 = vcmp.ne.s32.totalorder %v603_v60, 0  ;;  %vm671_vm12 = vcmp.lt.s32.totalorder %v603_v60, 0 }
  0xb9   : > { %v1586_v50 = vrot.slane %v1584_v57, 7  ;;  %v1595_v37 = vrot.slane %v1593_v52, 7  ;;  %vm7716_vm7 = vmand %vm671_vm12, %vm655_vm9  ;;  %v703_v12 = vadd.s32 16, %v603_v60  ;;  %v5552_v18 = vsel %vm1030_vm5, 1.0, %v8702_v55  ;;  %6396 = vmatpush3.bf16.msra.mxu0 %v6685_v4 }
  0xba   : > { %v3416_v59 = vrot.slane %v3335_v16, 7  ;;  %v7720_v20 = vrot.slane %v3342_v2, 7  ;;  %6397 = vmatprep.subr.bf16.mxu0 %v6687_v38  ;;  %v6689_v16 = vld [vmem:[%s8611_s2 + $0x1a8] sm:$0xff]   ;;  %v8732_v2 = vrot.slane %v7028_v10, 4  ;;  %v7737_v63 = vsel %vm7710_vm11, %v702_v11, %v596_v45 }
  0xbb   : > { %v1589_v57 = vor.u32 %v1587_v9, %v1586_v50  ;;  %v1591_v52 = vrot.slane %v1586_v50, 4  ;;  %v1598_v7 = vor.u32 %v1596_v44, %v1595_v37  ;;  %v1600_v8 = vrot.slane %v1595_v37, 4  ;;  %v6725_v37 = vld [vmem:[#allocation2 + $0x20] sm:$0xf] }
  0xbc   : > { %v3417_v34 = vsel %vm7024_vm10, %v8732_v2, %v3416_v59  ;;  %v3418_v40 = vrot.slane %v3416_v59, 4  ;;  %v7741_v4 = vsel %vm7716_vm7, %v703_v12, %v603_v60  ;;  %v8733_v9 = vrot.slane %v7608_v41, 4 }
  0xbd   : > { %v1599_v10 = vsel %vm7216_vm15, %v1591_v52, %v1598_v7  ;;  %v1634_v50 = vmul.bf16 %v1600_v8, %v1334_v61  ;;  %v3469_v2 = vmul.bf16 %v6725_v37, %v3417_v34  ;;  %vm1094_vm14 = vcmp.lt.s32.totalorder %v7737_v63, 15  ;;  %6398 = vmatpush3.bf16.msra.mxu0 %v6687_v38  ;;  %v6691_v34 = vld [vmem:[%s8611_s2 + $0x1b0] sm:$0xff]  }
  0xbe   : > { %v1590_v44 = vsel %vm7216_vm15, %v8733_v9, %v1589_v57  ;;  %v1633_v45 = vmul.bf16 %v1599_v10, %v7726_v1  ;;  %v3420_v60 = vsel %vm7024_vm10, %v3418_v40, %v7720_v20  ;;  %vm1095_vm0 = vcmp.lt.s32.totalorder %v7741_v4, 15  ;;  %6399 = vmatprep.subr.bf16.mxu0 %v6689_v16 }
  0xbf   : > { %v1632_v59 = vmul.bf16 %v1590_v44, %v7714_v28  ;;  %v5608_v41 = vcombine.low %v1634_v50, %v1634_v50  ;;  %v3470_v48 = vmul.bf16 %v6726_v62, %v3420_v60  ;;  %v5576_v7 = vsel %vm1094_vm14, 1.0, %v8702_v55 }
  0xc0   : > { %v5577_v11 = vsel %vm1095_vm0, 1.0, %v8702_v55  ;;  %v3421_v40 = vrot.slane %v7720_v20, 4  ;;  %v5553_v38 = vsel %vm1031_vm3, 1.0, %v8702_v55  ;;  %v5618_v10 = vcombine.low %v7210_v39, %v7256_v21 }
  0xc1   : > { %v5607_v8 = vcombine.low %v1632_v59, %v1633_v45  ;;  %v1760_v12 = vshll.u32 %v5608_v41, 16  ;;  %v7765_v61 = vcombine.low %v3469_v2, %v3470_v48  ;;  %v7767_v57 = vpack.c.bf16 %v5577_v11, %v5576_v7  ;;  %6400 = vmatpush3.bf16.msra.mxu0 %v6689_v16 }
  0xc2   : > { %v7769_v52 = vpack.c.bf16 %v5553_v38, %v5552_v18  ;;  %v608_v50 = vand.u32 15, %v7455_v30  ;;  %6401 = vmatprep.subr.bf16.mxu0 %v6691_v34  ;;  %v615_v60 = vand.u32 15, %v7462_v29  ;;  %v6693_v30 = vld [vmem:[%s8611_s2 + $0x1b8] sm:$0xff]   ;;  %v8734_v16 = vrot.slane %v7426_v17, 1 }
  0xc3   : > { %v1752_v9 = vshll.u32 %v5607_v8, 16  ;;  %v1756_v44 = vshrl.u32 %v5607_v8, 16  ;;  %v1762_v20 = vrot.slane %v1760_v12, 1  ;;  %v3545_v37 = vrot.slane %v7765_v61, 1 }
  0xc4   : > { %v3349_v42 = vrot.slane %v7767_v57, %v6980_v27  ;;  %v3356_v2 = vrot.slane %v7767_v57, %v6985_v33  ;;  %v1158_v59 = vmul.bf16 %v7769_v52, %v7164_v13  ;;  %v609_v45 = vsub.s32 0, %v608_v50 }
  0xc5   : > { %v1754_v18 = vrot.slane %v1752_v9, 1  ;;  %v3546_v41 = vsel %vm2383_vm1, %v8734_v16, %v3545_v37  ;;  %v622_v7 = vand.u32 15, %v7522_v0  ;;  %vm8735_vm5 = vcmp.lt.s32.totalorder %v7406_v46, 0  ;;  %6402 = vmatpush3.bf16.msra.mxu0 %v6691_v34  ;;  %v7802_v16 = vld [vmem:[#allocation2 + $0x4] sm:$0xf] }
  0xc6   : > { %v3422_v62 = vrot.slane %v3349_v42, 7  ;;  %v7790_v48 = vrot.slane %v3356_v2, 7  ;;  %6377 = vmatprep.mubr.bf16.mxu0 %v3546_v41  ;;  %v1180_v29 = vrot.slane %v1158_v59, %v6980_v27  ;;  %v1187_v38 = vrot.slane %v1158_v59, %v6985_v33  ;;  %v6727_v2 = vld [vmem:[#allocation2 + $0x28] sm:$0xf]  ;;  %6403 = vmatprep.subr.bf16.mxu0 %v6693_v30 }
  0xc7   : > { %v1755_v8 = vsel %vm1695_vm8, %v7664_v43, %v1754_v18  ;;  %v1758_v11 = vor.u32 %v1756_v44, %v1754_v18  ;;  %v610_v9 = vsel %vm8735_vm5, %v609_v45, %v608_v50  ;;  %v616_v42 = vsub.s32 0, %v615_v60  ;;  %v6728_v44 = vld [vmem:[#allocation2] sm:$0xf]  ;;  %v6730_v50 = vld [vmem:[#allocation2 + $0x2c] sm:$0xf] }
  0xc8   : > { %6225 = vmatprep.mubr.bf16.mxu1 %v1755_v8  ;;  %v3423_v17 = vsel %vm7024_vm10, %v3421_v40, %v3422_v62  ;;  %v3424_v12 = vrot.slane %v3422_v62, 4  ;;  %v1302_v18 = vmul.bf16 %v6728_v44, %v1180_v29  ;;  %v1303_v59 = vmul.bf16 %v7802_v16, %v1187_v38  ;;  %v7808_v40 = vld [vmem:[%s8611_s2 + $0x1c0] sm:$0xff]  }
  0xc9   : > { %v1763_v0 = vsel %vm1695_vm8, %v1758_v11, %v1762_v20  ;;  %v3471_v43 = vmul.bf16 %v6727_v2, %v3423_v17  ;;  %vm8736_vm6 = vcmp.lt.s32.totalorder %v7418_v6, 0  ;;  %vm656_vm2 = vcmp.ne.s32.totalorder %v610_v9, 0  ;;  %6404 = vmatpush3.bf16.msra.mxu0 %v6693_v30 }
  0xca   : > { %6226 = vmatmul.mubr.bf16.gmra.mrb[12].mxu1 %v1763_v0  ;;  %v3426_v46 = vsel %vm7024_vm10, %v3424_v12, %v7790_v48  ;;  %v617_v34 = vsel %vm8736_vm6, %v616_v42, %v615_v60  ;;  %vm672_vm13 = vcmp.lt.s32.totalorder %v610_v9, 0  ;;  %v5617_v45 = vcombine.low %v1302_v18, %v1303_v59  ;;  %6421 = vmatprep.subr.bf16.mxu0 %v7808_v40 }
  0xcb   : > { %v3472_v20 = vmul.bf16 %v6730_v50, %v3426_v46  ;;  %vm657_vm4 = vcmp.ne.s32.totalorder %v617_v34, 0  ;;  %vm673_vm9 = vcmp.lt.s32.totalorder %v617_v34, 0  ;;  %vm688_vm12 = vmand %vm672_vm13, %vm656_vm2  ;;  %v704_v41 = vadd.s32 16, %v610_v9 }
  0xcc   : > { %vm689_vm11 = vmand %vm673_vm9, %vm657_vm4  ;;  %v705_v62 = vadd.s32 16, %v617_v34  ;;  %v3427_v8 = vrot.slane %v7790_v48, 4  ;;  %v623_v11 = vsub.s32 0, %v622_v7  ;;  %6245 = vmatprep.mubr.bf16.mxu1 %v5617_v45  ;;  %v629_v6 = vand.u32 15, %v7528_v51  ;;  %v6686_v51 = vld [vmem:[%s8611_s2 + $0x88] sm:$0xff]  }
  0xcd   : > { %v7816_v29 = vcombine.low %v3471_v43, %v3472_v20  ;;  %vm1034_vm7 = vcmp.ge.s32.totalorder %v6976_v26, 1  ;;  %vm1035_vm3 = vcmp.ge.s32.totalorder %v6982_v32, 1  ;;  %v7822_v60 = vsel %vm688_vm12, %v704_v41, %v610_v9  ;;  %v6688_v32 = vld [vmem:[%s8611_s2 + $0x90] sm:$0xff]  }
  0xce   : > { %v7824_v38 = vsel %vm689_vm11, %v705_v62, %v617_v34  ;;  %vm8737_vm14 = vcmp.lt.s32.totalorder %v7502_v49, 0  ;;  %v5556_v30 = vsel %vm1034_vm7, 1.0, %v8702_v55  ;;  %vm1096_vm0 = vcmp.lt.s32.totalorder %v7822_v60, 15  ;;  %v6731_v45 = vld [vmem:[#allocation2 + $0x30] sm:$0xf] }
  0xcf   : > { %v624_v48 = vsel %vm8737_vm14, %v623_v11, %v622_v7  ;;  %v3547_v17 = vrot.slane %v7816_v29, 1  ;;  %vm1097_vm5 = vcmp.lt.s32.totalorder %v7824_v38, 15  ;;  %v630_v26 = vsub.s32 0, %v629_v6 }
  0xd0   : > { %v5578_v12 = vsel %vm1096_vm0, 1.0, %v8702_v55  ;;  %v5579_v9 = vsel %vm1097_vm5, 1.0, %v8702_v55  ;;  %vm658_vm6 = vcmp.ne.s32.totalorder %v624_v48, 0  ;;  %vm674_vm2 = vcmp.lt.s32.totalorder %v624_v48, 0 }
  0xd1   : > { %v3548_v49 = vsel %vm2383_vm1, %v3545_v37, %v3547_v17  ;;  %v7842_v7 = vpack.c.bf16 %v5579_v9, %v5578_v12  ;;  %vm8738_vm13 = vcmp.lt.s32.totalorder %v7509_v58, 0  ;;  %vm690_vm4 = vmand %vm674_vm2, %vm658_vm6  ;;  %v706_v0 = vadd.s32 16, %v624_v48  ;;  %v6732_v12 = vld [vmem:[#allocation2 + $0x34] sm:$0xf] }
  0xd2   : > { %v631_v42 = vsel %vm8738_vm13, %v630_v26, %v629_v6  ;;  %6378 = vmatmul.mubr.bf16.gmra.mrb[4].mxu0 %v3548_v49  ;;  %6246 = vmatmul.mubr.bf16.vlgmr.msra.gmra.mrb[0].mxu1 %v5618_v10  ;;  %v5557_v61 = vsel %vm1035_vm3, 1.0, %v8702_v55  ;;  %vm1036_vm3 = vcmp.ge.s32.totalorder %v7681_v36, 1  ;;  %vm1037_vm14 = vcmp.ge.s32.totalorder %v7683_v56, 1  ;;  %v7894_v49 = vld [vmem:[#allocation2 + $0x10] sm:$0xf] }
  0xd3   : > { %vm659_vm9 = vcmp.ne.s32.totalorder %v631_v42, 0  ;;  %vm675_vm12 = vcmp.lt.s32.totalorder %v631_v42, 0  ;;  %v707_v2 = vadd.s32 16, %v631_v42  ;;  %6262 = vmatpush3.bf16.msra.mxu1 %v7491_v22  ;;  %v3363_v58 = vrot.slane %v7842_v7, %v6980_v27 }
  0xd4   : > { %v3370_v37 = vrot.slane %v7842_v7, %v6985_v33  ;;  %vm691_vm11 = vmand %vm675_vm12, %vm659_vm9  ;;  %v7857_v43 = vsel %vm690_vm4, %v706_v0, %v624_v48  ;;  %v7859_v39 = vpack.c.bf16 %v5557_v61, %v5556_v30  ;;  %6263 = vmatprep.subr.bf16.mxu1 %v6686_v51  ;;  %v5558_v46 = vsel %vm1036_vm3, 1.0, %v8702_v55  ;;  %v6690_v48 = vld [vmem:[%s8611_s2 + $0x98] sm:$0xff]   ;;  %v7897_v0 = vld [vmem:[#allocation2 + $0x14] sm:$0xf] }
  0xd5   : > { %v7861_v21 = vsel %vm691_vm11, %v707_v2, %v631_v42  ;;  %vm1098_vm7 = vcmp.lt.s32.totalorder %v7857_v43, 15  ;;  %v3428_v22 = vrot.slane %v3363_v58, 7  ;;  %v5559_v36 = vsel %vm1037_vm14, 1.0, %v8702_v55 }
  0xd6   : > { %v3431_v10 = vrot.slane %v3370_v37, 7  ;;  %vm1099_vm0 = vcmp.lt.s32.totalorder %v7861_v21, 15  ;;  %v5580_v44 = vsel %vm1098_vm7, 1.0, %v8702_v55  ;;  %v1160_v59 = vmul.bf16 %v7859_v39, %v7258_v23 }
  0xd7   : > { %v5581_v18 = vsel %vm1099_vm0, 1.0, %v8702_v55  ;;  %6264 = vmatpush3.bf16.msra.mxu1 %v6686_v51  ;;  %v3429_v56 = vsel %vm7024_vm10, %v3427_v8, %v3428_v22  ;;  %v3430_v34 = vrot.slane %v3428_v22, 4  ;;  %v7882_v6 = vpack.c.bf16 %v5559_v36, %v5558_v46  ;;  %v6692_v46 = vld [vmem:[%s8611_s2 + $0xa0] sm:$0xff]  }
  0xd8   : > { %v7878_v50 = vpack.c.bf16 %v5581_v18, %v5580_v44  ;;  %v3433_v20 = vrot.slane %v3431_v10, 4  ;;  %v3473_v41 = vmul.bf16 %v6731_v45, %v3429_v56  ;;  %v1208_v62 = vrot.slane %v1160_v59, %v6980_v27  ;;  %6265 = vmatprep.subr.bf16.mxu1 %v6688_v32  ;;  %v6735_v45 = vld [vmem:[#allocation2 + $0x38] sm:$0xf] }
  0xd9   : > { %v1215_v11 = vrot.slane %v1160_v59, %v6985_v33  ;;  %v3432_v8 = vsel %vm7024_vm10, %v3430_v34, %v3431_v10  ;;  %v636_v51 = vand.u32 15, %v7622_v19  ;;  %v1161_v61 = vmul.bf16 %v7882_v6, %v7384_v31 }
  0xda   : > { %v3377_v30 = vrot.slane %v7878_v50, %v6980_v27  ;;  %v3384_v26 = vrot.slane %v7878_v50, %v6985_v33  ;;  %v3474_v9 = vmul.bf16 %v6732_v12, %v3432_v8  ;;  %v1306_v42 = vmul.bf16 %v7894_v49, %v1208_v62 }
  0xdb   : > { %v1307_v2 = vmul.bf16 %v7897_v0, %v1215_v11  ;;  %6266 = vmatpush3.bf16.msra.mxu1 %v6688_v32  ;;  %v637_v22 = vsub.s32 0, %v636_v51  ;;  %v643_v19 = vand.u32 15, %v7636_v35  ;;  %v1222_v18 = vrot.slane %v1161_v61, %v6980_v27 }
  0xdc   : > { %v3434_v58 = vrot.slane %v3377_v30, 7  ;;  %v7902_v37 = vrot.slane %v3384_v26, 7  ;;  %v5752_v10 = vcombine.low %v3473_v41, %v3474_v9  ;;  %v1229_v59 = vrot.slane %v1161_v61, %v6985_v33  ;;  %6267 = vmatprep.subr.bf16.mxu1 %v6690_v48  ;;  %v6736_v30 = vld [vmem:[#allocation2 + $0x3c] sm:$0xf] }
  0xdd   : > { %v5619_v44 = vcombine.low %v1306_v42, %v1307_v2  ;;  %vm8739_vm5 = vcmp.lt.s32.totalorder %v7596_v25, 0  ;;  %v644_v34 = vsub.s32 0, %v643_v19  ;;  %v1308_v62 = vmul.bf16 %v1222_v18, %v7408_v24  ;;  %v6694_v24 = vld [vmem:[%s8611_s2 + $0xa8] sm:$0xff]  }
  0xde   : > { %v3435_v36 = vsel %vm7024_vm10, %v3433_v20, %v3434_v58  ;;  %v3436_v56 = vrot.slane %v3434_v58, 4  ;;  %v638_v32 = vsel %vm8739_vm5, %v637_v22, %v636_v51  ;;  %v3549_v35 = vrot.slane %v5752_v10, 1  ;;  %v8742_v18 = vld [vmem:[#allocation10_spill] sm:$0xff] }
  0xdf   : > { %v3475_v41 = vmul.bf16 %v6735_v45, %v3435_v36  ;;  %6249 = vmatprep.mubr.bf16.mxu1 %v5619_v44  ;;  %v1309_v11 = vmul.bf16 %v1229_v59, %v7428_v53  ;;  %6268 = vmatpush3.bf16.msra.mxu1 %v6690_v48  ;;  %vm8740_vm6 = vcmp.lt.s32.totalorder %v7602_v3, 0  ;;  %vm660_vm2 = vcmp.ne.s32.totalorder %v638_v32, 0  ;;  %v8744_v59 = vld [vmem:[#allocation8_spill] sm:$0xff] }
  0xe0   : > { %v3438_v8 = vsel %vm7024_vm10, %v3436_v56, %v7902_v37  ;;  %v645_v20 = vsel %vm8740_vm6, %v644_v34, %v643_v19  ;;  %vm676_vm13 = vcmp.lt.s32.totalorder %v638_v32, 0  ;;  %v3550_v25 = vsel %vm2383_vm1, %v3547_v17, %v3549_v35  ;;  %6269 = vmatprep.subr.bf16.mxu1 %v6692_v46  ;;  %v6698_v34 = vld [vmem:[%s8611_s2 + $0xb8] sm:$0xff]  }
  0xe1   : > { %v3476_v26 = vmul.bf16 %v6736_v30, %v3438_v8  ;;  %v5620_v51 = vcombine.low %v1308_v62, %v1309_v11  ;;  %vm661_vm4 = vcmp.ne.s32.totalorder %v645_v20, 0  ;;  %vm692_vm9 = vmand %vm676_vm13, %vm660_vm2  ;;  %6381 = vmatprep.mubr.bf16.mxu0 %v3550_v25  ;;  %vm677_vm12 = vcmp.lt.s32.totalorder %v645_v20, 0  ;;  %v8745_v62 = vld [vmem:[#allocation9_spill] sm:$0xff]  ;;  %v8747_v30 = vld [vmem:[#allocation20_spill] sm:$0xff] }
  0xe2   : > { %v708_v53 = vadd.s32 16, %v638_v32  ;;  %v709_v3 = vadd.s32 16, %v645_v20  ;;  %v3439_v48 = vrot.slane %v7902_v37, 4  ;;  %vm693_vm11 = vmand %vm677_vm12, %vm661_vm4  ;;  %vm1038_vm7 = vcmp.ge.s32.totalorder %v7737_v63, 1 }
  0xe3   : > { %v7928_v12 = vcombine.low %v3475_v41, %v3476_v26  ;;  %6250 = vmatmul.mubr.bf16.gmra.mrb[4].mxu1 %v5620_v51  ;;  %vm1039_vm3 = vcmp.ge.s32.totalorder %v7741_v4, 1  ;;  %vm1040_vm14 = vcmp.ge.s32.totalorder %v7822_v60, 1  ;;  %v5560_v9 = vsel %vm1038_vm7, 1.0, %v8702_v55  ;;  %v6696_v4 = vld [vmem:[%s8611_s2 + $0xb0] sm:$0xff]  }
  0xe4   : > { %v7933_v29 = vsel %vm692_vm9, %v708_v53, %v638_v32  ;;  %v7935_v17 = vsel %vm693_vm11, %v709_v3, %v645_v20  ;;  %v5561_v42 = vsel %vm1039_vm3, 1.0, %v8702_v55  ;;  %6270 = vmatpush3.bf16.msra.mxu1 %v6692_v46  ;;  %vm1041_vm6 = vcmp.ge.s32.totalorder %v7824_v38, 1  ;;  %v8743_v38 = vld [vmem:[#allocation11_spill] sm:$0xff] }
  0xe5   : > { %v3551_v2 = vrot.slane %v7928_v12, 1  ;;  %vm1100_vm0 = vcmp.lt.s32.totalorder %v7933_v29, 15  ;;  %vm1101_vm5 = vcmp.lt.s32.totalorder %v7935_v17, 15  ;;  %v7942_v63 = vpack.c.bf16 %v5561_v42, %v5560_v9  ;;  %6271 = vmatprep.subr.bf16.mxu1 %v6694_v24  ;;  %v8746_v20 = vld [vmem:[#allocation19_spill] sm:$0xff]  ;;  %v8753_v12 = vld [vmem:[#allocation14_spill] sm:$0xff] }
  0xe6   : > { %v5582_v60 = vsel %vm1100_vm0, 1.0, %v8702_v55  ;;  %v5583_v61 = vsel %vm1101_vm5, 1.0, %v8702_v55  ;;  %v5562_v58 = vsel %vm1040_vm14, 1.0, %v8702_v55  ;;  %v5563_v10 = vsel %vm1041_vm6, 1.0, %v8702_v55 }
  0xe7   : > { %v3552_v37 = vsel %vm2383_vm1, %v3549_v35, %v3551_v2  ;;  %v7954_v22 = vpack.c.bf16 %v5583_v61, %v5582_v60  ;;  %v1162_v19 = vmul.bf16 %v7942_v63, %v7435_v14  ;;  %v7959_v44 = vpack.c.bf16 %v5563_v10, %v5562_v58  ;;  %v7992_v58 = vld [vmem:[%s8611_s2 + $0xc0] sm:$0xff]   ;;  %v8748_v10 = vld [vmem:[#allocation23_spill] sm:$0xff] }
  0xe8   : > { %6382 = vmatmul.mubr.bf16.gmra.mrb[8].mxu0 %v3552_v37  ;;  %6272 = vmatpush3.bf16.msra.mxu1 %v6694_v24  ;;  %vm974_vm2 = vcmp.lt.s32.totalorder %v8742_v18, 240  ;;  %vm975_vm13 = vcmp.lt.s32.totalorder %v8743_v38, 240  ;;  %vm976_vm4 = vcmp.lt.s32.totalorder %v8744_v59, 240  ;;  %vm977_vm9 = vcmp.lt.s32.totalorder %v8745_v62, 240  ;;  %v6737_v37 = vld [vmem:[#allocation2 + $0x40] sm:$0xf] }
  0xe9   : > { %8741 = vst [vmem:[#allocation34_spill] sm:$0xff] %v7954_v22  ;;  %v3391_v46 = vrot.slane %v7954_v22, %v6980_v27  ;;  %v3398_v36 = vrot.slane %v7954_v22, %v6985_v33  ;;  %v1236_v56 = vrot.slane %v1162_v19, %v6980_v27  ;;  %v1243_v32 = vrot.slane %v1162_v19, %v6985_v33  ;;  %v8749_v38 = vld [vmem:[#allocation24_spill] sm:$0xff] }
  0xea   : > { %6273 = vmatprep.subr.bf16.mxu1 %v6696_v4  ;;  %v1163_v35 = vmul.bf16 %v7959_v44, %v7519_v54  ;;  %v5536_v45 = vsel %vm974_vm2, 1.0, %v8702_v55  ;;  %v5537_v41 = vsel %vm975_vm13, 1.0, %v8702_v55  ;;  %v5538_v3 = vsel %vm976_vm4, 1.0, %v8702_v55 }
  0xeb   : > { %v3440_v11 = vrot.slane %v3391_v46, 7  ;;  %v3443_v8 = vrot.slane %v3398_v36, 7  ;;  %v1310_v25 = vmul.bf16 %v1236_v56, %v8746_v20  ;;  %v1311_v26 = vmul.bf16 %v1243_v32, %v8747_v30  ;;  %v6738_v46 = vld [vmem:[#allocation2 + $0x48] sm:$0x1]  ;;  %v3726_v56 = vld [vmem:[#allocation2 + $0x10] sm:$0xf] }
  0xec   : > { %v1250_v51 = vrot.slane %v1163_v35, %v6980_v27  ;;  %v1257_v24 = vrot.slane %v1163_v35, %v6985_v33  ;;  %v7982_v53 = vpack.c.bf16 %v5537_v41, %v5536_v45  ;;  %6274 = vmatpush3.bf16.msra.mxu1 %v6696_v4  ;;  %v3727_v32 = vld [vmem:[#allocation2 + $0x14] sm:$0xf]  ;;  %v5539_v35 = vsel %vm977_vm9, 1.0, %v8702_v55  ;;  %v6739_v45 = vld [vmem:[#allocation2 + $0x44] sm:$0xf] }
  0xed   : > { %v3441_v9 = vsel %vm7024_vm10, %v3439_v48, %v3440_v11  ;;  %v3442_v42 = vrot.slane %v3440_v11, 4  ;;  %v3445_v60 = vrot.slane %v3443_v8, 4  ;;  %v5621_v61 = vcombine.low %v1310_v25, %v1311_v26  ;;  %6275 = vmatprep.subr.bf16.mxu1 %v6698_v34 }
  0xee   : > { %v3477_v19 = vmul.bf16 %v6737_v37, %v3441_v9  ;;  %v1312_v18 = vmul.bf16 %v1250_v51, %v8748_v10  ;;  %v1313_v59 = vmul.bf16 %v1257_v24, %v8749_v38  ;;  %v3742_v4 = vmul.bf16 %v7769_v52, %v7982_v53  ;;  %v3729_v37 = vld [vmem:[#allocation2 + $0x1c] sm:$0xf]  ;;  %v8751_v38 = vld [vmem:[#allocation28_spill] sm:$0xff] }
  0xef   : > { %v3444_v48 = vsel %vm7024_vm10, %v3442_v42, %v3443_v8  ;;  %v3479_v36 = vmul.bf16 %v6738_v46, %v3445_v60  ;;  %6253 = vmatprep.mubr.bf16.mxu1 %v5621_v61  ;;  %vm1042_vm12 = vcmp.ge.s32.totalorder %v7857_v43, 1  ;;  %v8006_v30 = vpack.c.bf16 %v5539_v35, %v5538_v3  ;;  %v3728_v42 = vld [vmem:[#allocation2 + $0x18] sm:$0xf]  ;;  %v8750_v60 = vld [vmem:[#allocation7_spill] sm:$0xff] }
  0xf0   : > { %v3478_v41 = vmul.bf16 %v6739_v45, %v3444_v48  ;;  %v5622_v11 = vcombine.low %v1312_v18, %v1313_v59  ;;  %v3764_v20 = vrot.slane %v3742_v4, %v6980_v27  ;;  %v3771_v25 = vrot.slane %v3742_v4, %v6985_v33  ;;  %6276 = vmatpush3.bf16.msra.mxu1 %v6698_v34 }
  0xf1   : > { %v5755_v8 = vcombine.low %v3479_v36, %v3479_v36  ;;  %vm1043_vm11 = vcmp.ge.s32.totalorder %v7861_v21, 1  ;;  %v5564_v26 = vsel %vm1042_vm12, 1.0, %v8702_v55  ;;  %6293 = vmatprep.subr.bf16.mxu1 %v7992_v58  ;;  %v3743_v34 = vmul.bf16 %v8750_v60, %v8006_v30 }
  0xf2   : > { %v5754_v62 = vcombine.low %v3477_v19, %v3478_v41  ;;  %6254 = vmatmul.mubr.bf16.gmra.mrb[8].mxu1 %v5622_v11  ;;  %v3886_v43 = vmul.bf16 %v3764_v20, %v3726_v56  ;;  %v3887_v51 = vmul.bf16 %v3771_v25, %v3727_v32  ;;  %v5565_v24 = vsel %vm1043_vm11, 1.0, %v8702_v55  ;;  %v8754_v41 = vld [vmem:[#allocation15_spill] sm:$0xff]  ;;  %v8755_v20 = vld [vmem:[#allocation29_spill] sm:$0xff] }
  0xf3   : > { %v3555_v9 = vrot.slane %v5755_v8, 1  ;;  %v8014_v61 = vpack.c.bf16 %v5565_v24, %v5564_v26  ;;  %vm1044_vm7 = vcmp.ge.s32.totalorder %v7933_v29, 1  ;;  %vm1045_vm3 = vcmp.ge.s32.totalorder %v7935_v17, 1  ;;  %v8752_v17 = vld [vmem:[#allocation13_spill] sm:$0xff]  ;;  %v8756_v8 = vld [vmem:[#allocation30_spill] sm:$0xff] }
  0xf4   : > { %v3553_v21 = vrot.slane %v5754_v62, 1  ;;  %v5780_v3 = vcombine.low %v3886_v43, %v3887_v51  ;;  %v5566_v19 = vsel %vm1044_vm7, 1.0, %v8702_v55  ;;  %v3778_v10 = vrot.slane %v3743_v34, %v6980_v27 }
  0xf5   : > { %v3785_v18 = vrot.slane %v3743_v34, %v6985_v33  ;;  %v1164_v59 = vmul.bf16 %v8014_v61, %v8751_v38  ;;  %v5567_v4 = vsel %vm1045_vm3, 1.0, %v8702_v55  ;;  %vm978_vm14 = vcmp.lt.s32.totalorder %v8752_v17, 240  ;;  %v8760_v17 = vld [vmem:[#allocation5_spill] sm:$0xff] }
  0xf6   : > { %v3554_v29 = vsel %vm2383_vm1, %v3551_v2, %v3553_v21  ;;  %v3556_v48 = vsel %vm2383_vm1, %v3553_v21, %v3555_v9  ;;  %v8028_v46 = vpack.c.bf16 %v5567_v4, %v5566_v19  ;;  %v3888_v36 = vmul.bf16 %v3778_v10, %v3728_v42  ;;  %v8757_v9 = vld [vmem:[#allocation16_spill] sm:$0xff]  ;;  %v3730_v4 = vld [vmem:[#allocation2 + $0x20] sm:$0xf] }
  0xf7   : > { %6385 = vmatprep.mubr.bf16.mxu0 %v3554_v29  ;;  %v3889_v56 = vmul.bf16 %v3785_v18, %v3729_v37  ;;  %v1264_v32 = vrot.slane %v1164_v59, %v6980_v27  ;;  %v1271_v35 = vrot.slane %v1164_v59, %v6985_v33  ;;  %vm979_vm0 = vcmp.lt.s32.totalorder %v8753_v12, 240  ;;  %v3731_v29 = vld [vmem:[#allocation2 + $0x24] sm:$0xf] }
  0xf8   : > { %6386 = vmatmul.mubr.bf16.gmra.mrb[12].mxu0 %v3556_v48  ;;  %v1165_v45 = vmul.bf16 %v8028_v46, %v7679_v47  ;;  %v5540_v2 = vsel %vm978_vm14, 1.0, %v8702_v55  ;;  %vm980_vm5 = vcmp.lt.s32.totalorder %v8754_v41, 240  ;;  %v5541_v62 = vsel %vm979_vm0, 1.0, %v8702_v55  ;;  %v8759_v48 = vld [vmem:[#allocation12_spill] sm:$0xff]  ;;  %v3732_v41 = vld [vmem:[#allocation2 + $0x28] sm:$0xf] }
  0xf9   : > { %6405 = vmatprep.mubr.bf16.mxu0 %v5780_v3  ;;  %v5781_v11 = vcombine.low %v3888_v36, %v3889_v56  ;;  %v1314_v25 = vmul.bf16 %v1264_v32, %v8755_v20  ;;  %v1315_v26 = vmul.bf16 %v1271_v35, %v8756_v8  ;;  %v8043_v24 = vpack.c.bf16 %v5541_v62, %v5540_v2  ;;  %v8758_v3 = vld [vmem:[#allocation27_spill] sm:$0xff]  ;;  %v2110_v20 = vld [vmem:[#allocation2] sm:$0xe] }
  0xfa   : > { %v1278_v43 = vrot.slane %v1165_v45, %v6980_v27  ;;  %v1285_v51 = vrot.slane %v1165_v45, %v6985_v33  ;;  %vm981_vm6 = vcmp.lt.s32.totalorder %v8757_v9, 240  ;;  %v5542_v34 = vsel %vm980_vm5, 1.0, %v8702_v55 }
  0xfb   : > { %v5623_v42 = vcombine.low %v1314_v25, %v1315_v26  ;;  %v5543_v21 = vsel %vm981_vm6, 1.0, %v8702_v55  ;;  %v2111_v37 = vmul.bf16 %v8758_v3, %v7164_v13  ;;  %v3744_v18 = vmul.bf16 %v7859_v39, %v8043_v24  ;;  %v8761_v13 = vld [vmem:[#allocation6_spill] sm:$0xff] }
  0xfc   : > { %v1316_v19 = vmul.bf16 %v1278_v43, %v7714_v28  ;;  %v1317_v10 = vmul.bf16 %v1285_v51, %v7726_v1  ;;  %v8054_v59 = vpack.c.bf16 %v5543_v21, %v5542_v34  ;;  %v2112_v36 = vmul.bf16 %v8760_v17, %v8759_v48  ;;  %v6697_v1 = vld [vmem:[%s8611_s2 + $0x1c8] sm:$0xff]  }
  0xfd   : > { %6257 = vmatprep.mubr.bf16.mxu1 %v5623_v42  ;;  %v2133_v56 = vrot.slane %v2111_v37, %v6980_v27  ;;  %v2140_v32 = vrot.slane %v2111_v37, %v6985_v33  ;;  %v2113_v28 = vmul.bf16 %v8761_v13, %v7258_v23  ;;  %v3792_v45 = vrot.slane %v3744_v18, %v6980_v27  ;;  %v3733_v51 = vld [vmem:[#allocation2 + $0x2c] sm:$0xf]  ;;  %v8762_v42 = vld [vmem:[#allocation17_spill] sm:$0xff] }
  0xfe   : > { %v5624_v35 = vcombine.low %v1316_v19, %v1317_v10  ;;  %v3799_v12 = vrot.slane %v3744_v18, %v6985_v33  ;;  %v3745_v2 = vmul.bf16 %v7882_v6, %v8054_v59  ;;  %v2147_v25 = vrot.slane %v2112_v36, %v6980_v27 }
  0xff   : > { %v2154_v8 = vrot.slane %v2112_v36, %v6985_v33  ;;  %v2242_v26 = vrot.slane %v2133_v56, 7  ;;  %v2244_v23 = vrot.slane %v2140_v32, 7  ;;  %v3890_v62 = vmul.bf16 %v3792_v45, %v3730_v4  ;;  %v6740_v45 = vld [vmem:[#allocation2 + $0x8] sm:$0xf] }
 0x100   : > { %6406 = vmatmul.mubr.bf16.vlgmr.msra.gmra.mrb[0].mxu0 %v5781_v11  ;;  %6258 = vmatmul.mubr.bf16.gmra.mrb[12].mxu1 %v5624_v35  ;;  %v3891_v43 = vmul.bf16 %v3799_v12, %v3731_v29  ;;  %v3806_v9 = vrot.slane %v3745_v2, %v6980_v27  ;;  %vm982_vm2 = vcmp.lt.s32.totalorder %v8762_v42, 240  ;;  %v3813_v34 = vrot.slane %v3745_v2, %v6985_v33  ;;  %v6699_v11 = vld [vmem:[%s8611_s2 + $0x1d0] sm:$0xff]  }
 0x101   : > { %6422 = vmatpush3.bf16.msra.mxu0 %v7808_v40  ;;  %v2243_v21 = vrot.slane %v2242_v26, 4  ;;  %v2246_v37 = vrot.slane %v2244_v23, 4  ;;  %v2247_v19 = vrot.slane %v2147_v25, 7  ;;  %v2250_v4 = vrot.slane %v2154_v8, 7  ;;  %v8763_v8 = vld [vmem:[#allocation18_spill] sm:$0xff] }
 0x102   : > { %6423 = vmatprep.subr.bf16.mxu0 %v6697_v1  ;;  %v5782_v10 = vcombine.low %v3890_v62, %v3891_v43  ;;  %v3892_v18 = vmul.bf16 %v3806_v9, %v3732_v41  ;;  %v2306_v29 = vmul.bf16 %v2242_v26, %v2110_v20  ;;  %v3893_v48 = vmul.bf16 %v3813_v34, %v3733_v51  ;;  %v6741_v26 = vld [vmem:[#allocation2 + $0xc] sm:$0xf]  ;;  %v8764_v34 = vld [vmem:[#allocation21_spill] sm:$0xff] }
 0x103   : > { %v2245_v36 = vsel %vm7024_vm10, %v2243_v21, %v2244_v23  ;;  %v2248_v40 = vsel %vm7024_vm10, %v2246_v37, %v2247_v19  ;;  %v2249_v56 = vrot.slane %v2247_v19, 4  ;;  %v2252_v32 = vrot.slane %v2250_v4, 4 }
 0x104   : > { %6409 = vmatprep.mubr.bf16.mxu0 %v5782_v10  ;;  %v2307_v35 = vmul.bf16 %v7802_v16, %v2245_v36  ;;  %v2308_v12 = vmul.bf16 %v6740_v45, %v2248_v40  ;;  %v2161_v2 = vrot.slane %v2113_v28, %v6980_v27  ;;  %v5783_v41 = vcombine.low %v3892_v18, %v3893_v48  ;;  %v6701_v16 = vld [vmem:[%s8611_s2 + $0x1d8] sm:$0xff]  }
 0x105   : > { %6424 = vmatpush3.bf16.msra.mxu0 %v6697_v1  ;;  %v2251_v20 = vsel %vm7024_vm10, %v2249_v56, %v2250_v4  ;;  %v2168_v25 = vrot.slane %v2113_v28, %v6985_v33  ;;  %vm983_vm13 = vcmp.lt.s32.totalorder %v8763_v8, 240  ;;  %v5544_v1 = vsel %vm982_vm2, 1.0, %v8702_v55  ;;  %v8765_v28 = vld [vmem:[#allocation22_spill] sm:$0xff] }
 0x106   : > { %6425 = vmatprep.subr.bf16.mxu0 %v6699_v11  ;;  %v2309_v23 = vmul.bf16 %v6741_v26, %v2251_v20  ;;  %v5649_v62 = vcombine.low %v2306_v29, %v2307_v35  ;;  %v2253_v43 = vrot.slane %v2161_v2, 7  ;;  %v5545_v9 = vsel %vm983_vm13, 1.0, %v8702_v55  ;;  %v6703_v56 = vld [vmem:[%s8611_s2 + $0x1e0] sm:$0xff]   ;;  %v3735_v20 = vld [vmem:[#allocation2 + $0x34] sm:$0xf] }
 0x107   : > { %v2256_v51 = vrot.slane %v2168_v25, 7  ;;  %vm984_vm4 = vcmp.lt.s32.totalorder %v8764_v34, 240  ;;  %vm985_vm9 = vcmp.lt.s32.totalorder %v8765_v28, 240  ;;  %v8100_v4 = vpack.c.bf16 %v5545_v9, %v5544_v1  ;;  %v6705_v28 = vld [vmem:[%s8611_s2 + $0x1e8] sm:$0xff]  }
 0x108   : > { %6410 = vmatmul.mubr.bf16.gmra.mrb[4].mxu0 %v5783_v41  ;;  %v5650_v21 = vcombine.low %v2308_v12, %v2309_v23  ;;  %v2384_v37 = vrot.slane %v5649_v62, 1  ;;  %v2254_v19 = vsel %vm7024_vm10, %v2252_v32, %v2253_v43  ;;  %v2255_v10 = vrot.slane %v2253_v43, 4  ;;  %v3734_v41 = vld [vmem:[#allocation2 + $0x30] sm:$0xf]  ;;  %v3737_v62 = vld [vmem:[#allocation2 + $0x3c] sm:$0xf] }
 0x109   : > { %6426 = vmatpush3.bf16.msra.mxu0 %v6699_v11  ;;  %v2310_v18 = vmul.bf16 %v7894_v49, %v2254_v19  ;;  %v5546_v42 = vsel %vm984_vm4, 1.0, %v8702_v55  ;;  %v5547_v29 = vsel %vm985_vm9, 1.0, %v8702_v55  ;;  %v8766_v11 = vld [vmem:[#allocation33_spill] sm:$0xff]  ;;  %v3746_v35 = vmul.bf16 %v7942_v63, %v8100_v4 }
 0x10a   : > { %v2385_v48 = vrot.slane %v5650_v21, 1  ;;  %v2257_v36 = vsel %vm7024_vm10, %v2255_v10, %v2256_v51  ;;  %6427 = vmatprep.subr.bf16.mxu0 %v6701_v16  ;;  %v8106_v40 = vpack.c.bf16 %v5547_v29, %v5546_v42  ;;  %v2114_v49 = vmul.bf16 %v8766_v11, %v7384_v31  ;;  %v8767_v43 = vld [vmem:[#allocation25_spill] sm:$0xff]  ;;  %v6702_v10 = vld [vmem:[%s8611_s2 + $0xc8] sm:$0xff]  }
 0x10b   : > { %v2311_v32 = vmul.bf16 %v7897_v0, %v2257_v36  ;;  %v2258_v45 = vrot.slane %v2256_v51, 4  ;;  %v2115_v12 = vmul.bf16 %v7767_v57, %v7435_v14  ;;  %v3820_v26 = vrot.slane %v3746_v35, %v6980_v27  ;;  %v3736_v14 = vld [vmem:[#allocation2 + $0x38] sm:$0xf] }
 0x10c   : > { %v2386_v2 = vsel %vm2383_vm1, %v2384_v37, %v2385_v48  ;;  %v3747_v25 = vmul.bf16 %v7959_v44, %v8106_v40  ;;  %v2175_v8 = vrot.slane %v2114_v49, %v6980_v27  ;;  %v2182_v31 = vrot.slane %v2114_v49, %v6985_v33 }
 0x10d   : > { %6277 = vmatprep.mubr.bf16.mxu1 %v2386_v2  ;;  %v8123_v0 = vcombine.low %v2310_v18, %v2311_v32  ;;  %6428 = vmatpush3.bf16.msra.mxu0 %v6701_v16  ;;  %v3827_v23 = vrot.slane %v3746_v35, %v6985_v33  ;;  %vm986_vm12 = vcmp.lt.s32.totalorder %v8767_v43, 240  ;;  %v3894_v21 = vmul.bf16 %v3820_v26, %v3734_v41  ;;  %v6742_v35 = vld [vmem:[#allocation2 + $0x18] sm:$0xf] }
 0x10e   : > { %v3834_v1 = vrot.slane %v3747_v25, %v6980_v27  ;;  %v3841_v51 = vrot.slane %v3747_v25, %v6985_v33  ;;  %6429 = vmatprep.subr.bf16.mxu0 %v6703_v56  ;;  %v2259_v9 = vrot.slane %v2175_v8, 7  ;;  %v2262_v34 = vrot.slane %v2182_v31, 7 }
 0x10f   : > { %v2387_v16 = vrot.slane %v8123_v0, 1  ;;  %v3895_v37 = vmul.bf16 %v3827_v23, %v3735_v20  ;;  %v2189_v19 = vrot.slane %v2115_v12, %v6980_v27  ;;  %v2196_v41 = vrot.slane %v2115_v12, %v6985_v33  ;;  %v8768_v23 = vld [vmem:[#allocation26_spill] sm:$0xff] }
 0x110   : > { %v3896_v18 = vmul.bf16 %v3834_v1, %v3736_v14  ;;  %v3897_v42 = vmul.bf16 %v3841_v51, %v3737_v62  ;;  %v2260_v29 = vsel %vm7024_vm10, %v2258_v45, %v2259_v9  ;;  %v2261_v36 = vrot.slane %v2259_v9, 4  ;;  %v6707_v45 = vld [vmem:[%s8611_s2 + $0x1f0] sm:$0xff]  }
 0x111   : > { %v2388_v49 = vsel %vm2383_vm1, %v2385_v48, %v2387_v16  ;;  %v5784_v32 = vcombine.low %v3894_v21, %v3895_v37  ;;  %v2312_v2 = vmul.bf16 %v6742_v35, %v2260_v29  ;;  %6430 = vmatpush3.bf16.msra.mxu0 %v6703_v56  ;;  %v2264_v8 = vrot.slane %v2262_v34, 4  ;;  %v6743_v48 = vld [vmem:[#allocation2 + $0x1c] sm:$0xf]  ;;  %v8769_v51 = vld [vmem:[#allocation31_spill] sm:$0xff]  ;;  %v8770_v37 = vld [vmem:[#allocation32_spill] sm:$0xff] }
 0x112   : > { %6278 = vmatmul.mubr.bf16.vlgmr.msra.gmra.mrb[0].mxu1 %v2388_v49  ;;  %v5785_v20 = vcombine.low %v3896_v18, %v3897_v42  ;;  %v2263_v25 = vsel %vm7024_vm10, %v2261_v36, %v2262_v34  ;;  %v2265_v31 = vrot.slane %v2189_v19, 7  ;;  %6431 = vmatprep.subr.bf16.mxu0 %v6705_v28  ;;  %v2268_v56 = vrot.slane %v2196_v41, 7  ;;  %v6744_v34 = vld [vmem:[#allocation2 + $0x20] sm:$0xf]  ;;  %v6709_v36 = vld [vmem:[%s8611_s2 + $0x1f8] sm:$0xff]  }
 0x113   : > { %6294 = vmatpush3.bf16.msra.mxu1 %v7992_v58  ;;  %6413 = vmatprep.mubr.bf16.mxu0 %v5784_v32  ;;  %v2313_v26 = vmul.bf16 %v6743_v48, %v2263_v25  ;;  %vm987_vm11 = vcmp.lt.s32.totalorder %v8768_v23, 240  ;;  %v5548_v12 = vsel %vm986_vm12, 1.0, %v8702_v55  ;;  %v6704_v58 = vld [vmem:[%s8611_s2 + $0xd0] sm:$0xff]   ;;  %vm988_vm7 = vcmp.lt.s32.totalorder %v8769_v51, 240  ;;  %v6745_v49 = vld [vmem:[#allocation2 + $0x24] sm:$0xf] }
 0x114   : > { %6295 = vmatprep.subr.bf16.mxu1 %v6702_v10  ;;  %6414 = vmatmul.mubr.bf16.gmra.mrb[8].mxu0 %v5785_v20  ;;  %v2266_v14 = vsel %vm7024_vm10, %v2264_v8, %v2265_v31  ;;  %v2267_v62 = vrot.slane %v2265_v31, 4  ;;  %v5549_v1 = vsel %vm987_vm11, 1.0, %v8702_v55  ;;  %vm989_vm3 = vcmp.lt.s32.totalorder %v8770_v37, 240  ;;  %v6706_v41 = vld [vmem:[%s8611_s2 + $0xd8] sm:$0xff]   ;;  %v3738_v20 = vld [vmem:[#allocation2 + $0x40] sm:$0xf] }
 0x115   : > { %v5652_v9 = vcombine.low %v2312_v2, %v2313_v26  ;;  %v2314_v21 = vmul.bf16 %v6744_v34, %v2266_v14  ;;  %6432 = vmatpush3.bf16.msra.mxu0 %v6705_v28  ;;  %v8161_v43 = vpack.c.bf16 %v5549_v1, %v5548_v12  ;;  %v5550_v18 = vsel %vm988_vm7, 1.0, %v8702_v55 }
 0x116   : > { %v2269_v19 = vsel %vm7024_vm10, %v2267_v62, %v2268_v56  ;;  %v5551_v42 = vsel %vm989_vm3, 1.0, %v8702_v55  ;;  %6433 = vmatprep.subr.bf16.mxu0 %v6707_v45  ;;  %v2116_v29 = vmul.bf16 %v7842_v7, %v7519_v54  ;;  %v3739_v54 = vld [vmem:[#allocation2 + $0x44] sm:$0xf]  ;;  %v2117_v31 = vmul.bf16 %v7878_v50, %v8751_v38 }
 0x117   : > { %6296 = vmatpush3.bf16.msra.mxu1 %v6702_v10  ;;  %v2389_v28 = vrot.slane %v5652_v9, 1  ;;  %v2315_v32 = vmul.bf16 %v6745_v49, %v2269_v19  ;;  %v3748_v35 = vmul.bf16 %v8014_v61, %v8161_v43  ;;  %v8175_v2 = vpack.c.bf16 %v5551_v42, %v5550_v18  ;;  %v8197_v38 = vld [vmem:[%s8611_s2 + $0x200] sm:$0xff]   ;;  %v3741_v9 = vld [vmem:[#allocation2 + $0x4c] sm:$0xf]  ;;  %v6746_v49 = vld [vmem:[#allocation2 + $0x28] sm:$0xf] }
 0x118   : > { %6297 = vmatprep.subr.bf16.mxu1 %v6704_v58  ;;  %v2203_v25 = vrot.slane %v2116_v29, %v6980_v27  ;;  %v2210_v8 = vrot.slane %v2116_v29, %v6985_v33  ;;  %v2270_v10 = vrot.slane %v2268_v56, 4  ;;  %v2217_v1 = vrot.slane %v2117_v31, %v6980_v27  ;;  %v6708_v42 = vld [vmem:[%s8611_s2 + $0xe0] sm:$0xff]  }
 0x119   : > { %v2390_v48 = vsel %vm2383_vm1, %v2387_v16, %v2389_v28  ;;  %v8187_v26 = vcombine.low %v2314_v21, %v2315_v32  ;;  %v3848_v23 = vrot.slane %v3748_v35, %v6980_v27  ;;  %v3855_v12 = vrot.slane %v3748_v35, %v6985_v33  ;;  %6434 = vmatpush3.bf16.msra.mxu0 %v6707_v45  ;;  %v3740_v45 = vld [vmem:[#allocation2 + $0x48] sm:$0xf] }
 0x11a   : > { %6281 = vmatprep.mubr.bf16.mxu1 %v2390_v48  ;;  %v3749_v14 = vmul.bf16 %v8028_v46, %v8175_v2  ;;  %v2271_v62 = vrot.slane %v2203_v25, 7  ;;  %v2274_v56 = vrot.slane %v2210_v8, 7  ;;  %6435 = vmatprep.subr.bf16.mxu0 %v6709_v36  ;;  %v2224_v34 = vrot.slane %v2117_v31, %v6985_v33 }
 0x11b   : > { %v2391_v0 = vrot.slane %v8187_v26, 1  ;;  %6298 = vmatpush3.bf16.msra.mxu1 %v6704_v58  ;;  %v3898_v16 = vmul.bf16 %v3848_v23, %v3738_v20  ;;  %v3899_v51 = vmul.bf16 %v3855_v12, %v3739_v54  ;;  %v2277_v8 = vrot.slane %v2217_v1, 7 }
 0x11c   : > { %6299 = vmatprep.subr.bf16.mxu1 %v6706_v41  ;;  %v3862_v21 = vrot.slane %v3749_v14, %v6980_v27  ;;  %v3869_v37 = vrot.slane %v3749_v14, %v6985_v33  ;;  %v2272_v19 = vsel %vm7024_vm10, %v2270_v10, %v2271_v62  ;;  %v2273_v18 = vrot.slane %v2271_v62, 4  ;;  %v6747_v10 = vld [vmem:[#allocation2 + $0x2c] sm:$0xf] }
 0x11d   : > { %v2392_v58 = vsel %vm2383_vm1, %v2389_v28, %v2391_v0  ;;  %v5786_v29 = vcombine.low %v3898_v16, %v3899_v51  ;;  %v2316_v32 = vmul.bf16 %v6746_v49, %v2272_v19  ;;  %v2276_v35 = vrot.slane %v2274_v56, 4  ;;  %6436 = vmatpush3.bf16.msra.mxu0 %v6709_v36  ;;  %v6749_v19 = vld [vmem:[#allocation2 + $0x34] sm:$0xf] }
 0x11e   : > { %6282 = vmatmul.mubr.bf16.gmra.mrb[4].mxu1 %v2392_v58  ;;  %v3900_v20 = vmul.bf16 %v3862_v21, %v3740_v45  ;;  %v3901_v54 = vmul.bf16 %v3869_v37, %v3741_v9  ;;  %v2275_v25 = vsel %vm7024_vm10, %v2273_v18, %v2274_v56  ;;  %6453 = vmatprep.subr.bf16.mxu0 %v8197_v38  ;;  %v8212_v48 = vrot.slane %v2224_v34, 7  ;;  %v6748_v56 = vld [vmem:[#allocation2 + $0x30] sm:$0xf] }
 0x11f   : > { %6300 = vmatpush3.bf16.msra.mxu1 %v6706_v41  ;;  %6417 = vmatprep.mubr.bf16.mxu0 %v5786_v29  ;;  %v2317_v31 = vmul.bf16 %v6747_v10, %v2275_v25  ;;  %v4159_v28 = vrot.slane %v7982_v53, %v6980_v27  ;;  %v4166_v36 = vrot.slane %v7982_v53, %v6985_v33  ;;  %v2279_v12 = vrot.slane %v2277_v8, 4  ;;  %v6710_v41 = vld [vmem:[%s8611_s2 + $0xe8] sm:$0xff]   ;;  %v4128_v58 = vld [vmem:[#allocation2 + $0x10] sm:$0xf] }
 0x120   : > { %v5787_v26 = vcombine.low %v3900_v20, %v3901_v54  ;;  %v2278_v23 = vsel %vm7024_vm10, %v2276_v35, %v2277_v8  ;;  %6301 = vmatprep.subr.bf16.mxu1 %v6708_v42  ;;  %v4173_v14 = vrot.slane %v8006_v30, %v6980_v27  ;;  %v4180_v16 = vrot.slane %v8006_v30, %v6985_v33  ;;  %v6712_v25 = vld [vmem:[%s8611_s2 + $0xf0] sm:$0xff]  }
 0x121   : > { %v5654_v62 = vcombine.low %v2316_v32, %v2317_v31  ;;  %v2318_v1 = vmul.bf16 %v6748_v56, %v2278_v23  ;;  %v4266_v51 = vshrl.u32 %v4159_v28, 16  ;;  %v2281_v45 = vsel %vm7024_vm10, %v2279_v12, %v8212_v48 }
 0x122   : > { %6418 = vmatmul.mubr.bf16.gmra.mrb[12].mxu0 %v5787_v26  ;;  %v4269_v9 = vshll.u32 %v4159_v28, 16  ;;  %v4274_v34 = vshrl.u32 %v4166_v36, 16  ;;  %v4277_v21 = vshll.u32 %v4166_v36, 16  ;;  %v2319_v18 = vmul.bf16 %v6749_v19, %v2281_v45 }
 0x123   : > { %v2393_v37 = vrot.slane %v5654_v62, 1  ;;  %6302 = vmatpush3.bf16.msra.mxu1 %v6708_v42  ;;  %v4268_v29 = vrot.slane %v4266_v51, 7  ;;  %v4283_v49 = vshrl.u32 %v4173_v14, 16  ;;  %v4286_v35 = vshll.u32 %v4173_v14, 16  ;;  %v8236_v42 = vld [vmem:[#allocation2 + $0x14] sm:$0xf] }
 0x124   : > { %6303 = vmatprep.subr.bf16.mxu1 %v6710_v41  ;;  %v4276_v32 = vrot.slane %v4274_v34, 7  ;;  %v4292_v20 = vshrl.u32 %v4180_v16, 16  ;;  %v4295_v54 = vshll.u32 %v4180_v16, 16  ;;  %v8234_v10 = vcombine.low %v2318_v1, %v2319_v18  ;;  %v8243_v1 = vld [vmem:[#allocation2 + $0x18] sm:$0xf] }
 0x125   : > { %v2394_v8 = vsel %vm2383_vm1, %v2391_v0, %v2393_v37  ;;  %v4271_v31 = vor.u32 %v4269_v9, %v4268_v29  ;;  %v4272_v28 = vrot.slane %v4268_v29, 4  ;;  %v4285_v23 = vrot.slane %v4283_v49, 7  ;;  %v8245_v16 = vld [vmem:[#allocation2 + $0x1c] sm:$0xf] }
 0x126   : > { %6285 = vmatprep.mubr.bf16.mxu1 %v2394_v8  ;;  %v4279_v36 = vor.u32 %v4277_v21, %v4276_v32  ;;  %v4281_v26 = vrot.slane %v4276_v32, 4  ;;  %v4294_v12 = vrot.slane %v4292_v20, 7  ;;  %v8665_v14 = vrot.slane %v8234_v10, 1 }
 0x127   : > { %6304 = vmatpush3.bf16.msra.mxu1 %v6710_v41  ;;  %v4425_v62 = vmul.bf16 %v4271_v31, %v4128_v58  ;;  %v4187_v56 = vrot.slane %v8043_v24, %v6980_v27  ;;  %v4194_v0 = vrot.slane %v8043_v24, %v6985_v33  ;;  %v4288_v45 = vor.u32 %v4286_v35, %v4285_v23  ;;  %v6714_v41 = vld [vmem:[%s8611_s2 + $0xf8] sm:$0xff]  }
 0x128   : > { %v4280_v51 = vsel %vm7216_vm15, %v4272_v28, %v4279_v36  ;;  %v4290_v9 = vrot.slane %v4285_v23, 4  ;;  %v4297_v34 = vor.u32 %v4295_v54, %v4294_v12  ;;  %6305 = vmatprep.subr.bf16.mxu1 %v6712_v25  ;;  %v2396_v21 = vsel %vm2383_vm1, %v2393_v37, %v8665_v14 }
 0x129   : > { %v4426_v19 = vmul.bf16 %v4280_v51, %v8236_v42  ;;  %v4299_v18 = vrot.slane %v4294_v12, 4  ;;  %v4301_v58 = vshrl.u32 %v4187_v56, 16  ;;  %6286 = vmatmul.mubr.bf16.gmra.mrb[8].mxu1 %v2396_v21  ;;  %v4289_v29 = vsel %vm7216_vm15, %v4281_v26, %v4288_v45  ;;  %v8267_v51 = vld [vmem:[#allocation2 + $0x20] sm:$0xf] }
 0x12a   : > { %v4298_v49 = vsel %vm7216_vm15, %v4290_v9, %v4297_v34  ;;  %v4304_v32 = vshll.u32 %v4187_v56, 16  ;;  %v4310_v35 = vshrl.u32 %v4194_v0, 16  ;;  %v4427_v20 = vmul.bf16 %v4289_v29, %v8243_v1  ;;  %v8269_v9 = vld [vmem:[#allocation2 + $0x24] sm:$0xf] }
 0x12b   : > { %v4428_v54 = vmul.bf16 %v4298_v49, %v8245_v16  ;;  %v5812_v8 = vcombine.low %v4425_v62, %v4426_v19  ;;  %v4303_v31 = vrot.slane %v4301_v58, 7  ;;  %6306 = vmatpush3.bf16.msra.mxu1 %v6712_v25  ;;  %v4313_v28 = vshll.u32 %v4194_v0, 16 }
 0x12c   : > { %v8262_v37 = vrot.slane %v4310_v35, 7  ;;  %v2118_v36 = vmul.bf16 %v7954_v22, %v7679_v47  ;;  %v2282_v26 = vrot.slane %v8212_v48, 4  ;;  %6307 = vmatprep.subr.bf16.mxu1 %v6714_v41 }
 0x12d   : > { %v5813_v23 = vcombine.low %v4427_v20, %v4428_v54  ;;  %v4503_v12 = vshrl.u32 %v5812_v8, 16  ;;  %v4505_v56 = vshll.u32 %v5812_v8, 16  ;;  %v4306_v45 = vor.u32 %v4304_v32, %v4303_v31 }
 0x12e   : > { %v4308_v62 = vrot.slane %v4303_v31, 4  ;;  %v4315_v25 = vor.u32 %v4313_v28, %v8262_v37  ;;  %v2231_v34 = vrot.slane %v2118_v36, %v6980_v27  ;;  %v2238_v0 = vrot.slane %v2118_v36, %v6985_v33 }
 0x12f   : > { %v4507_v21 = vrot.slane %v4505_v56, 1  ;;  %v4510_v47 = vshll.u32 %v5813_v23, 16  ;;  %v4514_v19 = vshrl.u32 %v5813_v23, 16  ;;  %v4307_v48 = vsel %vm7216_vm15, %v4299_v18, %v4306_v45  ;;  %6308 = vmatpush3.bf16.msra.mxu1 %v6714_v41  ;;  %v6750_v45 = vld [vmem:[#allocation2 + $0x38] sm:$0xf] }
 0x130   : > { %v4316_v58 = vsel %vm7216_vm15, %v4308_v62, %v4315_v25  ;;  %v4429_v29 = vmul.bf16 %v4307_v48, %v8267_v51  ;;  %v2283_v49 = vrot.slane %v2231_v34, 7  ;;  %v2286_v32 = vrot.slane %v2238_v0, 7  ;;  %6485 = vmatprep.subr.bf16.mxu1 %v8197_v38  ;;  %v6751_v25 = vld [vmem:[#allocation2 + $0x40] sm:$0x1] }
 0x131   : > { %v4508_v35 = vor.u32 %v4507_v21, %v4503_v12  ;;  %v4512_v20 = vrot.slane %v4510_v47, 1  ;;  %v4430_v54 = vmul.bf16 %v4316_v58, %v8269_v9  ;;  %v4201_v8 = vrot.slane %v8054_v59, %v6980_v27  ;;  %v6752_v47 = vld [vmem:[#allocation2 + $0x3c] sm:$0xf] }
 0x132   : > { %v2284_v18 = vsel %vm7024_vm10, %v2282_v26, %v2283_v49  ;;  %v2285_v41 = vrot.slane %v2283_v49, 4  ;;  %v2288_v31 = vrot.slane %v2286_v32, 4  ;;  %v4208_v28 = vrot.slane %v8054_v59, %v6985_v33 }
 0x133   : > { %v4513_v36 = vsel %vm1695_vm8, %v4508_v35, %v4512_v20  ;;  %v4516_v23 = vor.u32 %v4514_v19, %v4512_v20  ;;  %v5814_v56 = vcombine.low %v4429_v29, %v4430_v54  ;;  %v2320_v12 = vmul.bf16 %v6750_v45, %v2284_v18 }
 0x134   : > { %6437 = vmatprep.mubr.bf16.mxu0 %v4513_v36  ;;  %v2287_v62 = vsel %vm7024_vm10, %v2285_v41, %v2286_v32  ;;  %v2322_v34 = vmul.bf16 %v6751_v25, %v2288_v31  ;;  %v4317_v0 = vrot.slane %v8262_v37, 4  ;;  %v4319_v26 = vshrl.u32 %v4201_v8, 16  ;;  %v8296_v37 = vld [vmem:[%s8611_s2 + $0x208] sm:$0xff]  }
 0x135   : > { %v4518_v21 = vshll.u32 %v5814_v56, 16  ;;  %v2321_v48 = vmul.bf16 %v6752_v47, %v2287_v62  ;;  %v4322_v58 = vshll.u32 %v4201_v8, 16  ;;  %v4328_v49 = vshrl.u32 %v4208_v28, 16  ;;  %v8298_v31 = vld [vmem:[#allocation2 + $0x28] sm:$0xf] }
 0x136   : > { %v5657_v14 = vcombine.low %v2322_v34, %v2322_v34  ;;  %v4321_v35 = vrot.slane %v4319_v26, 7  ;;  %v4331_v19 = vshll.u32 %v4208_v28, 16  ;;  %v4522_v29 = vshrl.u32 %v5814_v56, 16  ;;  %8771 = vst [vmem:[#allocation10_spill] sm:$0xff] %v8298_v31 }
 0x137   : > { %v4520_v20 = vrot.slane %v4518_v21, 1  ;;  %v5656_v54 = vcombine.low %v2320_v12, %v2321_v48  ;;  %v4330_v18 = vrot.slane %v4328_v49, 7  ;;  %v4215_v32 = vrot.slane %v8100_v4, %v6980_v27  ;;  %v8303_v12 = vld [vmem:[#allocation2 + $0x2c] sm:$0xf] }
 0x138   : > { %v2399_v41 = vrot.slane %v5657_v14, 1  ;;  %v4324_v8 = vor.u32 %v4322_v58, %v4321_v35  ;;  %v4326_v36 = vrot.slane %v4321_v35, 4  ;;  %v4222_v28 = vrot.slane %v8100_v4, %v6985_v33  ;;  %8772 = vst [vmem:[#allocation11_spill] sm:$0xff] %v8303_v12  ;;  %v2570_v35 = vld [vmem:[#allocation2 + $0x8] sm:$0xf] }
 0x139   : > { %v4521_v56 = vsel %vm1695_vm8, %v4516_v23, %v4520_v20  ;;  %v2397_v45 = vrot.slane %v5656_v54, 1  ;;  %v4333_v62 = vor.u32 %v4331_v19, %v4330_v18  ;;  %v4524_v25 = vor.u32 %v4522_v29, %v4520_v20  ;;  %v2571_v19 = vld [vmem:[#allocation2 + $0xc] sm:$0xf]  ;;  %v2572_v29 = vld [vmem:[#allocation2 + $0x10] sm:$0xf] }
 0x13a   : > { %6438 = vmatmul.mubr.bf16.vlgmr.msra.gmra.mrb[0].mxu0 %v4521_v56  ;;  %v4325_v14 = vsel %vm7216_vm15, %v4317_v0, %v4324_v8  ;;  %v4335_v34 = vrot.slane %v4330_v18, 4  ;;  %v4337_v26 = vshrl.u32 %v4215_v32, 16  ;;  %v4340_v21 = vshll.u32 %v4215_v32, 16  ;;  %v8320_v18 = vld [vmem:[%s8611_s2 + $0x210] sm:$0xff]  }
 0x13b   : > { %v8773_v47 = vrot.slane %v8234_v10, 1  ;;  %6454 = vmatpush3.bf16.msra.mxu0 %v8197_v38  ;;  %v2400_v23 = vsel %vm2383_vm1, %v2397_v45, %v2399_v41  ;;  %v4334_v58 = vsel %vm7216_vm15, %v4326_v36, %v4333_v62  ;;  %v4431_v49 = vmul.bf16 %v4325_v14, %v8298_v31  ;;  %v2573_v32 = vld [vmem:[#allocation2 + $0x14] sm:$0xf] }
 0x13c   : > { %6455 = vmatprep.subr.bf16.mxu0 %v8296_v37  ;;  %v4432_v0 = vmul.bf16 %v4334_v58, %v8303_v12  ;;  %v4339_v10 = vrot.slane %v4337_v26, 7  ;;  %v4346_v20 = vshrl.u32 %v4222_v28, 16  ;;  %v4349_v54 = vshll.u32 %v4222_v28, 16 }
 0x13d   : > { %v2398_v48 = vsel %vm2383_vm1, %v8773_v47, %v2397_v45  ;;  %v2600_v41 = vrot.slane %v7769_v52, %v6980_v27  ;;  %v2607_v8 = vrot.slane %v7769_v52, %v6985_v33  ;;  %v2614_v36 = vrot.slane %v8750_v60, %v6980_v27  ;;  %v8330_v45 = vld [vmem:[#allocation2 + $0x30] sm:$0xf]  ;;  %v8333_v52 = vld [vmem:[#allocation2 + $0x34] sm:$0xf] }
 0x13e   : > { %6289 = vmatprep.mubr.bf16.mxu1 %v2398_v48  ;;  %v2621_v56 = vrot.slane %v8750_v60, %v6985_v33  ;;  %v5815_v28 = vcombine.low %v4431_v49, %v4432_v0  ;;  %v4342_v62 = vor.u32 %v4340_v21, %v4339_v10  ;;  %v4344_v14 = vrot.slane %v4339_v10, 4  ;;  %v8341_v21 = vld [vmem:[%s8611_s2 + $0x218] sm:$0xff]  }
 0x13f   : > { %6290 = vmatmul.mubr.bf16.gmra.mrb[12].mxu1 %v2400_v23  ;;  %v4348_v26 = vrot.slane %v4346_v20, 7  ;;  %6456 = vmatpush3.bf16.msra.mxu0 %v8296_v37  ;;  %v2722_v47 = vmul.bf16 %v2600_v41, %v2570_v35  ;;  %v2723_v48 = vmul.bf16 %v2607_v8, %v2571_v19  ;;  %v2724_v23 = vmul.bf16 %v2614_v36, %v2572_v29 }
 0x140   : > { %v2725_v58 = vmul.bf16 %v2621_v56, %v2573_v32  ;;  %v4526_v22 = vshll.u32 %v5815_v28, 16  ;;  %v4343_v12 = vsel %vm7216_vm15, %v4335_v34, %v4342_v62  ;;  %v4530_v60 = vshrl.u32 %v5815_v28, 16  ;;  %6457 = vmatprep.subr.bf16.mxu0 %v8320_v18  ;;  %v8359_v56 = vld [vmem:[%s8611_s2 + $0x220] sm:$0xff]  }
 0x141   : > { %v4351_v31 = vor.u32 %v4349_v54, %v4348_v26  ;;  %v4433_v49 = vmul.bf16 %v4343_v12, %v8330_v45  ;;  %v5682_v35 = vcombine.low %v2722_v47, %v2723_v48  ;;  %v4229_v29 = vrot.slane %v8106_v40, %v6980_v27  ;;  %v2574_v48 = vld [vmem:[#allocation2 + $0x18] sm:$0xf] }
 0x142   : > { %v5683_v19 = vcombine.low %v2724_v23, %v2725_v58  ;;  %v4528_v0 = vrot.slane %v4526_v22, 1  ;;  %v4236_v10 = vrot.slane %v8106_v40, %v6985_v33  ;;  %v4353_v20 = vrot.slane %v4348_v26, 4 }
 0x143   : > { %v4352_v34 = vsel %vm7216_vm15, %v4344_v14, %v4351_v31  ;;  %6309 = vmatprep.mubr.bf16.mxu1 %v5682_v35  ;;  %6458 = vmatpush3.bf16.msra.mxu0 %v8320_v18  ;;  %v4355_v32 = vshrl.u32 %v4229_v29, 16  ;;  %v4358_v12 = vshll.u32 %v4229_v29, 16  ;;  %v4243_v41 = vrot.slane %v8161_v43, %v6980_v27 }
 0x144   : > { %v4434_v54 = vmul.bf16 %v4352_v34, %v8333_v52  ;;  %v4529_v8 = vsel %vm1695_vm8, %v4524_v25, %v4528_v0  ;;  %v4532_v22 = vor.u32 %v4530_v60, %v4528_v0  ;;  %6459 = vmatprep.subr.bf16.mxu0 %v8341_v21  ;;  %v4364_v31 = vshrl.u32 %v4236_v10, 16 }
 0x145   : > { %v4367_v36 = vshll.u32 %v4236_v10, 16  ;;  %6441 = vmatprep.mubr.bf16.mxu0 %v4529_v8  ;;  %v4357_v62 = vrot.slane %v4355_v32, 7  ;;  %v4250_v14 = vrot.slane %v8161_v43, %v6985_v33  ;;  %v4373_v26 = vshrl.u32 %v4243_v41, 16  ;;  %v2575_v8 = vld [vmem:[#allocation2 + $0x1c] sm:$0xf] }
 0x146   : > { %v5816_v28 = vcombine.low %v4433_v49, %v4434_v54  ;;  %v4366_v25 = vrot.slane %v4364_v31, 7  ;;  %v4376_v47 = vshll.u32 %v4243_v41, 16  ;;  %v2628_v23 = vrot.slane %v7859_v39, %v6980_v27  ;;  %v8370_v49 = vld [vmem:[#allocation2 + $0x38] sm:$0xf] }
 0x147   : > { %6310 = vmatmul.mubr.bf16.vlgmr.msra.gmra.mrb[0].mxu1 %v5683_v19  ;;  %v2635_v58 = vrot.slane %v7859_v39, %v6985_v33  ;;  %6460 = vmatpush3.bf16.msra.mxu0 %v8341_v21  ;;  %v4360_v35 = vor.u32 %v4358_v12, %v4357_v62  ;;  %v4362_v19 = vrot.slane %v4357_v62, 4  ;;  %v4375_v10 = vrot.slane %v4373_v26, 7  ;;  %v8380_v12 = vld [vmem:[%s8611_s2 + $0x228] sm:$0xff]   ;;  %v8386_v62 = vld [vmem:[#allocation2 + $0x40] sm:$0xf] }
 0x148   : > { %6493 = vmatpush3.bf16.msra.mxu1 %v8197_v38  ;;  %v4534_v60 = vshll.u32 %v5816_v28, 16  ;;  %v4538_v29 = vshrl.u32 %v5816_v28, 16  ;;  %v8372_v38 = vld [vmem:[#allocation2 + $0x3c] sm:$0xf]  ;;  %v4369_v0 = vor.u32 %v4367_v36, %v4366_v25  ;;  %v4371_v34 = vrot.slane %v4366_v25, 4  ;;  %6461 = vmatprep.subr.bf16.mxu0 %v8359_v56 }
 0x149   : > { %6486 = vmatprep.subr.bf16.mxu1 %v8296_v37  ;;  %v4382_v54 = vshrl.u32 %v4250_v14, 16  ;;  %v4361_v39 = vsel %vm7216_vm15, %v4353_v20, %v4360_v35  ;;  %v4385_v41 = vshll.u32 %v4250_v14, 16  ;;  %v2726_v31 = vmul.bf16 %v2628_v23, %v2574_v48  ;;  %v2577_v35 = vld [vmem:[#allocation2 + $0x24] sm:$0xf] }
 0x14a   : > { %v4536_v32 = vrot.slane %v4534_v60, 1  ;;  %v4370_v36 = vsel %vm7216_vm15, %v4362_v19, %v4369_v0  ;;  %v4435_v28 = vmul.bf16 %v4361_v39, %v8370_v49  ;;  %v4378_v26 = vor.u32 %v4376_v47, %v4375_v10  ;;  %v2576_v60 = vld [vmem:[#allocation2 + $0x20] sm:$0xf] }
 0x14b   : > { %v4380_v25 = vrot.slane %v4375_v10, 4  ;;  %v4436_v14 = vmul.bf16 %v4370_v36, %v8372_v38  ;;  %v8390_v23 = vrot.slane %v4382_v54, 7  ;;  %6462 = vmatpush3.bf16.msra.mxu0 %v8359_v56  ;;  %v2727_v47 = vmul.bf16 %v2635_v58, %v2575_v8  ;;  %v8405_v10 = vld [vmem:[#allocation2 + $0x44] sm:$0xf]  ;;  %v327_v36 = vld [vmem:[%s7254_s25 + $0x10] sm:$0xf] }
 0x14c   : > { %6494 = vmatpush3.bf16.msra.mxu1 %v8296_v37  ;;  %v4537_v20 = vsel %vm1695_vm8, %v4532_v22, %v4536_v32  ;;  %v4540_v48 = vor.u32 %v4538_v29, %v4536_v32  ;;  %v4379_v37 = vsel %vm7216_vm15, %v4371_v34, %v4378_v26  ;;  %v2642_v22 = vrot.slane %v7882_v6, %v6980_v27  ;;  %v8403_v29 = vld [vmem:[%s8611_s2 + $0x230] sm:$0xff]  }
 0x14d   : > { %6487 = vmatprep.subr.bf16.mxu1 %v8320_v18  ;;  %6442 = vmatmul.mubr.bf16.gmra.mrb[4].mxu0 %v4537_v20  ;;  %v2649_v19 = vrot.slane %v7882_v6, %v6985_v33  ;;  %v5817_v0 = vcombine.low %v4435_v28, %v4436_v14  ;;  %v4387_v54 = vor.u32 %v4385_v41, %v8390_v23  ;;  %v4389_v20 = vrot.slane %v8390_v23, 4 }
 0x14e   : > { %v4437_v34 = vmul.bf16 %v4379_v37, %v8386_v62  ;;  %6463 = vmatprep.subr.bf16.mxu0 %v8380_v12  ;;  %v4257_v58 = vrot.slane %v8175_v2, %v6980_v27  ;;  %v5684_v32 = vcombine.low %v2726_v31, %v2727_v47  ;;  %v2728_v39 = vmul.bf16 %v2642_v22, %v2576_v60 }
 0x14f   : > { %v2729_v6 = vmul.bf16 %v2649_v19, %v2577_v35  ;;  %v4264_v8 = vrot.slane %v8175_v2, %v6985_v33  ;;  %v4542_v28 = vshll.u32 %v5817_v0, 16  ;;  %v4388_v41 = vsel %vm7216_vm15, %v4380_v25, %v4387_v54  ;;  %6464 = vmatpush3.bf16.msra.mxu0 %v8380_v12  ;;  %v8426_v25 = vld [vmem:[%s8611_s2 + $0x238] sm:$0xff]  }
 0x150   : > { %6495 = vmatpush3.bf16.msra.mxu1 %v8320_v18  ;;  %v4546_v26 = vshrl.u32 %v5817_v0, 16  ;;  %v4438_v31 = vmul.bf16 %v4388_v41, %v8405_v10  ;;  %6313 = vmatprep.mubr.bf16.mxu1 %v5684_v32  ;;  %v4391_v18 = vshrl.u32 %v4257_v58, 16  ;;  %v4394_v60 = vshll.u32 %v4257_v58, 16  ;;  %v2578_v0 = vld [vmem:[#allocation2 + $0x28] sm:$0xf] }
 0x151   : > { %6488 = vmatprep.subr.bf16.mxu1 %v8341_v21  ;;  %v5685_v14 = vcombine.low %v2728_v39, %v2729_v6  ;;  %6465 = vmatprep.subr.bf16.mxu0 %v8403_v29  ;;  %v4544_v35 = vrot.slane %v4542_v28, 1  ;;  %v4400_v37 = vshrl.u32 %v4264_v8, 16  ;;  %v4403_v47 = vshll.u32 %v4264_v8, 16  ;;  %v8774_v8 = vld [vmem:[#allocation4_spill] sm:$0xff]  ;;  %v8438_v28 = vld [vmem:[#allocation2 + $0x48] sm:$0xf] }
 0x152   : > { %v390_v22 = vunpack.c.l.bf16 %v327_v36  ;;  %v5818_v19 = vcombine.low %v4437_v34, %v4438_v31  ;;  %v4393_v23 = vrot.slane %v4391_v18, 7  ;;  %v2656_v54 = vrot.slane %v7942_v63, %v6980_v27  ;;  %v2579_v36 = vld [vmem:[#allocation2 + $0x2c] sm:$0xf] }
 0x153   : > { %6314 = vmatmul.mubr.bf16.gmra.mrb[4].mxu1 %v5685_v14  ;;  %v2663_v58 = vrot.slane %v7942_v63, %v6985_v33  ;;  %v4545_v32 = vsel %vm1695_vm8, %v4540_v48, %v4544_v35  ;;  %v4548_v39 = vor.u32 %v4546_v26, %v4544_v35  ;;  %v8433_v6 = vrot.slane %v4400_v37, 7  ;;  %6466 = vmatpush3.bf16.msra.mxu0 %v8403_v29  ;;  %v8441_v63 = vld [vmem:[#allocation2 + $0x4c] sm:$0xf] }
 0x154   : > { %6496 = vmatpush3.bf16.msra.mxu1 %v8341_v21  ;;  %vm395_vm14 = vcmp.ge.f32.partialorder %v390_v22, %v8774_v8  ;;  %6445 = vmatprep.mubr.bf16.mxu0 %v4545_v32  ;;  %v4550_v34 = vshll.u32 %v5818_v19, 16  ;;  %v4396_v41 = vor.u32 %v4394_v60, %v4393_v23  ;;  %v4398_v31 = vrot.slane %v4393_v23, 4  ;;  %v2580_v60 = vld [vmem:[#allocation2 + $0x30] sm:$0xf]  ;;  %v2581_v23 = vld [vmem:[#allocation2 + $0x34] sm:$0xf] }
 0x155   : > { %v4554_v14 = vshrl.u32 %v5818_v19, 16  ;;  %6489 = vmatprep.subr.bf16.mxu1 %v8359_v56  ;;  %v4405_v48 = vor.u32 %v4403_v47, %v8433_v6  ;;  %v400_v21 = vsel %vm395_vm14, 1.0, %v8702_v55  ;;  %v2730_v26 = vmul.bf16 %v2656_v54, %v2578_v0  ;;  %6467 = vmatprep.subr.bf16.mxu0 %v8426_v25 }
 0x156   : > { %v4552_v18 = vrot.slane %v4550_v34, 1  ;;  %v4397_v35 = vsel %vm7216_vm15, %v4389_v20, %v4396_v41  ;;  %v5902_v37 = vpack.c.bf16 %v400_v21, %v400_v21  ;;  %v2731_v22 = vmul.bf16 %v2663_v58, %v2579_v36 }
 0x157   : > { %v4406_v19 = vsel %vm7216_vm15, %v4398_v31, %v4405_v48  ;;  %v4439_v32 = vmul.bf16 %v4397_v35, %v8438_v28  ;;  %v2670_v47 = vrot.slane %v7959_v44, %v6980_v27  ;;  %v2677_v55 = vrot.slane %v7959_v44, %v6985_v33  ;;  %6468 = vmatpush3.bf16.msra.mxu0 %v8426_v25  ;;  %v2582_v48 = vld [vmem:[#allocation2 + $0x38] sm:$0xf] }
 0x158   : > { %6497 = vmatpush3.bf16.msra.mxu1 %v8359_v56  ;;  %v4553_v0 = vsel %vm1695_vm8, %v4548_v39, %v4552_v18  ;;  %v4440_v20 = vmul.bf16 %v4406_v19, %v8441_v63  ;;  %v4556_v54 = vor.u32 %v4554_v14, %v4552_v18  ;;  %498 = vst [vmem:[#allocation2 + $0x50] sm:$0xf] %v5902_v37  ;;  %v4407_v15 = vrot.slane %v8433_v6, 4 }
 0x159   : > { %v5686_v58 = vcombine.low %v2730_v26, %v2731_v22  ;;  %6446 = vmatmul.mubr.bf16.gmra.mrb[8].mxu0 %v4553_v0  ;;  %v2732_v8 = vmul.bf16 %v2670_v47, %v2580_v60  ;;  %v2733_v36 = vmul.bf16 %v2677_v55, %v2581_v23  ;;  %6490 = vmatprep.subr.bf16.mxu1 %v8380_v12 }
 0x15a   : > { %v4740_v44 = vmul.bf16 %v8758_v3, %v7982_v53  ;;  %v5819_v56 = vcombine.low %v4439_v32, %v4440_v20  ;;  %v4741_v39 = vmul.bf16 %v8760_v17, %v8006_v30  ;;  %v4742_v34 = vmul.bf16 %v8761_v13, %v8043_v24  ;;  %v4739_v30 = vld [vmem:[#allocation2 + $0x10] sm:$0xe] }
 0x15b   : > { %6317 = vmatprep.mubr.bf16.mxu1 %v5686_v58  ;;  %v2684_v41 = vrot.slane %v8014_v61, %v6980_v27  ;;  %v5687_v31 = vcombine.low %v2732_v8, %v2733_v36  ;;  %v2691_v53 = vrot.slane %v8014_v61, %v6985_v33  ;;  %v2583_v8 = vld [vmem:[#allocation2 + $0x3c] sm:$0xf] }
 0x15c   : > { %6498 = vmatpush3.bf16.msra.mxu1 %v8380_v12  ;;  %v4762_v6 = vrot.slane %v4740_v44, %v6980_v27  ;;  %v4769_v14 = vrot.slane %v4740_v44, %v6985_v33  ;;  %v4558_v3 = vshll.u32 %v5819_v56, 16  ;;  %v4562_v21 = vshrl.u32 %v5819_v56, 16 }
 0x15d   : > { %v4776_v17 = vrot.slane %v4741_v39, %v6980_v27  ;;  %v4783_v24 = vrot.slane %v4741_v39, %v6985_v33  ;;  %6491 = vmatprep.subr.bf16.mxu1 %v8403_v29  ;;  %6318 = vmatmul.mubr.bf16.gmra.mrb[8].mxu1 %v5687_v31  ;;  %v4790_v26 = vrot.slane %v4742_v34, %v6980_v27 }
 0x15e   : > { %v4868_v13 = vrot.slane %v4762_v6, 7  ;;  %v4870_v12 = vrot.slane %v4769_v14, 7  ;;  %v4797_v18 = vrot.slane %v4742_v34, %v6985_v33  ;;  %v4560_v35 = vrot.slane %v4558_v3, 1 }
 0x15f   : > { %v4873_v37 = vrot.slane %v4776_v17, 7  ;;  %v4876_v22 = vrot.slane %v4783_v24, 7  ;;  %v2734_v61 = vmul.bf16 %v2684_v41, %v2582_v48  ;;  %v8479_v60 = vld [vmem:[#allocation2 + $0x50] sm:$0x1]  ;;  %v4879_v47 = vrot.slane %v4790_v26, 7 }
 0x160   : > { %v4869_v23 = vrot.slane %v4868_v13, 4  ;;  %v4872_v19 = vrot.slane %v4870_v12, 4  ;;  %v4932_v32 = vmul.bf16 %v4868_v13, %v4739_v30  ;;  %6499 = vmatpush3.bf16.msra.mxu1 %v8403_v29  ;;  %v4561_v55 = vsel %vm1695_vm8, %v4556_v54, %v4560_v35  ;;  %v2584_v48 = vld [vmem:[#allocation2 + $0x40] sm:$0xf]  ;;  %v2585_v17 = vld [vmem:[#allocation2 + $0x44] sm:$0xf] }
 0x161   : > { %v4441_v0 = vmul.bf16 %v4407_v15, %v8479_v60  ;;  %v4564_v20 = vor.u32 %v4562_v21, %v4560_v35  ;;  %v4875_v58 = vrot.slane %v4873_v37, 4  ;;  %6492 = vmatprep.subr.bf16.mxu1 %v8426_v25  ;;  %6449 = vmatprep.mubr.bf16.mxu0 %v4561_v55  ;;  %v4878_v56 = vrot.slane %v4876_v22, 4 }
 0x162   : > { %v4871_v36 = vsel %vm7024_vm10, %v4869_v23, %v4870_v12  ;;  %v4874_v44 = vsel %vm7024_vm10, %v4872_v19, %v4873_v37  ;;  %v4881_v39 = vrot.slane %v4879_v47, 4  ;;  %v4882_v6 = vrot.slane %v4797_v18, 7 }
 0x163   : > { %v5820_v34 = vcombine.low %v4441_v0, %v4441_v0  ;;  %v4877_v29 = vsel %vm7024_vm10, %v4875_v58, %v4876_v22  ;;  %v4933_v54 = vmul.bf16 %v4871_v36, %v8236_v42  ;;  %v4934_v15 = vmul.bf16 %v4874_v44, %v8243_v1 }
 0x164   : > { %v4935_v41 = vmul.bf16 %v4877_v29, %v8245_v16  ;;  %v4880_v31 = vsel %vm7024_vm10, %v4878_v56, %v4879_v47  ;;  %v2735_v14 = vmul.bf16 %v2691_v53, %v2583_v8  ;;  %6500 = vmatpush3.bf16.msra.mxu1 %v8426_v25  ;;  %v2698_v42 = vrot.slane %v8028_v46, %v6980_v27  ;;  %v8775_v29 = vld [vmem:[#allocation10_spill] sm:$0xff] }
 0x165   : > { %v4566_v3 = vshll.u32 %v5820_v34, 16  ;;  %v5845_v21 = vcombine.low %v4932_v32, %v4933_v54  ;;  %v4936_v30 = vmul.bf16 %v4880_v31, %v8267_v51  ;;  %v4883_v1 = vsel %vm7024_vm10, %v4881_v39, %v4882_v6 }
 0x166   : > { %v5846_v24 = vcombine.low %v4934_v15, %v4935_v41  ;;  %v5688_v16 = vcombine.low %v2734_v61, %v2735_v14  ;;  %v2705_v13 = vrot.slane %v8028_v46, %v6985_v33  ;;  %v4937_v25 = vmul.bf16 %v4883_v1, %v8269_v9 }
 0x167   : > { %v4568_v53 = vrot.slane %v4566_v3, 1  ;;  %v5009_v12 = vrot.slane %v5845_v21, 1  ;;  %v2736_v26 = vmul.bf16 %v2698_v42, %v2584_v48  ;;  %v4743_v35 = vmul.bf16 %v8766_v11, %v8054_v59  ;;  %v8776_v48 = vld [vmem:[#allocation11_spill] sm:$0xff] }
 0x168   : > { %v5010_v18 = vrot.slane %v5846_v24, 1  ;;  %6321 = vmatprep.mubr.bf16.mxu1 %v5688_v16  ;;  %v2737_v51 = vmul.bf16 %v2705_v13, %v2585_v17  ;;  %v4884_v37 = vrot.slane %v4882_v6, 4  ;;  %v5847_v23 = vcombine.low %v4936_v30, %v4937_v25  ;;  %v8777_v25 = vld [vmem:[#allocation34_spill] sm:$0xff] }
 0x169   : > { %v4569_v22 = vsel %vm1695_vm8, %v4564_v20, %v4568_v53  ;;  %v4744_v61 = vmul.bf16 %v7767_v57, %v8100_v4  ;;  %v4745_v46 = vmul.bf16 %v7842_v7, %v8106_v40  ;;  %v4804_v32 = vrot.slane %v4743_v35, %v6980_v27 }
 0x16a   : > { %6450 = vmatmul.mubr.bf16.gmra.mrb[12].mxu0 %v4569_v22  ;;  %v5011_v9 = vsel %vm2383_vm1, %v5009_v12, %v5010_v18  ;;  %v5689_v19 = vcombine.low %v2736_v26, %v2737_v51  ;;  %v4811_v47 = vrot.slane %v4743_v35, %v6985_v33  ;;  %v5012_v59 = vrot.slane %v5847_v23, 1 }
 0x16b   : > { %6469 = vmatprep.mubr.bf16.mxu0 %v5011_v9  ;;  %v4818_v11 = vrot.slane %v4744_v61, %v6980_v27  ;;  %v4825_v55 = vrot.slane %v4744_v61, %v6985_v33  ;;  %v4832_v0 = vrot.slane %v4745_v46, %v6980_v27  ;;  %v4885_v57 = vrot.slane %v4804_v32, 7 }
 0x16c   : > { %6322 = vmatmul.mubr.bf16.gmra.mrb[12].mxu1 %v5689_v19  ;;  %v4888_v4 = vrot.slane %v4811_v47, 7  ;;  %v4839_v7 = vrot.slane %v4745_v46, %v6985_v33  ;;  %v4746_v40 = vmul.bf16 %v7878_v50, %v8161_v43  ;;  %v5013_v20 = vsel %vm2383_vm1, %v5010_v18, %v5012_v59 }
 0x16d   : > { %v4891_v58 = vrot.slane %v4818_v11, 7  ;;  %v4894_v8 = vrot.slane %v4825_v55, 7  ;;  %v4897_v36 = vrot.slane %v4832_v0, 7  ;;  %v4886_v44 = vsel %vm7024_vm10, %v4884_v37, %v4885_v57 }
 0x16e   : > { %v4887_v56 = vrot.slane %v4885_v57, 4  ;;  %v4890_v39 = vrot.slane %v4888_v4, 4  ;;  %v4900_v34 = vrot.slane %v4839_v7, 7  ;;  %v4938_v54 = vmul.bf16 %v4886_v44, %v8775_v29 }
 0x16f   : > { %v4893_v15 = vrot.slane %v4891_v58, 4  ;;  %v4896_v41 = vrot.slane %v4894_v8, 4  ;;  %v4899_v31 = vrot.slane %v4897_v36, 4  ;;  %v4846_v14 = vrot.slane %v4746_v40, %v6980_v27 }
 0x170   : > { %v4889_v6 = vsel %vm7024_vm10, %v4887_v56, %v4888_v4  ;;  %v4892_v50 = vsel %vm7024_vm10, %v4890_v39, %v4891_v58  ;;  %v4902_v43 = vrot.slane %v4900_v34, 4  ;;  %v4853_v16 = vrot.slane %v4746_v40, %v6985_v33 }
 0x171   : > { %v4939_v3 = vmul.bf16 %v4889_v6, %v8776_v48  ;;  %v4895_v21 = vsel %vm7024_vm10, %v4893_v15, %v4894_v8  ;;  %v4940_v30 = vmul.bf16 %v4892_v50, %v8330_v45  ;;  %v4898_v17 = vsel %vm7024_vm10, %v4896_v41, %v4897_v36 }
 0x172   : > { %6470 = vmatmul.mubr.bf16.vlgmr.msra.gmra.mrb[0].mxu0 %v5013_v20  ;;  %v4941_v42 = vmul.bf16 %v4895_v21, %v8333_v52  ;;  %v4901_v24 = vsel %vm7024_vm10, %v4899_v31, %v4900_v34  ;;  %v4942_v1 = vmul.bf16 %v4898_v17, %v8370_v49  ;;  %v4903_v12 = vrot.slane %v4846_v14, 7 }
 0x173   : > { %v5848_v13 = vcombine.low %v4938_v54, %v4939_v3  ;;  %v4943_v53 = vmul.bf16 %v4901_v24, %v8372_v38  ;;  %v4747_v45 = vmul.bf16 %v8777_v25, %v8175_v2  ;;  %v4906_v18 = vrot.slane %v4853_v16, 7 }
 0x174   : > { %v5849_v26 = vcombine.low %v4940_v30, %v4941_v42  ;;  %v4904_v52 = vsel %vm7024_vm10, %v4902_v43, %v4903_v12  ;;  %v4905_v37 = vrot.slane %v4903_v12, 4 }
 0x175   : > { %v5014_v51 = vrot.slane %v5848_v13, 1  ;;  %v5850_v35 = vcombine.low %v4942_v1, %v4943_v53  ;;  %v4944_v49 = vmul.bf16 %v4904_v52, %v8386_v62  ;;  %v4860_v23 = vrot.slane %v4747_v45, %v6980_v27 }
 0x176   : > { %v5016_v22 = vrot.slane %v5849_v26, 1  ;;  %v4867_v61 = vrot.slane %v4747_v45, %v6985_v33  ;;  %v4907_v2 = vsel %vm7024_vm10, %v4905_v37, %v4906_v18  ;;  %v4908_v9 = vrot.slane %v4906_v18, 4 }
 0x177   : > { %v5015_v38 = vsel %vm2383_vm1, %v5012_v59, %v5014_v51  ;;  %v5018_v46 = vrot.slane %v5850_v35, 1  ;;  %v4945_v32 = vmul.bf16 %v4907_v2, %v8405_v10  ;;  %v4909_v47 = vrot.slane %v4860_v23, 7 }
 0x178   : > { %6473 = vmatprep.mubr.bf16.mxu0 %v5015_v38  ;;  %v5017_v19 = vsel %vm2383_vm1, %v5014_v51, %v5016_v22  ;;  %v4912_v11 = vrot.slane %v4867_v61, 7 }
 0x179   : > { %v5019_v62 = vsel %vm2383_vm1, %v5016_v22, %v5018_v46  ;;  %v5851_v27 = vcombine.low %v4944_v49, %v4945_v32  ;;  %v4910_v33 = vsel %vm7024_vm10, %v4908_v9, %v4909_v47  ;;  %v4911_v59 = vrot.slane %v4909_v47, 4 }
 0x17a   : > { %6474 = vmatmul.mubr.bf16.gmra.mrb[4].mxu0 %v5017_v19  ;;  %6477 = vmatprep.mubr.bf16.mxu1 %v5019_v62  ;;  %v4914_v55 = vrot.slane %v4912_v11, 4  ;;  %v4946_v0 = vmul.bf16 %v4910_v33, %v8438_v28 }
 0x17b   : > { %v5020_v57 = vrot.slane %v5851_v27, 1  ;;  %v4913_v4 = vsel %vm7024_vm10, %v4911_v59, %v4912_v11 }
 0x17c   : > { %v4948_v10 = vmul.bf16 %v4914_v55, %v8479_v60  ;;  %v4947_v7 = vmul.bf16 %v4913_v4, %v8441_v63 }
 0x17d   : > { %v5021_v40 = vsel %vm2383_vm1, %v5018_v46, %v5020_v57 }
 0x17e   : > { %v5853_v20 = vcombine.low %v4948_v10, %v4948_v10  ;;  %6478 = vmatmul.mubr.bf16.vlgmr.msra.gmra.mrb[16].mxu1 %v5021_v40  ;;  %v5852_v58 = vcombine.low %v4946_v0, %v4947_v7 }
 0x180   : > { %v5024_v8 = vrot.slane %v5853_v20, 1  ;;  %v5022_v36 = vrot.slane %v5852_v58, 1 }
 0x182   : > { %v5023_v44 = vsel %vm2383_vm1, %v5020_v57, %v5022_v36  ;;  %v5025_v28 = vsel %vm2383_vm1, %v5022_v36, %v5024_v8 }
 0x183   : > { %6481 = vmatprep.mubr.bf16.mxu1 %v5023_v44 }
 0x186   : > { %6482 = vmatmul.mubr.bf16.gmra.mrb[20].mxu1 %v5025_v28 }
 0x21a   : > { %v6311_v56 = vpop.f32.mrb[0].mxu1 }
 0x21b   : > { %v2885_v5 = vpop.f32.mrb[1].mxu1 }
 0x21c   : > { %v6312_v39 = vpop.f32.mrb[2].mxu1 }
 0x21d   : > { %v2888_v34 = vpop.f32.mrb[3].mxu1 }
 0x226   : > { %v6315_v60 = vpop.f32.mrb[4].mxu1 }
 0x227   : > { %v2901_v29 = vpop.f32.mrb[5].mxu1 }
 0x228   : > { %v6316_v63 = vpop.f32.mrb[6].mxu1 }
 0x229   : > { %v2904_v54 = vpop.f32.mrb[7].mxu1 }
 0x22c   : > { %v6447_v15 = vpop.f32.mrb[8].mxu0 }
 0x22d   : > { %v4692_v41 = vpop.f32.mrb[9].mxu0 }
 0x22e   : > { %v6448_v31 = vpop.f32.mrb[10].mxu0 }
 0x22f   : > { %v4695_v6 = vpop.f32.mrb[11].mxu0 }
 0x230   : > { %v6319_v50 = vpop.f32.mrb[8].mxu1 }
 0x231   : > { %v6509_v43 = vadd.f32 %v6447_v15, %v6319_v50  ;;  %v2917_v14 = vpop.f32.mrb[9].mxu1 }
 0x232   : > { %v6511_v48 = vadd.f32 %v4692_v41, %v2917_v14  ;;  %v6320_v3 = vpop.f32.mrb[10].mxu1 }
 0x233   : > { %v8565_v21 = vadd.f32 %v6448_v31, %v6320_v3  ;;  %v2920_v30 = vpop.f32.mrb[11].mxu1 }
 0x234   : > { %v8567_v17 = vadd.f32 %v4695_v6, %v2920_v30 }
 0x23d   : > { %v6451_v42 = vpop.f32.mrb[12].mxu0 }
 0x23e   : > { %v4708_v24 = vpop.f32.mrb[13].mxu0 }
 0x23f   : > { %v6452_v1 = vpop.f32.mrb[14].mxu0  ;;  %v6323_v16 = vpop.f32.mrb[12].mxu1 }
 0x240   : > { %v4711_v13 = vpop.f32.mrb[15].mxu0  ;;  %v8570_v53 = vadd.f32 %v6451_v42, %v6323_v16  ;;  %v2933_v12 = vpop.f32.mrb[13].mxu1 }
 0x241   : > { %v8572_v25 = vadd.f32 %v4708_v24, %v2933_v12  ;;  %v6324_v45 = vpop.f32.mrb[14].mxu1 }
 0x242   : > { %v8575_v26 = vadd.f32 %v6452_v1, %v6324_v45  ;;  %v2936_v18 = vpop.f32.mrb[15].mxu1 }
 0x243   : > { %v8577_v51 = vadd.f32 %v4711_v13, %v2936_v18 }
 0x245   : > { %v6471_v35 = vpop.f32.mrb[0].mxu0 }
 0x246   : > { %v6501_v52 = vadd.f32 %v6471_v35, %v6311_v56  ;;  %v5116_v37 = vpop.f32.mrb[1].mxu0 }
 0x247   : > { %v6502_v22 = vadd.f32 %v5116_v37, %v2885_v5  ;;  %v6472_v49 = vpop.f32.mrb[2].mxu0 }
 0x248   : > { %v6503_v23 = vadd.f32 %v6472_v49, %v6312_v39  ;;  %v5119_v61 = vpop.f32.mrb[3].mxu0  ;;  %v5280_v47 = vmul.f32 %v6501_v52, %v6501_v52 }
 0x249   : > { %v6504_v38 = vadd.f32 %v5119_v61, %v2888_v34  ;;  %v5275_v2 = vmul.f32 %v6502_v22, %v6502_v22 }
 0x24a   : > { %v5997_v46 = vpack.c.bf16 %v6503_v23, %v6501_v52  ;;  %v5283_v55 = vmul.f32 %v6503_v23, %v6503_v23 }
 0x24b   : > { %v5992_v9 = vpack.c.bf16 %v6504_v38, %v6502_v22  ;;  %v5276_v19 = vadd.f32 %v6504_v38, %v6502_v22  ;;  %v5277_v32 = vmul.f32 %v6504_v38, %v6504_v38 }
 0x24c   : > { %6046 = vst [vmem:[%s8582_s13 + $0x8] sm:$0xff] %v5997_v46  }
 0x24d   : > { %5993 = vst [vmem:[%s8582_s13] sm:$0xff] %v5992_v9   ;;  %v5278_v11 = vadd.f32 %v5277_v32, %v5275_v2  ;;  %v5279_v62 = vadd.f32 %v6501_v52, %v5276_v19  ;;  %v6475_v27 = vpop.f32.mrb[4].mxu0 }
 0x24e   : > { %v6505_v33 = vadd.f32 %v6475_v27, %v6315_v60  ;;  %v5132_v59 = vpop.f32.mrb[5].mxu0 }
 0x24f   : > { %v5281_v0 = vadd.f32 %v5280_v47, %v5278_v11  ;;  %v6506_v57 = vadd.f32 %v5132_v59, %v2901_v29  ;;  %v5282_v4 = vadd.f32 %v6503_v23, %v5279_v62  ;;  %v6476_v10 = vpop.f32.mrb[6].mxu0 }
 0x250   : > { %v6507_v7 = vadd.f32 %v6476_v10, %v6316_v63  ;;  %v5135_v40 = vpop.f32.mrb[7].mxu0  ;;  %v5292_v50 = vmul.f32 %v6505_v33, %v6505_v33 }
 0x251   : > { %v5284_v20 = vadd.f32 %v5283_v55, %v5281_v0  ;;  %v5285_v58 = vadd.f32 %v6506_v57, %v5282_v4  ;;  %v5286_v8 = vmul.f32 %v6506_v57, %v6506_v57  ;;  %v6508_v36 = vadd.f32 %v5135_v40, %v2904_v54  ;;  %v6479_v28 = vpop.f32.mrb[16].mxu1 }
 0x252   : > { %v6007_v44 = vpack.c.bf16 %v6507_v7, %v6505_v33  ;;  %v6510_v5 = vadd.f32 %v6509_v43, %v6479_v28  ;;  %v5148_v60 = vpop.f32.mrb[17].mxu1  ;;  %v5295_v30 = vmul.f32 %v6507_v7, %v6507_v7 }
 0x253   : > { %v5287_v56 = vadd.f32 %v5286_v8, %v5284_v20  ;;  %v6002_v39 = vpack.c.bf16 %v6508_v36, %v6506_v57  ;;  %v5288_v34 = vadd.f32 %v6508_v36, %v5285_v58  ;;  %v5289_v15 = vmul.f32 %v6508_v36, %v6508_v36  ;;  %v6480_v41 = vpop.f32.mrb[18].mxu1 }
 0x254   : > { %6048 = vst [vmem:[%s8582_s13 + $0x18] sm:$0xff] %v6007_v44   ;;  %v6512_v29 = vadd.f32 %v6511_v48, %v5148_v60  ;;  %v6514_v31 = vadd.f32 %v8565_v21, %v6480_v41  ;;  %v5151_v6 = vpop.f32.mrb[19].mxu1  ;;  %v5304_v23 = vmul.f32 %v6510_v5, %v6510_v5 }
 0x255   : > { %6047 = vst [vmem:[%s8582_s13 + $0x10] sm:$0xff] %v6002_v39   ;;  %v5291_v63 = vadd.f32 %v6505_v33, %v5288_v34  ;;  %v5290_v54 = vadd.f32 %v5289_v15, %v5287_v56  ;;  %v6516_v14 = vadd.f32 %v8567_v17, %v5151_v6 }
 0x256   : > { %v6017_v3 = vpack.c.bf16 %v6514_v31, %v6510_v5  ;;  %v5298_v16 = vmul.f32 %v6512_v29, %v6512_v29 }
 0x257   : > { %v5294_v43 = vadd.f32 %v6507_v7, %v5291_v63  ;;  %v5293_v42 = vadd.f32 %v5292_v50, %v5290_v54  ;;  %v6012_v24 = vpack.c.bf16 %v6516_v14, %v6512_v29  ;;  %v5301_v35 = vmul.f32 %v6516_v14, %v6516_v14 }
 0x258   : > { %6050 = vst [vmem:[%s8582_s13 + $0x28] sm:$0xff] %v6017_v3  }
 0x259   : > { %v5297_v1 = vadd.f32 %v6512_v29, %v5294_v43  ;;  %v5296_v48 = vadd.f32 %v5295_v30, %v5293_v42  ;;  %6049 = vst [vmem:[%s8582_s13 + $0x20] sm:$0xff] %v6012_v24   ;;  %v6483_v13 = vpop.f32.mrb[20].mxu1 }
 0x25a   : > { %v6518_v21 = vadd.f32 %v8570_v53, %v6483_v13  ;;  %v5164_v45 = vpop.f32.mrb[21].mxu1  ;;  %v5307_v53 = vmul.f32 %v6514_v31, %v6514_v31 }
 0x25b   : > { %v5300_v12 = vadd.f32 %v6516_v14, %v5297_v1  ;;  %v5299_v18 = vadd.f32 %v5298_v16, %v5296_v48  ;;  %v6520_v17 = vadd.f32 %v8572_v25, %v5164_v45  ;;  %v6484_v52 = vpop.f32.mrb[22].mxu1 }
 0x25c   : > { %v6522_v22 = vadd.f32 %v8575_v26, %v6484_v52  ;;  %v5167_v49 = vpop.f32.mrb[23].mxu1  ;;  %v5316_v33 = vmul.f32 %v6518_v21, %v6518_v21 }
 0x25d   : > { %v5303_v37 = vadd.f32 %v6510_v5, %v5300_v12  ;;  %v5302_v61 = vadd.f32 %v5301_v35, %v5299_v18  ;;  %v6524_v38 = vadd.f32 %v8577_v51, %v5167_v49  ;;  %v5310_v25 = vmul.f32 %v6520_v17, %v6520_v17 }
 0x25e   : > { %v6027_v2 = vpack.c.bf16 %v6522_v22, %v6518_v21  ;;  %v5319_v55 = vmul.f32 %v6522_v22, %v6522_v22 }
 0x25f   : > { %v5306_v46 = vadd.f32 %v6514_v31, %v5303_v37  ;;  %v5305_v9 = vadd.f32 %v5304_v23, %v5302_v61  ;;  %v6022_v19 = vpack.c.bf16 %v6524_v38, %v6520_v17  ;;  %v5313_v26 = vmul.f32 %v6524_v38, %v6524_v38 }
 0x260   : > { %6052 = vst [vmem:[%s8582_s13 + $0x38] sm:$0xff] %v6027_v2  }
 0x261   : > { %v5309_v32 = vadd.f32 %v6520_v17, %v5306_v46  ;;  %v5308_v47 = vadd.f32 %v5307_v53, %v5305_v9  ;;  %6051 = vst [vmem:[%s8582_s13 + $0x30] sm:$0xff] %v6022_v19  }
 0x263   : > { %v5312_v11 = vadd.f32 %v6524_v38, %v5309_v32  ;;  %v5311_v62 = vadd.f32 %v5310_v25, %v5308_v47 }
 0x265   : > { %v5315_v27 = vadd.f32 %v6518_v21, %v5312_v11  ;;  %v5314_v51 = vadd.f32 %v5313_v26, %v5311_v62 }
 0x267   : > { %v5318_v59 = vadd.f32 %v6522_v22, %v5315_v27  ;;  %v5317_v0 = vadd.f32 %v5316_v33, %v5314_v51 }
 0x269   : > { %5321 = vst [vmem:[%s301_s16] sm:$0xff] %v5318_v59  ;;  %v5320_v57 = vadd.f32 %v5319_v55, %v5317_v0 }
 0x26b   : > { %5322 = vst [vmem:[%s305_s19] sm:$0xff] %v5320_v57 }
 0x26c PF: > { %s18_s23 = sadd.s32 1, %s6759_s23  }
 0x26d   : > { %p15_p7 = scmp.ge.s32.totalorder %s18_s23, 6  }
 0x26f   :  { %17 = sbr.rel (!%p15_p7) target bundleno = 2 (0x2), region = 101 }

</bundles_post_ra>
